<compile_context>
chip_gen: v6e
topology: v6e:2x2x1
jax: 0.10.0
libtpu: 0.0.40
codegen_flags: <defaults>
</compile_context>

<pallas_src>
import functools

import jax
import jax.numpy as jnp
from jax.experimental import pallas as pl
from jax.experimental.pallas import tpu as pltpu

LN_EPS = 1e-5                      # torch.nn.LayerNorm default
_VMEM_LIMIT = 48 * 1024 * 1024     # > 32 MiB scoped default, headroom on v7x (64 MiB)


# ----------------------------------------------------------------------------
# Kernels
# ----------------------------------------------------------------------------
def _layernorm_f32(x, gamma, beta, eps):
    mu = jnp.mean(x, axis=-1, keepdims=True)
    var = jnp.mean(jnp.square(x - mu), axis=-1, keepdims=True)
    return (x - mu) * jax.lax.rsqrt(var + eps) * gamma + beta


def _attn_block_kernel(x_ref, g1_ref, bt1_ref, wqkv_ref, wproj_ref, bproj_ref,
                       o_ref, *, num_heads, scale, eps):
    """One batch element per grid step: o = x + Attn(LN1(x))."""
    x = x_ref[0].astype(jnp.float32)                       # (N, D)
    xn = _layernorm_f32(x, g1_ref[...], bt1_ref[...], eps)

    # qkv projection (qkv_bias=False): bf16 operands, f32 accumulation.
    qkv = jnp.dot(xn.astype(wqkv_ref.dtype), wqkv_ref[...],
                  preferred_element_type=jnp.float32)      # (N, 3D)
    D = x.shape[-1]
    d = D // num_heads

    # Per-head attention; the 3D axis is laid out as (qkv, h, d), matching
    # rearrange('b n (qkv h d) -> qkv b h n d').
    ctx_heads = []
    for h in range(num_heads):
        qh = qkv[:, h * d:(h + 1) * d]                     # (N, d)
        kh = qkv[:, D + h * d:D + (h + 1) * d]
        vh = qkv[:, 2 * D + h * d:2 * D + (h + 1) * d]
        dots = jax.lax.dot_general(
            qh, kh, (((1,), (1,)), ((), ())),
            preferred_element_type=jnp.float32) * scale    # (N, N)
        dots = dots - jnp.max(dots, axis=-1, keepdims=True)
        e = jnp.exp(dots)
        attn = e / jnp.sum(e, axis=-1, keepdims=True)
        ctx_heads.append(jnp.dot(attn, vh, preferred_element_type=jnp.float32))
    ctx = jnp.concatenate(ctx_heads, axis=-1)              # 'b h n d -> b n (h d)'

    proj = jnp.dot(ctx.astype(wproj_ref.dtype), wproj_ref[...],
                   preferred_element_type=jnp.float32) + bproj_ref[...]
    o_ref[0] = (x + proj).astype(o_ref.dtype)              # residual


def _mlp_block_kernel(x_ref, g2_ref, bt2_ref, w1_ref, b1_ref, w2_ref, b2_ref,
                      o_ref, *, eps):
    """One (TM, D) row tile per grid step: o = x + Mlp(LN2(x))."""
    x = x_ref[...].astype(jnp.float32)                     # (TM, D)
    xn = _layernorm_f32(x, g2_ref[...], bt2_ref[...], eps)
    h = jnp.dot(xn.astype(w1_ref.dtype), w1_ref[...],
                preferred_element_type=jnp.float32) + b1_ref[...]
    h = jax.nn.gelu(h, approximate=False)                  # exact erf == torch.nn.GELU()
    y = jnp.dot(h.astype(w2_ref.dtype), w2_ref[...],
                preferred_element_type=jnp.float32) + b2_ref[...]
    o_ref[...] = (x + y).astype(o_ref.dtype)               # residual


# ----------------------------------------------------------------------------
# pallas_call builders
# ----------------------------------------------------------------------------
def _resident_spec(shape, w_mode):
    """BlockSpec for a weight/bias that never changes across the grid."""
    index_map = lambda *_: (0,) * len(shape)
    if w_mode is not None:
        return pl.BlockSpec(shape, index_map, pipeline_mode=w_mode)
    return pl.BlockSpec(shape, index_map)


def _build_attn_call(B, N, D, num_heads, out_dtype, w_mode):
    kern = functools.partial(
        _attn_block_kernel,
        num_heads=num_heads,
        scale=float((D // num_heads) ** -0.5),
        eps=LN_EPS)
    return pl.pallas_call(
        kern,
        out_shape=jax.ShapeDtypeStruct((B, N, D), out_dtype),
        grid_spec=pltpu.PrefetchScalarGridSpec(
            num_scalar_prefetch=0,
            grid=(B,),
            in_specs=[
                pl.BlockSpec((1, N, D), lambda b: (b, 0, 0)),   # x (per-batch tile)
                _resident_spec((1, D), w_mode),                 # norm1 gamma
                _resident_spec((1, D), w_mode),                 # norm1 beta
                _resident_spec((D, 3 * D), w_mode),             # qkv weight (no bias)
                _resident_spec((D, D), w_mode),                 # proj weight
                _resident_spec((1, D), w_mode),                 # proj bias
            ],
            out_specs=pl.BlockSpec((1, N, D), lambda b: (b, 0, 0)),
        ),
        compiler_params=pltpu.CompilerParams(
            dimension_semantics=("parallel",),
            vmem_limit_bytes=_VMEM_LIMIT),
    )


def _build_mlp_call(M, D, Dh, TM, out_dtype, w_mode):
    kern = functools.partial(_mlp_block_kernel, eps=LN_EPS)
    return pl.pallas_call(
        kern,
        out_shape=jax.ShapeDtypeStruct((M, D), out_dtype),
        grid_spec=pltpu.PrefetchScalarGridSpec(
            num_scalar_prefetch=0,
            grid=(M // TM,),
            in_specs=[
                pl.BlockSpec((TM, D), lambda i: (i, 0)),        # x row tile
                _resident_spec((1, D), w_mode),                 # norm2 gamma
                _resident_spec((1, D), w_mode),                 # norm2 beta
                _resident_spec((D, Dh), w_mode),                # fc1 weight
                _resident_spec((1, Dh), w_mode),                # fc1 bias
                _resident_spec((Dh, D), w_mode),                # fc2 weight
                _resident_spec((1, D), w_mode),                 # fc2 bias
            ],
            out_specs=pl.BlockSpec((TM, D), lambda i: (i, 0)),
        ),
        compiler_params=pltpu.CompilerParams(
            dimension_semantics=("parallel",),
            vmem_limit_bytes=_VMEM_LIMIT),
    )


def _run_with_single_buffered_weights(build_fn, *args):
    """Prefer single-buffering resident weights (halves their VMEM footprint);
    fall back to default double-buffering if this Pallas build rejects it."""
    try:
        return build_fn(pl.Buffered(buffer_count=1))(*args)
    except Exception:
        return build_fn(None)(*args)


def _pick_tm(M, target=512):
    tm = min(target, M)
    while tm > 8 and M % tm:
        tm -= 8
    return max(tm, 8)


# ----------------------------------------------------------------------------
# Block wrapper
# ----------------------------------------------------------------------------
def vit_block_pallas(x, p, *, num_heads, tm=None):
    """x: (B, N, D) f32; p: dict of Block parameters (weights pre-transposed)."""
    B, N, D = x.shape
    Dh = p["w1"].shape[1]
    assert D % num_heads == 0
    # Lane-dense feature dims (multiples of 128) keep stores unmasked.
    # TODO(synk): pad D / Dh up to multiples of 128 here if a caller passes
    # ragged feature dims; this demo uses 128 / 512 directly.

    f32 = jnp.float32
    g1 = p["g1"].reshape(1, D).astype(f32)
    bt1 = p["bt1"].reshape(1, D).astype(f32)
    bproj = p["bproj"].reshape(1, D).astype(f32)
    g2 = p["g2"].reshape(1, D).astype(f32)
    bt2 = p["bt2"].reshape(1, D).astype(f32)
    b1 = p["b1"].reshape(1, Dh).astype(f32)
    b2 = p["b2"].reshape(1, D).astype(f32)

    # ---- attention sub-block: h1 = x + Attn(LN1(x)) ----
    h1 = _run_with_single_buffered_weights(
        lambda mode: _build_attn_call(B, N, D, num_heads, x.dtype, mode),
        x, g1, bt1, p["wqkv"], p["wproj"], bproj)

    # ---- MLP sub-block: out = h1 + Mlp(LN2(h1)), tiled over M = B*N rows ----
    M = B * N
    TM = tm if tm is not None else _pick_tm(M)
    assert M % TM == 0 and TM % 8 == 0
    out2 = _run_with_single_buffered_weights(
        lambda mode: _build_mlp_call(M, D, Dh, TM, x.dtype, mode),
        h1.reshape(M, D), g2, bt2, p["w1"], b1, p["w2"], b2)
    return out2.reshape(B, N, D)


# ----------------------------------------------------------------------------
# Plain-JAX reference (same mixed precision as the kernels)
# ----------------------------------------------------------------------------
def _ref_block(x, p, num_heads):
    f32 = jnp.float32
    B, N, D = x.shape
    d = D // num_heads
    scale = d ** -0.5

    def ln(z, g, b):
        z = z.astype(f32)
        mu = jnp.mean(z, -1, keepdims=True)
        var = jnp.mean(jnp.square(z - mu), -1, keepdims=True)
        return (z - mu) * jax.lax.rsqrt(var + LN_EPS) * g + b

    xn = ln(x, p["g1"], p["bt1"])
    qkv = jnp.einsum("bnd,de->bne", xn.astype(p["wqkv"].dtype), p["wqkv"],
                     preferred_element_type=f32)
    q = qkv[..., :D].reshape(B, N, num_heads, d).transpose(0, 2, 1, 3)
    k = qkv[..., D:2 * D].reshape(B, N, num_heads, d).transpose(0, 2, 1, 3)
    v = qkv[..., 2 * D:].reshape(B, N, num_heads, d).transpose(0, 2, 1, 3)
    dots = jnp.einsum("bhid,bhjd->bhij", q, k, preferred_element_type=f32) * scale
    dots = dots - jnp.max(dots, -1, keepdims=True)
    e = jnp.exp(dots)
    attn = e / jnp.sum(e, -1, keepdims=True)
    ctx = jnp.einsum("bhij,bhjd->bhid", attn, v, preferred_element_type=f32)
    ctx = ctx.transpose(0, 2, 1, 3).reshape(B, N, D)
    proj = jnp.einsum("bnd,de->bne", ctx.astype(p["wproj"].dtype), p["wproj"],
                      preferred_element_type=f32) + p["bproj"]
    h1 = x.astype(f32) + proj

    xn2 = ln(h1, p["g2"], p["bt2"])
    h = jnp.einsum("bnd,dh->bnh", xn2.astype(p["w1"].dtype), p["w1"],
                   preferred_element_type=f32) + p["b1"]
    h = jax.nn.gelu(h, approximate=False)
    y = jnp.einsum("bnh,hd->bnd", h.astype(p["w2"].dtype), p["w2"],
                   preferred_element_type=f32) + p["b2"]
    return h1 + y


# ----------------------------------------------------------------------------
if __name__ == "__main__":
    # Small ViT-like Block: batch=2, seq=128 tokens, dim=128, 4 heads, mlp 4x.
    B, N = 2, 128
    dim = 128
    num_heads = 4
    mlp_hidden = 4 * dim  # 512

    key = jax.random.PRNGKey(0)
    ks = jax.random.split(key, 12)
    f32, bf16 = jnp.float32, jnp.bfloat16

    x = jax.random.normal(ks[0], (B, N, dim), f32)
    p = {
        "g1": 1.0 + jax.random.normal(ks[1], (dim,), f32) * 0.02,
        "bt1": jax.random.normal(ks[2], (dim,), f32) * 0.02,
        "wqkv": (jax.random.normal(ks[3], (dim, 3 * dim), f32) * 0.02).astype(bf16),
        "wproj": (jax.random.normal(ks[4], (dim, dim), f32) * 0.02).astype(bf16),
        "bproj": jax.random.normal(ks[5], (dim,), f32) * 0.02,
        "g2": 1.0 + jax.random.normal(ks[6], (dim,), f32) * 0.02,
        "bt2": jax.random.normal(ks[7], (dim,), f32) * 0.02,
        "w1": (jax.random.normal(ks[8], (dim, mlp_hidden), f32) * 0.02).astype(bf16),
        "b1": jax.random.normal(ks[9], (mlp_hidden,), f32) * 0.02,
        "w2": (jax.random.normal(ks[10], (mlp_hidden, dim), f32) * 0.02).astype(bf16),
        "b2": jax.random.normal(ks[11], (dim,), f32) * 0.02,
    }

    out = vit_block_pallas(x, p, num_heads=num_heads, tm=128)  # MLP grid = (2,)
    jax.block_until_ready(out)

    ref = _ref_block(x, p, num_heads)
    assert out.shape == (B, N, dim)
    max_err = float(jnp.max(jnp.abs(out - ref)))
    assert jnp.allclose(out, ref, atol=2e-2, rtol=2e-2), f"max abs err {max_err}"

    print("KERNEL_OK")
</pallas_src>

<mosaic_0001>
module attributes {stable_mosaic.version = 11 : i64} {
  func.func @_attn_block_kernel(%arg0: i32, %arg1: memref<1x128x128xf32, #tpu.memory_space<vmem>>, %arg2: memref<1x128xf32, #tpu.memory_space<vmem>>, %arg3: memref<1x128xf32, #tpu.memory_space<vmem>>, %arg4: memref<128x384xbf16, #tpu.memory_space<vmem>>, %arg5: memref<128x128xbf16, #tpu.memory_space<vmem>>, %arg6: memref<1x128xf32, #tpu.memory_space<vmem>>, %arg7: memref<1x128x128xf32, #tpu.memory_space<vmem>>) attributes {dimension_semantics = [#tpu.dimension_semantics<parallel>], iteration_bounds = array<i64: 2>, scalar_prefetch = 0 : i64, scratch_operands = 0 : i64, tpu.core_type = #tpu.core_type<tc>, window_params = [{transform_indices = @transform_0, window_bounds = array<i64: 1, 128, 128>}, {pipeline_mode = #tpu.pipeline_mode<synchronous>, transform_indices = @transform_1, window_bounds = array<i64: 1, 128>}, {pipeline_mode = #tpu.pipeline_mode<synchronous>, transform_indices = @transform_2, window_bounds = array<i64: 1, 128>}, {pipeline_mode = #tpu.pipeline_mode<synchronous>, transform_indices = @transform_3, window_bounds = array<i64: 128, 384>}, {pipeline_mode = #tpu.pipeline_mode<synchronous>, transform_indices = @transform_4, window_bounds = array<i64: 128, 128>}, {pipeline_mode = #tpu.pipeline_mode<synchronous>, transform_indices = @transform_5, window_bounds = array<i64: 1, 128>}, {transform_indices = @transform_6, window_bounds = array<i64: 1, 128, 128>}]} {
    %c0 = arith.constant 0 : index
    %c0_0 = arith.constant 0 : index
    %c0_1 = arith.constant 0 : index
    %0 = vector.load %arg1[%c0, %c0_0, %c0_1] : memref<1x128x128xf32, #tpu.memory_space<vmem>>, vector<1x128x128xf32>
    %1 = vector.shape_cast %0 : vector<1x128x128xf32> to vector<128x128xf32>
    %c0_2 = arith.constant 0 : index
    %c0_3 = arith.constant 0 : index
    %2 = vector.load %arg2[%c0_2, %c0_3] : memref<1x128xf32, #tpu.memory_space<vmem>>, vector<1x128xf32>
    %c0_4 = arith.constant 0 : index
    %c0_5 = arith.constant 0 : index
    %3 = vector.load %arg3[%c0_4, %c0_5] : memref<1x128xf32, #tpu.memory_space<vmem>>, vector<1x128xf32>
    %cst = arith.constant dense<0.000000e+00> : vector<128xf32>
    %4 = vector.multi_reduction <add>, %1, %cst [1] : vector<128x128xf32> to vector<128xf32>
    %5 = vector.shape_cast %4 : vector<128xf32> to vector<128x1xf32>
    %cst_6 = arith.constant 1.280000e+02 : f32
    %6 = vector.broadcast %cst_6 : f32 to vector<128x1xf32>
    %7 = arith.divf %5, %6 : vector<128x1xf32>
    %8 = vector.broadcast %7 : vector<128x1xf32> to vector<128x128xf32>
    %9 = arith.subf %1, %8 : vector<128x128xf32>
    %10 = arith.mulf %9, %9 : vector<128x128xf32>
    %cst_7 = arith.constant dense<0.000000e+00> : vector<128xf32>
    %11 = vector.multi_reduction <add>, %10, %cst_7 [1] : vector<128x128xf32> to vector<128xf32>
    %12 = vector.shape_cast %11 : vector<128xf32> to vector<128x1xf32>
    %cst_8 = arith.constant 1.280000e+02 : f32
    %13 = vector.broadcast %cst_8 : f32 to vector<128x1xf32>
    %14 = arith.divf %12, %13 : vector<128x1xf32>
    %15 = vector.broadcast %7 : vector<128x1xf32> to vector<128x128xf32>
    %16 = arith.subf %1, %15 : vector<128x128xf32>
    %cst_9 = arith.constant 9.99999974E-6 : f32
    %17 = vector.broadcast %cst_9 : f32 to vector<128x1xf32>
    %18 = arith.addf %14, %17 : vector<128x1xf32>
    %19 = math.rsqrt %18 : vector<128x1xf32>
    %20 = vector.broadcast %19 : vector<128x1xf32> to vector<128x128xf32>
    %21 = arith.mulf %16, %20 : vector<128x128xf32>
    %22 = vector.broadcast %2 : vector<1x128xf32> to vector<128x128xf32>
    %23 = arith.mulf %21, %22 : vector<128x128xf32>
    %24 = vector.broadcast %3 : vector<1x128xf32> to vector<128x128xf32>
    %25 = arith.addf %23, %24 : vector<128x128xf32>
    %26 = arith.truncf %25 : vector<128x128xf32> to vector<128x128xbf16>
    %c0_10 = arith.constant 0 : index
    %c0_11 = arith.constant 0 : index
    %27 = vector.load %arg4[%c0_10, %c0_11] : memref<128x384xbf16, #tpu.memory_space<vmem>>, vector<128x384xbf16>
    %cst_12 = arith.constant dense<0.000000e+00> : vector<128x384xf32>
    %28 = tpu.matmul %26, %27, %cst_12 {dimension_numbers = #tpu.dot_dimension_numbers<[1], [0], [0], [1], [0, 0, 1, 1], [], []>} : vector<128x128xbf16>, vector<128x384xbf16>, vector<128x384xf32> -> vector<128x384xf32>
    %29 = vector.extract_strided_slice %28 {offsets = [0, 0], sizes = [128, 32], strides = [1, 1]} : vector<128x384xf32> to vector<128x32xf32>
    %30 = vector.extract_strided_slice %28 {offsets = [0, 128], sizes = [128, 32], strides = [1, 1]} : vector<128x384xf32> to vector<128x32xf32>
    %31 = vector.extract_strided_slice %28 {offsets = [0, 256], sizes = [128, 32], strides = [1, 1]} : vector<128x384xf32> to vector<128x32xf32>
    %cst_13 = arith.constant dense<0.000000e+00> : vector<128x128xf32>
    %32 = tpu.matmul %29, %30, %cst_13 {dimension_numbers = #tpu.dot_dimension_numbers<[1], [1], [0], [0], [0, 0, 1, 0], [], []>} : vector<128x32xf32>, vector<128x32xf32>, vector<128x128xf32> -> vector<128x128xf32>
    %cst_14 = arith.constant 0.176776692 : f32
    %33 = vector.broadcast %cst_14 : f32 to vector<128x128xf32>
    %34 = arith.mulf %32, %33 : vector<128x128xf32>
    %cst_15 = arith.constant dense<0xFF800000> : vector<128xf32>
    %35 = vector.multi_reduction <maximumf>, %34, %cst_15 [1] : vector<128x128xf32> to vector<128xf32>
    %36 = vector.shape_cast %35 : vector<128xf32> to vector<128x1xf32>
    %37 = vector.broadcast %36 : vector<128x1xf32> to vector<128x128xf32>
    %38 = arith.subf %34, %37 : vector<128x128xf32>
    %39 = math.exp %38 : vector<128x128xf32>
    %cst_16 = arith.constant dense<0.000000e+00> : vector<128xf32>
    %40 = vector.multi_reduction <add>, %39, %cst_16 [1] : vector<128x128xf32> to vector<128xf32>
    %41 = vector.shape_cast %40 : vector<128xf32> to vector<128x1xf32>
    %42 = vector.broadcast %41 : vector<128x1xf32> to vector<128x128xf32>
    %43 = arith.divf %39, %42 : vector<128x128xf32>
    %cst_17 = arith.constant dense<0.000000e+00> : vector<128x32xf32>
    %44 = tpu.matmul %43, %31, %cst_17 {dimension_numbers = #tpu.dot_dimension_numbers<[1], [0], [0], [1], [0, 0, 1, 1], [], []>} : vector<128x128xf32>, vector<128x32xf32>, vector<128x32xf32> -> vector<128x32xf32>
    %45 = vector.extract_strided_slice %28 {offsets = [0, 32], sizes = [128, 32], strides = [1, 1]} : vector<128x384xf32> to vector<128x32xf32>
    %46 = vector.extract_strided_slice %28 {offsets = [0, 160], sizes = [128, 32], strides = [1, 1]} : vector<128x384xf32> to vector<128x32xf32>
    %47 = vector.extract_strided_slice %28 {offsets = [0, 288], sizes = [128, 32], strides = [1, 1]} : vector<128x384xf32> to vector<128x32xf32>
    %cst_18 = arith.constant dense<0.000000e+00> : vector<128x128xf32>
    %48 = tpu.matmul %45, %46, %cst_18 {dimension_numbers = #tpu.dot_dimension_numbers<[1], [1], [0], [0], [0, 0, 1, 0], [], []>} : vector<128x32xf32>, vector<128x32xf32>, vector<128x128xf32> -> vector<128x128xf32>
    %cst_19 = arith.constant 0.176776692 : f32
    %49 = vector.broadcast %cst_19 : f32 to vector<128x128xf32>
    %50 = arith.mulf %48, %49 : vector<128x128xf32>
    %cst_20 = arith.constant dense<0xFF800000> : vector<128xf32>
    %51 = vector.multi_reduction <maximumf>, %50, %cst_20 [1] : vector<128x128xf32> to vector<128xf32>
    %52 = vector.shape_cast %51 : vector<128xf32> to vector<128x1xf32>
    %53 = vector.broadcast %52 : vector<128x1xf32> to vector<128x128xf32>
    %54 = arith.subf %50, %53 : vector<128x128xf32>
    %55 = math.exp %54 : vector<128x128xf32>
    %cst_21 = arith.constant dense<0.000000e+00> : vector<128xf32>
    %56 = vector.multi_reduction <add>, %55, %cst_21 [1] : vector<128x128xf32> to vector<128xf32>
    %57 = vector.shape_cast %56 : vector<128xf32> to vector<128x1xf32>
    %58 = vector.broadcast %57 : vector<128x1xf32> to vector<128x128xf32>
    %59 = arith.divf %55, %58 : vector<128x128xf32>
    %cst_22 = arith.constant dense<0.000000e+00> : vector<128x32xf32>
    %60 = tpu.matmul %59, %47, %cst_22 {dimension_numbers = #tpu.dot_dimension_numbers<[1], [0], [0], [1], [0, 0, 1, 1], [], []>} : vector<128x128xf32>, vector<128x32xf32>, vector<128x32xf32> -> vector<128x32xf32>
    %61 = vector.extract_strided_slice %28 {offsets = [0, 64], sizes = [128, 32], strides = [1, 1]} : vector<128x384xf32> to vector<128x32xf32>
    %62 = vector.extract_strided_slice %28 {offsets = [0, 192], sizes = [128, 32], strides = [1, 1]} : vector<128x384xf32> to vector<128x32xf32>
    %63 = vector.extract_strided_slice %28 {offsets = [0, 320], sizes = [128, 32], strides = [1, 1]} : vector<128x384xf32> to vector<128x32xf32>
    %cst_23 = arith.constant dense<0.000000e+00> : vector<128x128xf32>
    %64 = tpu.matmul %61, %62, %cst_23 {dimension_numbers = #tpu.dot_dimension_numbers<[1], [1], [0], [0], [0, 0, 1, 0], [], []>} : vector<128x32xf32>, vector<128x32xf32>, vector<128x128xf32> -> vector<128x128xf32>
    %cst_24 = arith.constant 0.176776692 : f32
    %65 = vector.broadcast %cst_24 : f32 to vector<128x128xf32>
    %66 = arith.mulf %64, %65 : vector<128x128xf32>
    %cst_25 = arith.constant dense<0xFF800000> : vector<128xf32>
    %67 = vector.multi_reduction <maximumf>, %66, %cst_25 [1] : vector<128x128xf32> to vector<128xf32>
    %68 = vector.shape_cast %67 : vector<128xf32> to vector<128x1xf32>
    %69 = vector.broadcast %68 : vector<128x1xf32> to vector<128x128xf32>
    %70 = arith.subf %66, %69 : vector<128x128xf32>
    %71 = math.exp %70 : vector<128x128xf32>
    %cst_26 = arith.constant dense<0.000000e+00> : vector<128xf32>
    %72 = vector.multi_reduction <add>, %71, %cst_26 [1] : vector<128x128xf32> to vector<128xf32>
    %73 = vector.shape_cast %72 : vector<128xf32> to vector<128x1xf32>
    %74 = vector.broadcast %73 : vector<128x1xf32> to vector<128x128xf32>
    %75 = arith.divf %71, %74 : vector<128x128xf32>
    %cst_27 = arith.constant dense<0.000000e+00> : vector<128x32xf32>
    %76 = tpu.matmul %75, %63, %cst_27 {dimension_numbers = #tpu.dot_dimension_numbers<[1], [0], [0], [1], [0, 0, 1, 1], [], []>} : vector<128x128xf32>, vector<128x32xf32>, vector<128x32xf32> -> vector<128x32xf32>
    %77 = vector.extract_strided_slice %28 {offsets = [0, 96], sizes = [128, 32], strides = [1, 1]} : vector<128x384xf32> to vector<128x32xf32>
    %78 = vector.extract_strided_slice %28 {offsets = [0, 224], sizes = [128, 32], strides = [1, 1]} : vector<128x384xf32> to vector<128x32xf32>
    %79 = vector.extract_strided_slice %28 {offsets = [0, 352], sizes = [128, 32], strides = [1, 1]} : vector<128x384xf32> to vector<128x32xf32>
    %cst_28 = arith.constant dense<0.000000e+00> : vector<128x128xf32>
    %80 = tpu.matmul %77, %78, %cst_28 {dimension_numbers = #tpu.dot_dimension_numbers<[1], [1], [0], [0], [0, 0, 1, 0], [], []>} : vector<128x32xf32>, vector<128x32xf32>, vector<128x128xf32> -> vector<128x128xf32>
    %cst_29 = arith.constant 0.176776692 : f32
    %81 = vector.broadcast %cst_29 : f32 to vector<128x128xf32>
    %82 = arith.mulf %80, %81 : vector<128x128xf32>
    %cst_30 = arith.constant dense<0xFF800000> : vector<128xf32>
    %83 = vector.multi_reduction <maximumf>, %82, %cst_30 [1] : vector<128x128xf32> to vector<128xf32>
    %84 = vector.shape_cast %83 : vector<128xf32> to vector<128x1xf32>
    %85 = vector.broadcast %84 : vector<128x1xf32> to vector<128x128xf32>
    %86 = arith.subf %82, %85 : vector<128x128xf32>
    %87 = math.exp %86 : vector<128x128xf32>
    %cst_31 = arith.constant dense<0.000000e+00> : vector<128xf32>
    %88 = vector.multi_reduction <add>, %87, %cst_31 [1] : vector<128x128xf32> to vector<128xf32>
    %89 = vector.shape_cast %88 : vector<128xf32> to vector<128x1xf32>
    %90 = vector.broadcast %89 : vector<128x1xf32> to vector<128x128xf32>
    %91 = arith.divf %87, %90 : vector<128x128xf32>
    %cst_32 = arith.constant dense<0.000000e+00> : vector<128x32xf32>
    %92 = tpu.matmul %91, %79, %cst_32 {dimension_numbers = #tpu.dot_dimension_numbers<[1], [0], [0], [1], [0, 0, 1, 1], [], []>} : vector<128x128xf32>, vector<128x32xf32>, vector<128x32xf32> -> vector<128x32xf32>
    %93 = tpu.concatenate %44, %60, %76, %92 in 1 : vector<128x32xf32>, vector<128x32xf32>, vector<128x32xf32>, vector<128x32xf32> -> vector<128x128xf32>
    %94 = arith.truncf %93 : vector<128x128xf32> to vector<128x128xbf16>
    %c0_33 = arith.constant 0 : index
    %c0_34 = arith.constant 0 : index
    %95 = vector.load %arg5[%c0_33, %c0_34] : memref<128x128xbf16, #tpu.memory_space<vmem>>, vector<128x128xbf16>
    %cst_35 = arith.constant dense<0.000000e+00> : vector<128x128xf32>
    %96 = tpu.matmul %94, %95, %cst_35 {dimension_numbers = #tpu.dot_dimension_numbers<[1], [0], [0], [1], [0, 0, 1, 1], [], []>} : vector<128x128xbf16>, vector<128x128xbf16>, vector<128x128xf32> -> vector<128x128xf32>
    %c0_36 = arith.constant 0 : index
    %c0_37 = arith.constant 0 : index
    %97 = vector.load %arg6[%c0_36, %c0_37] : memref<1x128xf32, #tpu.memory_space<vmem>>, vector<1x128xf32>
    %98 = vector.broadcast %97 : vector<1x128xf32> to vector<128x128xf32>
    %99 = arith.addf %96, %98 : vector<128x128xf32>
    %100 = arith.addf %1, %99 : vector<128x128xf32>
    %c0_38 = arith.constant 0 : index
    %c0_39 = arith.constant 0 : index
    %c0_40 = arith.constant 0 : index
    %101 = vector.load %arg7[%c0_38, %c0_39, %c0_40] : memref<1x128x128xf32, #tpu.memory_space<vmem>>, vector<1x128x128xf32>
    %102 = vector.shape_cast %101 : vector<1x128x128xf32> to vector<128x128xf32>
    %103 = vector.shape_cast %100 : vector<128x128xf32> to vector<1x128x128xf32>
    tpu.vector_store %arg7[%c0_38, %c0_39, %c0_40], %103 {strides = array<i32>} : memref<1x128x128xf32, #tpu.memory_space<vmem>>, vector<1x128x128xf32>,
    return
  }
  func.func @transform_0(%arg0: i32) -> (i32, i32, i32) {
    %c0_i32 = arith.constant 0 : i32
    %c0_i32_0 = arith.constant 0 : i32
    %c0_i32_1 = arith.constant 0 : i32
    return %arg0, %c0_i32, %c0_i32_0 : i32, i32, i32
  }
  func.func @transform_1(%arg0: i32) -> (i32, i32) {
    %c0_i32 = arith.constant 0 : i32
    %c0_i32_0 = arith.constant 0 : i32
    %c0_i32_1 = arith.constant 0 : i32
    return %c0_i32, %c0_i32_0 : i32, i32
  }
  func.func @transform_2(%arg0: i32) -> (i32, i32) {
    %c0_i32 = arith.constant 0 : i32
    %c0_i32_0 = arith.constant 0 : i32
    %c0_i32_1 = arith.constant 0 : i32
    return %c0_i32, %c0_i32_0 : i32, i32
  }
  func.func @transform_3(%arg0: i32) -> (i32, i32) {
    %c0_i32 = arith.constant 0 : i32
    %c0_i32_0 = arith.constant 0 : i32
    %c0_i32_1 = arith.constant 0 : i32
    return %c0_i32, %c0_i32_0 : i32, i32
  }
  func.func @transform_4(%arg0: i32) -> (i32, i32) {
    %c0_i32 = arith.constant 0 : i32
    %c0_i32_0 = arith.constant 0 : i32
    %c0_i32_1 = arith.constant 0 : i32
    return %c0_i32, %c0_i32_0 : i32, i32
  }
  func.func @transform_5(%arg0: i32) -> (i32, i32) {
    %c0_i32 = arith.constant 0 : i32
    %c0_i32_0 = arith.constant 0 : i32
    %c0_i32_1 = arith.constant 0 : i32
    return %c0_i32, %c0_i32_0 : i32, i32
  }
  func.func @transform_6(%arg0: i32) -> (i32, i32, i32) {
    %c0_i32 = arith.constant 0 : i32
    %c0_i32_0 = arith.constant 0 : i32
    %c0_i32_1 = arith.constant 0 : i32
    return %arg0, %c0_i32, %c0_i32_0 : i32, i32, i32
  }
}

module attributes {stable_mosaic.version = 11 : i64} {
  func.func @_attn_block_kernel(%arg0: i32, %arg1: memref<1x128x128xf32, #tpu.memory_space<vmem>>, %arg2: memref<1x128xf32, #tpu.memory_space<vmem>>, %arg3: memref<1x128xf32, #tpu.memory_space<vmem>>, %arg4: memref<128x384xbf16, #tpu.memory_space<vmem>>, %arg5: memref<128x128xbf16, #tpu.memory_space<vmem>>, %arg6: memref<1x128xf32, #tpu.memory_space<vmem>>, %arg7: memref<1x128x128xf32, #tpu.memory_space<vmem>>) attributes {dimension_semantics = [#tpu.dimension_semantics<parallel>], iteration_bounds = array<i64: 2>, scalar_prefetch = 0 : i64, scratch_operands = 0 : i64, tpu.core_type = #tpu.core_type<tc>, window_params = [{transform_indices = @transform_0, window_bounds = array<i64: 1, 128, 128>}, {pipeline_mode = #tpu.pipeline_mode<synchronous>, transform_indices = @transform_1, window_bounds = array<i64: 1, 128>}, {pipeline_mode = #tpu.pipeline_mode<synchronous>, transform_indices = @transform_2, window_bounds = array<i64: 1, 128>}, {pipeline_mode = #tpu.pipeline_mode<synchronous>, transform_indices = @transform_3, window_bounds = array<i64: 128, 384>}, {pipeline_mode = #tpu.pipeline_mode<synchronous>, transform_indices = @transform_4, window_bounds = array<i64: 128, 128>}, {pipeline_mode = #tpu.pipeline_mode<synchronous>, transform_indices = @transform_5, window_bounds = array<i64: 1, 128>}, {transform_indices = @transform_6, window_bounds = array<i64: 1, 128, 128>}]} {
    %c0 = arith.constant 0 : index
    %c0_0 = arith.constant 0 : index
    %c0_1 = arith.constant 0 : index
    %0 = vector.load %arg1[%c0, %c0_0, %c0_1] : memref<1x128x128xf32, #tpu.memory_space<vmem>>, vector<1x128x128xf32>
    %1 = vector.shape_cast %0 : vector<1x128x128xf32> to vector<128x128xf32>
    %c0_2 = arith.constant 0 : index
    %c0_3 = arith.constant 0 : index
    %2 = vector.load %arg2[%c0_2, %c0_3] : memref<1x128xf32, #tpu.memory_space<vmem>>, vector<1x128xf32>
    %c0_4 = arith.constant 0 : index
    %c0_5 = arith.constant 0 : index
    %3 = vector.load %arg3[%c0_4, %c0_5] : memref<1x128xf32, #tpu.memory_space<vmem>>, vector<1x128xf32>
    %cst = arith.constant dense<0.000000e+00> : vector<128xf32>
    %4 = vector.multi_reduction <add>, %1, %cst [1] : vector<128x128xf32> to vector<128xf32>
    %5 = vector.shape_cast %4 : vector<128xf32> to vector<128x1xf32>
    %cst_6 = arith.constant 1.280000e+02 : f32
    %6 = vector.broadcast %cst_6 : f32 to vector<128x1xf32>
    %7 = arith.divf %5, %6 : vector<128x1xf32>
    %8 = vector.broadcast %7 : vector<128x1xf32> to vector<128x128xf32>
    %9 = arith.subf %1, %8 : vector<128x128xf32>
    %10 = arith.mulf %9, %9 : vector<128x128xf32>
    %cst_7 = arith.constant dense<0.000000e+00> : vector<128xf32>
    %11 = vector.multi_reduction <add>, %10, %cst_7 [1] : vector<128x128xf32> to vector<128xf32>
    %12 = vector.shape_cast %11 : vector<128xf32> to vector<128x1xf32>
    %cst_8 = arith.constant 1.280000e+02 : f32
    %13 = vector.broadcast %cst_8 : f32 to vector<128x1xf32>
    %14 = arith.divf %12, %13 : vector<128x1xf32>
    %15 = vector.broadcast %7 : vector<128x1xf32> to vector<128x128xf32>
    %16 = arith.subf %1, %15 : vector<128x128xf32>
    %cst_9 = arith.constant 9.99999974E-6 : f32
    %17 = vector.broadcast %cst_9 : f32 to vector<128x1xf32>
    %18 = arith.addf %14, %17 : vector<128x1xf32>
    %19 = math.rsqrt %18 : vector<128x1xf32>
    %20 = vector.broadcast %19 : vector<128x1xf32> to vector<128x128xf32>
    %21 = arith.mulf %16, %20 : vector<128x128xf32>
    %22 = vector.broadcast %2 : vector<1x128xf32> to vector<128x128xf32>
    %23 = arith.mulf %21, %22 : vector<128x128xf32>
    %24 = vector.broadcast %3 : vector<1x128xf32> to vector<128x128xf32>
    %25 = arith.addf %23, %24 : vector<128x128xf32>
    %26 = arith.truncf %25 : vector<128x128xf32> to vector<128x128xbf16>
    %c0_10 = arith.constant 0 : index
    %c0_11 = arith.constant 0 : index
    %27 = vector.load %arg4[%c0_10, %c0_11] : memref<128x384xbf16, #tpu.memory_space<vmem>>, vector<128x384xbf16>
    %cst_12 = arith.constant dense<0.000000e+00> : vector<128x384xf32>
    %28 = tpu.matmul %26, %27, %cst_12 {dimension_numbers = #tpu.dot_dimension_numbers<[1], [0], [0], [1], [0, 0, 1, 1], [], []>} : vector<128x128xbf16>, vector<128x384xbf16>, vector<128x384xf32> -> vector<128x384xf32>
    %29 = vector.extract_strided_slice %28 {offsets = [0, 0], sizes = [128, 32], strides = [1, 1]} : vector<128x384xf32> to vector<128x32xf32>
    %30 = vector.extract_strided_slice %28 {offsets = [0, 128], sizes = [128, 32], strides = [1, 1]} : vector<128x384xf32> to vector<128x32xf32>
    %31 = vector.extract_strided_slice %28 {offsets = [0, 256], sizes = [128, 32], strides = [1, 1]} : vector<128x384xf32> to vector<128x32xf32>
    %cst_13 = arith.constant dense<0.000000e+00> : vector<128x128xf32>
    %32 = tpu.matmul %29, %30, %cst_13 {dimension_numbers = #tpu.dot_dimension_numbers<[1], [1], [0], [0], [0, 0, 1, 0], [], []>} : vector<128x32xf32>, vector<128x32xf32>, vector<128x128xf32> -> vector<128x128xf32>
    %cst_14 = arith.constant 0.176776692 : f32
    %33 = vector.broadcast %cst_14 : f32 to vector<128x128xf32>
    %34 = arith.mulf %32, %33 : vector<128x128xf32>
    %cst_15 = arith.constant dense<0xFF800000> : vector<128xf32>
    %35 = vector.multi_reduction <maximumf>, %34, %cst_15 [1] : vector<128x128xf32> to vector<128xf32>
    %36 = vector.shape_cast %35 : vector<128xf32> to vector<128x1xf32>
    %37 = vector.broadcast %36 : vector<128x1xf32> to vector<128x128xf32>
    %38 = arith.subf %34, %37 : vector<128x128xf32>
    %39 = math.exp %38 : vector<128x128xf32>
    %cst_16 = arith.constant dense<0.000000e+00> : vector<128xf32>
    %40 = vector.multi_reduction <add>, %39, %cst_16 [1] : vector<128x128xf32> to vector<128xf32>
    %41 = vector.shape_cast %40 : vector<128xf32> to vector<128x1xf32>
    %42 = vector.broadcast %41 : vector<128x1xf32> to vector<128x128xf32>
    %43 = arith.divf %39, %42 : vector<128x128xf32>
    %cst_17 = arith.constant dense<0.000000e+00> : vector<128x32xf32>
    %44 = tpu.matmul %43, %31, %cst_17 {dimension_numbers = #tpu.dot_dimension_numbers<[1], [0], [0], [1], [0, 0, 1, 1], [], []>} : vector<128x128xf32>, vector<128x32xf32>, vector<128x32xf32> -> vector<128x32xf32>
    %45 = vector.extract_strided_slice %28 {offsets = [0, 32], sizes = [128, 32], strides = [1, 1]} : vector<128x384xf32> to vector<128x32xf32>
    %46 = vector.extract_strided_slice %28 {offsets = [0, 160], sizes = [128, 32], strides = [1, 1]} : vector<128x384xf32> to vector<128x32xf32>
    %47 = vector.extract_strided_slice %28 {offsets = [0, 288], sizes = [128, 32], strides = [1, 1]} : vector<128x384xf32> to vector<128x32xf32>
    %cst_18 = arith.constant dense<0.000000e+00> : vector<128x128xf32>
    %48 = tpu.matmul %45, %46, %cst_18 {dimension_numbers = #tpu.dot_dimension_numbers<[1], [1], [0], [0], [0, 0, 1, 0], [], []>} : vector<128x32xf32>, vector<128x32xf32>, vector<128x128xf32> -> vector<128x128xf32>
    %cst_19 = arith.constant 0.176776692 : f32
    %49 = vector.broadcast %cst_19 : f32 to vector<128x128xf32>
    %50 = arith.mulf %48, %49 : vector<128x128xf32>
    %cst_20 = arith.constant dense<0xFF800000> : vector<128xf32>
    %51 = vector.multi_reduction <maximumf>, %50, %cst_20 [1] : vector<128x128xf32> to vector<128xf32>
    %52 = vector.shape_cast %51 : vector<128xf32> to vector<128x1xf32>
    %53 = vector.broadcast %52 : vector<128x1xf32> to vector<128x128xf32>
    %54 = arith.subf %50, %53 : vector<128x128xf32>
    %55 = math.exp %54 : vector<128x128xf32>
    %cst_21 = arith.constant dense<0.000000e+00> : vector<128xf32>
    %56 = vector.multi_reduction <add>, %55, %cst_21 [1] : vector<128x128xf32> to vector<128xf32>
    %57 = vector.shape_cast %56 : vector<128xf32> to vector<128x1xf32>
    %58 = vector.broadcast %57 : vector<128x1xf32> to vector<128x128xf32>
    %59 = arith.divf %55, %58 : vector<128x128xf32>
    %cst_22 = arith.constant dense<0.000000e+00> : vector<128x32xf32>
    %60 = tpu.matmul %59, %47, %cst_22 {dimension_numbers = #tpu.dot_dimension_numbers<[1], [0], [0], [1], [0, 0, 1, 1], [], []>} : vector<128x128xf32>, vector<128x32xf32>, vector<128x32xf32> -> vector<128x32xf32>
    %61 = vector.extract_strided_slice %28 {offsets = [0, 64], sizes = [128, 32], strides = [1, 1]} : vector<128x384xf32> to vector<128x32xf32>
    %62 = vector.extract_strided_slice %28 {offsets = [0, 192], sizes = [128, 32], strides = [1, 1]} : vector<128x384xf32> to vector<128x32xf32>
    %63 = vector.extract_strided_slice %28 {offsets = [0, 320], sizes = [128, 32], strides = [1, 1]} : vector<128x384xf32> to vector<128x32xf32>
    %cst_23 = arith.constant dense<0.000000e+00> : vector<128x128xf32>
    %64 = tpu.matmul %61, %62, %cst_23 {dimension_numbers = #tpu.dot_dimension_numbers<[1], [1], [0], [0], [0, 0, 1, 0], [], []>} : vector<128x32xf32>, vector<128x32xf32>, vector<128x128xf32> -> vector<128x128xf32>
    %cst_24 = arith.constant 0.176776692 : f32
    %65 = vector.broadcast %cst_24 : f32 to vector<128x128xf32>
    %66 = arith.mulf %64, %65 : vector<128x128xf32>
    %cst_25 = arith.constant dense<0xFF800000> : vector<128xf32>
    %67 = vector.multi_reduction <maximumf>, %66, %cst_25 [1] : vector<128x128xf32> to vector<128xf32>
    %68 = vector.shape_cast %67 : vector<128xf32> to vector<128x1xf32>
    %69 = vector.broadcast %68 : vector<128x1xf32> to vector<128x128xf32>
    %70 = arith.subf %66, %69 : vector<128x128xf32>
    %71 = math.exp %70 : vector<128x128xf32>
    %cst_26 = arith.constant dense<0.000000e+00> : vector<128xf32>
    %72 = vector.multi_reduction <add>, %71, %cst_26 [1] : vector<128x128xf32> to vector<128xf32>
    %73 = vector.shape_cast %72 : vector<128xf32> to vector<128x1xf32>
    %74 = vector.broadcast %73 : vector<128x1xf32> to vector<128x128xf32>
    %75 = arith.divf %71, %74 : vector<128x128xf32>
    %cst_27 = arith.constant dense<0.000000e+00> : vector<128x32xf32>
    %76 = tpu.matmul %75, %63, %cst_27 {dimension_numbers = #tpu.dot_dimension_numbers<[1], [0], [0], [1], [0, 0, 1, 1], [], []>} : vector<128x128xf32>, vector<128x32xf32>, vector<128x32xf32> -> vector<128x32xf32>
    %77 = vector.extract_strided_slice %28 {offsets = [0, 96], sizes = [128, 32], strides = [1, 1]} : vector<128x384xf32> to vector<128x32xf32>
    %78 = vector.extract_strided_slice %28 {offsets = [0, 224], sizes = [128, 32], strides = [1, 1]} : vector<128x384xf32> to vector<128x32xf32>
    %79 = vector.extract_strided_slice %28 {offsets = [0, 352], sizes = [128, 32], strides = [1, 1]} : vector<128x384xf32> to vector<128x32xf32>
    %cst_28 = arith.constant dense<0.000000e+00> : vector<128x128xf32>
    %80 = tpu.matmul %77, %78, %cst_28 {dimension_numbers = #tpu.dot_dimension_numbers<[1], [1], [0], [0], [0, 0, 1, 0], [], []>} : vector<128x32xf32>, vector<128x32xf32>, vector<128x128xf32> -> vector<128x128xf32>
    %cst_29 = arith.constant 0.176776692 : f32
    %81 = vector.broadcast %cst_29 : f32 to vector<128x128xf32>
    %82 = arith.mulf %80, %81 : vector<128x128xf32>
    %cst_30 = arith.constant dense<0xFF800000> : vector<128xf32>
    %83 = vector.multi_reduction <maximumf>, %82, %cst_30 [1] : vector<128x128xf32> to vector<128xf32>
    %84 = vector.shape_cast %83 : vector<128xf32> to vector<128x1xf32>
    %85 = vector.broadcast %84 : vector<128x1xf32> to vector<128x128xf32>
    %86 = arith.subf %82, %85 : vector<128x128xf32>
    %87 = math.exp %86 : vector<128x128xf32>
    %cst_31 = arith.constant dense<0.000000e+00> : vector<128xf32>
    %88 = vector.multi_reduction <add>, %87, %cst_31 [1] : vector<128x128xf32> to vector<128xf32>
    %89 = vector.shape_cast %88 : vector<128xf32> to vector<128x1xf32>
    %90 = vector.broadcast %89 : vector<128x1xf32> to vector<128x128xf32>
    %91 = arith.divf %87, %90 : vector<128x128xf32>
    %cst_32 = arith.constant dense<0.000000e+00> : vector<128x32xf32>
    %92 = tpu.matmul %91, %79, %cst_32 {dimension_numbers = #tpu.dot_dimension_numbers<[1], [0], [0], [1], [0, 0, 1, 1], [], []>} : vector<128x128xf32>, vector<128x32xf32>, vector<128x32xf32> -> vector<128x32xf32>
    %93 = tpu.concatenate %44, %60, %76, %92 in 1 : vector<128x32xf32>, vector<128x32xf32>, vector<128x32xf32>, vector<128x32xf32> -> vector<128x128xf32>
    %94 = arith.truncf %93 : vector<128x128xf32> to vector<128x128xbf16>
    %c0_33 = arith.constant 0 : index
    %c0_34 = arith.constant 0 : index
    %95 = vector.load %arg5[%c0_33, %c0_34] : memref<128x128xbf16, #tpu.memory_space<vmem>>, vector<128x128xbf16>
    %cst_35 = arith.constant dense<0.000000e+00> : vector<128x128xf32>
    %96 = tpu.matmul %94, %95, %cst_35 {dimension_numbers = #tpu.dot_dimension_numbers<[1], [0], [0], [1], [0, 0, 1, 1], [], []>} : vector<128x128xbf16>, vector<128x128xbf16>, vector<128x128xf32> -> vector<128x128xf32>
    %c0_36 = arith.constant 0 : index
    %c0_37 = arith.constant 0 : index
    %97 = vector.load %arg6[%c0_36, %c0_37] : memref<1x128xf32, #tpu.memory_space<vmem>>, vector<1x128xf32>
    %98 = vector.broadcast %97 : vector<1x128xf32> to vector<128x128xf32>
    %99 = arith.addf %96, %98 : vector<128x128xf32>
    %100 = arith.addf %1, %99 : vector<128x128xf32>
    %c0_38 = arith.constant 0 : index
    %c0_39 = arith.constant 0 : index
    %c0_40 = arith.constant 0 : index
    %101 = vector.load %arg7[%c0_38, %c0_39, %c0_40] : memref<1x128x128xf32, #tpu.memory_space<vmem>>, vector<1x128x128xf32>
    %102 = vector.shape_cast %101 : vector<1x128x128xf32> to vector<128x128xf32>
    %103 = vector.shape_cast %100 : vector<128x128xf32> to vector<1x128x128xf32>
    tpu.vector_store %arg7[%c0_38, %c0_39, %c0_40], %103 {strides = array<i32>} : memref<1x128x128xf32, #tpu.memory_space<vmem>>, vector<1x128x128xf32>,
    return
  }
  func.func @transform_0(%arg0: i32) -> (i32, i32, i32) {
    %c0_i32 = arith.constant 0 : i32
    %c0_i32_0 = arith.constant 0 : i32
    %c0_i32_1 = arith.constant 0 : i32
    return %arg0, %c0_i32, %c0_i32_0 : i32, i32, i32
  }
  func.func @transform_1(%arg0: i32) -> (i32, i32) {
    %c0_i32 = arith.constant 0 : i32
    %c0_i32_0 = arith.constant 0 : i32
    %c0_i32_1 = arith.constant 0 : i32
    return %c0_i32, %c0_i32_0 : i32, i32
  }
  func.func @transform_2(%arg0: i32) -> (i32, i32) {
    %c0_i32 = arith.constant 0 : i32
    %c0_i32_0 = arith.constant 0 : i32
    %c0_i32_1 = arith.constant 0 : i32
    return %c0_i32, %c0_i32_0 : i32, i32
  }
  func.func @transform_3(%arg0: i32) -> (i32, i32) {
    %c0_i32 = arith.constant 0 : i32
    %c0_i32_0 = arith.constant 0 : i32
    %c0_i32_1 = arith.constant 0 : i32
    return %c0_i32, %c0_i32_0 : i32, i32
  }
  func.func @transform_4(%arg0: i32) -> (i32, i32) {
    %c0_i32 = arith.constant 0 : i32
    %c0_i32_0 = arith.constant 0 : i32
    %c0_i32_1 = arith.constant 0 : i32
    return %c0_i32, %c0_i32_0 : i32, i32
  }
  func.func @transform_5(%arg0: i32) -> (i32, i32) {
    %c0_i32 = arith.constant 0 : i32
    %c0_i32_0 = arith.constant 0 : i32
    %c0_i32_1 = arith.constant 0 : i32
    return %c0_i32, %c0_i32_0 : i32, i32
  }
  func.func @transform_6(%arg0: i32) -> (i32, i32, i32) {
    %c0_i32 = arith.constant 0 : i32
    %c0_i32_0 = arith.constant 0 : i32
    %c0_i32_1 = arith.constant 0 : i32
    return %arg0, %c0_i32, %c0_i32_0 : i32, i32, i32
  }
}

</mosaic_0001>

<bundles_post_ra>
// kernel: tpu_custom_call.1
= control target key start
LH: loop header
LB: loop body
LE: loop exit
PB: predicated region body
PF: predicated region fallthrough
CT: control target
= control target key end

     0   :  { %11 = vsyncpa [#allocation3], 0  ;;  %s7649_s0 = inlined_call_operand.hbm [shape: f32[2,128,128], index: 0, kind: input, shape index: {}]   ;;  %s7650_s1 = inlined_call_operand.vmem [shape: f32[1,128], index: 1, kind: input, shape index: {}]   ;;  %s7651_s2 = inlined_call_operand.vmem [shape: f32[1,128], index: 2, kind: input, shape index: {}]   ;;  %s7652_s3 = inlined_call_operand.hbm [shape: bf16[128,384], index: 3, kind: input, shape index: {}]   ;;  %s7653_s4 = inlined_call_operand.hbm [shape: bf16[128,128], index: 4, kind: input, shape index: {}]   ;;  %s7654_s5 = inlined_call_operand.vmem [shape: f32[1,128], index: 5, kind: input, shape index: {}]   ;;  %s7655_s6 = inlined_call_operand.hbm [shape: f32[2,128,128], index: 6, kind: output, shape index: {}]  }
   0x1   :  { %13 = vsyncpa [#allocation3 + $0x1], 0 }
   0x2   :  { %14 = vsyncpa [#allocation6], 0 }
   0x3   :  { %15 = vsyncpa [#allocation4], 0 }
   0x4   :  { %17 = vsyncpa [#allocation4 + $0x1], 0  ;;  %s5657_s21 = smov 0   ;;  %s5659_s22 = smov 0  }
   0x5   :  { %s5661_s23 = smov 0   ;;  %s5663_s24 = smov 0  }
   0x6 LB: > { %s5678_s25 = sadd.s32 4294967295, %s5604_s24   ;;  %s3914_s26 = sadd.s32 4294967294, %s5604_s24   ;;  %s5604_s24 = sphi %s5663_s24, %s7963_s24   ;;  %s5600_s23 = sphi %s5661_s23, %s7962_s23   ;;  %s5596_s22 = sphi %s5659_s22, %s7961_s22   ;;  %s5592_s21 = sphi %s5657_s21, %s7960_s21  }
   0x7   : > { %p43_p0 = scmp.ne.s32.totalorder %s5596_s22, %s5592_s21  ;;  %p7656_p1 = scmp.eq.s32.totalorder %s5678_s25, 0 }
   0x8   : > { %p178_p3 = scmp.eq.s32.totalorder %s3914_s26, 1  ;;  %p3915_p5 = scmp.ge.s32.totalorder %s5604_s24, 1 }
   0x9   : > { %p5687_p4 = por %p7656_p1, %p43_p0  ;;  %p185_p7 = scmp.lt.s32.totalorder %s5604_s24, 3 }
   0xa   : > { %p5692_p6 = por %p178_p3, %p43_p0  ;;  %s5606_s30 = smov [#allocation5]  }
   0xb   : > { %s7755_s27 = scalar_select %p5687_p4, 1, 0 }
   0xc   : > { %s7756_s28 = scalar_select %p5692_p6, 1, 0 }
   0xd   : > { %p5697_p8 = pnand %p3915_p5, %p185_p7  ;;  %s203_s7 = sshll.u32 %s5606_s30, 4  ;;  %s204_s7 = int_to_ptr.vmem [resolvable:$true] %s203_s7 }
   0xe   : > { %s5607_s9 = smov [#allocation7]   ;;  %s5467_s11 = scalar_lea.vmem %s204_s7, 3072 }
   0xf   : > { %s7757_s29 = scalar_select %p5697_p8, 1, 0 }
  0x10   : > { %p4925_p9 = pneg %p5697_p8  ;;  %s216_s10 = sshll.u32 %s5607_s9, 4  ;;  %s217_s10 = int_to_ptr.vmem [resolvable:$true] %s216_s10 }
  0x11   : > { %p5468_p13 = scmp.ne.s32.totalorder %s204_s7, %s5467_s11  ;;  %p5475_p5 = scmp.lt.s32.totalorder %s204_s7, %s204_s7 }
  0x12   : > { %p5706_p11 = pnand %p4925_p9, %p7656_p1  ;;  %p5476_p7 = scmp.lt.s32.totalorder %s5467_s11, %s5467_s11 }
  0x14   : > { %p5458_p12 = pneg %p5706_p11  ;;  %p5477_p10 = por %p5476_p7, %p5475_p5 }
  0x16   : > { %p5470_p0 = pnand %p5468_p13, %p5458_p12 }
  0x18   : > { %p5471_p3 = pneg %p5470_p0 }
  0x1a   : > { %p5478_p9 = pnand %p5477_p10, %p5471_p3 }
  0x1c   : > { %5481 = shalt.err (!%p5478_p9)
}
  0x1d   : > { %s5608_s12 = smov 192   ;;  %s5609_s13 = smov 12  }
  0x1e   : > { %4928 = dma.hbm_to_vmem [thread:$0]  (!%p5706_p11), %s7652_s3, 3072, %s204_s7, [#allocation6], %s5608_s12, %s5608_s12, %s5609_s13  }
  0x1f   : > { %s5493_s16 = scalar_lea.vmem %s217_s10, 1024  ;;  %p5501_p2 = scmp.lt.s32.totalorder %s217_s10, %s217_s10 }
  0x20   : > { %p5494_p1 = scmp.ne.s32.totalorder %s217_s10, %s5493_s16  ;;  %p5502_p6 = scmp.lt.s32.totalorder %s5493_s16, %s5493_s16 }
  0x22   : > { %p5496_p13 = pnand %p5494_p1, %p5458_p12  ;;  %p5503_p5 = por %p5502_p6, %p5501_p2 }
  0x24   : > { %p5497_p0 = pneg %p5496_p13 }
  0x26   : > { %p5504_p10 = pnand %p5503_p5, %p5497_p0 }
  0x28   : > { %5507 = shalt.err (!%p5504_p10)
}
  0x29   : > { %s5610_s17 = smov 64   ;;  %s5611_s18 = smov 4  }
  0x2a   : > { %4931 = dma.hbm_to_vmem [thread:$0]  (!%p5706_p11), %s7653_s4, 1024, %s217_s10, [#allocation6], %s5610_s17, %s5610_s17, %s5611_s18  }
  0x2b   : > { %s5729_s26 = sadd.s32 1, %s5604_s24   ;;  %s30_s7 = sadd.s32 1, %s5600_s23 }
  0x2c   : > { %s27_s30 = ssub.s32 %s5604_s24, %s5729_s26  ;;  %p37_p2 = scmp.ne.s32.totalorder %s5600_s23, %s5596_s22 }
  0x2d   : > { %p28_p1 = scmp.eq.s32.totalorder %s27_s30, 0  ;;  %p38_p6 = scmp.eq.s32.totalorder %s5604_s24, 0 }
  0x2e   : > { %p7759_p3 = scmp.eq.s32.totalorder %s5678_s25, 1  ;;  %p4942_p9 = scmp.lt.s32.totalorder %s5604_s24, 2 }
  0x2f   : > { %s5738_s9 = scalar_select %p28_p1, %s5600_s23, %s30_s7  }
  0x30   : > { %p39_p12 = por %p38_p6, %p37_p2  ;;  %p5742_p7 = por %p7759_p3, %p37_p2 }
  0x31   : > { %s233_s8 = sand.u32 1, %s5600_s23   ;;  %s4095_s10 = sshll.u32 %s5604_s24, 11 }
  0x32   : > { %s7760_s11 = scalar_select %p5742_p7, 1, 0 }
  0x33   : > { %s3919_s12 = sshll.u32 %s233_s8, 7  ;;  %s5752_s15 = scalar_lea.hbm %s7649_s0, %s4095_s10 }
  0x34   : > { %s237_s16 = scalar_lea.vmem [#allocation2], %s3919_s12  ;;  %p5756_p11 = pnand %p4942_p9, %p39_p12 }
  0x35   : > { %s244_s17 = sshll.u32 %s237_s16, 4  ;;  %s5760_s19 = scalar_lea.sflag [#allocation3], %s233_s8  ;;  %s5754_s17 = int_to_ptr.vmem [resolvable:$true] %s244_s17 }
  0x36   : > { %s5508_s20 = scalar_lea.hbm %s5752_s15, 2048  ;;  %p5510_p0 = pneg %p5756_p11 }
  0x37   : > { %p5509_p13 = scmp.ne.s32.totalorder %s5752_s15, %s5508_s20  ;;  %s5513_s12 = scalar_lea.hbm %s7649_s0, 4096 }
  0x38   : > { %p5514_p1 = scmp.lt.s32.totalorder %s5752_s15, %s7649_s0  ;;  %p5515_p2 = scmp.lt.s32.totalorder %s5513_s12, %s5508_s20 }
  0x39   : > { %p5511_p5 = pnand %p5510_p0, %p5509_p13 }
  0x3a   : > { %p5516_p6 = por %p5515_p2, %p5514_p1 }
  0x3b   : > { %p5512_p10 = pneg %p5511_p5 }
  0x3d   : > { %p5517_p12 = pnand %p5516_p6, %p5512_p10 }
  0x3f   : > { %5520 = shalt.err (!%p5517_p12)
}
  0x40   : > { %s5521_s8 = scalar_lea.vmem %s5754_s17, 2048  ;;  %s5612_s14 = smov [#allocation2]  }
  0x41   : > { %p5522_p3 = scmp.ne.s32.totalorder %s5754_s17, %s5521_s8  ;;  %s5526_s16 = sshll.u32 %s5612_s14, 4  ;;  %s5527_s16 = int_to_ptr.vmem [resolvable:$false] %s5526_s16 }
  0x42   : > { %s5528_s30 = scalar_lea.vmem %s5527_s16, 4096  ;;  %p5529_p5 = scmp.lt.s32.totalorder %s5754_s17, %s5527_s16 }
  0x43   : > { %p5524_p9 = pnand %p5522_p3, %p5510_p0  ;;  %p5530_p7 = scmp.lt.s32.totalorder %s5528_s30, %s5521_s8 }
  0x45   : > { %p5525_p13 = pneg %p5524_p9  ;;  %p5531_p4 = por %p5530_p7, %p5529_p5 }
  0x47   : > { %p5532_p8 = pnand %p5531_p4, %p5525_p13 }
  0x49   : > { %5535 = shalt.err (!%p5532_p8)
}
  0x4a   : > { %s5613_s20 = smov 128   ;;  %s5614_s7 = smov 8  }
  0x4b   : > { %4935 = dma.hbm_to_vmem [thread:$0]  (!%p5756_p11), %s5752_s15, 2048, %s5754_s17, %s5760_s19, %s5613_s20, %s5613_s20, %s5614_s7  }
  0x4c   : > { %p7762_p0 = scmp.ne.s32.totalorder %s7757_s29, 0 }
  0x4e   : > { %256 = sbr.rel (%p7762_p0) target bundleno = 3761 (0xeb1), region = 44 }
  0x53   : > { %s5784_s12 = sand.u32 1, %s5596_s22   ;;  %p7763_p4 = scmp.ne.s32.totalorder %s7755_s27, 0 }
  0x54   : > { %s3923_s10 = sshll.u32 %s5784_s12, 7  ;;  %s259_s13 = scalar_lea.sflag [#allocation3], %s5784_s12 }
  0x55   : > { %s5790_s8 = scalar_lea.vmem [#allocation2], %s3923_s10 }
  0x56   : > { %5579 = dma.done.wait (%p7763_p4), %s259_s13, 2048  }
  0x57   : > { %5581 = vsyncadd (%p7763_p4), %s259_s13, 4294965248  ;;  %p7764_p8 = scmp.eq.s32.totalorder %s5678_s25, 0 }
  0x59   : > { %5583 = dma.done.wait (%p7764_p8), [#allocation6], 4096   ;;  %p7765_p7 = pmov %p7764_p8 }
  0x5a   : > { %v300_v0 = vld [vmem:[%s5790_s8] sm:$0xff]  ;;  %v302_v1 = vld [vmem:[%s5790_s8 + $0x10] sm:$0xff]  ;;  %v301_v2 = vld [vmem:[%s5790_s8 + $0x8] sm:$0xff]  ;;  %vm917_vm0 = vcmask 261120   ;;  %s5616_s18 = smov 96   ;;  %s5617_s19 = smov 64  }
  0x5b   : > { %5585 = vsyncadd (%p7765_p7), [#allocation6], 4294963200  ;;  %318 = vadd.xlane.f32.xlu0 %v300_v0  ;;  %322 = vadd.xlane.f32.xlu1 %v302_v1  ;;  %v303_v3 = vld [vmem:[%s5790_s8 + $0x18] sm:$0xff]  ;;  %v304_v4 = vld [vmem:[%s5790_s8 + $0x20] sm:$0xff]  ;;  %s5618_s14 = smov 32   ;;  %vm3566_vm1 = vcmask 523264  }
  0x5c   : > { %v305_v5 = vld [vmem:[%s5790_s8 + $0x28] sm:$0xff]  ;;  %v306_v6 = vld [vmem:[%s5790_s8 + $0x30] sm:$0xff]  ;;  %v307_v7 = vld [vmem:[%s5790_s8 + $0x38] sm:$0xff]  ;;  %vm3583_vm2 = vcmask 785408   ;;  %s7552_s20 = scalar_lea.vmem [#allocation8], %s3923_s10  ;;  %s4096_s7 = sshll.u32 %s5678_s25, 11 }
  0x5d   : > { %v5809_v8 = vld [vmem:[%s5790_s8 + $0x40] sm:$0xff]  ;;  %v5812_v9 = vld [vmem:[%s5790_s8 + $0x48] sm:$0xff]  ;;  %v5815_v10 = vld [vmem:[%s5790_s8 + $0x50] sm:$0xff]  ;;  %s3822_s10 = sshll.u32 %s7552_s20, 4  ;;  %s7601_s29 = scalar_lea.hbm %s7655_s6, %s4096_s7  ;;  %s7603_s10 = int_to_ptr.vmem [resolvable:$true] %s3822_s10 }
  0x5e   : > { %v5818_v11 = vld [vmem:[%s5790_s8 + $0x58] sm:$0xff]  ;;  %v5825_v12 = vld [vmem:[%s5790_s8 + $0x60] sm:$0xff]  ;;  %v5828_v13 = vld [vmem:[%s5790_s8 + $0x68] sm:$0xff]  ;;  %s3809_s25 = scalar_lea.sflag [#allocation4], %s5784_s12  ;;  %s5536_s15 = scalar_lea.vmem %s7603_s10, 2048 }
  0x5f   : > { %320 = vadd.xlane.f32.xlu0 %v301_v2  ;;  %324 = vadd.xlane.f32.xlu1 %v303_v3  ;;  %v5833_v14 = vld [vmem:[%s5790_s8 + $0x70] sm:$0xff]  ;;  %v5836_v15 = vld [vmem:[%s5790_s8 + $0x78] sm:$0xff]  ;;  %p5537_p11 = scmp.ne.s32.totalorder %s7603_s10, %s5536_s15  ;;  %p7957_p10 = scmp.ne.s32.totalorder %s7760_s11, 0 }
  0x60   : > { %v5112_v16 = vld [vmem:[#allocation5 + $0xac] ss:$12 sps:$4 sm:$0xff]   ;;  %v5114_v17 = vld [vmem:[#allocation5 + $0xa8] ss:$12 sps:$4 sm:$0xff]   ;;  %v5117_v54 = vld [vmem:[#allocation5 + $0xb0] ss:$12 sps:$4 sm:$0xff]  }
  0x61   : > { %707 = vmatprep.subr.bf16.mxu0 %v5112_v16  ;;  %v5115_v53 = vld [vmem:[#allocation5 + $0x94] ss:$12 sps:$4 sm:$0xff]   ;;  %v5118_v55 = vld [vmem:[#allocation5 + $0x90] ss:$12 sps:$4 sm:$0xff]   ;;  %4385 = vmatprep.subr.bf16.mxu1 %v5117_v54  ;;  %p5538_p1 = pnand %p5537_p11, %p7957_p10  ;;  %s5619_s17 = smov [#allocation8]  }
  0x62   : > { %708 = vmatpush1.bf16.msra.mxu0 %v5114_v17  ;;  %4386 = vmatpush3.bf16.msra.mxu1 %v5117_v54  ;;  %v5123_v17 = vld [vmem:[#allocation5 + $0x64] ss:$12 sps:$4 sm:$0xff]  }
  0x63   : > { %326 = vadd.xlane.f32.xlu0 %v304_v4  ;;  %328 = vadd.xlane.f32.xlu1 %v305_v5  ;;  %p5539_p2 = pneg %p5538_p1 }
  0x64   : > { %709 = vmatprep.subr.bf16.mxu0 %v5115_v53 }
  0x66   : > { %710 = vmatpush1.bf16.msra.mxu0 %v5118_v55 }
  0x67   : > { %330 = vadd.xlane.f32.xlu0 %v306_v6  ;;  %332 = vadd.xlane.f32.xlu1 %v307_v7 }
  0x6b   : > { %334 = vadd.xlane.f32.xlu0 %v5809_v8  ;;  %336 = vadd.xlane.f32.xlu1 %v5812_v9 }
  0x6f   : > { %338 = vadd.xlane.f32.xlu0 %v5815_v10  ;;  %340 = vadd.xlane.f32.xlu1 %v5818_v11 }
  0x73   : > { %342 = vadd.xlane.f32.xlu0 %v5825_v12  ;;  %344 = vadd.xlane.f32.xlu1 %v5828_v13 }
  0x77   : > { %346 = vadd.xlane.f32.xlu0 %v5833_v14  ;;  %348 = vadd.xlane.f32.xlu1 %v5836_v15 }
  0xe4   : > { %v319_v18 = vpop.xlane.xlu0 %318  ;;  %v323_v19 = vpop.xlane.xlu1 %322 }
  0xe5   : > { %v351_v20 = vmul.f32 0.0078125, %v319_v18  ;;  %v353_v21 = vmul.f32 0.0078125, %v323_v19  ;;  %v5125_v18 = vld [vmem:[#allocation5 + $0x80] ss:$12 sps:$4 sm:$0xff]  }
  0xe7   : > { %v5840_v22 = vsub.f32 %v300_v0, %v351_v20  ;;  %v5842_v23 = vsub.f32 %v302_v1, %v353_v21  ;;  %v5119_v0 = vld [vmem:[#allocation5 + $0x7c] ss:$12 sps:$4 sm:$0xff]   ;;  %v5121_v1 = vld [vmem:[#allocation5 + $0x98] ss:$12 sps:$4 sm:$0xff]   ;;  %v5126_v20 = vld [vmem:[#allocation5 + $0x60] ss:$12 sps:$4 sm:$0xff]  }
  0xe8   : > { %v321_v24 = vpop.xlane.xlu0 %320  ;;  %v325_v25 = vpop.xlane.xlu1 %324  ;;  %711 = vmatprep.subr.bf16.mxu0 %v5119_v0  ;;  %4387 = vmatprep.subr.bf16.mxu1 %v5121_v1 }
  0xe9   : > { %v352_v26 = vmul.f32 0.0078125, %v321_v24  ;;  %v383_v27 = vmul.f32 %v5840_v22, %v5840_v22  ;;  %v354_v28 = vmul.f32 0.0078125, %v325_v25  ;;  %v385_v29 = vmul.f32 %v5842_v23, %v5842_v23  ;;  %4388 = vmatpush3.bf16.msra.mxu1 %v5121_v1 }
  0xea   : > { %4389 = vmatprep.subr.bf16.mxu1 %v5125_v18 }
  0xeb   : > { %399 = vadd.xlane.f32.xlu0 %v383_v27  ;;  %v5848_v30 = vsub.f32 %v301_v2, %v352_v26  ;;  %v5850_v31 = vsub.f32 %v303_v3, %v354_v28  ;;  %v5127_v28 = vld [vmem:[#allocation5 + $0x4c] ss:$12 sps:$4 sm:$0xff]  }
  0xec   : > { %v327_v32 = vpop.xlane.xlu0 %326  ;;  %v329_v33 = vpop.xlane.xlu1 %328 }
  0xed   : > { %v355_v34 = vmul.f32 0.0078125, %v327_v32  ;;  %v384_v35 = vmul.f32 %v5848_v30, %v5848_v30  ;;  %v356_v36 = vmul.f32 0.0078125, %v329_v33  ;;  %v386_v37 = vmul.f32 %v5850_v31, %v5850_v31  ;;  %4390 = vmatpush3.bf16.msra.mxu1 %v5125_v18  ;;  %v5130_v33 = vld [vmem:[#allocation5 + $0x48] ss:$12 sps:$4 sm:$0xff]  }
  0xef   : > { %403 = vadd.xlane.f32.xlu0 %v385_v29  ;;  %401 = vadd.xlane.f32.xlu1 %v384_v35  ;;  %v5856_v38 = vsub.f32 %v304_v4, %v355_v34  ;;  %v5858_v39 = vsub.f32 %v305_v5, %v356_v36  ;;  %v5122_v5 = vld [vmem:[#allocation5 + $0x78] ss:$12 sps:$4 sm:$0xff]   ;;  %v5129_v29 = vld [vmem:[#allocation5 + $0x68] ss:$12 sps:$4 sm:$0xff]   ;;  %v5133_v36 = vld [vmem:[#allocation5 + $0x50] ss:$12 sps:$4 sm:$0xff]  }
  0xf0   : > { %v331_v40 = vpop.xlane.xlu0 %330  ;;  %v333_v41 = vpop.xlane.xlu1 %332  ;;  %712 = vmatpush1.bf16.msra.mxu0 %v5122_v5  ;;  %4391 = vmatprep.subr.bf16.mxu1 %v5129_v29  ;;  %v5131_v35 = vld [vmem:[#allocation5 + $0x34] ss:$12 sps:$4 sm:$0xff]  }
  0xf1   : > { %v357_v42 = vmul.f32 0.0078125, %v331_v40  ;;  %v387_v43 = vmul.f32 %v5856_v38, %v5856_v38  ;;  %v358_v44 = vmul.f32 0.0078125, %v333_v41  ;;  %v388_v45 = vmul.f32 %v5858_v39, %v5858_v39  ;;  %713 = vmatprep.subr.bf16.mxu0 %v5123_v17  ;;  %4392 = vmatpush3.bf16.msra.mxu1 %v5129_v29  ;;  %v5137_v40 = vld [vmem:[#allocation5 + $0x38] ss:$12 sps:$4 sm:$0xff]  }
  0xf2   : > { %4393 = vmatprep.subr.bf16.mxu1 %v5133_v36  ;;  %v5138_v41 = vld [vmem:[#allocation5 + $0x18] ss:$12 sps:$4 sm:$0xff]  }
  0xf3   : > { %405 = vadd.xlane.f32.xlu1 %v386_v37  ;;  %407 = vadd.xlane.f32.xlu0 %v387_v43  ;;  %v5864_v46 = vsub.f32 %v306_v6, %v357_v42  ;;  %v5866_v47 = vsub.f32 %v307_v7, %v358_v44  ;;  %v5139_v42 = vld [vmem:[#allocation5 + $0x4] ss:$12 sps:$4 sm:$0xff]   ;;  %v5141_v43 = vld [vmem:[#allocation5 + $0x20] ss:$12 sps:$4 sm:$0xff]  }
  0xf4   : > { %v335_v48 = vpop.xlane.xlu0 %334  ;;  %v337_v49 = vpop.xlane.xlu1 %336  ;;  %714 = vmatpush1.bf16.msra.mxu0 %v5126_v20  ;;  %v5142_v44 = vld [vmem:[#allocation5] ss:$12 sps:$4 sm:$0xff]  }
  0xf5   : > { %v359_v50 = vmul.f32 0.0078125, %v335_v48  ;;  %v389_v51 = vmul.f32 %v5864_v46, %v5864_v46  ;;  %v360_v52 = vmul.f32 0.0078125, %v337_v49  ;;  %v390_v56 = vmul.f32 %v5866_v47, %v5866_v47  ;;  %715 = vmatprep.subr.bf16.mxu0 %v5127_v28  ;;  %4394 = vmatpush3.bf16.msra.mxu1 %v5133_v36 }
  0xf6   : > { %4395 = vmatprep.subr.bf16.mxu1 %v5137_v40  ;;  %v5615_v48 = vmov 0  }
  0xf7   : > { %409 = vadd.xlane.f32.xlu1 %v388_v45  ;;  %411 = vadd.xlane.f32.xlu0 %v389_v51  ;;  %v5873_v57 = vsub.f32 %v5809_v8, %v359_v50  ;;  %v5876_v58 = vsub.f32 %v5812_v9, %v360_v52  ;;  %v5143_v45 = vld [vmem:[#allocation5 + $0x8] ss:$12 sps:$4 sm:$0xff]  }
  0xf8   : > { %v339_v59 = vpop.xlane.xlu0 %338  ;;  %v341_v60 = vpop.xlane.xlu1 %340  ;;  %716 = vmatpush1.bf16.msra.mxu0 %v5130_v33  ;;  %739 = vmatprep.mubr.bf16.mxu0 %v5615_v48 }
  0xf9   : > { %v361_v61 = vmul.f32 0.0078125, %v339_v59  ;;  %v391_v62 = vmul.f32 %v5873_v57, %v5873_v57  ;;  %v362_v63 = vmul.f32 0.0078125, %v341_v60  ;;  %v392_v2 = vmul.f32 %v5876_v58, %v5876_v58  ;;  %717 = vmatprep.subr.bf16.mxu0 %v5131_v35  ;;  %4396 = vmatpush3.bf16.msra.mxu1 %v5137_v40 }
  0xfa   : > { %4397 = vmatprep.subr.bf16.mxu1 %v5141_v43 }
  0xfb   : > { %413 = vadd.xlane.f32.xlu1 %v390_v56  ;;  %415 = vadd.xlane.f32.xlu0 %v391_v62  ;;  %v5883_v3 = vsub.f32 %v5815_v10, %v361_v61  ;;  %v5886_v4 = vsub.f32 %v5818_v11, %v362_v63 }
  0xfc   : > { %v343_v6 = vpop.xlane.xlu0 %342  ;;  %v345_v7 = vpop.xlane.xlu1 %344 }
  0xfd   : > { %v363_v8 = vmul.f32 0.0078125, %v343_v6  ;;  %v393_v9 = vmul.f32 %v5883_v3, %v5883_v3  ;;  %v364_v16 = vmul.f32 0.0078125, %v345_v7  ;;  %v394_v10 = vmul.f32 %v5886_v4, %v5886_v4  ;;  %4398 = vmatpush3.bf16.msra.mxu1 %v5141_v43 }
  0xfe   : > { %4399 = vmatprep.subr.bf16.mxu1 %v5143_v45 }
  0xff   : > { %417 = vadd.xlane.f32.xlu1 %v392_v2  ;;  %419 = vadd.xlane.f32.xlu0 %v393_v9  ;;  %v5893_v11 = vsub.f32 %v5825_v12, %v363_v8  ;;  %v5896_v19 = vsub.f32 %v5828_v13, %v364_v16 }
 0x100   : > { %v347_v21 = vpop.xlane.xlu0 %346  ;;  %v349_v24 = vpop.xlane.xlu1 %348 }
 0x101   : > { %v365_v25 = vmul.f32 0.0078125, %v347_v21  ;;  %v395_v26 = vmul.f32 %v5893_v11, %v5893_v11  ;;  %v366_v27 = vmul.f32 0.0078125, %v349_v24  ;;  %v396_v12 = vmul.f32 %v5896_v19, %v5896_v19  ;;  %4400 = vmatpush3.bf16.msra.mxu1 %v5143_v45 }
 0x103   : > { %421 = vadd.xlane.f32.xlu1 %v394_v10  ;;  %423 = vadd.xlane.f32.xlu0 %v395_v26  ;;  %v5903_v13 = vsub.f32 %v5833_v14, %v365_v25  ;;  %v5906_v32 = vsub.f32 %v5836_v15, %v366_v27  ;;  %v5134_v14 = vld [vmem:[#allocation5 + $0x30] ss:$12 sps:$4 sm:$0xff]   ;;  %v5916_v25 = vld [vmem:[%s7650_s1] ss:$0 sm:$0xff] }
 0x104   : > { %718 = vmatpush1.bf16.msra.mxu0 %v5134_v14  ;;  %v5135_v15 = vld [vmem:[#allocation5 + $0x1c] ss:$12 sps:$4 sm:$0xff]   ;;  %v5923_v14 = vld [vmem:[%s7651_s2] ss:$0 sm:$0xff] }
 0x105   : > { %v397_v34 = vmul.f32 %v5903_v13, %v5903_v13  ;;  %v398_v37 = vmul.f32 %v5906_v32, %v5906_v32  ;;  %719 = vmatprep.subr.bf16.mxu0 %v5135_v15 }
 0x107   : > { %425 = vadd.xlane.f32.xlu1 %v396_v12  ;;  %427 = vadd.xlane.f32.xlu0 %v397_v34 }
 0x108   : > { %720 = vmatpush1.bf16.msra.mxu0 %v5138_v41 }
 0x109   : > { %721 = vmatprep.subr.bf16.mxu0 %v5139_v42 }
 0x10b   : > { %429 = vadd.xlane.f32.xlu1 %v398_v37 }
 0x10c   : > { %722 = vmatpush1.bf16.msra.mxu0 %v5142_v44 }
 0x174   : > { %v400_v49 = vpop.xlane.xlu0 %399 }
 0x175   : > { %v431_v50 = vmul.f32 0.0078125, %v400_v49 }
 0x177   : > { %v447_v51 = vadd.f32 1e-05, %v431_v50 }
 0x178   : > { %v402_v52 = vpop.xlane.xlu1 %401  ;;  %v404_v53 = vpop.xlane.xlu0 %403 }
 0x179   : > { %5152 = vrsqrt.f32 %v447_v51  ;;  %v432_v54 = vmul.f32 0.0078125, %v402_v52  ;;  %v433_v55 = vmul.f32 0.0078125, %v404_v53 }
 0x17b   : > { %v448_v56 = vadd.f32 1e-05, %v432_v54  ;;  %v449_v59 = vadd.f32 1e-05, %v433_v55 }
 0x17c   : > { %v406_v60 = vpop.xlane.xlu1 %405  ;;  %v408_v61 = vpop.xlane.xlu0 %407 }
 0x17d   : > { %5154 = vrsqrt.f32 %v448_v56  ;;  %v434_v62 = vmul.f32 0.0078125, %v406_v60  ;;  %v435_v63 = vmul.f32 0.0078125, %v408_v61 }
 0x17e   : > { %5156 = vrsqrt.f32 %v449_v59 }
 0x17f   : > { %v450_v0 = vadd.f32 1e-05, %v434_v62  ;;  %v451_v1 = vadd.f32 1e-05, %v435_v63 }
 0x180   : > { %v410_v2 = vpop.xlane.xlu1 %409  ;;  %v412_v5 = vpop.xlane.xlu0 %411 }
 0x181   : > { %5158 = vrsqrt.f32 %v450_v0  ;;  %v436_v6 = vmul.f32 0.0078125, %v410_v2  ;;  %v437_v7 = vmul.f32 0.0078125, %v412_v5 }
 0x182   : > { %5160 = vrsqrt.f32 %v451_v1 }
 0x183   : > { %v452_v8 = vadd.f32 1e-05, %v436_v6  ;;  %v453_v9 = vadd.f32 1e-05, %v437_v7 }
 0x184   : > { %v414_v16 = vpop.xlane.xlu1 %413  ;;  %v416_v17 = vpop.xlane.xlu0 %415 }
 0x185   : > { %5162 = vrsqrt.f32 %v452_v8  ;;  %v438_v18 = vmul.f32 0.0078125, %v414_v16  ;;  %v439_v10 = vmul.f32 0.0078125, %v416_v17 }
 0x186   : > { %v5153_v20 = vpop.eup %5152  ;;  %5164 = vrsqrt.f32 %v453_v9 }
 0x187   : > { %v454_v21 = vadd.f32 1e-05, %v438_v18  ;;  %v455_v24 = vadd.f32 1e-05, %v439_v10  ;;  %v479_v26 = vmul.f32 %v5153_v20, %v5840_v22 }
 0x188   : > { %v418_v27 = vpop.xlane.xlu1 %417  ;;  %v420_v28 = vpop.xlane.xlu0 %419 }
 0x189   : > { %5166 = vrsqrt.f32 %v454_v21  ;;  %v440_v29 = vmul.f32 0.0078125, %v418_v27  ;;  %v441_v12 = vmul.f32 0.0078125, %v420_v28  ;;  %v501_v34 = vmul.f32 %v5916_v25, %v479_v26 }
 0x18a   : > { %v5155_v33 = vpop.eup %5154  ;;  %5168 = vrsqrt.f32 %v455_v24 }
 0x18b   : > { %v5157_v35 = vpop.eup %5156  ;;  %v456_v36 = vadd.f32 1e-05, %v440_v29  ;;  %v457_v37 = vadd.f32 1e-05, %v441_v12  ;;  %v480_v15 = vmul.f32 %v5155_v33, %v5848_v30  ;;  %v523_v49 = vadd.f32 %v5923_v14, %v501_v34 }
 0x18c   : > { %v422_v22 = vpop.xlane.xlu1 %421  ;;  %v424_v40 = vpop.xlane.xlu0 %423  ;;  %v481_v41 = vmul.f32 %v5157_v35, %v5842_v23 }
 0x18d   : > { %5170 = vrsqrt.f32 %v456_v36  ;;  %v442_v42 = vmul.f32 0.0078125, %v422_v22  ;;  %v443_v43 = vmul.f32 0.0078125, %v424_v40  ;;  %v502_v44 = vmul.f32 %v5916_v25, %v480_v15 }
 0x18e   : > { %v5159_v45 = vpop.eup %5158  ;;  %5172 = vrsqrt.f32 %v457_v37  ;;  %v503_v23 = vmul.f32 %v5916_v25, %v481_v41 }
 0x18f   : > { %v5161_v50 = vpop.eup %5160  ;;  %v458_v51 = vadd.f32 1e-05, %v442_v42  ;;  %v459_v52 = vadd.f32 1e-05, %v443_v43  ;;  %v524_v53 = vadd.f32 %v5923_v14, %v502_v44  ;;  %v482_v30 = vmul.f32 %v5159_v45, %v5850_v31 }
 0x190   : > { %v426_v54 = vpop.xlane.xlu1 %425  ;;  %v428_v55 = vpop.xlane.xlu0 %427  ;;  %v483_v56 = vmul.f32 %v5161_v50, %v5856_v38  ;;  %v525_v38 = vadd.f32 %v5923_v14, %v503_v23 }
 0x191   : > { %5174 = vrsqrt.f32 %v458_v51  ;;  %v444_v59 = vmul.f32 0.0078125, %v426_v54  ;;  %v445_v60 = vmul.f32 0.0078125, %v428_v55  ;;  %v539_v61 = vpack.c.bf16 %v524_v53, %v523_v49 }
 0x192   : > { %v5163_v62 = vpop.eup %5162  ;;  %5176 = vrsqrt.f32 %v459_v52  ;;  %v504_v63 = vmul.f32 %v5916_v25, %v482_v30  ;;  %v505_v5 = vmul.f32 %v5916_v25, %v483_v56 }
 0x193   : > { %v5165_v0 = vpop.eup %5164  ;;  %v460_v1 = vadd.f32 1e-05, %v444_v59  ;;  %v461_v2 = vadd.f32 1e-05, %v445_v60  ;;  %740 = vmatmul.mubr.bf16.vlgmr.msra.gmra.mxu0 %v539_v61  ;;  %4401 = vmatprep.mubr.bf16.mxu1 %v539_v61  ;;  %v484_v31 = vmul.f32 %v5163_v62, %v5858_v39 }
 0x194   : > { %v430_v6 = vpop.xlane.xlu1 %429  ;;  %v526_v7 = vadd.f32 %v5923_v14, %v504_v63  ;;  %749 = vmatprep.mubr.bf16.mxu0 %v5615_v48  ;;  %v485_v8 = vmul.f32 %v5165_v0, %v5864_v46  ;;  %v527_v21 = vadd.f32 %v5923_v14, %v505_v5 }
 0x195   : > { %5178 = vrsqrt.f32 %v460_v1  ;;  %v446_v9 = vmul.f32 0.0078125, %v430_v6  ;;  %v506_v16 = vmul.f32 %v5916_v25, %v484_v31 }
 0x196   : > { %v5167_v17 = vpop.eup %5166  ;;  %5180 = vrsqrt.f32 %v461_v2  ;;  %v540_v18 = vpack.c.bf16 %v526_v7, %v525_v38  ;;  %v507_v39 = vmul.f32 %v5916_v25, %v485_v8 }
 0x197   : > { %v5169_v10 = vpop.eup %5168  ;;  %v462_v20 = vadd.f32 1e-05, %v446_v9  ;;  %v528_v24 = vadd.f32 %v5923_v14, %v506_v16  ;;  %v486_v26 = vmul.f32 %v5167_v17, %v5866_v47 }
 0x198   : > { %4402 = vmatmul.mubr.bf16.vlgmr.msra.gmra.mxu1 %v540_v18  ;;  %v487_v46 = vmul.f32 %v5169_v10, %v5873_v57  ;;  %v529_v12 = vadd.f32 %v5923_v14, %v507_v39 }
 0x199   : > { %5182 = vrsqrt.f32 %v462_v20  ;;  %v541_v27 = vpack.c.bf16 %v528_v24, %v527_v21  ;;  %v508_v28 = vmul.f32 %v5916_v25, %v486_v26 }
 0x19a   : > { %v5171_v29 = vpop.eup %5170  ;;  %v509_v36 = vmul.f32 %v5916_v25, %v487_v46 }
 0x19b   : > { %v5173_v33 = vpop.eup %5172  ;;  %750 = vmatmul.mubr.bf16.gmra.mxu0 %v540_v18  ;;  %4405 = vmatprep.mubr.bf16.mxu1 %v541_v27  ;;  %v530_v34 = vadd.f32 %v5923_v14, %v508_v28  ;;  %v488_v35 = vmul.f32 %v5171_v29, %v5876_v58 }
 0x19c   : > { %759 = vmatprep.mubr.bf16.mxu0 %v5615_v48  ;;  %v489_v47 = vmul.f32 %v5173_v33, %v5883_v3  ;;  %v531_v41 = vadd.f32 %v5923_v14, %v509_v36 }
 0x19d   : > { %v542_v57 = vpack.c.bf16 %v530_v34, %v529_v12  ;;  %v510_v37 = vmul.f32 %v5916_v25, %v488_v35 }
 0x19e   : > { %v5175_v15 = vpop.eup %5174  ;;  %v511_v22 = vmul.f32 %v5916_v25, %v489_v47 }
 0x19f   : > { %v5177_v40 = vpop.eup %5176  ;;  %v532_v42 = vadd.f32 %v5923_v14, %v510_v37  ;;  %v490_v43 = vmul.f32 %v5175_v15, %v5886_v4 }
 0x1a0   : > { %4406 = vmatmul.mubr.bf16.gmra.mxu1 %v542_v57  ;;  %v491_v58 = vmul.f32 %v5177_v40, %v5893_v11  ;;  %v533_v49 = vadd.f32 %v5923_v14, %v511_v22 }
 0x1a1   : > { %v543_v44 = vpack.c.bf16 %v532_v42, %v531_v41  ;;  %v512_v45 = vmul.f32 %v5916_v25, %v490_v43 }
 0x1a2   : > { %v5179_v3 = vpop.eup %5178  ;;  %v513_v53 = vmul.f32 %v5916_v25, %v491_v58 }
 0x1a3   : > { %v5181_v50 = vpop.eup %5180  ;;  %760 = vmatmul.mubr.bf16.gmra.mxu0 %v541_v27  ;;  %4409 = vmatprep.mubr.bf16.mxu1 %v543_v44  ;;  %v534_v51 = vadd.f32 %v5923_v14, %v512_v45  ;;  %v492_v52 = vmul.f32 %v5179_v3, %v5896_v19 }
 0x1a4   : > { %769 = vmatprep.mubr.bf16.mxu0 %v5615_v48  ;;  %v493_v4 = vmul.f32 %v5181_v50, %v5903_v13  ;;  %v535_v55 = vadd.f32 %v5923_v14, %v513_v53 }
 0x1a5   : > { %v544_v11 = vpack.c.bf16 %v534_v51, %v533_v49  ;;  %v514_v30 = vmul.f32 %v5916_v25, %v492_v52 }
 0x1a6   : > { %v5183_v54 = vpop.eup %5182  ;;  %v515_v59 = vmul.f32 %v5916_v25, %v493_v4 }
 0x1a7   : > { %v536_v23 = vadd.f32 %v5923_v14, %v514_v30  ;;  %v494_v56 = vmul.f32 %v5183_v54, %v5906_v32 }
 0x1a8   : > { %4410 = vmatmul.mubr.bf16.gmra.mxu1 %v544_v11  ;;  %v537_v13 = vadd.f32 %v5923_v14, %v515_v59 }
 0x1a9   : > { %v545_v19 = vpack.c.bf16 %v536_v23, %v535_v55  ;;  %v516_v60 = vmul.f32 %v5916_v25, %v494_v56 }
 0x1ab   : > { %770 = vmatmul.mubr.bf16.gmra.mxu0 %v542_v57  ;;  %4413 = vmatprep.mubr.bf16.mxu1 %v545_v19  ;;  %v538_v61 = vadd.f32 %v5923_v14, %v516_v60 }
 0x1ac   : > { %779 = vmatprep.mubr.bf16.mxu0 %v5615_v48 }
 0x1ad   : > { %v546_v62 = vpack.c.bf16 %v538_v61, %v537_v13 }
 0x1b0   : > { %4414 = vmatmul.mubr.bf16.gmra.mxu1 %v546_v62 }
 0x1b3   : > { %780 = vmatmul.mubr.bf16.gmra.mxu0 %v543_v44 }
 0x1b4   : > { %789 = vmatprep.mubr.bf16.mxu0 %v5615_v48 }
 0x1bb   : > { %790 = vmatmul.mubr.bf16.gmra.mxu0 %v544_v11 }
 0x1bc   : > { %799 = vmatprep.mubr.bf16.mxu0 %v5615_v48 }
 0x1c3   : > { %800 = vmatmul.mubr.bf16.gmra.mxu0 %v545_v19 }
 0x1c4   : > { %809 = vmatprep.mubr.bf16.mxu0 %v5615_v48 }
 0x1cb   : > { %810 = vmatmul.mubr.bf16.gmra.mxu0 %v546_v62 }
 0x253   : > { %v5978_v32 = vpop.f32.mrf.mxu0 }
 0x254   : > { %4449 = vmatprep.mubr.msk.f32.mxu0 %vm917_vm0, %v5978_v32 }
 0x255   : > { %v5982_v25 = vpop.f32.mrf.mxu0 }
 0x257   : > { %v5984_v14 = vpop.f32.mrf.mxu0 }
 0x258   : > { %7766 = vst [vmem:[#allocation12_spill] sm:$0xff] %v5984_v14  ;;  %v5986_v63 = vpop.f32.mrf.mxu1 }
 0x259   : > { %7767 = vst [vmem:[#allocation13_spill] sm:$0xff] %v5986_v63  ;;  %v5988_v0 = vpop.f32.mrf.mxu0 }
 0x25a   : > { %7768 = vst [vmem:[#allocation14_spill] sm:$0xff] %v5988_v0  ;;  %v5990_v1 = vpop.f32.mrf.mxu1 }
 0x25b   : > { %7769 = vst [vmem:[#allocation15_spill] sm:$0xff] %v5990_v1  ;;  %v5992_v2 = vpop.f32.mrf.mxu0 }
 0x25c   : > { %7770 = vst [vmem:[#allocation16_spill] sm:$0xff] %v5992_v2  ;;  %v5994_v48 = vpop.f32.mrf.mxu1 }
 0x25d   : > { %7771 = vst [vmem:[#allocation17_spill] sm:$0xff] %v5994_v48  ;;  %v5996_v31 = vpop.f32.mrf.mxu0 }
 0x25e   : > { %7772 = vst [vmem:[#allocation18_spill] sm:$0xff] %v5996_v31  ;;  %v5998_v5 = vpop.f32.mrf.mxu1 }
 0x25f   : > { %7773 = vst [vmem:[#allocation19_spill] sm:$0xff] %v5998_v5  ;;  %v6000_v6 = vpop.f32.mrf.mxu0 }
 0x260   : > { %v6002_v38 = vpop.f32.mrf.mxu1 }
 0x261   : > { %7774 = vst [vmem:[#allocation20_spill] sm:$0xff] %v6002_v38  ;;  %v6004_v7 = vpop.f32.mrf.mxu0 }
 0x262   : > { %7775 = vst [vmem:[#allocation21_spill] sm:$0xff] %v6004_v7  ;;  %v6006_v8 = vpop.f32.mrf.mxu1 }
 0x263   : > { %7776 = vst [vmem:[#allocation22_spill] sm:$0xff] %v6006_v8  ;;  %v6008_v9 = vpop.f32.mrf.mxu0 }
 0x264   : > { %7777 = vst [vmem:[#allocation23_spill] sm:$0xff] %v6008_v9  ;;  %v6010_v16 = vpop.f32.mrf.mxu1 }
 0x265   : > { %7778 = vst [vmem:[#allocation24_spill] sm:$0xff] %v6010_v16  ;;  %v6012_v17 = vpop.f32.mrf.mxu0 }
 0x266   : > { %7779 = vst [vmem:[#allocation25_spill] sm:$0xff] %v6012_v17  ;;  %v6014_v18 = vpop.f32.mrf.mxu1 }
 0x267   : > { %7780 = vst [vmem:[#allocation26_spill] sm:$0xff] %v6014_v18  ;;  %v6016_v39 = vpop.f32.mrf.mxu0 }
 0x268   : > { %v6018_v10 = vpop.f32.mrf.mxu1 }
 0x269   : > { %7781 = vst [vmem:[#allocation27_spill] sm:$0xff] %v6018_v10  ;;  %v6020_v20 = vpop.f32.mrf.mxu0 }
 0x26a   : > { %7782 = vst [vmem:[#allocation28_spill] sm:$0xff] %v6020_v20  ;;  %v6022_v21 = vpop.f32.mrf.mxu1 }
 0x26b   : > { %7783 = vst [vmem:[#allocation29_spill] sm:$0xff] %v6022_v21  ;;  %v6024_v24 = vpop.f32.mrf.mxu0 }
 0x26c   : > { %7784 = vst [vmem:[#allocation30_spill] sm:$0xff] %v6024_v24  ;;  %v6026_v26 = vpop.f32.mrf.mxu1 }
 0x26d   : > { %7785 = vst [vmem:[#allocation31_spill] sm:$0xff] %v6026_v26  ;;  %v6028_v46 = vpop.f32.mrf.mxu0 }
 0x26e   : > { %7786 = vst [vmem:[#allocation32_spill] sm:$0xff] %v6028_v46  ;;  %v6030_v27 = vpop.f32.mrf.mxu1 }
 0x26f   : > { %7787 = vst [vmem:[#allocation33_spill] sm:$0xff] %v6030_v27  ;;  %v6032_v28 = vpop.f32.mrf.mxu0 }
 0x270   : > { %v6034_v29 = vpop.f32.mrf.mxu1 }
 0x271   : > { %7788 = vst [vmem:[#allocation34_spill] sm:$0xff] %v6034_v29  ;;  %v6036_v12 = vpop.f32.mrf.mxu0 }
 0x272   : > { %7789 = vst [vmem:[#allocation35_spill] sm:$0xff] %v6036_v12  ;;  %v6038_v33 = vpop.f32.mrf.mxu1 }
 0x273   : > { %7790 = vst [vmem:[#allocation36_spill] sm:$0xff] %v6038_v33  ;;  %v6040_v34 = vpop.f32.mrf.mxu0 }
 0x274   : > { %7791 = vst [vmem:[#allocation37_spill] sm:$0xff] %v6040_v34  ;;  %v6042_v35 = vpop.f32.mrf.mxu1 }
 0x275   : > { %4473 = vmatprep.subr.mxu1 %v6042_v35  ;;  %v6045_v36 = vpop.f32.mrf.mxu0 }
 0x276   : > { %7792 = vst [vmem:[#allocation38_spill] sm:$0xff] %v6045_v36  ;;  %4474 = vmatpush3.msra.mxu1 %v6042_v35  ;;  %v6051_v57 = vpop.f32.mrf.mxu1 }
 0x277   : > { %4475 = vmatprep.subr.mxu1 %v6034_v29  ;;  %v6049_v47 = vpop.f32.mrf.mxu0 }
 0x278   : > { %4476 = vmatpush3.msra.mxu1 %v6034_v29 }
 0x279   : > { %4477 = vmatprep.subr.mxu1 %v6051_v57  ;;  %v6055_v37 = vpop.f32.mrf.mxu0 }
 0x27a   : > { %7793 = vst [vmem:[#allocation39_spill] sm:$0xff] %v6055_v37  ;;  %4478 = vmatpush3.msra.mxu1 %v6051_v57 }
 0x27b   : > { %4479 = vmatprep.subr.mxu1 %v6038_v33  ;;  %v6059_v15 = vpop.f32.mrf.mxu0 }
 0x27c   : > { %7794 = vst [vmem:[#allocation40_spill] sm:$0xff] %v6059_v15  ;;  %4480 = vmatpush3.msra.mxu1 %v6038_v33 }
 0x27d   : > { %4481 = vmatprep.subr.mxu1 %v6026_v26  ;;  %v6063_v22 = vpop.f32.mrf.mxu0 }
 0x27e   : > { %7795 = vst [vmem:[#allocation41_spill] sm:$0xff] %v6063_v22  ;;  %4482 = vmatpush3.msra.mxu1 %v6026_v26  ;;  %1516 = vrot.lane.b32.xlu1 %v6063_v22, %s5616_s18 }
 0x27f   : > { %4483 = vmatprep.subr.mxu1 %v6018_v10  ;;  %v6069_v40 = vpop.f32.mrf.mxu0 }
 0x280   : > { %4484 = vmatpush3.msra.mxu1 %v6018_v10 }
 0x281   : > { %4485 = vmatprep.subr.mxu1 %v6030_v27  ;;  %v6073_v41 = vpop.f32.mrf.mxu0 }
 0x282   : > { %7796 = vst [vmem:[#allocation42_spill] sm:$0xff] %v6073_v41  ;;  %4486 = vmatpush3.msra.mxu1 %v6030_v27  ;;  %1518 = vrot.lane.b32.xlu0 %v6073_v41, %s5616_s18 }
 0x283   : > { %4487 = vmatprep.subr.mxu1 %v6022_v21  ;;  %v6079_v42 = vpop.f32.mrf.mxu0 }
 0x284   : > { %7797 = vst [vmem:[#allocation43_spill] sm:$0xff] %v6079_v42  ;;  %4488 = vmatpush3.msra.mxu1 %v6022_v21 }
 0x285   : > { %4489 = vmatprep.subr.mxu1 %v6010_v16  ;;  %v6083_v43 = vpop.f32.mrf.mxu0 }
 0x286   : > { %7798 = vst [vmem:[#allocation44_spill] sm:$0xff] %v6083_v43  ;;  %4490 = vmatpush3.msra.mxu1 %v6010_v16  ;;  %1520 = vrot.lane.b32.xlu1 %v6083_v43, %s5616_s18 }
 0x287   : > { %4491 = vmatprep.subr.mxu1 %v6002_v38  ;;  %v6089_v58 = vpop.f32.mrf.mxu0 }
 0x288   : > { %4492 = vmatpush3.msra.mxu1 %v6002_v38 }
 0x289   : > { %4493 = vmatprep.subr.mxu1 %v6014_v18  ;;  %v6093_v44 = vpop.f32.mrf.mxu0 }
 0x28a   : > { %7799 = vst [vmem:[#allocation45_spill] sm:$0xff] %v6093_v44  ;;  %4494 = vmatpush3.msra.mxu1 %v6014_v18  ;;  %1522 = vrot.lane.b32.xlu0 %v6093_v44, %s5616_s18 }
 0x28b   : > { %4495 = vmatprep.subr.mxu1 %v6006_v8  ;;  %v6099_v45 = vpop.f32.mrf.mxu0 }
 0x28c   : > { %7800 = vst [vmem:[#allocation46_spill] sm:$0xff] %v6099_v45  ;;  %4496 = vmatpush3.msra.mxu1 %v6006_v8 }
 0x28d   : > { %4497 = vmatprep.subr.mxu1 %v5994_v48  ;;  %v6103_v3 = vpop.f32.mrf.mxu0 }
 0x28e   : > { %7801 = vst [vmem:[#allocation47_spill] sm:$0xff] %v6103_v3  ;;  %4498 = vmatpush3.msra.mxu1 %v5994_v48  ;;  %1524 = vrot.lane.b32.xlu1 %v6103_v3, %s5616_s18 }
 0x28f   : > { %4499 = vmatprep.subr.mxu1 %v5986_v63  ;;  %v6109_v49 = vpop.f32.mrf.mxu0 }
 0x290   : > { %4500 = vmatpush3.msra.mxu1 %v5986_v63 }
 0x291   : > { %4501 = vmatprep.subr.mxu1 %v5998_v5  ;;  %v6113_v50 = vpop.f32.mrf.mxu0 }
 0x292   : > { %7802 = vst [vmem:[#allocation48_spill] sm:$0xff] %v6113_v50  ;;  %4502 = vmatpush3.msra.mxu1 %v5998_v5  ;;  %1526 = vrot.lane.b32.xlu0 %v6113_v50, %s5616_s18 }
 0x293   : > { %4503 = vmatprep.subr.mxu1 %v5990_v1  ;;  %4417 = vmatprep.subr.msk.mxu0 %vm917_vm0, %v6113_v50 }
 0x294   : > { %4418 = vmatpush3.xpose.msk.msra.mxu0 %vm917_vm0, %v6113_v50  ;;  %4504 = vmatpush3.msra.mxu1 %v5990_v1 }
 0x295   : > { %4419 = vmatprep.subr.msk.mxu0 %vm917_vm0, %v6103_v3 }
 0x298   : > { %4420 = vmatpush3.xpose.msk.msra.mxu0 %vm917_vm0, %v6103_v3 }
 0x299   : > { %4421 = vmatprep.subr.msk.mxu0 %vm917_vm0, %v6093_v44 }
 0x29c   : > { %4422 = vmatpush3.xpose.msk.msra.mxu0 %vm917_vm0, %v6093_v44 }
 0x29d   : > { %4423 = vmatprep.subr.msk.mxu0 %vm917_vm0, %v6083_v43 }
 0x2a0   : > { %4424 = vmatpush3.xpose.msk.msra.mxu0 %vm917_vm0, %v6083_v43 }
 0x2a1   : > { %4425 = vmatprep.subr.msk.mxu0 %vm917_vm0, %v6073_v41 }
 0x2a4   : > { %4426 = vmatpush3.xpose.msk.msra.mxu0 %vm917_vm0, %v6073_v41 }
 0x2a5   : > { %4427 = vmatprep.subr.msk.mxu0 %vm917_vm0, %v6063_v22 }
 0x2a8   : > { %4428 = vmatpush3.xpose.msk.msra.mxu0 %vm917_vm0, %v6063_v22 }
 0x2a9   : > { %4429 = vmatprep.subr.msk.mxu0 %vm917_vm0, %v6055_v37 }
 0x2ac   : > { %4430 = vmatpush3.xpose.msk.msra.mxu0 %vm917_vm0, %v6055_v37 }
 0x2ad   : > { %4431 = vmatprep.subr.msk.mxu0 %vm917_vm0, %v6045_v36 }
 0x2b0   : > { %4432 = vmatpush3.xpose.msk.msra.mxu0 %vm917_vm0, %v6045_v36 }
 0x2b1   : > { %4433 = vmatprep.subr.msk.mxu0 %vm917_vm0, %v6036_v12 }
 0x2b4   : > { %4434 = vmatpush3.xpose.msk.msra.mxu0 %vm917_vm0, %v6036_v12 }
 0x2b5   : > { %4435 = vmatprep.subr.msk.mxu0 %vm917_vm0, %v6028_v46 }
 0x2b8   : > { %4436 = vmatpush3.xpose.msk.msra.mxu0 %vm917_vm0, %v6028_v46 }
 0x2b9   : > { %4437 = vmatprep.subr.msk.mxu0 %vm917_vm0, %v6020_v20 }
 0x2bc   : > { %4438 = vmatpush3.xpose.msk.msra.mxu0 %vm917_vm0, %v6020_v20 }
 0x2bd   : > { %4439 = vmatprep.subr.msk.mxu0 %vm917_vm0, %v6012_v17 }
 0x2c0   : > { %4440 = vmatpush3.xpose.msk.msra.mxu0 %vm917_vm0, %v6012_v17 }
 0x2c1   : > { %4441 = vmatprep.subr.msk.mxu0 %vm917_vm0, %v6004_v7 }
 0x2c4   : > { %4442 = vmatpush3.xpose.msk.msra.mxu0 %vm917_vm0, %v6004_v7 }
 0x2c5   : > { %4443 = vmatprep.subr.msk.mxu0 %vm917_vm0, %v5996_v31 }
 0x2c8   : > { %4444 = vmatpush3.xpose.msk.msra.mxu0 %vm917_vm0, %v5996_v31 }
 0x2c9   : > { %4445 = vmatprep.subr.msk.mxu0 %vm917_vm0, %v5988_v0 }
 0x2cc   : > { %4446 = vmatpush3.xpose.msk.msra.mxu0 %vm917_vm0, %v5988_v0 }
 0x2cd   : > { %4447 = vmatprep.subr.msk.mxu0 %vm917_vm0, %v5982_v25 }
 0x2d0   : > { %4448 = vmatpush3.xpose.msk.msra.mxu0 %vm917_vm0, %v5982_v25 }
 0x2d3   : > { %4450 = vmatmul.mubr.msk.f32.vlgmr.msra.gmra.mxu0 %vm917_vm0, %v5984_v14 }
 0x2d4   : > { %4452 = vmatprep.mubr.msk.f32.mxu0 %vm917_vm0, %v5992_v2 }
 0x2d7   : > { %4453 = vmatmul.mubr.msk.f32.gmra.mxu0 %vm917_vm0, %v6000_v6 }
 0x2d8   : > { %4455 = vmatprep.mubr.msk.f32.mxu0 %vm917_vm0, %v6008_v9 }
 0x2db   : > { %4456 = vmatmul.mubr.msk.f32.gmra.mxu0 %vm917_vm0, %v6016_v39 }
 0x2dc   : > { %4458 = vmatprep.mubr.msk.f32.mxu0 %vm917_vm0, %v6024_v24 }
 0x2df   : > { %4459 = vmatmul.mubr.msk.f32.gmra.mxu0 %vm917_vm0, %v6032_v28 }
 0x2e0   : > { %4461 = vmatprep.mubr.msk.f32.mxu0 %vm917_vm0, %v6040_v34 }
 0x2e3   : > { %4462 = vmatmul.mubr.msk.f32.gmra.mxu0 %vm917_vm0, %v6049_v47 }
 0x2e4   : > { %4464 = vmatprep.mubr.msk.f32.mxu0 %vm917_vm0, %v6059_v15 }
 0x2e7   : > { %4465 = vmatmul.mubr.msk.f32.gmra.mxu0 %vm917_vm0, %v6069_v40 }
 0x2e8   : > { %4467 = vmatprep.mubr.msk.f32.mxu0 %vm917_vm0, %v6079_v42 }
 0x2eb   : > { %4468 = vmatmul.mubr.msk.f32.gmra.mxu0 %vm917_vm0, %v6089_v58 }
 0x2ec   : > { %4470 = vmatprep.mubr.msk.f32.mxu0 %vm917_vm0, %v6099_v45 }
 0x2ef   : > { %4471 = vmatmul.mubr.msk.f32.gmra.mxu0 %vm917_vm0, %v6109_v49 }
 0x2f4   : > { %v6214_v51 = vpop.permute.xlu0 %1518 }
 0x2f5   : > { %7803 = vst [vmem:[#allocation49_spill] sm:$0xff] %v6214_v51 }
 0x2fc   : > { %v6216_v52 = vpop.permute.xlu0 %1522 }
 0x2fd   : > { %7804 = vst [vmem:[#allocation50_spill] sm:$0xff] %v6216_v52 }
 0x304   : > { %v6218_v53 = vpop.permute.xlu0 %1526 }
 0x305   : > { %4529 = vmatprep.subr.msk.mxu1 %vm917_vm0, %v6218_v53 }
 0x393   : > { %v4451_v4 = vpop.f32.mrf.mxu0 }
 0x394   : > { %v1160_v11 = vmul.f32 0.17677669, %v4451_v4 }
 0x395   : > { %v1080_v30 = vpop.f32.mrf.mxu0 }
 0x396   : > { %v1159_v54 = vmul.f32 0.17677669, %v1080_v30  ;;  %1177 = vmax.xlane.f32.xlu1 %v1160_v11 }
 0x397   : > { %v4454_v55 = vpop.f32.mrf.mxu0 }
 0x398   : > { %v6222_v23 = vmul.f32 0.17677669, %v4454_v55  ;;  %1175 = vmax.xlane.f32.xlu0 %v1159_v54 }
 0x399   : > { %v1090_v56 = vpop.f32.mrf.mxu0 }
 0x39a   : > { %v6224_v59 = vmul.f32 0.17677669, %v1090_v56  ;;  %1181 = vmax.xlane.f32.xlu1 %v6222_v23 }
 0x39b   : > { %v4457_v19 = vpop.f32.mrf.mxu0 }
 0x39c   : > { %v6227_v60 = vmul.f32 0.17677669, %v4457_v19  ;;  %1179 = vmax.xlane.f32.xlu0 %v6224_v59 }
 0x39d   : > { %v1100_v13 = vpop.f32.mrf.mxu0 }
 0x39e   : > { %v6230_v61 = vmul.f32 0.17677669, %v1100_v13  ;;  %1185 = vmax.xlane.f32.xlu1 %v6227_v60 }
 0x39f   : > { %v4460_v62 = vpop.f32.mrf.mxu0 }
 0x3a0   : > { %v6233_v4 = vmul.f32 0.17677669, %v4460_v62  ;;  %1183 = vmax.xlane.f32.xlu0 %v6230_v61 }
 0x3a1   : > { %v1110_v30 = vpop.f32.mrf.mxu0 }
 0x3a2   : > { %v6236_v55 = vmul.f32 0.17677669, %v1110_v30  ;;  %1189 = vmax.xlane.f32.xlu1 %v6233_v4 }
 0x3a3   : > { %v4463_v56 = vpop.f32.mrf.mxu0 }
 0x3a4   : > { %v6239_v19 = vmul.f32 0.17677669, %v4463_v56  ;;  %1187 = vmax.xlane.f32.xlu0 %v6236_v55 }
 0x3a5   : > { %v1120_v22 = vpop.f32.mrf.mxu0 }
 0x3a6   : > { %v6242_v13 = vmul.f32 0.17677669, %v1120_v22  ;;  %1193 = vmax.xlane.f32.xlu1 %v6239_v19 }
 0x3a7   : > { %v4466_v43 = vpop.f32.mrf.mxu0 }
 0x3a8   : > { %v6245_v62 = vmul.f32 0.17677669, %v4466_v43  ;;  %1191 = vmax.xlane.f32.xlu0 %v6242_v13 }
 0x3a9   : > { %v1130_v50 = vpop.f32.mrf.mxu0 }
 0x3aa   : > { %v1169_v30 = vmul.f32 0.17677669, %v1130_v50  ;;  %1197 = vmax.xlane.f32.xlu1 %v6245_v62 }
 0x3ab   : > { %v4469_v5 = vpop.f32.mrf.mxu0 }
 0x3ac   : > { %v6249_v48 = vmul.f32 0.17677669, %v4469_v5  ;;  %1195 = vmax.xlane.f32.xlu0 %v1169_v30  ;;  %v6260_v5 = vpop.permute.xlu1 %1516 }
 0x3ad   : > { %v1140_v56 = vpop.f32.mrf.mxu0  ;;  %7805 = vst [vmem:[#allocation51_spill] sm:$0xff] %v6260_v5 }
 0x3ae   : > { %v6251_v18 = vmul.f32 0.17677669, %v1140_v56  ;;  %1201 = vmax.xlane.f32.xlu1 %v6249_v48 }
 0x3af   : > { %v4472_v22 = vpop.f32.mrf.mxu0 }
 0x3b0   : > { %v1174_v16 = vmul.f32 0.17677669, %v4472_v22  ;;  %1199 = vmax.xlane.f32.xlu0 %v6251_v18  ;;  %v6262_v50 = vpop.permute.xlu1 %1520 }
 0x3b1   : > { %v1150_v43 = vpop.f32.mrf.mxu0  ;;  %7806 = vst [vmem:[#allocation52_spill] sm:$0xff] %v6262_v50 }
 0x3b2   : > { %v6255_v27 = vmul.f32 0.17677669, %v1150_v43  ;;  %1205 = vmax.xlane.f32.xlu1 %v1174_v16 }
 0x3b4   : > { %1203 = vmax.xlane.f32.xlu0 %v6255_v27  ;;  %v6264_v56 = vpop.permute.xlu1 %1524 }
 0x3ca   : > { %1514 = vrot.lane.b32.xlu0 %v6055_v37, %s5616_s18 }
 0x41f   : > { %v1178_v10 = vpop.xlane.xlu1 %1177 }
 0x420   : > { %v1208_v33 = vsub.f32 %v1160_v11, %v1178_v10 }
 0x421   : > { %v1176_v22 = vpop.xlane.xlu0 %1175 }
 0x422   : > { %v1225_v29 = vmul.f32 1.442695, %v1208_v33  ;;  %v1207_v45 = vsub.f32 %v1159_v54, %v1176_v22 }
 0x423   : > { %v1182_v34 = vpop.xlane.xlu1 %1181 }
 0x424   : > { %5184 = vpow2.f32 %v1225_v29  ;;  %v1223_v43 = vmul.f32 1.442695, %v1207_v45  ;;  %v1210_v22 = vsub.f32 %v6222_v23, %v1182_v34 }
 0x425   : > { %v1180_v9 = vpop.xlane.xlu0 %1179 }
 0x426   : > { %5186 = vpow2.f32 %v1223_v43  ;;  %v1229_v2 = vmul.f32 1.442695, %v1210_v22 }
 0x427   : > { %v1186_v24 = vpop.xlane.xlu1 %1185 }
 0x428   : > { %5188 = vpow2.f32 %v1229_v2 }
 0x429   : > { %v1184_v33 = vpop.xlane.xlu0 %1183 }
 0x42a   : > { %v1211_v23 = vsub.f32 %v6230_v61, %v1184_v33 }
 0x42b   : > { %v1190_v10 = vpop.xlane.xlu1 %1189 }
 0x42c   : > { %v1214_v2 = vsub.f32 %v6233_v4, %v1190_v10 }
 0x42d   : > { %v1188_v45 = vpop.xlane.xlu0 %1187 }
 0x42e   : > { %v1213_v14 = vsub.f32 %v6236_v55, %v1188_v45 }
 0x42f   : > { %v1194_v29 = vpop.xlane.xlu1 %1193 }
 0x430   : > { %v1235_v5 = vmul.f32 1.442695, %v1213_v14  ;;  %v1231_v14 = vmul.f32 1.442695, %v1211_v23 }
 0x431   : > { %v6266_v42 = vpop.eup %5184  ;;  %v1192_v54 = vpop.xlane.xlu0 %1191 }
 0x432   : > { %1257 = vadd.xlane.f32.xlu1 %v6266_v42  ;;  %5190 = vpow2.f32 %v1235_v5 }
 0x433   : > { %v6269_v15 = vpop.eup %5186  ;;  %v1198_v11 = vpop.xlane.xlu1 %1197 }
 0x434   : > { %1255 = vadd.xlane.f32.xlu0 %v6269_v15 }
 0x435   : > { %v6287_v55 = vpop.eup %5188 }
 0x437   : > { %v1202_v43 = vpop.xlane.xlu1 %1201 }
 0x443   : > { %1510 = vrot.lane.b32.xlu1 %v6036_v12, %s5616_s18  ;;  %v1209_v12 = vsub.f32 %v6224_v59, %v1180_v9  ;;  %v6291_v9 = vpop.eup %5190 }
 0x445   : > { %v1227_v37 = vmul.f32 1.442695, %v1209_v12 }
 0x447   : > { %1508 = vrot.lane.b32.xlu1 %v6028_v46, %s5616_s18  ;;  %v1196_v46 = vpop.xlane.xlu0 %1195 }
 0x448   : > { %v1217_v51 = vsub.f32 %v1169_v30, %v1196_v46  ;;  %v1215_v46 = vsub.f32 %v6242_v13, %v1192_v54 }
 0x44a   : > { %1512 = vrot.lane.b32.xlu0 %v6045_v36, %s5616_s18  ;;  %v1206_v36 = vpop.xlane.xlu1 %1205 }
 0x44b   : > { %1506 = vrot.lane.b32.xlu1 %v6020_v20, %s5616_s18  ;;  %v1243_v20 = vmul.f32 1.442695, %v1217_v51  ;;  %v1222_v50 = vsub.f32 %v1174_v16, %v1206_v36  ;;  %v1237_v16 = vmul.f32 1.442695, %v1214_v2  ;;  %v1218_v51 = vsub.f32 %v6245_v62, %v1198_v11  ;;  %v1200_v4 = vpop.xlane.xlu0 %1199  ;;  %v7810_v2 = vld [vmem:[#allocation35_spill] sm:$0xff] }
 0x44c   : > { %v1219_v13 = vsub.f32 %v6251_v18, %v1200_v4 }
 0x44d   : > { %5192 = vpow2.f32 %v1243_v20  ;;  %v1253_v52 = vmul.f32 1.442695, %v1222_v50  ;;  %v1216_v20 = vsub.f32 %v6239_v19, %v1194_v29  ;;  %v1245_v59 = vmul.f32 1.442695, %v1218_v51 }
 0x44e   : > { %5194 = vpow2.f32 %v1227_v37  ;;  %v1239_v37 = vmul.f32 1.442695, %v1215_v46  ;;  %v1247_v30 = vmul.f32 1.442695, %v1219_v13  ;;  %v7817_v13 = vld [vmem:[#allocation37_spill] sm:$0xff] }
 0x44f   : > { %1504 = vrot.lane.b32.xlu1 %v6012_v17, %s5616_s18  ;;  %v1212_v17 = vsub.f32 %v6227_v60, %v1186_v24  ;;  %5196 = vpow2.f32 %v1253_v52  ;;  %v1241_v24 = vmul.f32 1.442695, %v1216_v20  ;;  %v1220_v60 = vsub.f32 %v6249_v48, %v1202_v43  ;;  %v1204_v33 = vpop.xlane.xlu0 %1203  ;;  %v7813_v20 = vld [vmem:[#allocation12_spill] sm:$0xff] }
 0x450   : > { %v1221_v54 = vsub.f32 %v6255_v27, %v1204_v33 }
 0x451   : > { %v1233_v34 = vmul.f32 1.442695, %v1212_v17  ;;  %v1249_v19 = vmul.f32 1.442695, %v1220_v60  ;;  %v7816_v60 = vld [vmem:[#allocation30_spill] sm:$0xff] }
 0x452   : > { %v1251_v22 = vmul.f32 1.442695, %v1221_v54  ;;  %v7819_v54 = vld [vmem:[#allocation43_spill] sm:$0xff] }
 0x453   : > { %5198 = vpow2.f32 %v1233_v34  ;;  %v1515_v29 = vpop.permute.xlu0 %1514 }
 0x454   : > { %5200 = vpow2.f32 %v1231_v14 }
 0x455   : > { %5202 = vpow2.f32 %v1237_v16  ;;  %v7812_v16 = vld [vmem:[#allocation51_spill] sm:$0xff] }
 0x456   : > { %5204 = vpow2.f32 %v1241_v24 }
 0x457   : > { %5206 = vpow2.f32 %v1239_v37  ;;  %v7814_v37 = vld [vmem:[#allocation16_spill] sm:$0xff] }
 0x458   : > { %5208 = vpow2.f32 %v1245_v59  ;;  %v7815_v59 = vld [vmem:[#allocation23_spill] sm:$0xff] }
 0x459   : > { %5210 = vpow2.f32 %v1249_v19 }
 0x45a   : > { %v6295_v17 = vpop.eup %5192  ;;  %5212 = vpow2.f32 %v1247_v30 }
 0x45b   : > { %v6299_v12 = vpop.eup %5194 }
 0x45c   : > { %v6302_v36 = vpop.eup %5196 }
 0x460   : > { %v6306_v52 = vpop.eup %5198 }
 0x461   : > { %v6310_v61 = vpop.eup %5200 }
 0x462   : > { %v6314_v62 = vpop.eup %5202 }
 0x463   : > { %v6317_v5 = vpop.eup %5204 }
 0x464   : > { %v6320_v48 = vpop.eup %5206 }
 0x465   : > { %v6323_v50 = vpop.eup %5208 }
 0x466   : > { %v6328_v18 = vpop.eup %5210 }
 0x467   : > { %v6333_v10 = vpop.eup %5212 }
 0x469   : > { %1261 = vadd.xlane.f32.xlu0 %v6287_v55 }
 0x46d   : > { %1267 = vadd.xlane.f32.xlu0 %v6291_v9 }
 0x471   : > { %1275 = vadd.xlane.f32.xlu0 %v6295_v17 }
 0x473   : > { %1259 = vadd.xlane.f32.xlu1 %v6299_v12 }
 0x475   : > { %1285 = vadd.xlane.f32.xlu0 %v6302_v36 }
 0x477   : > { %1265 = vadd.xlane.f32.xlu1 %v6306_v52 }
 0x47b   : > { %1263 = vadd.xlane.f32.xlu1 %v6310_v61 }
 0x47f   : > { %1269 = vadd.xlane.f32.xlu1 %v6314_v62 }
 0x483   : > { %1273 = vadd.xlane.f32.xlu1 %v6317_v5 }
 0x487   : > { %1271 = vadd.xlane.f32.xlu1 %v6320_v48 }
 0x48b   : > { %1277 = vadd.xlane.f32.xlu1 %v6323_v50  ;;  %1502 = vrot.lane.b32.xlu0 %v6004_v7, %s5616_s18 }
 0x48f   : > { %1281 = vadd.xlane.f32.xlu1 %v6328_v18  ;;  %1470 = vrot.lane.b32.xlu0 %v6000_v6, %s5616_s18 }
 0x493   : > { %1474 = vrot.lane.b32.xlu0 %v6016_v39, %s5616_s18  ;;  %1279 = vadd.xlane.f32.xlu1 %v6333_v10 }
 0x497   : > { %1478 = vrot.lane.b32.xlu0 %v6032_v28, %s5616_s18 }
 0x49b   : > { %1482 = vrot.lane.b32.xlu0 %v6049_v47, %s5616_s18 }
 0x49f   : > { %1486 = vrot.lane.b32.xlu0 %v6069_v40, %s5616_s18 }
 0x4a3   : > { %1490 = vrot.lane.b32.xlu0 %v6089_v58, %s5616_s18 }
 0x4a4   : > { %1500 = vrot.lane.b32.xlu1 %v5996_v31, %s5616_s18 }
 0x4a7   : > { %1494 = vrot.lane.b32.xlu0 %v6109_v49, %s5616_s18 }
 0x4a8   : > { %1498 = vrot.lane.b32.xlu1 %v5988_v0, %s5616_s18 }
 0x4ab   : > { %1943 = vrot.lane.b32.xlu0 %v6042_v35, %s5616_s18 }
 0x4ac   : > { %1496 = vrot.lane.b32.xlu1 %v5982_v25, %s5616_s18 }
 0x4af   : > { %1939 = vrot.lane.b32.xlu0 %v6051_v57, %s5616_s18 }
 0x4b0   : > { %1464 = vrot.lane.b32.xlu1 %v5978_v32, %s5616_s18 }
 0x4b3   : > { %1935 = vrot.lane.b32.xlu0 %v6026_v26, %s5616_s18 }
 0x4b7   : > { %1929 = vrot.lane.b32.xlu0 %v6022_v21, %s5616_s18 }
 0x4bb   : > { %v1258_v45 = vpop.xlane.xlu1 %1257  ;;  %1925 = vrot.lane.b32.xlu0 %v6002_v38, %s5616_s18 }
 0x4bc   : > { %5214 = vrcp.f32 %v1258_v45 }
 0x4bd   : > { %v1256_v11 = vpop.xlane.xlu0 %1255 }
 0x4be   : > { %5216 = vrcp.f32 %v1256_v11 }
 0x4bf   : > { %1921 = vrot.lane.b32.xlu0 %v6006_v8, %s5616_s18  ;;  %5218 = vpow2.f32 %v1251_v22  ;;  %v1511_v24 = vpop.permute.xlu1 %1510 }
 0x4c1   : > { %v1513_v46 = vpop.permute.xlu0 %1512 }
 0x4c3   : > { %1917 = vrot.lane.b32.xlu0 %v5986_v63, %s5616_s18  ;;  %v1509_v51 = vpop.permute.xlu1 %1508 }
 0x4c7   : > { %1913 = vrot.lane.b32.xlu0 %v5990_v1, %s5616_s18  ;;  %v1507_v4 = vpop.permute.xlu1 %1506 }
 0x4c9   : > { %v5215_v43 = vpop.eup %5214 }
 0x4ca   : > { %v1290_v23 = vmul.f32 %v5215_v43, %v6266_v42  ;;  %v7808_v42 = vld [vmem:[#allocation39_spill] sm:$0xff] }
 0x4cb   : > { %v5217_v34 = vpop.eup %5216  ;;  %2166 = vrot.lane.b32.xlu0 %v6103_v3, %s5617_s19  ;;  %v1505_v33 = vpop.permute.xlu1 %1504 }
 0x4cc   : > { %v1288_v27 = vmul.f32 %v5217_v34, %v6269_v15  ;;  %v6383_v14 = vpop.eup %5218  ;;  %v7807_v15 = vld [vmem:[#allocation50_spill] sm:$0xff] }
 0x4cd   : > { %v7820_v34 = vld [vmem:[#allocation46_spill] sm:$0xff] }
 0x4ce   : > { %4505 = vmatprep.mubr.f32.mxu1 %v1288_v27 }
 0x4cf   : > { %2164 = vrot.lane.b32.xlu0 %v6093_v44, %s5617_s19  ;;  %4506 = vmatmul.mubr.f32.vlgmr.msra.gmra.mxu1 %v1290_v23 }
 0x4d0   : > { %4530 = vmatpush3.xpose.msk.msra.mxu1 %vm917_vm0, %v6218_v53  ;;  %v7809_v53 = vld [vmem:[#allocation52_spill] sm:$0xff] }
 0x4d1   : > { %4531 = vmatprep.subr.msk.mxu1 %vm917_vm0, %v6264_v56 }
 0x4d3   : > { %2160 = vrot.lane.b32.xlu0 %v6073_v41, %s5617_s19 }
 0x4d4   : > { %4532 = vmatpush3.xpose.msk.msra.mxu1 %vm917_vm0, %v6264_v56  ;;  %1283 = vadd.xlane.f32.xlu1 %v6383_v14  ;;  %v7811_v56 = vld [vmem:[#allocation49_spill] sm:$0xff] }
 0x4d5   : > { %4533 = vmatprep.subr.msk.mxu1 %vm917_vm0, %v7807_v15 }
 0x4d7   : > { %2156 = vrot.lane.b32.xlu0 %v7808_v42, %s5617_s19 }
 0x4d8   : > { %4534 = vmatpush3.xpose.msk.msra.mxu1 %vm917_vm0, %v7807_v15  ;;  %v7821_v15 = vld [vmem:[#allocation34_spill] sm:$0xff] }
 0x4d9   : > { %4535 = vmatprep.subr.msk.mxu1 %vm917_vm0, %v7809_v53 }
 0x4db   : > { %2152 = vrot.lane.b32.xlu0 %v7810_v2, %s5617_s19 }
 0x4dc   : > { %4536 = vmatpush3.xpose.msk.msra.mxu1 %vm917_vm0, %v7809_v53 }
 0x4dd   : > { %4537 = vmatprep.subr.msk.mxu1 %vm917_vm0, %v7811_v56 }
 0x4e0   : > { %4538 = vmatpush3.xpose.msk.msra.mxu1 %vm917_vm0, %v7811_v56 }
 0x4e1   : > { %4539 = vmatprep.subr.msk.mxu1 %vm917_vm0, %v7812_v16 }
 0x4e4   : > { %4540 = vmatpush3.xpose.msk.msra.mxu1 %vm917_vm0, %v7812_v16 }
 0x4e5   : > { %4541 = vmatprep.subr.msk.mxu1 %vm917_vm0, %v1515_v29  ;;  %1466 = vrot.lane.b32.xlu1 %v7813_v20, %s5616_s18 }
 0x4e8   : > { %4542 = vmatpush3.xpose.msk.msra.mxu1 %vm917_vm0, %v1515_v29  ;;  %v7818_v29 = vld [vmem:[#allocation40_spill] sm:$0xff] }
 0x4e9   : > { %4543 = vmatprep.subr.msk.mxu1 %vm917_vm0, %v1513_v46  ;;  %1468 = vrot.lane.b32.xlu1 %v7814_v37, %s5616_s18 }
 0x4ec   : > { %4544 = vmatpush3.xpose.msk.msra.mxu1 %vm917_vm0, %v1513_v46 }
 0x4ed   : > { %4545 = vmatprep.subr.msk.mxu1 %vm917_vm0, %v1511_v24  ;;  %1472 = vrot.lane.b32.xlu1 %v7815_v59, %s5616_s18 }
 0x4f0   : > { %4546 = vmatpush3.xpose.msk.msra.mxu1 %vm917_vm0, %v1511_v24  ;;  %v7822_v24 = vld [vmem:[#allocation36_spill] sm:$0xff] }
 0x4f1   : > { %4547 = vmatprep.subr.msk.mxu1 %vm917_vm0, %v1509_v51  ;;  %1476 = vrot.lane.b32.xlu1 %v7816_v60, %s5616_s18 }
 0x4f2   : > { %v1262_v19 = vpop.xlane.xlu0 %1261 }
 0x4f3   : > { %5220 = vrcp.f32 %v1262_v19 }
 0x4f4   : > { %4548 = vmatpush3.xpose.msk.msra.mxu1 %vm917_vm0, %v1509_v51 }
 0x4f5   : > { %4549 = vmatprep.subr.msk.mxu1 %vm917_vm0, %v1507_v4  ;;  %1480 = vrot.lane.b32.xlu1 %v7817_v13, %s5616_s18 }
 0x4f6   : > { %v1268_v30 = vpop.xlane.xlu0 %1267 }
 0x4f8   : > { %4550 = vmatpush3.xpose.msk.msra.mxu1 %vm917_vm0, %v1507_v4 }
 0x4f9   : > { %4551 = vmatprep.subr.msk.mxu1 %vm917_vm0, %v1505_v33  ;;  %1484 = vrot.lane.b32.xlu1 %v7818_v29, %s5616_s18 }
 0x4fa   : > { %v1276_v45 = vpop.xlane.xlu0 %1275 }
 0x4fc   : > { %4552 = vmatpush3.xpose.msk.msra.mxu1 %vm917_vm0, %v1505_v33  ;;  %v1260_v11 = vpop.xlane.xlu1 %1259  ;;  %v7823_v33 = vld [vmem:[#allocation27_spill] sm:$0xff] }
 0x4fd   : > { %5222 = vrcp.f32 %v1260_v11  ;;  %1488 = vrot.lane.b32.xlu1 %v7819_v54, %s5616_s18 }
 0x4fe   : > { %v6436_v22 = vpop.xlane.xlu0 %1285  ;;  %5224 = vrcp.f32 %v1268_v30 }
 0x500   : > { %v1266_v43 = vpop.xlane.xlu1 %1265  ;;  %v5221_v16 = vpop.eup %5220 }
 0x501   : > { %1492 = vrot.lane.b32.xlu1 %v7820_v34, %s5616_s18  ;;  %5226 = vrcp.f32 %v1266_v43  ;;  %v1294_v30 = vmul.f32 %v5221_v16, %v6287_v55 }
 0x502   : > { %v1503_v27 = vpop.permute.xlu0 %1502 }
 0x503   : > { %4553 = vmatprep.subr.msk.mxu1 %vm917_vm0, %v1503_v27 }
 0x504   : > { %v1264_v23 = vpop.xlane.xlu1 %1263  ;;  %4554 = vmatpush3.xpose.msk.msra.mxu1 %vm917_vm0, %v1503_v27 }
 0x505   : > { %5228 = vrcp.f32 %v1264_v23  ;;  %1941 = vrot.lane.b32.xlu1 %v7821_v15, %s5616_s18 }
 0x506   : > { %v6444_v53 = vpop.permute.xlu0 %1470 }
 0x508   : > { %v1270_v56 = vpop.xlane.xlu1 %1269 }
 0x509   : > { %5230 = vrcp.f32 %v1270_v56  ;;  %1937 = vrot.lane.b32.xlu1 %v7822_v24, %s5616_s18  ;;  %v7824_v56 = vld [vmem:[#allocation33_spill] sm:$0xff] }
 0x50a   : > { %v5223_v46 = vpop.eup %5222  ;;  %v6448_v51 = vpop.permute.xlu0 %1474  ;;  %5232 = vrcp.f32 %v1276_v45 }
 0x50b   : > { %v1292_v4 = vmul.f32 %v5223_v46, %v6299_v12  ;;  %v5225_v43 = vpop.eup %5224 }
 0x50c   : > { %v1274_v19 = vpop.xlane.xlu1 %1273  ;;  %v1300_v45 = vmul.f32 %v5225_v43, %v6291_v9  ;;  %v7827_v9 = vld [vmem:[#allocation17_spill] sm:$0xff] }
 0x50d   : > { %1933 = vrot.lane.b32.xlu1 %v7823_v33, %s5616_s18  ;;  %4508 = vmatprep.mubr.f32.mxu1 %v1292_v4  ;;  %5234 = vrcp.f32 %v1274_v19 }
 0x50e   : > { %4509 = vmatmul.mubr.f32.gmra.mxu1 %v1294_v30  ;;  %v6454_v11 = vpop.permute.xlu0 %1478  ;;  %v5227_v23 = vpop.eup %5226  ;;  %v7825_v30 = vld [vmem:[#allocation24_spill] sm:$0xff] }
 0x50f   : > { %v1298_v4 = vmul.f32 %v5227_v23, %v6306_v52 }
 0x510   : > { %v1272_v27 = vpop.xlane.xlu1 %1271 }
 0x511   : > { %5236 = vrcp.f32 %v1272_v27  ;;  %1931 = vrot.lane.b32.xlu1 %v7824_v56, %s5616_s18 }
 0x512   : > { %v5229_v12 = vpop.eup %5228  ;;  %v6458_v46 = vpop.permute.xlu0 %1482 }
 0x513   : > { %v1296_v55 = vmul.f32 %v5229_v12, %v6310_v61  ;;  %v7826_v61 = vld [vmem:[#allocation26_spill] sm:$0xff] }
 0x514   : > { %v1278_v16 = vpop.xlane.xlu1 %1277 }
 0x515   : > { %5238 = vrcp.f32 %v1278_v16  ;;  %1927 = vrot.lane.b32.xlu1 %v7825_v30, %s5616_s18  ;;  %4511 = vmatprep.mubr.f32.mxu1 %v1296_v55 }
 0x516   : > { %v5231_v19 = vpop.eup %5230  ;;  %4512 = vmatmul.mubr.f32.gmra.mxu1 %v1298_v4  ;;  %v6465_v27 = vpop.permute.xlu0 %1486 }
 0x517   : > { %4514 = vmatprep.mubr.f32.mxu1 %v1300_v45  ;;  %v1302_v2 = vmul.f32 %v5231_v19, %v6314_v62  ;;  %v5233_v23 = vpop.eup %5232 }
 0x518   : > { %v1282_v42 = vpop.xlane.xlu1 %1281 }
 0x519   : > { %1923 = vrot.lane.b32.xlu1 %v7826_v61, %s5616_s18  ;;  %5240 = vrcp.f32 %v1282_v42  ;;  %v1308_v42 = vmul.f32 %v5233_v23, %v6295_v17 }
 0x51a   : > { %4515 = vmatmul.mubr.f32.gmra.mxu1 %v1302_v2  ;;  %v6470_v52 = vpop.permute.xlu0 %1490  ;;  %v5235_v55 = vpop.eup %5234  ;;  %v7828_v2 = vld [vmem:[#allocation19_spill] sm:$0xff] }
 0x51b   : > { %v1306_v45 = vmul.f32 %v5235_v55, %v6317_v5  ;;  %v7829_v5 = vld [vmem:[#allocation48_spill] sm:$0xff] }
 0x51c   : > { %v1280_v12 = vpop.xlane.xlu1 %1279  ;;  %v7830_v55 = vld [vmem:[#allocation44_spill] sm:$0xff] }
 0x51d   : > { %5242 = vrcp.f32 %v1280_v12  ;;  %1919 = vrot.lane.b32.xlu1 %v7827_v9, %s5616_s18 }
 0x51e   : > { %v5237_v43 = vpop.eup %5236  ;;  %v6474_v16 = vpop.permute.xlu0 %1494  ;;  %5244 = vrcp.f32 %v6436_v22 }
 0x51f   : > { %v1304_v62 = vmul.f32 %v5237_v43, %v6320_v48 }
 0x520   : > { %v1501_v4 = vpop.permute.xlu1 %1500 }
 0x521   : > { %1915 = vrot.lane.b32.xlu1 %v7828_v2, %s5616_s18  ;;  %4517 = vmatprep.mubr.f32.mxu1 %v1304_v62 }
 0x522   : > { %v5239_v19 = vpop.eup %5238  ;;  %4555 = vmatprep.subr.msk.mxu1 %vm917_vm0, %v1501_v4  ;;  %4518 = vmatmul.mubr.f32.gmra.mxu1 %v1306_v45  ;;  %v1944_v12 = vpop.permute.xlu0 %1943 }
 0x523   : > { %4556 = vmatpush3.xpose.msk.msra.mxu1 %vm917_vm0, %v1501_v4  ;;  %4520 = vmatprep.mubr.f32.mxu1 %v1308_v42  ;;  %v1310_v41 = vmul.f32 %v5239_v19, %v6323_v50  ;;  %v7831_v4 = vld [vmem:[#allocation41_spill] sm:$0xff] }
 0x524   : > { %4585 = vmatprep.subr.mxu0 %v1944_v12  ;;  %v1499_v48 = vpop.permute.xlu1 %1498 }
 0x525   : > { %4586 = vmatpush3.msra.mxu0 %v1944_v12  ;;  %2168 = vrot.lane.b32.xlu1 %v7829_v5, %s5617_s19 }
 0x526   : > { %4557 = vmatprep.subr.msk.mxu1 %vm917_vm0, %v1499_v48  ;;  %4521 = vmatmul.mubr.f32.gmra.mxu1 %v1310_v41  ;;  %v5241_v23 = vpop.eup %5240  ;;  %v7832_v41 = vld [vmem:[#allocation38_spill] sm:$0xff] }
 0x527   : > { %4558 = vmatpush3.xpose.msk.msra.mxu1 %vm917_vm0, %v1499_v48  ;;  %v1314_v62 = vmul.f32 %v5241_v23, %v6328_v18 }
 0x528   : > { %v1497_v17 = vpop.permute.xlu1 %1496 }
 0x529   : > { %2162 = vrot.lane.b32.xlu1 %v7830_v55, %s5617_s19  ;;  %4559 = vmatprep.subr.msk.mxu1 %vm917_vm0, %v1497_v17 }
 0x52a   : > { %v5243_v43 = vpop.eup %5242 }
 0x52b   : > { %4560 = vmatpush3.xpose.msk.msra.mxu1 %vm917_vm0, %v1497_v17  ;;  %v1312_v50 = vmul.f32 %v5243_v43, %v6333_v10  ;;  %v5245_v17 = vpop.eup %5244 }
 0x52c   : > { %v1465_v45 = vpop.permute.xlu1 %1464  ;;  %v1318_v43 = vmul.f32 %v5245_v17, %v6302_v36 }
 0x52d   : > { %2158 = vrot.lane.b32.xlu1 %v7831_v4, %s5617_s19  ;;  %4523 = vmatprep.mubr.f32.mxu1 %v1312_v50 }
 0x52e   : > { %4524 = vmatmul.mubr.f32.gmra.mxu1 %v1314_v62 }
 0x531   : > { %2154 = vrot.lane.b32.xlu1 %v7832_v41, %s5617_s19 }
 0x55d   : > { %v1284_v42 = vpop.xlane.xlu1 %1283 }
 0x55e   : > { %5246 = vrcp.f32 %v1284_v42 }
 0x561   : > { %v1467_v19 = vpop.permute.xlu1 %1466 }
 0x565   : > { %v1469_v12 = vpop.permute.xlu1 %1468 }
 0x569   : > { %v1473_v48 = vpop.permute.xlu1 %1472 }
 0x56b   : > { %v5247_v10 = vpop.eup %5246 }
 0x56c   : > { %v1316_v18 = vmul.f32 %v5247_v10, %v6383_v14  ;;  %v1940_v14 = vpop.permute.xlu0 %1939 }
 0x56d   : > { %v1477_v23 = vpop.permute.xlu1 %1476 }
 0x56e   : > { %4526 = vmatprep.mubr.f32.mxu1 %v1316_v18 }
 0x56f   : > { %4527 = vmatmul.mubr.f32.gmra.mxu1 %v1318_v43 }
 0x570   : > { %4561 = vmatprep.mubr.msk.f32.mxu1 %vm917_vm0, %v1465_v45  ;;  %v1936_v45 = vpop.permute.xlu0 %1935 }
 0x571   : > { %v1481_v50 = vpop.permute.xlu1 %1480 }
 0x573   : > { %4562 = vmatmul.mubr.msk.f32.vlgmr.msra.gmra.mxu1 %vm917_vm0, %v1467_v19 }
 0x574   : > { %4564 = vmatprep.mubr.msk.f32.mxu1 %vm917_vm0, %v1469_v12 }
 0x575   : > { %v1485_v22 = vpop.permute.xlu1 %1484 }
 0x577   : > { %4565 = vmatmul.mubr.msk.f32.gmra.mxu1 %vm917_vm0, %v6444_v53 }
 0x578   : > { %4567 = vmatprep.mubr.msk.f32.mxu1 %vm917_vm0, %v1473_v48 }
 0x579   : > { %v1489_v62 = vpop.permute.xlu1 %1488 }
 0x57b   : > { %4568 = vmatmul.mubr.msk.f32.gmra.mxu1 %vm917_vm0, %v6448_v51  ;;  %v1930_v51 = vpop.permute.xlu0 %1929 }
 0x57c   : > { %4570 = vmatprep.mubr.msk.f32.mxu1 %vm917_vm0, %v1477_v23 }
 0x57d   : > { %v1493_v36 = vpop.permute.xlu1 %1492 }
 0x57f   : > { %4571 = vmatmul.mubr.msk.f32.gmra.mxu1 %vm917_vm0, %v6454_v11 }
 0x580   : > { %4573 = vmatprep.mubr.msk.f32.mxu1 %vm917_vm0, %v1481_v50 }
 0x581   : > { %v1942_v42 = vpop.permute.xlu1 %1941 }
 0x582   : > { %4587 = vmatprep.subr.mxu0 %v1942_v42 }
 0x583   : > { %4574 = vmatmul.mubr.msk.f32.gmra.mxu1 %vm917_vm0, %v6458_v46  ;;  %4588 = vmatpush3.msra.mxu0 %v1942_v42  ;;  %v1926_v46 = vpop.permute.xlu0 %1925 }
 0x584   : > { %4576 = vmatprep.mubr.msk.f32.mxu1 %vm917_vm0, %v1485_v22  ;;  %4589 = vmatprep.subr.mxu0 %v1940_v14 }
 0x585   : > { %v1938_v53 = vpop.permute.xlu1 %1937  ;;  %4590 = vmatpush3.msra.mxu0 %v1940_v14 }
 0x586   : > { %4591 = vmatprep.subr.mxu0 %v1938_v53 }
 0x587   : > { %4577 = vmatmul.mubr.msk.f32.gmra.mxu1 %vm917_vm0, %v6465_v27  ;;  %4592 = vmatpush3.msra.mxu0 %v1938_v53  ;;  %v1922_v12 = vpop.permute.xlu0 %1921 }
 0x588   : > { %4579 = vmatprep.mubr.msk.f32.mxu1 %vm917_vm0, %v1489_v62  ;;  %4593 = vmatprep.subr.mxu0 %v1936_v45 }
 0x589   : > { %v1934_v11 = vpop.permute.xlu1 %1933  ;;  %4594 = vmatpush3.msra.mxu0 %v1936_v45 }
 0x58a   : > { %4595 = vmatprep.subr.mxu0 %v1934_v11 }
 0x58b   : > { %4580 = vmatmul.mubr.msk.f32.gmra.mxu1 %vm917_vm0, %v6470_v52  ;;  %4596 = vmatpush3.msra.mxu0 %v1934_v11  ;;  %v1918_v52 = vpop.permute.xlu0 %1917 }
 0x58c   : > { %4582 = vmatprep.mubr.msk.f32.mxu1 %vm917_vm0, %v1493_v36 }
 0x58d   : > { %v1932_v19 = vpop.permute.xlu1 %1931 }
 0x58e   : > { %4597 = vmatprep.subr.mxu0 %v1932_v19 }
 0x58f   : > { %4583 = vmatmul.mubr.msk.f32.gmra.mxu1 %vm917_vm0, %v6474_v16  ;;  %4598 = vmatpush3.msra.mxu0 %v1932_v19  ;;  %v1914_v10 = vpop.permute.xlu0 %1913  ;;  %v6528_v23 = vpop.f32.mrf.mxu1 }
 0x590   : > { %4599 = vmatprep.subr.mxu0 %v1930_v51  ;;  %7833 = vst [vmem:[#allocation50_spill] sm:$0xff] %v6528_v23 }
 0x591   : > { %v1928_v27 = vpop.permute.xlu1 %1927  ;;  %4600 = vmatpush3.msra.mxu0 %v1930_v51  ;;  %v6530_v43 = vpop.f32.mrf.mxu1 }
 0x592   : > { %4601 = vmatprep.subr.mxu0 %v1928_v27  ;;  %7834 = vst [vmem:[#allocation52_spill] sm:$0xff] %v6530_v43 }
 0x593   : > { %4602 = vmatpush3.msra.mxu0 %v1928_v27 }
 0x594   : > { %4603 = vmatprep.subr.mxu0 %v1926_v46 }
 0x595   : > { %v1924_v48 = vpop.permute.xlu1 %1923  ;;  %4604 = vmatpush3.msra.mxu0 %v1926_v46 }
 0x596   : > { %4605 = vmatprep.subr.mxu0 %v1924_v48 }
 0x597   : > { %4606 = vmatpush3.msra.mxu0 %v1924_v48 }
 0x598   : > { %4607 = vmatprep.subr.mxu0 %v1922_v12 }
 0x599   : > { %v1920_v17 = vpop.permute.xlu1 %1919  ;;  %4608 = vmatpush3.msra.mxu0 %v1922_v12 }
 0x59a   : > { %4609 = vmatprep.subr.mxu0 %v1920_v17 }
 0x59b   : > { %4610 = vmatpush3.msra.mxu0 %v1920_v17 }
 0x59c   : > { %4611 = vmatprep.subr.mxu0 %v1918_v52 }
 0x59d   : > { %v1916_v16 = vpop.permute.xlu1 %1915  ;;  %4612 = vmatpush3.msra.mxu0 %v1918_v52 }
 0x59e   : > { %4613 = vmatprep.subr.mxu0 %v1916_v16 }
 0x59f   : > { %4614 = vmatpush3.msra.mxu0 %v1916_v16 }
 0x5a0   : > { %4615 = vmatprep.subr.mxu0 %v1914_v10 }
 0x5a1   : > { %v6524_v18 = vpop.permute.xlu1 %2168  ;;  %4616 = vmatpush3.msra.mxu0 %v1914_v10  ;;  %v7849_v10 = vld [vmem:[#allocation32_spill] sm:$0xff] }
 0x5a2   : > { %4641 = vmatprep.subr.msk.mxu0 %vm917_vm0, %v6524_v18 }
 0x5a5   : > { %v6616_v41 = vpop.permute.xlu1 %2162 }
 0x5a9   : > { %v6620_v4 = vpop.permute.xlu1 %2158 }
 0x5ad   : > { %v6624_v55 = vpop.permute.xlu1 %2154 }
 0x5ce   : > { %v6532_v50 = vpop.f32.mrf.mxu1 }
 0x5cf   : > { %7835 = vst [vmem:[#allocation49_spill] sm:$0xff] %v6532_v50 }
 0x5d0   : > { %v6534_v22 = vpop.f32.mrf.mxu1 }
 0x5d1   : > { %7836 = vst [vmem:[#allocation51_spill] sm:$0xff] %v6534_v22 }
 0x5d6   : > { %v6536_v62 = vpop.f32.mrf.mxu1 }
 0x5d7   : > { %7837 = vst [vmem:[#allocation12_spill] sm:$0xff] %v6536_v62 }
 0x5d8   : > { %v6538_v14 = vpop.f32.mrf.mxu1 }
 0x5d9   : > { %7838 = vst [vmem:[#allocation16_spill] sm:$0xff] %v6538_v14 }
 0x5da   : > { %v6540_v36 = vpop.f32.mrf.mxu1 }
 0x5db   : > { %7839 = vst [vmem:[#allocation23_spill] sm:$0xff] %v6540_v36 }
 0x5dc   : > { %v6542_v45 = vpop.f32.mrf.mxu1 }
 0x5dd   : > { %7840 = vst [vmem:[#allocation30_spill] sm:$0xff] %v6542_v45 }
 0x5e2   : > { %v6544_v42 = vpop.f32.mrf.mxu1 }
 0x5e3   : > { %7841 = vst [vmem:[#allocation37_spill] sm:$0xff] %v6544_v42 }
 0x5e4   : > { %v6546_v53 = vpop.f32.mrf.mxu1 }
 0x5e5   : > { %7842 = vst [vmem:[#allocation40_spill] sm:$0xff] %v6546_v53 }
 0x5e6   : > { %v6548_v51 = vpop.f32.mrf.mxu1 }
 0x5e7   : > { %7843 = vst [vmem:[#allocation43_spill] sm:$0xff] %v6548_v51 }
 0x5e8   : > { %v6550_v11 = vpop.f32.mrf.mxu1 }
 0x5e9   : > { %7844 = vst [vmem:[#allocation46_spill] sm:$0xff] %v6550_v11  ;;  %v7850_v11 = vld [vmem:[#allocation28_spill] sm:$0xff] }
 0x5ee   : > { %v6552_v46 = vpop.f32.mrf.mxu1 }
 0x5ef   : > { %7845 = vst [vmem:[#allocation34_spill] sm:$0xff] %v6552_v46 }
 0x5f0   : > { %v6554_v19 = vpop.f32.mrf.mxu1 }
 0x5f1   : > { %7846 = vst [vmem:[#allocation53_spill] sm:$0xff] %v6554_v19  ;;  %v7851_v19 = vld [vmem:[#allocation25_spill] sm:$0xff] }
 0x62f   : > { %v6556_v27 = vpop.f32.mrf.mxu1 }
 0x630   : > { %7847 = vst [vmem:[#allocation54_spill] sm:$0xff] %v6556_v27 }
 0x631   : > { %v6558_v12 = vpop.f32.mrf.mxu1 }
 0x632   : > { %7848 = vst [vmem:[#allocation55_spill] sm:$0xff] %v6558_v12 }
 0x633   : > { %v4563_v48 = vpop.f32.mrf.mxu1 }
 0x634   : > { %v1738_v52 = vmul.f32 0.17677669, %v4563_v48 }
 0x635   : > { %v1658_v17 = vpop.f32.mrf.mxu1 }
 0x636   : > { %v6560_v16 = vmul.f32 0.17677669, %v1658_v17  ;;  %1755 = vmax.xlane.f32.xlu0 %v1738_v52 }
 0x637   : > { %v4566_v46 = vpop.f32.mrf.mxu1 }
 0x638   : > { %1753 = vmax.xlane.f32.xlu1 %v6560_v16  ;;  %v1740_v45 = vmul.f32 0.17677669, %v4566_v46 }
 0x639   : > { %v1668_v27 = vpop.f32.mrf.mxu1 }
 0x63a   : > { %v6569_v36 = vmul.f32 0.17677669, %v1668_v27 }
 0x63b   : > { %v4569_v12 = vpop.f32.mrf.mxu1 }
 0x63c   : > { %v6571_v62 = vmul.f32 0.17677669, %v4569_v12 }
 0x63d   : > { %v1678_v51 = vpop.f32.mrf.mxu1 }
 0x63e   : > { %v6574_v22 = vmul.f32 0.17677669, %v1678_v51 }
 0x63f   : > { %v4572_v48 = vpop.f32.mrf.mxu1 }
 0x640   : > { %v6577_v43 = vmul.f32 0.17677669, %v4572_v48 }
 0x641   : > { %v1688_v53 = vpop.f32.mrf.mxu1 }
 0x642   : > { %v6580_v23 = vmul.f32 0.17677669, %v1688_v53 }
 0x643   : > { %v4575_v17 = vpop.f32.mrf.mxu1 }
 0x644   : > { %v6583_v27 = vmul.f32 0.17677669, %v4575_v17 }
 0x645   : > { %v1698_v42 = vpop.f32.mrf.mxu1 }
 0x646   : > { %v6586_v12 = vmul.f32 0.17677669, %v1698_v42 }
 0x647   : > { %v4578_v14 = vpop.f32.mrf.mxu1 }
 0x649   : > { %2150 = vrot.lane.b32.xlu1 %v7849_v10, %s5617_s19  ;;  %v1708_v50 = vpop.f32.mrf.mxu1 }
 0x64a   : > { %v6592_v48 = vmul.f32 0.17677669, %v1708_v50  ;;  %v6610_v50 = vpop.permute.xlu0 %2166 }
 0x64b   : > { %v4581_v46 = vpop.f32.mrf.mxu1 }
 0x64c   : > { %2148 = vrot.lane.b32.xlu0 %v7850_v11, %s5617_s19  ;;  %v6595_v11 = vmul.f32 0.17677669, %v4581_v46 }
 0x64d   : > { %v1718_v51 = vpop.f32.mrf.mxu1 }
 0x64e   : > { %v6598_v17 = vmul.f32 0.17677669, %v1718_v51  ;;  %v6612_v46 = vpop.permute.xlu0 %2164 }
 0x64f   : > { %v4584_v53 = vpop.f32.mrf.mxu1 }
 0x650   : > { %2146 = vrot.lane.b32.xlu0 %v7851_v19, %s5617_s19  ;;  %v6589_v19 = vmul.f32 0.17677669, %v4578_v14  ;;  %v6601_v10 = vmul.f32 0.17677669, %v4584_v53 }
 0x651   : > { %v1728_v42 = vpop.f32.mrf.mxu1 }
 0x652   : > { %v6604_v14 = vmul.f32 0.17677669, %v1728_v42  ;;  %v6614_v51 = vpop.permute.xlu0 %2160 }
 0x656   : > { %v6618_v53 = vpop.permute.xlu0 %2156 }
 0x65a   : > { %v6622_v42 = vpop.permute.xlu0 %2152 }
 0x66d   : > { %1759 = vmax.xlane.f32.xlu1 %v1740_v45 }
 0x66f   : > { %1757 = vmax.xlane.f32.xlu0 %v6569_v36 }
 0x671   : > { %1763 = vmax.xlane.f32.xlu1 %v6571_v62 }
 0x673   : > { %1761 = vmax.xlane.f32.xlu0 %v6574_v22 }
 0x675   : > { %1767 = vmax.xlane.f32.xlu1 %v6577_v43 }
 0x677   : > { %1765 = vmax.xlane.f32.xlu0 %v6580_v23 }
 0x679   : > { %1771 = vmax.xlane.f32.xlu1 %v6583_v27 }
 0x67b   : > { %1769 = vmax.xlane.f32.xlu0 %v6586_v12 }
 0x67d   : > { %1775 = vmax.xlane.f32.xlu1 %v6589_v19 }
 0x67f   : > { %1773 = vmax.xlane.f32.xlu0 %v6592_v48 }
 0x681   : > { %1779 = vmax.xlane.f32.xlu1 %v6595_v11 }
 0x683   : > { %1777 = vmax.xlane.f32.xlu0 %v6598_v17 }
 0x685   : > { %1783 = vmax.xlane.f32.xlu1 %v6601_v10 }
 0x687   : > { %1781 = vmax.xlane.f32.xlu0 %v6604_v14 }
 0x69d   : > { %2144 = vrot.lane.b32.xlu0 %v6004_v7, %s5617_s19 }
 0x6bf   : > { %v1756_v44 = vpop.xlane.xlu0 %1755 }
 0x6c0   : > { %v1786_v5 = vsub.f32 %v1738_v52, %v1756_v44 }
 0x6c1   : > { %v1754_v3 = vpop.xlane.xlu1 %1753 }
 0x6c2   : > { %v1803_v7 = vmul.f32 1.442695, %v1786_v5  ;;  %v1785_v2 = vsub.f32 %v6560_v16, %v1754_v3 }
 0x6c3   : > { %v6633_v61 = vpop.permute.xlu0 %2148 }
 0x6c4   : > { %5248 = vpow2.f32 %v1803_v7  ;;  %v1801_v1 = vmul.f32 1.442695, %v1785_v2  ;;  %7852 = vst [vmem:[#allocation56_spill] sm:$0xff] %v6633_v61 }
 0x6c5   : > { %v6635_v8 = vpop.permute.xlu1 %2150 }
 0x6c6   : > { %5250 = vpow2.f32 %v1801_v1 }
 0x6c7   : > { %v6637_v44 = vpop.permute.xlu0 %2146 }
 0x6d1   : > { %v6627_v9 = vpop.eup %5248 }
 0x6d2   : > { %1835 = vadd.xlane.f32.xlu0 %v6627_v9 }
 0x6d3   : > { %v6630_v63 = vpop.eup %5250 }
 0x6d4   : > { %1833 = vadd.xlane.f32.xlu1 %v6630_v63 }
 0x6f6   : > { %v1760_v5 = vpop.xlane.xlu1 %1759 }
 0x6f7   : > { %v1788_v52 = vsub.f32 %v1740_v45, %v1760_v5 }
 0x6f8   : > { %v1758_v3 = vpop.xlane.xlu0 %1757 }
 0x6f9   : > { %v1807_v7 = vmul.f32 1.442695, %v1788_v52  ;;  %v1787_v1 = vsub.f32 %v6569_v36, %v1758_v3 }
 0x6fa   : > { %v1764_v2 = vpop.xlane.xlu1 %1763 }
 0x6fb   : > { %5252 = vpow2.f32 %v1807_v7  ;;  %v1805_v16 = vmul.f32 1.442695, %v1787_v1  ;;  %v1790_v30 = vsub.f32 %v6571_v62, %v1764_v2 }
 0x6fc   : > { %v1762_v38 = vpop.xlane.xlu0 %1761 }
 0x6fd   : > { %5254 = vpow2.f32 %v1805_v16  ;;  %v1811_v56 = vmul.f32 1.442695, %v1790_v30  ;;  %v1789_v21 = vsub.f32 %v6574_v22, %v1762_v38 }
 0x6fe   : > { %v1768_v33 = vpop.xlane.xlu1 %1767 }
 0x6ff   : > { %v1809_v61 = vmul.f32 1.442695, %v1789_v21  ;;  %5256 = vpow2.f32 %v1811_v56  ;;  %v1792_v45 = vsub.f32 %v6577_v43, %v1768_v33 }
 0x700   : > { %v1766_v26 = vpop.xlane.xlu0 %1765 }
 0x701   : > { %v1791_v5 = vsub.f32 %v6580_v23, %v1766_v26  ;;  %5258 = vpow2.f32 %v1809_v61  ;;  %v1815_v36 = vmul.f32 1.442695, %v1792_v45 }
 0x702   : > { %v1772_v56 = vpop.xlane.xlu1 %1771 }
 0x703   : > { %v1813_v52 = vmul.f32 1.442695, %v1791_v5  ;;  %v1794_v7 = vsub.f32 %v6583_v27, %v1772_v56 }
 0x704   : > { %v1770_v61 = vpop.xlane.xlu0 %1769 }
 0x705   : > { %5260 = vpow2.f32 %v1813_v52  ;;  %v1819_v45 = vmul.f32 1.442695, %v1794_v7  ;;  %v1793_v5 = vsub.f32 %v6586_v12, %v1770_v61 }
 0x706   : > { %5262 = vpow2.f32 %v1815_v36  ;;  %v1776_v23 = vpop.xlane.xlu1 %1775 }
 0x708   : > { %v6644_v3 = vpop.eup %5252  ;;  %v1774_v43 = vpop.xlane.xlu0 %1773 }
 0x709   : > { %1839 = vadd.xlane.f32.xlu0 %v6644_v3  ;;  %v1795_v62 = vsub.f32 %v6592_v48, %v1774_v43 }
 0x70a   : > { %v6647_v30 = vpop.eup %5254  ;;  %v1780_v22 = vpop.xlane.xlu1 %1779 }
 0x70b   : > { %1837 = vadd.xlane.f32.xlu1 %v6647_v30  ;;  %v1821_v1 = vmul.f32 1.442695, %v1795_v62  ;;  %v1798_v2 = vsub.f32 %v6595_v11, %v1780_v22 }
 0x70c   : > { %v6650_v38 = vpop.eup %5256 }
 0x70d   : > { %5264 = vpow2.f32 %v1821_v1  ;;  %v1827_v52 = vmul.f32 1.442695, %v1798_v2 }
 0x70e   : > { %v6653_v21 = vpop.eup %5258  ;;  %v1784_v16 = vpop.xlane.xlu1 %1783  ;;  %5266 = vpow2.f32 %v1819_v45 }
 0x70f   : > { %1843 = vadd.xlane.f32.xlu1 %v6650_v38  ;;  %v1800_v36 = vsub.f32 %v6601_v10, %v1784_v16  ;;  %5268 = vpow2.f32 %v1827_v52 }
 0x711   : > { %v1831_v48 = vmul.f32 1.442695, %v1800_v36 }
 0x712   : > { %v6655_v26 = vpop.eup %5260 }
 0x713   : > { %1841 = vadd.xlane.f32.xlu1 %v6653_v21  ;;  %1845 = vadd.xlane.f32.xlu0 %v6655_v26  ;;  %v6659_v33 = vpop.eup %5262 }
 0x714   : > { %7853 = vst [vmem:[#allocation57_spill] sm:$0xff] %v6659_v33 }
 0x717   : > { %1847 = vadd.xlane.f32.xlu1 %v6659_v33  ;;  %v1796_v33 = vsub.f32 %v6589_v19, %v1776_v23 }
 0x719   : > { %v1823_v27 = vmul.f32 1.442695, %v1796_v33 }
 0x71a   : > { %v6674_v61 = vpop.eup %5264 }
 0x71b   : > { %v6677_v10 = vpop.eup %5266 }
 0x71c   : > { %v6679_v23 = vpop.eup %5268 }
 0x728   : > { %2140 = vrot.lane.b32.xlu1 %v5988_v0, %s5617_s19  ;;  %v1778_v0 = vpop.xlane.xlu0 %1777 }
 0x729   : > { %2142 = vrot.lane.b32.xlu0 %v5996_v31, %s5617_s19  ;;  %v1817_v31 = vmul.f32 1.442695, %v1793_v5  ;;  %v1797_v56 = vsub.f32 %v6598_v17, %v1778_v0  ;;  %v7861_v5 = vld [vmem:[#allocation22_spill] sm:$0xff] }
 0x72b   : > { %5270 = vpow2.f32 %v1817_v31  ;;  %v1825_v43 = vmul.f32 1.442695, %v1797_v56  ;;  %v7863_v56 = vld [vmem:[#allocation13_spill] sm:$0xff] }
 0x72c   : > { %5272 = vpow2.f32 %v1831_v48  ;;  %v1782_v11 = vpop.xlane.xlu0 %1781 }
 0x72d   : > { %5274 = vpow2.f32 %v1823_v27  ;;  %v1799_v12 = vsub.f32 %v6604_v14, %v1782_v11 }
 0x72e   : > { %5276 = vpow2.f32 %v1825_v43 }
 0x72f   : > { %v1829_v19 = vmul.f32 1.442695, %v1799_v12  ;;  %v7864_v12 = vld [vmem:[#allocation17_spill] sm:$0xff] }
 0x730   : > { %v6694_v33 = vpop.permute.xlu0 %2144 }
 0x731   : > { %5278 = vpow2.f32 %v1829_v19 }
 0x738   : > { %v6683_v0 = vpop.eup %5270 }
 0x739   : > { %v6685_v31 = vpop.eup %5272 }
 0x73a   : > { %v6689_v17 = vpop.eup %5274 }
 0x73b   : > { %v6692_v14 = vpop.eup %5276 }
 0x73e   : > { %v6697_v22 = vpop.eup %5278 }
 0x748   : > { %1853 = vadd.xlane.f32.xlu0 %v6674_v61 }
 0x74c   : > { %1851 = vadd.xlane.f32.xlu1 %v6677_v10  ;;  %1859 = vadd.xlane.f32.xlu0 %v6679_v23 }
 0x750   : > { %1849 = vadd.xlane.f32.xlu1 %v6683_v0  ;;  %1863 = vadd.xlane.f32.xlu0 %v6685_v31 }
 0x754   : > { %1855 = vadd.xlane.f32.xlu1 %v6689_v17 }
 0x758   : > { %1857 = vadd.xlane.f32.xlu1 %v6692_v14 }
 0x75b   : > { %v1836_v62 = vpop.xlane.xlu0 %1835 }
 0x75c   : > { %1861 = vadd.xlane.f32.xlu1 %v6697_v22  ;;  %5280 = vrcp.f32 %v1836_v62 }
 0x75d   : > { %v1834_v7 = vpop.xlane.xlu1 %1833 }
 0x75e   : > { %5282 = vrcp.f32 %v1834_v7 }
 0x766   : > { %2138 = vrot.lane.b32.xlu0 %v5982_v25, %s5617_s19 }
 0x769   : > { %v5281_v1 = vpop.eup %5280 }
 0x76a   : > { %2108 = vrot.lane.b32.xlu0 %v7813_v20, %s5617_s19  ;;  %v1868_v45 = vmul.f32 %v5281_v1, %v6627_v9  ;;  %v7867_v1 = vld [vmem:[#allocation47_spill] sm:$0xff] }
 0x76b   : > { %v5283_v2 = vpop.eup %5282 }
 0x76c   : > { %v1866_v16 = vmul.f32 %v5283_v2, %v6630_v63  ;;  %v7854_v63 = vld [vmem:[#allocation31_spill] sm:$0xff] }
 0x76d   : > { %2106 = vrot.lane.b32.xlu1 %v5978_v32, %s5617_s19 }
 0x76e   : > { %4617 = vmatprep.mubr.f32.mxu0 %v1866_v16  ;;  %2112 = vrot.lane.b32.xlu0 %v6000_v6, %s5617_s19 }
 0x76f   : > { %4618 = vmatmul.mubr.f32.vlgmr.msra.gmra.mxu0 %v1868_v45  ;;  %v7868_v45 = vld [vmem:[#allocation48_spill] sm:$0xff] }
 0x770   : > { %4642 = vmatpush3.xpose.msk.msra.mxu0 %vm917_vm0, %v6524_v18  ;;  %v7857_v18 = vld [vmem:[#allocation29_spill] sm:$0xff] }
 0x771   : > { %4643 = vmatprep.subr.msk.mxu0 %vm917_vm0, %v6610_v50  ;;  %2110 = vrot.lane.b32.xlu1 %v7814_v37, %s5617_s19 }
 0x772   : > { %2116 = vrot.lane.b32.xlu0 %v6016_v39, %s5617_s19 }
 0x774   : > { %4644 = vmatpush3.xpose.msk.msra.mxu0 %vm917_vm0, %v6610_v50 }
 0x775   : > { %4645 = vmatprep.subr.msk.mxu0 %vm917_vm0, %v6612_v46  ;;  %2114 = vrot.lane.b32.xlu1 %v7815_v59, %s5617_s19 }
 0x776   : > { %2120 = vrot.lane.b32.xlu0 %v6032_v28, %s5617_s19 }
 0x778   : > { %4646 = vmatpush3.xpose.msk.msra.mxu0 %vm917_vm0, %v6612_v46  ;;  %v7859_v46 = vld [vmem:[#allocation20_spill] sm:$0xff] }
 0x779   : > { %4647 = vmatprep.subr.msk.mxu0 %vm917_vm0, %v6616_v41  ;;  %2118 = vrot.lane.b32.xlu1 %v7816_v60, %s5617_s19 }
 0x77a   : > { %2124 = vrot.lane.b32.xlu0 %v6049_v47, %s5617_s19 }
 0x77c   : > { %4648 = vmatpush3.xpose.msk.msra.mxu0 %vm917_vm0, %v6616_v41  ;;  %v7856_v41 = vld [vmem:[#allocation27_spill] sm:$0xff] }
 0x77d   : > { %4649 = vmatprep.subr.msk.mxu0 %vm917_vm0, %v6614_v51  ;;  %2122 = vrot.lane.b32.xlu1 %v7817_v13, %s5617_s19 }
 0x77e   : > { %2128 = vrot.lane.b32.xlu0 %v6069_v40, %s5617_s19 }
 0x780   : > { %4650 = vmatpush3.xpose.msk.msra.mxu0 %vm917_vm0, %v6614_v51 }
 0x781   : > { %4651 = vmatprep.subr.msk.mxu0 %vm917_vm0, %v6620_v4  ;;  %2126 = vrot.lane.b32.xlu1 %v7818_v29, %s5617_s19 }
 0x782   : > { %2132 = vrot.lane.b32.xlu0 %v6089_v58, %s5617_s19 }
 0x784   : > { %4652 = vmatpush3.xpose.msk.msra.mxu0 %vm917_vm0, %v6620_v4  ;;  %v7855_v4 = vld [vmem:[#allocation56_spill] sm:$0xff] }
 0x785   : > { %4653 = vmatprep.subr.msk.mxu0 %vm917_vm0, %v6618_v53  ;;  %2130 = vrot.lane.b32.xlu1 %v7819_v54, %s5617_s19 }
 0x786   : > { %2136 = vrot.lane.b32.xlu0 %v6109_v49, %s5617_s19 }
 0x788   : > { %4654 = vmatpush3.xpose.msk.msra.mxu0 %vm917_vm0, %v6618_v53 }
 0x789   : > { %4655 = vmatprep.subr.msk.mxu0 %vm917_vm0, %v6624_v55  ;;  %2134 = vrot.lane.b32.xlu1 %v7820_v34, %s5617_s19 }
 0x78a   : > { %2569 = vrot.lane.b32.xlu0 %v6042_v35, %s5617_s19 }
 0x78c   : > { %4656 = vmatpush3.xpose.msk.msra.mxu0 %vm917_vm0, %v6624_v55 }
 0x78d   : > { %4657 = vmatprep.subr.msk.mxu0 %vm917_vm0, %v6622_v42  ;;  %2567 = vrot.lane.b32.xlu1 %v7821_v15, %s5617_s19 }
 0x78e   : > { %2565 = vrot.lane.b32.xlu0 %v6051_v57, %s5617_s19 }
 0x790   : > { %4658 = vmatpush3.xpose.msk.msra.mxu0 %vm917_vm0, %v6622_v42  ;;  %v7860_v42 = vld [vmem:[#allocation24_spill] sm:$0xff] }
 0x791   : > { %4659 = vmatprep.subr.msk.mxu0 %vm917_vm0, %v6635_v8  ;;  %2563 = vrot.lane.b32.xlu1 %v7822_v24, %s5617_s19 }
 0x792   : > { %2561 = vrot.lane.b32.xlu0 %v7854_v63, %s5617_s19  ;;  %v1840_v9 = vpop.xlane.xlu0 %1839 }
 0x793   : > { %5284 = vrcp.f32 %v1840_v9 }
 0x794   : > { %4660 = vmatpush3.xpose.msk.msra.mxu0 %vm917_vm0, %v6635_v8  ;;  %v1838_v55 = vpop.xlane.xlu1 %1837  ;;  %v7858_v8 = vld [vmem:[#allocation33_spill] sm:$0xff] }
 0x795   : > { %5286 = vrcp.f32 %v1838_v55  ;;  %4661 = vmatprep.subr.msk.mxu0 %vm917_vm0, %v7855_v4  ;;  %2559 = vrot.lane.b32.xlu1 %v7856_v41, %s5617_s19 }
 0x796   : > { %2555 = vrot.lane.b32.xlu0 %v7857_v18, %s5617_s19 }
 0x798   : > { %4662 = vmatpush3.xpose.msk.msra.mxu0 %vm917_vm0, %v7855_v4  ;;  %v1844_v50 = vpop.xlane.xlu1 %1843  ;;  %v7869_v4 = vld [vmem:[#allocation45_spill] sm:$0xff] }
 0x799   : > { %4663 = vmatprep.subr.msk.mxu0 %vm917_vm0, %v6637_v44  ;;  %2557 = vrot.lane.b32.xlu1 %v7858_v8, %s5617_s19  ;;  %5288 = vrcp.f32 %v1844_v50  ;;  %v7870_v50 = vld [vmem:[#allocation57_spill] sm:$0xff] }
 0x79a   : > { %2551 = vrot.lane.b32.xlu0 %v7859_v46, %s5617_s19 }
 0x79c   : > { %4664 = vmatpush3.xpose.msk.msra.mxu0 %vm917_vm0, %v6637_v44  ;;  %v1842_v51 = vpop.xlane.xlu1 %1841  ;;  %v1846_v53 = vpop.xlane.xlu0 %1845  ;;  %v7862_v44 = vld [vmem:[#allocation26_spill] sm:$0xff] }
 0x79d   : > { %5290 = vrcp.f32 %v1842_v51  ;;  %4665 = vmatprep.subr.msk.mxu0 %vm917_vm0, %v6694_v33  ;;  %2553 = vrot.lane.b32.xlu1 %v7860_v42, %s5617_s19 }
 0x79e   : > { %5292 = vrcp.f32 %v1846_v53  ;;  %2547 = vrot.lane.b32.xlu0 %v7861_v5, %s5617_s19  ;;  %v7871_v53 = vld [vmem:[#allocation44_spill] sm:$0xff] }
 0x7a0   : > { %4666 = vmatpush3.xpose.msk.msra.mxu0 %vm917_vm0, %v6694_v33  ;;  %v1848_v52 = vpop.xlane.xlu1 %1847  ;;  %v2143_v36 = vpop.permute.xlu0 %2142  ;;  %v7865_v33 = vld [vmem:[#allocation15_spill] sm:$0xff] }
 0x7a1   : > { %v5285_v48 = vpop.eup %5284  ;;  %5294 = vrcp.f32 %v1848_v52  ;;  %2549 = vrot.lane.b32.xlu1 %v7862_v44, %s5617_s19  ;;  %4667 = vmatprep.subr.msk.mxu0 %vm917_vm0, %v2143_v36  ;;  %v7875_v52 = vld [vmem:[#allocation38_spill] sm:$0xff] }
 0x7a2   : > { %v5287_v27 = vpop.eup %5286  ;;  %2543 = vrot.lane.b32.xlu0 %v7863_v56, %s5617_s19  ;;  %v1872_v19 = vmul.f32 %v5285_v48, %v6644_v3  ;;  %v7877_v48 = vld [vmem:[#allocation32_spill] sm:$0xff] }
 0x7a3   : > { %v1870_v11 = vmul.f32 %v5287_v27, %v6647_v30  ;;  %v7866_v30 = vld [vmem:[#allocation19_spill] sm:$0xff]  ;;  %v7878_v27 = vld [vmem:[#allocation28_spill] sm:$0xff] }
 0x7a4   : > { %4668 = vmatpush3.xpose.msk.msra.mxu0 %vm917_vm0, %v2143_v36  ;;  %v2141_v43 = vpop.permute.xlu1 %2140  ;;  %v7876_v36 = vld [vmem:[#allocation35_spill] sm:$0xff] }
 0x7a5   : > { %2545 = vrot.lane.b32.xlu1 %v7864_v12, %s5617_s19  ;;  %4620 = vmatprep.mubr.f32.mxu0 %v1870_v11  ;;  %v7879_v11 = vld [vmem:[#allocation25_spill] sm:$0xff] }
 0x7a6   : > { %4669 = vmatprep.subr.msk.mxu0 %vm917_vm0, %v2141_v43  ;;  %2539 = vrot.lane.b32.xlu0 %v7865_v33, %s5617_s19  ;;  %v5289_v62 = vpop.eup %5288 }
 0x7a7   : > { %4621 = vmatmul.mubr.f32.gmra.mxu0 %v1872_v19  ;;  %v1876_v16 = vmul.f32 %v5289_v62, %v6650_v38  ;;  %v7873_v38 = vld [vmem:[#allocation41_spill] sm:$0xff] }
 0x7a8   : > { %4670 = vmatpush3.xpose.msk.msra.mxu0 %vm917_vm0, %v2141_v43 }
 0x7a9   : > { %2541 = vrot.lane.b32.xlu1 %v7866_v30, %s5617_s19 }
 0x7aa   : > { %v5291_v7 = vpop.eup %5290  ;;  %2792 = vrot.lane.b32.xlu0 %v7867_v1, %s5618_s14 }
 0x7ab   : > { %v5293_v2 = vpop.eup %5292  ;;  %v1874_v3 = vmul.f32 %v5291_v7, %v6653_v21  ;;  %v7872_v21 = vld [vmem:[#allocation42_spill] sm:$0xff] }
 0x7ac   : > { %v1878_v9 = vmul.f32 %v5293_v2, %v6655_v26  ;;  %v7874_v26 = vld [vmem:[#allocation39_spill] sm:$0xff] }
 0x7ad   : > { %2794 = vrot.lane.b32.xlu1 %v7868_v45, %s5618_s14  ;;  %4623 = vmatprep.mubr.f32.mxu0 %v1874_v3 }
 0x7ae   : > { %v5295_v55 = vpop.eup %5294  ;;  %2790 = vrot.lane.b32.xlu0 %v7869_v4, %s5618_s14  ;;  %4624 = vmatmul.mubr.f32.gmra.mxu0 %v1876_v16 }
 0x7af   : > { %4626 = vmatprep.mubr.f32.mxu0 %v1878_v9  ;;  %v1880_v51 = vmul.f32 %v5295_v55, %v7870_v50 }
 0x7b1   : > { %2788 = vrot.lane.b32.xlu1 %v7871_v53, %s5618_s14 }
 0x7b2   : > { %2786 = vrot.lane.b32.xlu0 %v7872_v21, %s5618_s14  ;;  %4627 = vmatmul.mubr.f32.gmra.mxu0 %v1880_v51 }
 0x7b5   : > { %2784 = vrot.lane.b32.xlu1 %v7873_v38, %s5618_s14 }
 0x7b6   : > { %2782 = vrot.lane.b32.xlu0 %v7874_v26, %s5618_s14 }
 0x7b9   : > { %2780 = vrot.lane.b32.xlu1 %v7875_v52, %s5618_s14 }
 0x7ba   : > { %2778 = vrot.lane.b32.xlu0 %v7876_v36, %s5618_s14 }
 0x7bd   : > { %2776 = vrot.lane.b32.xlu1 %v7877_v48, %s5618_s14 }
 0x7be   : > { %2774 = vrot.lane.b32.xlu0 %v7878_v27, %s5618_s14 }
 0x7c2   : > { %2772 = vrot.lane.b32.xlu0 %v7879_v11, %s5618_s14 }
 0x7d1   : > { %v1854_v43 = vpop.xlane.xlu0 %1853 }
 0x7d2   : > { %5296 = vrcp.f32 %v1854_v43 }
 0x7d5   : > { %v1852_v19 = vpop.xlane.xlu1 %1851  ;;  %v1860_v62 = vpop.xlane.xlu0 %1859 }
 0x7d6   : > { %5298 = vrcp.f32 %v1852_v19 }
 0x7d9   : > { %v1850_v7 = vpop.xlane.xlu1 %1849  ;;  %v1864_v1 = vpop.xlane.xlu0 %1863 }
 0x7da   : > { %5300 = vrcp.f32 %v1850_v7 }
 0x7dd   : > { %v1856_v2 = vpop.xlane.xlu1 %1855  ;;  %v2139_v3 = vpop.permute.xlu0 %2138 }
 0x7de   : > { %5302 = vrcp.f32 %v1856_v2  ;;  %4671 = vmatprep.subr.msk.mxu0 %vm917_vm0, %v2139_v3 }
 0x7df   : > { %4672 = vmatpush3.xpose.msk.msra.mxu0 %vm917_vm0, %v2139_v3  ;;  %5304 = vrcp.f32 %v1860_v62  ;;  %v5297_v9 = vpop.eup %5296 }
 0x7e0   : > { %v1886_v52 = vmul.f32 %v5297_v9, %v6674_v61 }
 0x7e1   : > { %v1858_v16 = vpop.xlane.xlu1 %1857  ;;  %v2109_v45 = vpop.permute.xlu0 %2108 }
 0x7e2   : > { %5306 = vrcp.f32 %v1858_v16 }
 0x7e3   : > { %5308 = vrcp.f32 %v1864_v1  ;;  %v5299_v50 = vpop.eup %5298 }
 0x7e4   : > { %v1884_v26 = vmul.f32 %v5299_v50, %v6677_v10 }
 0x7e5   : > { %v1862_v55 = vpop.xlane.xlu1 %1861  ;;  %v2113_v4 = vpop.permute.xlu0 %2112 }
 0x7e6   : > { %5310 = vrcp.f32 %v1862_v55 }
 0x7e7   : > { %v5301_v51 = vpop.eup %5300 }
 0x7e8   : > { %v1882_v53 = vmul.f32 %v5301_v51, %v6683_v0 }
 0x7e9   : > { %v2107_v21 = vpop.permute.xlu1 %2106  ;;  %v2117_v38 = vpop.permute.xlu0 %2116 }
 0x7ea   : > { %4629 = vmatprep.mubr.f32.mxu0 %v1882_v53 }
 0x7eb   : > { %v5303_v36 = vpop.eup %5302  ;;  %4630 = vmatmul.mubr.f32.gmra.mxu0 %v1884_v26 }
 0x7ec   : > { %4632 = vmatprep.mubr.f32.mxu0 %v1886_v52  ;;  %v1888_v48 = vmul.f32 %v5303_v36, %v6689_v17  ;;  %v5305_v43 = vpop.eup %5304 }
 0x7ed   : > { %v2111_v27 = vpop.permute.xlu1 %2110  ;;  %v2121_v11 = vpop.permute.xlu0 %2120  ;;  %v1892_v1 = vmul.f32 %v5305_v43, %v6679_v23 }
 0x7ef   : > { %v5307_v19 = vpop.eup %5306  ;;  %4633 = vmatmul.mubr.f32.gmra.mxu0 %v1888_v48 }
 0x7f0   : > { %v1890_v62 = vmul.f32 %v5307_v19, %v6692_v14  ;;  %v5309_v10 = vpop.eup %5308 }
 0x7f1   : > { %v2115_v0 = vpop.permute.xlu1 %2114  ;;  %v2125_v7 = vpop.permute.xlu0 %2124  ;;  %v1896_v17 = vmul.f32 %v5309_v10, %v6685_v31 }
 0x7f2   : > { %4635 = vmatprep.mubr.f32.mxu0 %v1890_v62 }
 0x7f3   : > { %v5311_v2 = vpop.eup %5310  ;;  %4636 = vmatmul.mubr.f32.gmra.mxu0 %v1892_v1 }
 0x7f4   : > { %v1894_v61 = vmul.f32 %v5311_v2, %v6697_v22 }
 0x7f5   : > { %v2119_v3 = vpop.permute.xlu1 %2118  ;;  %v2129_v16 = vpop.permute.xlu0 %2128 }
 0x7f6   : > { %4638 = vmatprep.mubr.f32.mxu0 %v1894_v61 }
 0x7f7   : > { %4639 = vmatmul.mubr.f32.gmra.mxu0 %v1896_v17 }
 0x7f8   : > { %4673 = vmatprep.mubr.msk.f32.mxu0 %vm917_vm0, %v2107_v21 }
 0x7f9   : > { %v2123_v9 = vpop.permute.xlu1 %2122  ;;  %v2133_v14 = vpop.permute.xlu0 %2132 }
 0x7fb   : > { %4674 = vmatmul.mubr.msk.f32.vlgmr.msra.gmra.mxu0 %vm917_vm0, %v2109_v45 }
 0x7fc   : > { %4676 = vmatprep.mubr.msk.f32.mxu0 %vm917_vm0, %v2111_v27 }
 0x7fd   : > { %v2127_v23 = vpop.permute.xlu1 %2126  ;;  %v2137_v55 = vpop.permute.xlu0 %2136 }
 0x7ff   : > { %4677 = vmatmul.mubr.msk.f32.gmra.mxu0 %vm917_vm0, %v2113_v4 }
 0x800   : > { %4679 = vmatprep.mubr.msk.f32.mxu0 %vm917_vm0, %v2115_v0 }
 0x801   : > { %v2131_v22 = vpop.permute.xlu1 %2130  ;;  %v2570_v50 = vpop.permute.xlu0 %2569 }
 0x802   : > { %4697 = vmatprep.subr.mxu1 %v2570_v50 }
 0x803   : > { %4680 = vmatmul.mubr.msk.f32.gmra.mxu0 %vm917_vm0, %v2117_v38  ;;  %4698 = vmatpush3.msra.mxu1 %v2570_v50 }
 0x804   : > { %4682 = vmatprep.mubr.msk.f32.mxu0 %vm917_vm0, %v2119_v3 }
 0x805   : > { %v2135_v31 = vpop.permute.xlu1 %2134  ;;  %v2566_v51 = vpop.permute.xlu0 %2565 }
 0x807   : > { %4683 = vmatmul.mubr.msk.f32.gmra.mxu0 %vm917_vm0, %v2121_v11 }
 0x808   : > { %4685 = vmatprep.mubr.msk.f32.mxu0 %vm917_vm0, %v2123_v9 }
 0x809   : > { %v2568_v45 = vpop.permute.xlu1 %2567  ;;  %v2562_v53 = vpop.permute.xlu0 %2561 }
 0x80a   : > { %4699 = vmatprep.subr.mxu1 %v2568_v45 }
 0x80b   : > { %4686 = vmatmul.mubr.msk.f32.gmra.mxu0 %vm917_vm0, %v2125_v7  ;;  %4700 = vmatpush3.msra.mxu1 %v2568_v45 }
 0x80c   : > { %4688 = vmatprep.mubr.msk.f32.mxu0 %vm917_vm0, %v2127_v23  ;;  %4701 = vmatprep.subr.mxu1 %v2566_v51 }
 0x80d   : > { %v2564_v4 = vpop.permute.xlu1 %2563  ;;  %4702 = vmatpush3.msra.mxu1 %v2566_v51  ;;  %v2556_v21 = vpop.permute.xlu0 %2555 }
 0x80e   : > { %4703 = vmatprep.subr.mxu1 %v2564_v4 }
 0x80f   : > { %4689 = vmatmul.mubr.msk.f32.gmra.mxu0 %vm917_vm0, %v2129_v16  ;;  %4704 = vmatpush3.msra.mxu1 %v2564_v4 }
 0x810   : > { %4691 = vmatprep.mubr.msk.f32.mxu0 %vm917_vm0, %v2131_v22  ;;  %4705 = vmatprep.subr.mxu1 %v2562_v53 }
 0x811   : > { %v2560_v38 = vpop.permute.xlu1 %2559  ;;  %4706 = vmatpush3.msra.mxu1 %v2562_v53  ;;  %v2552_v26 = vpop.permute.xlu0 %2551 }
 0x812   : > { %4707 = vmatprep.subr.mxu1 %v2560_v38 }
 0x813   : > { %4692 = vmatmul.mubr.msk.f32.gmra.mxu0 %vm917_vm0, %v2133_v14  ;;  %4708 = vmatpush3.msra.mxu1 %v2560_v38 }
 0x814   : > { %4694 = vmatprep.mubr.msk.f32.mxu0 %vm917_vm0, %v2135_v31 }
 0x815   : > { %v2558_v52 = vpop.permute.xlu1 %2557  ;;  %v2548_v48 = vpop.permute.xlu0 %2547 }
 0x816   : > { %4709 = vmatprep.subr.mxu1 %v2558_v52 }
 0x817   : > { %4695 = vmatmul.mubr.msk.f32.gmra.mxu0 %vm917_vm0, %v2137_v55  ;;  %4710 = vmatpush3.msra.mxu1 %v2558_v52 }
 0x818   : > { %4711 = vmatprep.subr.mxu1 %v2556_v21 }
 0x819   : > { %v2554_v36 = vpop.permute.xlu1 %2553  ;;  %4712 = vmatpush3.msra.mxu1 %v2556_v21  ;;  %v2544_v11 = vpop.permute.xlu0 %2543 }
 0x81a   : > { %4713 = vmatprep.subr.mxu1 %v2554_v36 }
 0x81b   : > { %4714 = vmatpush3.msra.mxu1 %v2554_v36 }
 0x81c   : > { %4715 = vmatprep.subr.mxu1 %v2552_v26 }
 0x81d   : > { %v2550_v27 = vpop.permute.xlu1 %2549  ;;  %4716 = vmatpush3.msra.mxu1 %v2552_v26  ;;  %v2540_v62 = vpop.permute.xlu0 %2539 }
 0x81e   : > { %4717 = vmatprep.subr.mxu1 %v2550_v27 }
 0x81f   : > { %4718 = vmatpush3.msra.mxu1 %v2550_v27 }
 0x820   : > { %4719 = vmatprep.subr.mxu1 %v2548_v48 }
 0x821   : > { %v2546_v43 = vpop.permute.xlu1 %2545  ;;  %4720 = vmatpush3.msra.mxu1 %v2548_v48 }
 0x822   : > { %4721 = vmatprep.subr.mxu1 %v2546_v43 }
 0x823   : > { %4722 = vmatpush3.msra.mxu1 %v2546_v43 }
 0x824   : > { %4723 = vmatprep.subr.mxu1 %v2544_v11 }
 0x825   : > { %v2542_v19 = vpop.permute.xlu1 %2541  ;;  %4724 = vmatpush3.msra.mxu1 %v2544_v11 }
 0x826   : > { %4725 = vmatprep.subr.mxu1 %v2542_v19 }
 0x827   : > { %4726 = vmatpush3.msra.mxu1 %v2542_v19 }
 0x828   : > { %4727 = vmatprep.subr.mxu1 %v2540_v62 }
 0x829   : > { %v6878_v0 = vpop.permute.xlu1 %2794  ;;  %4728 = vmatpush3.msra.mxu1 %v2540_v62 }
 0x82a   : > { %4753 = vmatprep.subr.msk.mxu1 %vm917_vm0, %v6878_v0 }
 0x82f   : > { %v6882_v7 = vpop.f32.mrf.mxu0 }
 0x830   : > { %7880 = vst [vmem:[#allocation31_spill] sm:$0xff] %v6882_v7 }
 0x831   : > { %v6884_v1 = vpop.f32.mrf.mxu0 }
 0x832   : > { %7881 = vst [vmem:[#allocation56_spill] sm:$0xff] %v6884_v1 }
 0x867   : > { %v6888_v2 = vpop.f32.mrf.mxu0 }
 0x868   : > { %7882 = vst [vmem:[#allocation33_spill] sm:$0xff] %v6888_v2 }
 0x869   : > { %v6890_v61 = vpop.f32.mrf.mxu0 }
 0x86a   : > { %7883 = vst [vmem:[#allocation24_spill] sm:$0xff] %v6890_v61 }
 0x86e   : > { %v6894_v16 = vpop.f32.mrf.mxu0 }
 0x86f   : > { %7884 = vst [vmem:[#allocation47_spill] sm:$0xff] %v6894_v16 }
 0x870   : > { %v6896_v17 = vpop.f32.mrf.mxu0 }
 0x871   : > { %7885 = vst [vmem:[#allocation48_spill] sm:$0xff] %v6896_v17  ;;  %v7896_v17 = vld [vmem:[#allocation21_spill] sm:$0xff] }
 0x872   : > { %v6900_v14 = vpop.f32.mrf.mxu0 }
 0x873   : > { %7886 = vst [vmem:[#allocation45_spill] sm:$0xff] %v6900_v14 }
 0x874   : > { %v6902_v23 = vpop.f32.mrf.mxu0 }
 0x875   : > { %7887 = vst [vmem:[#allocation57_spill] sm:$0xff] %v6902_v23 }
 0x8ab   : > { %v6906_v22 = vpop.f32.mrf.mxu0 }
 0x8ac   : > { %7888 = vst [vmem:[#allocation44_spill] sm:$0xff] %v6906_v22 }
 0x8ad   : > { %v6908_v50 = vpop.f32.mrf.mxu0 }
 0x8ae   : > { %7889 = vst [vmem:[#allocation42_spill] sm:$0xff] %v6908_v50 }
 0x8af   : > { %v6912_v51 = vpop.f32.mrf.mxu0 }
 0x8b0   : > { %7890 = vst [vmem:[#allocation41_spill] sm:$0xff] %v6912_v51  ;;  %v6985_v51 = vpop.permute.xlu1 %2788 }
 0x8b1   : > { %v6914_v45 = vpop.f32.mrf.mxu0 }
 0x8b2   : > { %7891 = vst [vmem:[#allocation39_spill] sm:$0xff] %v6914_v45 }
 0x8b3   : > { %v6918_v4 = vpop.f32.mrf.mxu0 }
 0x8b4   : > { %7892 = vst [vmem:[#allocation38_spill] sm:$0xff] %v6918_v4 }
 0x8b5   : > { %v6920_v21 = vpop.f32.mrf.mxu0 }
 0x8b6   : > { %7893 = vst [vmem:[#allocation35_spill] sm:$0xff] %v6920_v21 }
 0x8b7   : > { %v6924_v26 = vpop.f32.mrf.mxu0 }
 0x8b8   : > { %7894 = vst [vmem:[#allocation32_spill] sm:$0xff] %v6924_v26 }
 0x8b9   : > { %v6926_v52 = vpop.f32.mrf.mxu0 }
 0x8ba   : > { %7895 = vst [vmem:[#allocation28_spill] sm:$0xff] %v6926_v52 }
 0x8bb   : > { %v4675_v48 = vpop.f32.mrf.mxu0 }
 0x8bc   : > { %v2380_v27 = vmul.f32 0.17677669, %v4675_v48 }
 0x8bd   : > { %v2300_v11 = vpop.f32.mrf.mxu0 }
 0x8be   : > { %v6930_v43 = vmul.f32 0.17677669, %v2300_v11  ;;  %2397 = vmax.xlane.f32.xlu0 %v2380_v27 }
 0x8bf   : > { %v4678_v19 = vpop.f32.mrf.mxu0 }
 0x8c0   : > { %2395 = vmax.xlane.f32.xlu1 %v6930_v43  ;;  %v6933_v55 = vmul.f32 0.17677669, %v4678_v19 }
 0x8c1   : > { %v2310_v62 = vpop.f32.mrf.mxu0 }
 0x8c2   : > { %v6935_v38 = vmul.f32 0.17677669, %v2310_v62 }
 0x8c3   : > { %v4681_v9 = vpop.f32.mrf.mxu0 }
 0x8c4   : > { %2401 = vmax.xlane.f32.xlu1 %v6933_v55  ;;  %2399 = vmax.xlane.f32.xlu0 %v6935_v38  ;;  %v6939_v53 = vmul.f32 0.17677669, %v4681_v9 }
 0x8c5   : > { %v2320_v36 = vpop.f32.mrf.mxu0 }
 0x8c6   : > { %v6941_v48 = vmul.f32 0.17677669, %v2320_v36 }
 0x8c7   : > { %v4684_v11 = vpop.f32.mrf.mxu0 }
 0x8c8   : > { %2405 = vmax.xlane.f32.xlu1 %v6939_v53  ;;  %2403 = vmax.xlane.f32.xlu0 %v6941_v48  ;;  %v6945_v19 = vmul.f32 0.17677669, %v4684_v11 }
 0x8c9   : > { %v2330_v10 = vpop.f32.mrf.mxu0 }
 0x8ca   : > { %v6947_v62 = vmul.f32 0.17677669, %v2330_v10 }
 0x8cb   : > { %v4687_v3 = vpop.f32.mrf.mxu0 }
 0x8cc   : > { %2409 = vmax.xlane.f32.xlu1 %v6945_v19  ;;  %2407 = vmax.xlane.f32.xlu0 %v6947_v62  ;;  %v6951_v9 = vmul.f32 0.17677669, %v4687_v3 }
 0x8cd   : > { %v2340_v31 = vpop.f32.mrf.mxu0 }
 0x8ce   : > { %v6953_v36 = vmul.f32 0.17677669, %v2340_v31 }
 0x8cf   : > { %v4690_v52 = vpop.f32.mrf.mxu0 }
 0x8d0   : > { %2413 = vmax.xlane.f32.xlu1 %v6951_v9  ;;  %2411 = vmax.xlane.f32.xlu0 %v6953_v36  ;;  %v6957_v11 = vmul.f32 0.17677669, %v4690_v52 }
 0x8d1   : > { %v2350_v26 = vpop.f32.mrf.mxu0 }
 0x8d2   : > { %v6959_v10 = vmul.f32 0.17677669, %v2350_v26 }
 0x8d3   : > { %v4693_v21 = vpop.f32.mrf.mxu0 }
 0x8d4   : > { %2417 = vmax.xlane.f32.xlu1 %v6957_v11  ;;  %2415 = vmax.xlane.f32.xlu0 %v6959_v10  ;;  %v6963_v3 = vmul.f32 0.17677669, %v4693_v21  ;;  %v6977_v21 = vpop.permute.xlu0 %2792 }
 0x8d5   : > { %v2360_v4 = vpop.f32.mrf.mxu0 }
 0x8d6   : > { %v6965_v31 = vmul.f32 0.17677669, %v2360_v4 }
 0x8d7   : > { %v4696_v23 = vpop.f32.mrf.mxu0 }
 0x8d8   : > { %2421 = vmax.xlane.f32.xlu1 %v6963_v3  ;;  %2419 = vmax.xlane.f32.xlu0 %v6965_v31  ;;  %v6969_v52 = vmul.f32 0.17677669, %v4696_v23  ;;  %v6979_v4 = vpop.permute.xlu0 %2790 }
 0x8d9   : > { %v2370_v14 = vpop.f32.mrf.mxu0 }
 0x8da   : > { %v6971_v26 = vmul.f32 0.17677669, %v2370_v14  ;;  %v6989_v14 = vpop.permute.xlu1 %2784 }
 0x8dc   : > { %2425 = vmax.xlane.f32.xlu1 %v6969_v52  ;;  %2423 = vmax.xlane.f32.xlu0 %v6971_v26  ;;  %v6981_v16 = vpop.permute.xlu0 %2786 }
 0x8de   : > { %v6993_v7 = vpop.permute.xlu1 %2780 }
 0x8e0   : > { %v6983_v45 = vpop.permute.xlu0 %2782 }
 0x8e4   : > { %v6987_v23 = vpop.permute.xlu0 %2778 }
 0x8e5   : > { %7897 = vst [vmem:[#allocation25_spill] sm:$0xff] %v6987_v23 }
 0x8e8   : > { %v6991_v1 = vpop.permute.xlu0 %2774 }
 0x8e9   : > { %7898 = vst [vmem:[#allocation21_spill] sm:$0xff] %v6991_v1 }
 0x8ec   : > { %v6995_v61 = vpop.permute.xlu0 %2772 }
 0x8ed   : > { %7899 = vst [vmem:[#allocation58_spill] sm:$0xff] %v6995_v61 }
 0x8f2   : > { %2770 = vrot.lane.b32.xlu0 %v7896_v17, %s5618_s14  ;;  %v6997_v17 = vpop.permute.xlu1 %2776 }
 0x8f3   : > { %7900 = vst [vmem:[#allocation59_spill] sm:$0xff] %v6997_v17 }
 0x947   : > { %v2398_v2 = vpop.xlane.xlu0 %2397 }
 0x948   : > { %v2428_v50 = vsub.f32 %v2380_v27, %v2398_v2 }
 0x949   : > { %v2396_v22 = vpop.xlane.xlu1 %2395 }
 0x94a   : > { %v2445_v30 = vmul.f32 1.442695, %v2428_v50  ;;  %v2427_v12 = vsub.f32 %v6930_v43, %v2396_v22 }
 0x94c   : > { %5312 = vpow2.f32 %v2445_v30  ;;  %v2443_v33 = vmul.f32 1.442695, %v2427_v12 }
 0x94d   : > { %v2402_v44 = vpop.xlane.xlu1 %2401  ;;  %v2400_v56 = vpop.xlane.xlu0 %2399 }
 0x94e   : > { %5314 = vpow2.f32 %v2443_v33  ;;  %v2430_v5 = vsub.f32 %v6933_v55, %v2402_v44  ;;  %v2429_v46 = vsub.f32 %v6935_v38, %v2400_v56 }
 0x950   : > { %v2449_v1 = vmul.f32 1.442695, %v2430_v5  ;;  %v2447_v18 = vmul.f32 1.442695, %v2429_v46 }
 0x951   : > { %v2406_v61 = vpop.xlane.xlu1 %2405  ;;  %v2404_v41 = vpop.xlane.xlu0 %2403 }
 0x952   : > { %5316 = vpow2.f32 %v2449_v1  ;;  %v2432_v2 = vsub.f32 %v6939_v53, %v2406_v61  ;;  %v2431_v50 = vsub.f32 %v6941_v48, %v2404_v41  ;;  %v7901_v48 = vld [vmem:[#allocation14_spill] sm:$0xff] }
 0x953   : > { %5318 = vpow2.f32 %v2447_v18 }
 0x954   : > { %v2453_v22 = vmul.f32 1.442695, %v2432_v2  ;;  %v2451_v27 = vmul.f32 1.442695, %v2431_v50 }
 0x955   : > { %v2410_v30 = vpop.xlane.xlu1 %2409  ;;  %v2408_v12 = vpop.xlane.xlu0 %2407 }
 0x956   : > { %5320 = vpow2.f32 %v2453_v22  ;;  %v2433_v33 = vsub.f32 %v6947_v62, %v2408_v12  ;;  %v2434_v44 = vsub.f32 %v6945_v19, %v2410_v30  ;;  %v7902_v62 = vld [vmem:[#allocation18_spill] sm:$0xff] }
 0x957   : > { %5322 = vpow2.f32 %v2451_v27 }
 0x958   : > { %v2455_v56 = vmul.f32 1.442695, %v2433_v33  ;;  %v2457_v1 = vmul.f32 1.442695, %v2434_v44 }
 0x959   : > { %v7006_v5 = vpop.eup %5312  ;;  %v2414_v43 = vpop.xlane.xlu1 %2413 }
 0x95a   : > { %2477 = vadd.xlane.f32.xlu0 %v7006_v5  ;;  %5324 = vpow2.f32 %v2455_v56  ;;  %v2412_v19 = vpop.xlane.xlu0 %2411  ;;  %v2436_v12 = vsub.f32 %v6951_v9, %v2414_v43 }
 0x95b   : > { %v7009_v46 = vpop.eup %5314  ;;  %5326 = vpow2.f32 %v2457_v1  ;;  %v2435_v1 = vsub.f32 %v6953_v36, %v2412_v19 }
 0x95c   : > { %2475 = vadd.xlane.f32.xlu1 %v7009_v46  ;;  %v2461_v56 = vmul.f32 1.442695, %v2436_v12 }
 0x95d   : > { %v2418_v2 = vpop.xlane.xlu1 %2417 }
 0x95e   : > { %v2416_v50 = vpop.xlane.xlu0 %2415  ;;  %v2438_v23 = vsub.f32 %v6957_v11, %v2418_v2 }
 0x95f   : > { %v7012_v41 = vpop.eup %5316  ;;  %v2437_v30 = vsub.f32 %v6959_v10, %v2416_v50 }
 0x960   : > { %v7014_v18 = vpop.eup %5318  ;;  %2481 = vadd.xlane.f32.xlu0 %v7012_v41  ;;  %v2465_v9 = vmul.f32 1.442695, %v2438_v23 }
 0x961   : > { %2479 = vadd.xlane.f32.xlu1 %v7014_v18  ;;  %v2422_v22 = vpop.xlane.xlu1 %2421  ;;  %v2463_v27 = vmul.f32 1.442695, %v2437_v30 }
 0x962   : > { %v2440_v33 = vsub.f32 %v6963_v3, %v2422_v22  ;;  %v2420_v10 = vpop.xlane.xlu0 %2419 }
 0x963   : > { %v7018_v61 = vpop.eup %5320  ;;  %5328 = vpow2.f32 %v2463_v27  ;;  %v2439_v43 = vsub.f32 %v6965_v31, %v2420_v10 }
 0x964   : > { %v7021_v55 = vpop.eup %5322  ;;  %5330 = vpow2.f32 %v2461_v56 }
 0x965   : > { %2485 = vadd.xlane.f32.xlu1 %v7018_v61  ;;  %v2426_v44 = vpop.xlane.xlu1 %2425  ;;  %v2467_v3 = vmul.f32 1.442695, %v2439_v43 }
 0x966   : > { %v2442_v17 = vsub.f32 %v6969_v52, %v2426_v44 }
 0x967   : > { %v7023_v53 = vpop.eup %5324 }
 0x968   : > { %2487 = vadd.xlane.f32.xlu0 %v7023_v53  ;;  %v7027_v38 = vpop.eup %5326  ;;  %v2473_v24 = vmul.f32 1.442695, %v2442_v17  ;;  %v2424_v17 = vpop.xlane.xlu0 %2423 }
 0x969   : > { %2483 = vadd.xlane.f32.xlu1 %v7021_v55  ;;  %v2441_v19 = vsub.f32 %v6971_v26, %v2424_v17 }
 0x96d   : > { %2489 = vadd.xlane.f32.xlu1 %v7027_v38 }
 0x970   : > { %v7041_v50 = vpop.eup %5328 }
 0x971   : > { %v7044_v36 = vpop.eup %5330 }
 0x97e   : > { %2766 = vrot.lane.b32.xlu1 %v7901_v48, %s5618_s14  ;;  %2768 = vrot.lane.b32.xlu0 %v7902_v62, %s5618_s14  ;;  %v2469_v48 = vmul.f32 1.442695, %v2440_v33  ;;  %v2459_v62 = vmul.f32 1.442695, %v2435_v1 }
 0x980   : > { %5332 = vpow2.f32 %v2469_v48 }
 0x981   : > { %5334 = vpow2.f32 %v2459_v62 }
 0x982   : > { %5336 = vpow2.f32 %v2473_v24 }
 0x983   : > { %5338 = vpow2.f32 %v2465_v9 }
 0x984   : > { %5340 = vpow2.f32 %v2467_v3 }
 0x98d   : > { %v7046_v52 = vpop.eup %5332 }
 0x98e   : > { %v7050_v11 = vpop.eup %5334 }
 0x98f   : > { %v7052_v23 = vpop.eup %5336 }
 0x990   : > { %v7056_v24 = vpop.eup %5338 }
 0x991   : > { %v7059_v31 = vpop.eup %5340 }
 0x99d   : > { %2495 = vadd.xlane.f32.xlu0 %v7041_v50 }
 0x9a1   : > { %2501 = vadd.xlane.f32.xlu0 %v7046_v52 }
 0x9a2   : > { %2493 = vadd.xlane.f32.xlu1 %v7044_v36 }
 0x9a5   : > { %2505 = vadd.xlane.f32.xlu0 %v7052_v23 }
 0x9a6   : > { %2491 = vadd.xlane.f32.xlu1 %v7050_v11 }
 0x9aa   : > { %2497 = vadd.xlane.f32.xlu1 %v7056_v24 }
 0x9ae   : > { %2499 = vadd.xlane.f32.xlu1 %v7059_v31 }
 0x9bb   : > { %2764 = vrot.lane.b32.xlu0 %v5982_v25, %s5618_s14  ;;  %v2471_v25 = vmul.f32 1.442695, %v2441_v19 }
 0x9bd   : > { %5342 = vpow2.f32 %v2471_v25 }
 0x9bf   : > { %2732 = vrot.lane.b32.xlu1 %v5978_v32, %s5618_s14  ;;  %2734 = vrot.lane.b32.xlu0 %v7813_v20, %s5618_s14  ;;  %v7083_v32 = vpop.permute.xlu0 %2770 }
 0x9c3   : > { %2738 = vrot.lane.b32.xlu0 %v6000_v6, %s5618_s14 }
 0x9c7   : > { %2742 = vrot.lane.b32.xlu0 %v6016_v39, %s5618_s14 }
 0x9ca   : > { %v7087_v6 = vpop.eup %5342 }
 0x9cb   : > { %2746 = vrot.lane.b32.xlu0 %v6032_v28, %s5618_s14 }
 0x9cf   : > { %2750 = vrot.lane.b32.xlu0 %v6049_v47, %s5618_s14 }
 0x9d3   : > { %2754 = vrot.lane.b32.xlu0 %v6069_v40, %s5618_s14 }
 0x9d7   : > { %2758 = vrot.lane.b32.xlu0 %v6089_v58, %s5618_s14 }
 0x9db   : > { %2762 = vrot.lane.b32.xlu0 %v6109_v49, %s5618_s14 }
 0x9df   : > { %3195 = vrot.lane.b32.xlu0 %v6042_v35, %s5618_s14 }
 0x9e3   : > { %2503 = vadd.xlane.f32.xlu1 %v7087_v6  ;;  %v2478_v39 = vpop.xlane.xlu0 %2477  ;;  %3191 = vrot.lane.b32.xlu0 %v6051_v57, %s5618_s14 }
 0x9e4   : > { %5344 = vrcp.f32 %v2478_v39 }
 0x9e5   : > { %v2476_v28 = vpop.xlane.xlu1 %2475 }
 0x9e6   : > { %5346 = vrcp.f32 %v2476_v28 }
 0x9e7   : > { %3187 = vrot.lane.b32.xlu0 %v7854_v63, %s5618_s14 }
 0x9e9   : > { %v2482_v47 = vpop.xlane.xlu0 %2481 }
 0x9ea   : > { %v2480_v40 = vpop.xlane.xlu1 %2479  ;;  %5348 = vrcp.f32 %v2482_v47 }
 0x9eb   : > { %5350 = vrcp.f32 %v2480_v40  ;;  %3183 = vrot.lane.b32.xlu0 %v7858_v8, %s5618_s14 }
 0x9ee   : > { %v2486_v35 = vpop.xlane.xlu1 %2485 }
 0x9ef   : > { %3179 = vrot.lane.b32.xlu0 %v7860_v42, %s5618_s14  ;;  %5352 = vrcp.f32 %v2486_v35 }
 0x9f1   : > { %v5345_v58 = vpop.eup %5344  ;;  %v2488_v49 = vpop.xlane.xlu0 %2487 }
 0x9f2   : > { %v2484_v57 = vpop.xlane.xlu1 %2483  ;;  %v2510_v26 = vmul.f32 %v5345_v58, %v7006_v5 }
 0x9f3   : > { %v5347_v20 = vpop.eup %5346  ;;  %5354 = vrcp.f32 %v2484_v57 }
 0x9f4   : > { %5356 = vrcp.f32 %v2488_v49  ;;  %2736 = vrot.lane.b32.xlu1 %v7814_v37, %s5618_s14  ;;  %v2508_v63 = vmul.f32 %v5347_v20, %v7009_v46 }
 0x9f6   : > { %v2490_v2 = vpop.xlane.xlu1 %2489  ;;  %4729 = vmatprep.mubr.f32.mxu1 %v2508_v63 }
 0x9f7   : > { %v5349_v8 = vpop.eup %5348  ;;  %5358 = vrcp.f32 %v2490_v2  ;;  %4730 = vmatmul.mubr.f32.vlgmr.msra.gmra.mxu1 %v2510_v26 }
 0x9f8   : > { %v5351_v42 = vpop.eup %5350  ;;  %2740 = vrot.lane.b32.xlu1 %v7815_v59, %s5618_s14  ;;  %4754 = vmatpush3.xpose.msk.msra.mxu1 %vm917_vm0, %v6878_v0  ;;  %v2514_v22 = vmul.f32 %v5349_v8, %v7012_v41 }
 0x9f9   : > { %4755 = vmatprep.subr.msk.mxu1 %vm917_vm0, %v6977_v21  ;;  %v2512_v37 = vmul.f32 %v5351_v42, %v7014_v18 }
 0x9fb   : > { %4732 = vmatprep.mubr.f32.mxu1 %v2512_v37 }
 0x9fc   : > { %2744 = vrot.lane.b32.xlu1 %v7816_v60, %s5618_s14  ;;  %4733 = vmatmul.mubr.f32.gmra.mxu1 %v2514_v22  ;;  %v5353_v59 = vpop.eup %5352 }
 0x9fd   : > { %4756 = vmatpush3.xpose.msk.msra.mxu1 %vm917_vm0, %v6977_v21  ;;  %v2518_v60 = vmul.f32 %v5353_v59, %v7018_v61 }
 0x9fe   : > { %4757 = vmatprep.subr.msk.mxu1 %vm917_vm0, %v6979_v4 }
 0xa00   : > { %v5355_v0 = vpop.eup %5354  ;;  %2748 = vrot.lane.b32.xlu1 %v7817_v13, %s5618_s14 }
 0xa01   : > { %v5357_v5 = vpop.eup %5356  ;;  %4758 = vmatpush3.xpose.msk.msra.mxu1 %vm917_vm0, %v6979_v4  ;;  %v2516_v46 = vmul.f32 %v5355_v0, %v7021_v55  ;;  %v2769_v4 = vpop.permute.xlu0 %2768 }
 0xa02   : > { %4759 = vmatprep.subr.msk.mxu1 %vm917_vm0, %v6985_v51  ;;  %v2520_v21 = vmul.f32 %v5357_v5, %v7023_v53 }
 0xa03   : > { %4735 = vmatprep.mubr.f32.mxu1 %v2516_v46 }
 0xa04   : > { %v5359_v41 = vpop.eup %5358  ;;  %2752 = vrot.lane.b32.xlu1 %v7818_v29, %s5618_s14  ;;  %4736 = vmatmul.mubr.f32.gmra.mxu1 %v2518_v60  ;;  %v7903_v29 = vld [vmem:[#allocation36_spill] sm:$0xff] }
 0xa05   : > { %4760 = vmatpush3.xpose.msk.msra.mxu1 %vm917_vm0, %v6985_v51  ;;  %4738 = vmatprep.mubr.f32.mxu1 %v2520_v21  ;;  %v2522_v13 = vmul.f32 %v5359_v41, %v7027_v38  ;;  %v7908_v51 = vld [vmem:[#allocation21_spill] sm:$0xff] }
 0xa06   : > { %4761 = vmatprep.subr.msk.mxu1 %vm917_vm0, %v6981_v16 }
 0xa08   : > { %2756 = vrot.lane.b32.xlu1 %v7819_v54, %s5618_s14  ;;  %4739 = vmatmul.mubr.f32.gmra.mxu1 %v2522_v13  ;;  %v7904_v54 = vld [vmem:[#allocation25_spill] sm:$0xff] }
 0xa09   : > { %4762 = vmatpush3.xpose.msk.msra.mxu1 %vm917_vm0, %v6981_v16  ;;  %v7907_v16 = vld [vmem:[#allocation29_spill] sm:$0xff] }
 0xa0a   : > { %4763 = vmatprep.subr.msk.mxu1 %vm917_vm0, %v6989_v14 }
 0xa0c   : > { %2760 = vrot.lane.b32.xlu1 %v7820_v34, %s5618_s14  ;;  %v7905_v34 = vld [vmem:[#allocation27_spill] sm:$0xff] }
 0xa0d   : > { %4764 = vmatpush3.xpose.msk.msra.mxu1 %vm917_vm0, %v6989_v14  ;;  %v2767_v14 = vpop.permute.xlu1 %2766 }
 0xa0e   : > { %4765 = vmatprep.subr.msk.mxu1 %vm917_vm0, %v6983_v45 }
 0xa10   : > { %3193 = vrot.lane.b32.xlu1 %v7821_v15, %s5618_s14  ;;  %v7906_v15 = vld [vmem:[#allocation59_spill] sm:$0xff] }
 0xa11   : > { %4766 = vmatpush3.xpose.msk.msra.mxu1 %vm917_vm0, %v6983_v45  ;;  %v7910_v45 = vld [vmem:[#allocation58_spill] sm:$0xff] }
 0xa12   : > { %4767 = vmatprep.subr.msk.mxu1 %vm917_vm0, %v6993_v7 }
 0xa14   : > { %3189 = vrot.lane.b32.xlu1 %v7903_v29, %s5618_s14 }
 0xa15   : > { %4768 = vmatpush3.xpose.msk.msra.mxu1 %vm917_vm0, %v6993_v7  ;;  %v7909_v7 = vld [vmem:[#allocation20_spill] sm:$0xff] }
 0xa16   : > { %4769 = vmatprep.subr.msk.mxu1 %vm917_vm0, %v7904_v54 }
 0xa18   : > { %3185 = vrot.lane.b32.xlu1 %v7905_v34, %s5618_s14 }
 0xa19   : > { %4770 = vmatpush3.xpose.msk.msra.mxu1 %vm917_vm0, %v7904_v54 }
 0xa1a   : > { %4771 = vmatprep.subr.msk.mxu1 %vm917_vm0, %v7906_v15 }
 0xa1c   : > { %3181 = vrot.lane.b32.xlu1 %v7907_v16, %s5618_s14 }
 0xa1d   : > { %4772 = vmatpush3.xpose.msk.msra.mxu1 %vm917_vm0, %v7906_v15 }
 0xa1e   : > { %4773 = vmatprep.subr.msk.mxu1 %vm917_vm0, %v7908_v51 }
 0xa20   : > { %3177 = vrot.lane.b32.xlu1 %v7909_v7, %s5618_s14 }
 0xa21   : > { %4774 = vmatpush3.xpose.msk.msra.mxu1 %vm917_vm0, %v7908_v51 }
 0xa22   : > { %4775 = vmatprep.subr.msk.mxu1 %vm917_vm0, %v7910_v45 }
 0xa25   : > { %4776 = vmatpush3.xpose.msk.msra.mxu1 %vm917_vm0, %v7910_v45 }
 0xa26   : > { %4777 = vmatprep.subr.msk.mxu1 %vm917_vm0, %v7083_v32  ;;  %v2496_v18 = vpop.xlane.xlu0 %2495 }
 0xa27   : > { %5360 = vrcp.f32 %v2496_v18 }
 0xa29   : > { %4778 = vmatpush3.xpose.msk.msra.mxu1 %vm917_vm0, %v7083_v32 }
 0xa2a   : > { %4779 = vmatprep.subr.msk.mxu1 %vm917_vm0, %v2769_v4  ;;  %v2502_v55 = vpop.xlane.xlu0 %2501 }
 0xa2b   : > { %v2494_v61 = vpop.xlane.xlu1 %2493 }
 0xa2c   : > { %5362 = vrcp.f32 %v2494_v61 }
 0xa2d   : > { %4780 = vmatpush3.xpose.msk.msra.mxu1 %vm917_vm0, %v2769_v4 }
 0xa2e   : > { %4781 = vmatprep.subr.msk.mxu1 %vm917_vm0, %v2767_v14  ;;  %v2506_v38 = vpop.xlane.xlu0 %2505 }
 0xa2f   : > { %v2492_v53 = vpop.xlane.xlu1 %2491 }
 0xa30   : > { %5364 = vrcp.f32 %v2492_v53 }
 0xa31   : > { %4782 = vmatpush3.xpose.msk.msra.mxu1 %vm917_vm0, %v2767_v14 }
 0xa32   : > { %v2765_v12 = vpop.permute.xlu0 %2764 }
 0xa33   : > { %v2498_v30 = vpop.xlane.xlu1 %2497  ;;  %4783 = vmatprep.subr.msk.mxu1 %vm917_vm0, %v2765_v12 }
 0xa34   : > { %5366 = vrcp.f32 %v2498_v30  ;;  %v5361_v44 = vpop.eup %5360 }
 0xa35   : > { %4784 = vmatpush3.xpose.msk.msra.mxu1 %vm917_vm0, %v2765_v12  ;;  %5368 = vrcp.f32 %v2502_v55  ;;  %v2528_v43 = vmul.f32 %v5361_v44, %v7041_v50 }
 0xa36   : > { %v2735_v33 = vpop.permute.xlu0 %2734 }
 0xa37   : > { %v2500_v27 = vpop.xlane.xlu1 %2499 }
 0xa38   : > { %5370 = vrcp.f32 %v2500_v27 }
 0xa39   : > { %v5363_v1 = vpop.eup %5362  ;;  %5372 = vrcp.f32 %v2506_v38 }
 0xa3a   : > { %v2739_v56 = vpop.permute.xlu0 %2738  ;;  %v2526_v9 = vmul.f32 %v5363_v1, %v7044_v36 }
 0xa3b   : > { %v2733_v35 = vpop.permute.xlu1 %2732 }
 0xa3d   : > { %v5365_v48 = vpop.eup %5364 }
 0xa3e   : > { %v2524_v62 = vmul.f32 %v5365_v48, %v7050_v11  ;;  %v2743_v10 = vpop.permute.xlu0 %2742 }
 0xa40   : > { %4741 = vmatprep.mubr.f32.mxu1 %v2524_v62 }
 0xa41   : > { %v5367_v3 = vpop.eup %5366  ;;  %4742 = vmatmul.mubr.f32.gmra.mxu1 %v2526_v9 }
 0xa42   : > { %4744 = vmatprep.mubr.f32.mxu1 %v2528_v43  ;;  %v2530_v17 = vmul.f32 %v5367_v3, %v7056_v24  ;;  %v2747_v19 = vpop.permute.xlu0 %2746  ;;  %v5369_v25 = vpop.eup %5368 }
 0xa43   : > { %v2534_v11 = vmul.f32 %v5369_v25, %v7046_v52 }
 0xa45   : > { %v5371_v32 = vpop.eup %5370  ;;  %4745 = vmatmul.mubr.f32.gmra.mxu1 %v2530_v17 }
 0xa46   : > { %v2532_v39 = vmul.f32 %v5371_v32, %v7059_v31  ;;  %v2751_v28 = vpop.permute.xlu0 %2750  ;;  %v5373_v20 = vpop.eup %5372 }
 0xa47   : > { %v2538_v26 = vmul.f32 %v5373_v20, %v7052_v23 }
 0xa48   : > { %4747 = vmatprep.mubr.f32.mxu1 %v2532_v39 }
 0xa49   : > { %4748 = vmatmul.mubr.f32.gmra.mxu1 %v2534_v11 }
 0xa4a   : > { %v2755_v36 = vpop.permute.xlu0 %2754 }
 0xa4e   : > { %v2759_v47 = vpop.permute.xlu0 %2758 }
 0xa52   : > { %v2763_v40 = vpop.permute.xlu0 %2762 }
 0xa56   : > { %v3196_v50 = vpop.permute.xlu0 %3195 }
 0xa57   : > { %4809 = vmatprep.subr.mxu0 %v3196_v50 }
 0xa58   : > { %4810 = vmatpush3.msra.mxu0 %v3196_v50 }
 0xa5a   : > { %v3192_v42 = vpop.permute.xlu0 %3191 }
 0xa6c   : > { %v2504_v24 = vpop.xlane.xlu1 %2503 }
 0xa6d   : > { %5374 = vrcp.f32 %v2504_v24 }
 0xa70   : > { %v2737_v58 = vpop.permute.xlu1 %2736 }
 0xa74   : > { %v2741_v57 = vpop.permute.xlu1 %2740 }
 0xa78   : > { %v2745_v49 = vpop.permute.xlu1 %2744 }
 0xa7a   : > { %v5375_v31 = vpop.eup %5374 }
 0xa7b   : > { %v2536_v63 = vmul.f32 %v5375_v31, %v7087_v6  ;;  %v3188_v6 = vpop.permute.xlu0 %3187 }
 0xa7c   : > { %v2749_v52 = vpop.permute.xlu1 %2748 }
 0xa7d   : > { %4750 = vmatprep.mubr.f32.mxu1 %v2536_v63 }
 0xa7e   : > { %4751 = vmatmul.mubr.f32.gmra.mxu1 %v2538_v26 }
 0xa7f   : > { %4785 = vmatprep.mubr.msk.f32.mxu1 %vm917_vm0, %v2733_v35  ;;  %v3184_v59 = vpop.permute.xlu0 %3183 }
 0xa80   : > { %v2753_v2 = vpop.permute.xlu1 %2752 }
 0xa82   : > { %4786 = vmatmul.mubr.msk.f32.vlgmr.msra.gmra.mxu1 %vm917_vm0, %v2735_v33 }
 0xa83   : > { %4788 = vmatprep.mubr.msk.f32.mxu1 %vm917_vm0, %v2737_v58  ;;  %v3180_v46 = vpop.permute.xlu0 %3179 }
 0xa84   : > { %v2757_v8 = vpop.permute.xlu1 %2756 }
 0xa86   : > { %4789 = vmatmul.mubr.msk.f32.gmra.mxu1 %vm917_vm0, %v2739_v56 }
 0xa87   : > { %4791 = vmatprep.mubr.msk.f32.mxu1 %vm917_vm0, %v2741_v57 }
 0xa88   : > { %v2761_v22 = vpop.permute.xlu1 %2760 }
 0xa8a   : > { %4792 = vmatmul.mubr.msk.f32.gmra.mxu1 %vm917_vm0, %v2743_v10 }
 0xa8b   : > { %4794 = vmatprep.mubr.msk.f32.mxu1 %vm917_vm0, %v2745_v49 }
 0xa8c   : > { %v3194_v23 = vpop.permute.xlu1 %3193 }
 0xa8d   : > { %4811 = vmatprep.subr.mxu0 %v3194_v23 }
 0xa8e   : > { %4795 = vmatmul.mubr.msk.f32.gmra.mxu1 %vm917_vm0, %v2747_v19  ;;  %4812 = vmatpush3.msra.mxu0 %v3194_v23  ;;  %v7911_v23 = vld [vmem:[#allocation22_spill] sm:$0xff] }
 0xa8f   : > { %4797 = vmatprep.mubr.msk.f32.mxu1 %vm917_vm0, %v2749_v52  ;;  %4813 = vmatprep.subr.mxu0 %v3192_v42 }
 0xa90   : > { %v3190_v37 = vpop.permute.xlu1 %3189  ;;  %4814 = vmatpush3.msra.mxu0 %v3192_v42 }
 0xa91   : > { %4815 = vmatprep.subr.mxu0 %v3190_v37 }
 0xa92   : > { %4798 = vmatmul.mubr.msk.f32.gmra.mxu1 %vm917_vm0, %v2751_v28  ;;  %4816 = vmatpush3.msra.mxu0 %v3190_v37  ;;  %v7913_v37 = vld [vmem:[#allocation26_spill] sm:$0xff] }
 0xa93   : > { %4800 = vmatprep.mubr.msk.f32.mxu1 %vm917_vm0, %v2753_v2  ;;  %4817 = vmatprep.subr.mxu0 %v3188_v6 }
 0xa94   : > { %v3186_v0 = vpop.permute.xlu1 %3185  ;;  %4818 = vmatpush3.msra.mxu0 %v3188_v6  ;;  %v7912_v6 = vld [vmem:[#allocation13_spill] sm:$0xff] }
 0xa95   : > { %4819 = vmatprep.subr.mxu0 %v3186_v0 }
 0xa96   : > { %4801 = vmatmul.mubr.msk.f32.gmra.mxu1 %vm917_vm0, %v2755_v36  ;;  %4820 = vmatpush3.msra.mxu0 %v3186_v0  ;;  %v7915_v0 = vld [vmem:[#allocation17_spill] sm:$0xff] }
 0xa97   : > { %4803 = vmatprep.mubr.msk.f32.mxu1 %vm917_vm0, %v2757_v8  ;;  %4821 = vmatprep.subr.mxu0 %v3184_v59 }
 0xa98   : > { %v3182_v5 = vpop.permute.xlu1 %3181  ;;  %4822 = vmatpush3.msra.mxu0 %v3184_v59  ;;  %v7914_v59 = vld [vmem:[#allocation15_spill] sm:$0xff] }
 0xa99   : > { %4823 = vmatprep.subr.mxu0 %v3182_v5 }
 0xa9a   : > { %4804 = vmatmul.mubr.msk.f32.gmra.mxu1 %vm917_vm0, %v2759_v47  ;;  %4824 = vmatpush3.msra.mxu0 %v3182_v5  ;;  %v7916_v5 = vld [vmem:[#allocation19_spill] sm:$0xff] }
 0xa9b   : > { %4806 = vmatprep.mubr.msk.f32.mxu1 %vm917_vm0, %v2761_v22  ;;  %4825 = vmatprep.subr.mxu0 %v3180_v46 }
 0xa9c   : > { %v3178_v60 = vpop.permute.xlu1 %3177  ;;  %4826 = vmatpush3.msra.mxu0 %v3180_v46 }
 0xa9d   : > { %4827 = vmatprep.subr.mxu0 %v3178_v60 }
 0xa9e   : > { %4807 = vmatmul.mubr.msk.f32.gmra.mxu1 %vm917_vm0, %v2763_v40  ;;  %4828 = vmatpush3.msra.mxu0 %v3178_v60 }
 0xab7   : > { %v7210_v21 = vpop.f32.mrf.mxu1 }
 0xab9   : > { %v7212_v41 = vpop.f32.mrf.mxu1 }
 0xaba   : > { %v5012_v13 = vpack.i.bf16 %v7210_v21, %v7212_v41  ;;  %v7932_v41 = vld [vmem:[#allocation45_spill] sm:$0xff] }
 0xabc   : > { %v7216_v29 = vpop.f32.mrf.mxu1 }
 0xabe   : > { %v7218_v54 = vpop.f32.mrf.mxu1 }
 0xabf   : > { %v5022_v34 = vpack.i.bf16 %v7216_v29, %v7218_v54  ;;  %v7935_v54 = vld [vmem:[#allocation38_spill] sm:$0xff] }
 0xac4   : > { %v7222_v15 = vpop.f32.mrf.mxu1 }
 0xac6   : > { %v7224_v16 = vpop.f32.mrf.mxu1 }
 0xac7   : > { %v5052_v51 = vpack.i.bf16 %v7222_v15, %v7224_v16 }
 0xac8   : > { %v7228_v7 = vpop.f32.mrf.mxu1 }
 0xaca   : > { %v7230_v45 = vpop.f32.mrf.mxu1 }
 0xacb   : > { %v5062_v4 = vpack.i.bf16 %v7228_v7, %v7230_v45 }
 0xb01   : > { %v7234_v14 = vpop.f32.mrf.mxu1 }
 0xb03   : > { %v7236_v18 = vpop.f32.mrf.mxu1 }
 0xb04   : > { %v5017_v61 = vpack.i.bf16 %v7234_v14, %v7236_v18  ;;  %v7938_v18 = vld [vmem:[#allocation32_spill] sm:$0xff] }
 0xb05   : > { %v7240_v55 = vpop.f32.mrf.mxu1 }
 0xb07   : > { %v7242_v53 = vpop.f32.mrf.mxu1 }
 0xb08   : > { %v5027_v38 = vpack.i.bf16 %v7240_v55, %v7242_v53 }
 0xb09   : > { %v7246_v30 = vpop.f32.mrf.mxu1 }
 0xb0b   : > { %v7248_v12 = vpop.f32.mrf.mxu1 }
 0xb0c   : > { %v5057_v27 = vpack.i.bf16 %v7246_v30, %v7248_v12 }
 0xb3e   : > { %v7252_v33 = vpop.f32.mrf.mxu1 }
 0xb40   : > { %v7254_v44 = vpop.f32.mrf.mxu1 }
 0xb41   : > { %v5067_v56 = vpack.i.bf16 %v7252_v33, %v7254_v44 }
 0xb42   : > { %v4787_v1 = vpop.f32.mrf.mxu1 }
 0xb43   : > { %v3006_v48 = vmul.f32 0.17677669, %v4787_v1 }
 0xb44   : > { %v2926_v62 = vpop.f32.mrf.mxu1 }
 0xb45   : > { %v3005_v10 = vmul.f32 0.17677669, %v2926_v62  ;;  %3023 = vmax.xlane.f32.xlu0 %v3006_v48 }
 0xb46   : > { %v4790_v9 = vpop.f32.mrf.mxu1 }
 0xb47   : > { %3021 = vmax.xlane.f32.xlu1 %v3005_v10  ;;  %v3008_v3 = vmul.f32 0.17677669, %v4790_v9 }
 0xb48   : > { %v2936_v43 = vpop.f32.mrf.mxu1 }
 0xb49   : > { %v3007_v17 = vmul.f32 0.17677669, %v2936_v43 }
 0xb4a   : > { %v4793_v19 = vpop.f32.mrf.mxu1 }
 0xb4b   : > { %3027 = vmax.xlane.f32.xlu1 %v3008_v3  ;;  %3025 = vmax.xlane.f32.xlu0 %v3007_v17  ;;  %v3010_v32 = vmul.f32 0.17677669, %v4793_v19 }
 0xb4c   : > { %v2946_v25 = vpop.f32.mrf.mxu1 }
 0xb4d   : > { %v3009_v39 = vmul.f32 0.17677669, %v2946_v25 }
 0xb4e   : > { %v4796_v28 = vpop.f32.mrf.mxu1 }
 0xb4f   : > { %3031 = vmax.xlane.f32.xlu1 %v3010_v32  ;;  %3029 = vmax.xlane.f32.xlu0 %v3009_v39  ;;  %v3012_v36 = vmul.f32 0.17677669, %v4796_v28 }
 0xb50   : > { %v2956_v11 = vpop.f32.mrf.mxu1 }
 0xb51   : > { %v3011_v47 = vmul.f32 0.17677669, %v2956_v11 }
 0xb52   : > { %v4799_v40 = vpop.f32.mrf.mxu1 }
 0xb53   : > { %3035 = vmax.xlane.f32.xlu1 %v3012_v36  ;;  %3033 = vmax.xlane.f32.xlu0 %v3011_v47  ;;  %v7258_v35 = vmul.f32 0.17677669, %v4799_v40 }
 0xb54   : > { %v2966_v50 = vpop.f32.mrf.mxu1 }
 0xb55   : > { %v7260_v24 = vmul.f32 0.17677669, %v2966_v50 }
 0xb56   : > { %v4802_v58 = vpop.f32.mrf.mxu1 }
 0xb57   : > { %3039 = vmax.xlane.f32.xlu1 %v7258_v35  ;;  %3037 = vmax.xlane.f32.xlu0 %v7260_v24  ;;  %v7264_v49 = vmul.f32 0.17677669, %v4802_v58 }
 0xb58   : > { %v2976_v57 = vpop.f32.mrf.mxu1 }
 0xb59   : > { %v7266_v20 = vmul.f32 0.17677669, %v2976_v57 }
 0xb5a   : > { %v4805_v31 = vpop.f32.mrf.mxu1 }
 0xb5b   : > { %3043 = vmax.xlane.f32.xlu1 %v7264_v49  ;;  %3041 = vmax.xlane.f32.xlu0 %v7266_v20  ;;  %v7270_v52 = vmul.f32 0.17677669, %v4805_v31 }
 0xb5c   : > { %v2986_v63 = vpop.f32.mrf.mxu1 }
 0xb5d   : > { %v7272_v26 = vmul.f32 0.17677669, %v2986_v63 }
 0xb5e   : > { %v4808_v2 = vpop.f32.mrf.mxu1 }
 0xb5f   : > { %3047 = vmax.xlane.f32.xlu1 %v7270_v52  ;;  %3045 = vmax.xlane.f32.xlu0 %v7272_v26  ;;  %v7276_v42 = vmul.f32 0.17677669, %v4808_v2 }
 0xb60   : > { %v2996_v8 = vpop.f32.mrf.mxu1 }
 0xb61   : > { %v7278_v22 = vmul.f32 0.17677669, %v2996_v8 }
 0xb63   : > { %3051 = vmax.xlane.f32.xlu1 %v7276_v42  ;;  %3049 = vmax.xlane.f32.xlu0 %v7278_v22 }
 0xb74   : > { %3173 = vrot.lane.b32.xlu1 %v7911_v23, %s5618_s14 }
 0xb78   : > { %3169 = vrot.lane.b32.xlu1 %v7912_v6, %s5618_s14 }
 0xb79   : > { %3175 = vrot.lane.b32.xlu0 %v7913_v37, %s5618_s14 }
 0xb7c   : > { %3165 = vrot.lane.b32.xlu1 %v7914_v59, %s5618_s14 }
 0xb7d   : > { %3171 = vrot.lane.b32.xlu0 %v7915_v0, %s5618_s14 }
 0xb81   : > { %3167 = vrot.lane.b32.xlu0 %v7916_v5, %s5618_s14 }
 0xbce   : > { %v3024_v46 = vpop.xlane.xlu0 %3023 }
 0xbcf   : > { %v3054_v60 = vsub.f32 %v3006_v48, %v3024_v46 }
 0xbd0   : > { %v3022_v1 = vpop.xlane.xlu1 %3021 }
 0xbd1   : > { %v3071_v62 = vmul.f32 1.442695, %v3054_v60  ;;  %v3053_v9 = vsub.f32 %v3005_v10, %v3022_v1 }
 0xbd3   : > { %5376 = vpow2.f32 %v3071_v62  ;;  %v3069_v43 = vmul.f32 1.442695, %v3053_v9 }
 0xbd4   : > { %v3028_v19 = vpop.xlane.xlu1 %3027  ;;  %v3026_v25 = vpop.xlane.xlu0 %3025 }
 0xbd5   : > { %5378 = vpow2.f32 %v3069_v43  ;;  %v3056_v28 = vsub.f32 %v3008_v3, %v3028_v19  ;;  %v3055_v11 = vsub.f32 %v3007_v17, %v3026_v25 }
 0xbd7   : > { %v3075_v40 = vmul.f32 1.442695, %v3056_v28  ;;  %v3073_v50 = vmul.f32 1.442695, %v3055_v11 }
 0xbd8   : > { %v3032_v58 = vpop.xlane.xlu1 %3031  ;;  %v3030_v57 = vpop.xlane.xlu0 %3029 }
 0xbd9   : > { %5380 = vpow2.f32 %v3075_v40  ;;  %v3058_v31 = vsub.f32 %v3010_v32, %v3032_v58  ;;  %v3057_v63 = vsub.f32 %v3009_v39, %v3030_v57 }
 0xbda   : > { %5382 = vpow2.f32 %v3073_v50 }
 0xbdb   : > { %v3079_v2 = vmul.f32 1.442695, %v3058_v31  ;;  %v3077_v48 = vmul.f32 1.442695, %v3057_v63 }
 0xbdc   : > { %v3036_v8 = vpop.xlane.xlu1 %3035  ;;  %v3034_v23 = vpop.xlane.xlu0 %3033 }
 0xbdd   : > { %5384 = vpow2.f32 %v3079_v2  ;;  %v3060_v10 = vsub.f32 %v3012_v36, %v3036_v8  ;;  %v3059_v6 = vsub.f32 %v3011_v47, %v3034_v23 }
 0xbde   : > { %5386 = vpow2.f32 %v3077_v48 }
 0xbdf   : > { %v3083_v37 = vmul.f32 1.442695, %v3060_v10  ;;  %v3081_v59 = vmul.f32 1.442695, %v3059_v6 }
 0xbe0   : > { %v7294_v3 = vpop.eup %5376  ;;  %v3040_v17 = vpop.xlane.xlu1 %3039 }
 0xbe1   : > { %v3038_v0 = vpop.xlane.xlu0 %3037  ;;  %5388 = vpow2.f32 %v3083_v37  ;;  %v3062_v5 = vsub.f32 %v7258_v35, %v3040_v17  ;;  %3103 = vadd.xlane.f32.xlu0 %v7294_v3 }
 0xbe2   : > { %v3061_v32 = vsub.f32 %v7260_v24, %v3038_v0  ;;  %v7299_v39 = vpop.eup %5378  ;;  %5390 = vpow2.f32 %v3081_v59 }
 0xbe3   : > { %v3087_v46 = vmul.f32 1.442695, %v3062_v5  ;;  %3101 = vadd.xlane.f32.xlu1 %v7299_v39 }
 0xbe4   : > { %v3085_v36 = vmul.f32 1.442695, %v3061_v32  ;;  %v3044_v47 = vpop.xlane.xlu1 %3043 }
 0xbe5   : > { %v3042_v60 = vpop.xlane.xlu0 %3041  ;;  %5392 = vpow2.f32 %v3087_v46  ;;  %v3064_v1 = vsub.f32 %v7264_v49, %v3044_v47  ;;  %v7917_v47 = vld [vmem:[#allocation44_spill] sm:$0xff] }
 0xbe6   : > { %v3063_v62 = vsub.f32 %v7266_v20, %v3042_v60  ;;  %v7304_v9 = vpop.eup %5380  ;;  %5394 = vpow2.f32 %v3085_v36  ;;  %v7918_v60 = vld [vmem:[#allocation42_spill] sm:$0xff] }
 0xbe7   : > { %v7306_v35 = vpop.eup %5382  ;;  %v3091_v24 = vmul.f32 1.442695, %v3064_v1  ;;  %3107 = vadd.xlane.f32.xlu0 %v7304_v9  ;;  %v7919_v1 = vpack.i.bf16 %v7917_v47, %v7918_v60 }
 0xbe8   : > { %v3089_v43 = vmul.f32 1.442695, %v3063_v62  ;;  %3105 = vadd.xlane.f32.xlu1 %v7306_v35  ;;  %v3048_v19 = vpop.xlane.xlu1 %3047  ;;  %v7920_v62 = vld [vmem:[#allocation33_spill] sm:$0xff] }
 0xbe9   : > { %v3046_v25 = vpop.xlane.xlu0 %3045  ;;  %5396 = vpow2.f32 %v3091_v24  ;;  %v3066_v28 = vsub.f32 %v7270_v52, %v3048_v19  ;;  %v7921_v24 = vld [vmem:[#allocation24_spill] sm:$0xff]  ;;  %v7923_v19 = vld [vmem:[#allocation31_spill] sm:$0xff] }
 0xbea   : > { %v3065_v49 = vsub.f32 %v7272_v26, %v3046_v25  ;;  %v7312_v11 = vpop.eup %5384  ;;  %5398 = vpow2.f32 %v3089_v43  ;;  %v7922_v43 = vpack.i.bf16 %v7920_v62, %v7921_v24  ;;  %v7924_v25 = vld [vmem:[#allocation56_spill] sm:$0xff] }
 0xbeb   : > { %v7314_v20 = vpop.eup %5386  ;;  %v3095_v40 = vmul.f32 1.442695, %v3066_v28  ;;  %3111 = vadd.xlane.f32.xlu0 %v7312_v11  ;;  %v7925_v28 = vpack.i.bf16 %v7923_v19, %v7924_v25 }
 0xbec   : > { %v3093_v50 = vmul.f32 1.442695, %v3065_v49  ;;  %3109 = vadd.xlane.f32.xlu1 %v7314_v20  ;;  %v3052_v58 = vpop.xlane.xlu1 %3051  ;;  %v7926_v49 = vld [vmem:[#allocation41_spill] sm:$0xff] }
 0xbed   : > { %v3050_v57 = vpop.xlane.xlu0 %3049  ;;  %5400 = vpow2.f32 %v3095_v40  ;;  %v3068_v31 = vsub.f32 %v7276_v42, %v3052_v58  ;;  %v7927_v40 = vld [vmem:[#allocation39_spill] sm:$0xff] }
 0xbee   : > { %v3067_v52 = vsub.f32 %v7278_v22, %v3050_v57  ;;  %v7320_v63 = vpop.eup %5388  ;;  %5402 = vpow2.f32 %v3093_v50  ;;  %v7928_v50 = vpack.i.bf16 %v7926_v49, %v7927_v40  ;;  %v7929_v58 = vld [vmem:[#allocation47_spill] sm:$0xff]  ;;  %v7930_v57 = vld [vmem:[#allocation48_spill] sm:$0xff] }
 0xbef   : > { %v7322_v26 = vpop.eup %5390  ;;  %v3099_v2 = vmul.f32 1.442695, %v3068_v31  ;;  %3115 = vadd.xlane.f32.xlu0 %v7320_v63  ;;  %v7931_v21 = vpack.i.bf16 %v7929_v58, %v7930_v57 }
 0xbf0   : > { %v3097_v48 = vmul.f32 1.442695, %v3067_v52  ;;  %3113 = vadd.xlane.f32.xlu1 %v7322_v26  ;;  %v3174_v8 = vpop.permute.xlu1 %3173 }
 0xbf1   : > { %v3176_v23 = vpop.permute.xlu0 %3175  ;;  %5404 = vpow2.f32 %v3099_v2 }
 0xbf2   : > { %4829 = vmatprep.subr.mxu0 %v3176_v23  ;;  %v7326_v10 = vpop.eup %5392  ;;  %5406 = vpow2.f32 %v3097_v48 }
 0xbf3   : > { %4830 = vmatpush3.msra.mxu0 %v3176_v23  ;;  %v7328_v42 = vpop.eup %5394  ;;  %3119 = vadd.xlane.f32.xlu0 %v7326_v10 }
 0xbf4   : > { %4831 = vmatprep.subr.mxu0 %v3174_v8  ;;  %3117 = vadd.xlane.f32.xlu1 %v7328_v42  ;;  %v3170_v22 = vpop.permute.xlu1 %3169 }
 0xbf5   : > { %4832 = vmatpush3.msra.mxu0 %v3174_v8  ;;  %v3172_v6 = vpop.permute.xlu0 %3171 }
 0xbf6   : > { %4833 = vmatprep.subr.mxu0 %v3172_v6  ;;  %v7332_v37 = vpop.eup %5396 }
 0xbf7   : > { %4834 = vmatpush3.msra.mxu0 %v3172_v6  ;;  %v7334_v59 = vpop.eup %5398  ;;  %3123 = vadd.xlane.f32.xlu0 %v7332_v37 }
 0xbf8   : > { %4835 = vmatprep.subr.mxu0 %v3170_v22  ;;  %3121 = vadd.xlane.f32.xlu1 %v7334_v59  ;;  %v3166_v5 = vpop.permute.xlu1 %3165 }
 0xbf9   : > { %4836 = vmatpush3.msra.mxu0 %v3170_v22  ;;  %v3168_v17 = vpop.permute.xlu0 %3167 }
 0xbfa   : > { %4837 = vmatprep.subr.mxu0 %v3168_v17  ;;  %v7338_v0 = vpop.eup %5400 }
 0xbfb   : > { %4838 = vmatpush3.msra.mxu0 %v3168_v17  ;;  %v7340_v32 = vpop.eup %5402  ;;  %3127 = vadd.xlane.f32.xlu0 %v7338_v0 }
 0xbfc   : > { %4839 = vmatprep.subr.mxu0 %v3166_v5  ;;  %3125 = vadd.xlane.f32.xlu1 %v7340_v32 }
 0xbfd   : > { %4840 = vmatpush3.msra.mxu0 %v3166_v5 }
 0xbfe   : > { %v7344_v46 = vpop.eup %5404 }
 0xbff   : > { %v7346_v36 = vpop.eup %5406  ;;  %3131 = vadd.xlane.f32.xlu0 %v7344_v46 }
 0xc00   : > { %3129 = vadd.xlane.f32.xlu1 %v7346_v36 }
 0xc11   : > { %4998 = vrot.lane.b32.xlu1 %v7919_v1, %s5618_s14 }
 0xc15   : > { %5003 = vrot.lane.b32.xlu1 %v7922_v43, %s5618_s14  ;;  %4993 = vrot.lane.b32.xlu0 %v7925_v28, %s5618_s14 }
 0xc19   : > { %5013 = vrot.lane.b32.xlu1 %v5012_v13, %s5617_s19  ;;  %5008 = vrot.lane.b32.xlu0 %v7928_v50, %s5618_s14  ;;  %v7933_v13 = vld [vmem:[#allocation57_spill] sm:$0xff] }
 0xc1a   : > { %v7934_v29 = vpack.i.bf16 %v7932_v41, %v7933_v13  ;;  %v5151_v41 = vld [vmem:[#allocation7] sm:$0xff]  }
 0xc1d   : > { %5023 = vrot.lane.b32.xlu1 %v5022_v34, %s5617_s19  ;;  %5018 = vrot.lane.b32.xlu0 %v5017_v61, %s5617_s19  ;;  %v7936_v34 = vld [vmem:[#allocation35_spill] sm:$0xff]  ;;  %v7939_v61 = vld [vmem:[#allocation28_spill] sm:$0xff] }
 0xc1e   : > { %v7937_v14 = vpack.i.bf16 %v7935_v54, %v7936_v34  ;;  %v7940_v55 = vpack.i.bf16 %v7938_v18, %v7939_v61 }
 0xc21   : > { %5033 = vrot.lane.b32.xlu1 %v7931_v21, %s5618_s14  ;;  %5028 = vrot.lane.b32.xlu0 %v5027_v38, %s5617_s19  ;;  %v5150_v21 = vld [vmem:[#allocation7 + $0x8] sm:$0xff]  }
 0xc25   : > { %5043 = vrot.lane.b32.xlu1 %v7934_v29, %s5618_s14  ;;  %5038 = vrot.lane.b32.xlu0 %v7937_v14, %s5618_s14 }
 0xc29   : > { %5053 = vrot.lane.b32.xlu1 %v5052_v51, %s5617_s19  ;;  %5048 = vrot.lane.b32.xlu0 %v7940_v55, %s5618_s14 }
 0xc2d   : > { %5063 = vrot.lane.b32.xlu1 %v5062_v4, %s5617_s19  ;;  %5058 = vrot.lane.b32.xlu0 %v5057_v27, %s5617_s19 }
 0xc31   : > { %5068 = vrot.lane.b32.xlu0 %v5067_v56, %s5617_s19 }
 0xc6a   : > { %v3104_v15 = vpop.xlane.xlu0 %3103 }
 0xc6b   : > { %5408 = vrcp.f32 %v3104_v15 }
 0xc6c   : > { %v3102_v16 = vpop.xlane.xlu1 %3101 }
 0xc6d   : > { %5410 = vrcp.f32 %v3102_v16 }
 0xc70   : > { %v3108_v51 = vpop.xlane.xlu0 %3107 }
 0xc71   : > { %v3106_v53 = vpop.xlane.xlu1 %3105  ;;  %5412 = vrcp.f32 %v3108_v51 }
 0xc72   : > { %5414 = vrcp.f32 %v3106_v53 }
 0xc74   : > { %v3112_v7 = vpop.xlane.xlu0 %3111 }
 0xc75   : > { %v3110_v45 = vpop.xlane.xlu1 %3109  ;;  %5416 = vrcp.f32 %v3112_v7 }
 0xc76   : > { %5418 = vrcp.f32 %v3110_v45 }
 0xc78   : > { %v3116_v4 = vpop.xlane.xlu0 %3115  ;;  %v5409_v38 = vpop.eup %5408 }
 0xc79   : > { %v3114_v30 = vpop.xlane.xlu1 %3113  ;;  %5420 = vrcp.f32 %v3116_v4  ;;  %v3136_v44 = vmul.f32 %v5409_v38, %v7294_v3 }
 0xc7a   : > { %v5411_v12 = vpop.eup %5410  ;;  %5422 = vrcp.f32 %v3114_v30 }
 0xc7b   : > { %v3134_v27 = vmul.f32 %v5411_v12, %v7299_v39 }
 0xc7c   : > { %v3120_v33 = vpop.xlane.xlu0 %3119 }
 0xc7d   : > { %v3118_v56 = vpop.xlane.xlu1 %3117  ;;  %5424 = vrcp.f32 %v3120_v33  ;;  %4841 = vmatprep.mubr.f32.mxu0 %v3134_v27 }
 0xc7e   : > { %v5413_v31 = vpop.eup %5412  ;;  %5426 = vrcp.f32 %v3118_v56  ;;  %4842 = vmatmul.mubr.f32.vlgmr.msra.gmra.mxu0 %v3136_v44 }
 0xc7f   : > { %v5415_v52 = vpop.eup %5414  ;;  %v3140_v2 = vmul.f32 %v5413_v31, %v7304_v9 }
 0xc80   : > { %v3124_v48 = vpop.xlane.xlu0 %3123  ;;  %v3138_v8 = vmul.f32 %v5415_v52, %v7306_v35 }
 0xc81   : > { %v3122_v23 = vpop.xlane.xlu1 %3121  ;;  %5428 = vrcp.f32 %v3124_v48 }
 0xc82   : > { %v5417_v22 = vpop.eup %5416  ;;  %5430 = vrcp.f32 %v3122_v23  ;;  %4844 = vmatprep.mubr.f32.mxu0 %v3138_v8 }
 0xc83   : > { %v5419_v39 = vpop.eup %5418  ;;  %4845 = vmatmul.mubr.f32.gmra.mxu0 %v3140_v2  ;;  %v3144_v3 = vmul.f32 %v5417_v22, %v7312_v11 }
 0xc84   : > { %v3128_v6 = vpop.xlane.xlu0 %3127  ;;  %v3142_v17 = vmul.f32 %v5419_v39, %v7314_v20 }
 0xc85   : > { %v3126_v5 = vpop.xlane.xlu1 %3125  ;;  %5432 = vrcp.f32 %v3128_v6 }
 0xc86   : > { %v5421_v47 = vpop.eup %5420  ;;  %5434 = vrcp.f32 %v3126_v5  ;;  %4847 = vmatprep.mubr.f32.mxu0 %v3142_v17 }
 0xc87   : > { %v5423_v9 = vpop.eup %5422  ;;  %4848 = vmatmul.mubr.f32.gmra.mxu0 %v3144_v3  ;;  %v3148_v35 = vmul.f32 %v5421_v47, %v7320_v63 }
 0xc88   : > { %v3132_v60 = vpop.xlane.xlu0 %3131  ;;  %v3146_v1 = vmul.f32 %v5423_v9, %v7322_v26 }
 0xc89   : > { %v3130_v62 = vpop.xlane.xlu1 %3129  ;;  %5436 = vrcp.f32 %v3132_v60 }
 0xc8a   : > { %v5425_v24 = vpop.eup %5424  ;;  %5438 = vrcp.f32 %v3130_v62  ;;  %4850 = vmatprep.mubr.f32.mxu0 %v3146_v1 }
 0xc8b   : > { %v5427_v11 = vpop.eup %5426  ;;  %4851 = vmatmul.mubr.f32.gmra.mxu0 %v3148_v35  ;;  %v3152_v20 = vmul.f32 %v5425_v24, %v7326_v10 }
 0xc8c   : > { %v3150_v43 = vmul.f32 %v5427_v11, %v7328_v42  ;;  %v4994_v23 = vpop.permute.xlu0 %4993 }
 0xc8d   : > { %v7438_v2 = vpop.permute.xlu1 %4998  ;;  %v4996_v60 = vunpack.i.h.bf16 %v4994_v23  ;;  %v4995_v1 = vunpack.i.l.bf16 %v4994_v23 }
 0xc8e   : > { %v5429_v19 = vpop.eup %5428  ;;  %4853 = vmatprep.mubr.f32.mxu0 %v3150_v43  ;;  %v5001_v23 = vunpack.i.h.bf16 %v7438_v2 }
 0xc8f   : > { %v5431_v25 = vpop.eup %5430  ;;  %4854 = vmatmul.mubr.f32.gmra.mxu0 %v3152_v20  ;;  %v3156_v63 = vmul.f32 %v5429_v19, %v7332_v37  ;;  %v5144_v37 = vld [vmem:[#allocation7 + $0x38] sm:$0xff]   ;;  %v7941_v20 = vld [vmem:[#allocation50_spill] sm:$0xff]  ;;  %v7942_v19 = vld [vmem:[#allocation52_spill] sm:$0xff] }
 0xc90   : > { %v3154_v28 = vmul.f32 %v5431_v25, %v7334_v59  ;;  %v5145_v59 = vld [vmem:[#allocation7 + $0x30] sm:$0xff]   ;;  %4865 = vmatprep.subr.bf16.mxu0 %v5144_v37  ;;  %4897 = vmatprep.subr.bf16.mxu1 %v5144_v37  ;;  %v7440_v39 = vpop.permute.xlu0 %5008  ;;  %v3551_v43 = vsel %vm917_vm0, %v7941_v20, %v4996_v60  ;;  %v3550_v25 = vsel %vm917_vm0, %v7942_v19, %v4995_v1  ;;  %v7947_v60 = vld [vmem:[#allocation23_spill] sm:$0xff] }
 0xc91   : > { %4866 = vmatpush3.bf16.msra.mxu0 %v5144_v37  ;;  %4905 = vmatpush3.bf16.msra.mxu1 %v5144_v37  ;;  %v5004_v48 = vpop.permute.xlu1 %5003 }
 0xc92   : > { %v5433_v26 = vpop.eup %5432  ;;  %4856 = vmatprep.mubr.f32.mxu0 %v3154_v28  ;;  %4867 = vmatprep.subr.bf16.mxu0 %v5145_v59 }
 0xc93   : > { %v5435_v49 = vpop.eup %5434  ;;  %4857 = vmatmul.mubr.f32.gmra.mxu0 %v3156_v63  ;;  %v3160_v40 = vmul.f32 %v5433_v26, %v7338_v0  ;;  %v5146_v0 = vld [vmem:[#allocation7 + $0x28] sm:$0xff]   ;;  %4898 = vmatprep.subr.bf16.mxu1 %v5145_v59 }
 0xc94   : > { %v3158_v50 = vmul.f32 %v5435_v49, %v7340_v32  ;;  %v5147_v32 = vld [vmem:[#allocation7 + $0x20] sm:$0xff]   ;;  %v7442_v6 = vpop.permute.xlu0 %5018  ;;  %v5006_v49 = vunpack.i.h.bf16 %v5004_v48 }
 0xc95   : > { %4868 = vmatpush3.bf16.msra.mxu0 %v5145_v59  ;;  %4906 = vmatpush3.bf16.msra.mxu1 %v5145_v59  ;;  %v5014_v8 = vpop.permute.xlu1 %5013  ;;  %v5021_v20 = vunpack.i.h.bf16 %v7442_v6 }
 0xc96   : > { %v5437_v58 = vpop.eup %5436  ;;  %4859 = vmatprep.mubr.f32.mxu0 %v3158_v50  ;;  %4869 = vmatprep.subr.bf16.mxu0 %v5146_v0  ;;  %v5016_v62 = vunpack.i.h.bf16 %v5014_v8  ;;  %v5015_v24 = vunpack.i.l.bf16 %v5014_v8 }
 0xc97   : > { %v5439_v10 = vpop.eup %5438  ;;  %4860 = vmatmul.mubr.f32.gmra.mxu0 %v3160_v40  ;;  %v3164_v42 = vmul.f32 %v5437_v58, %v7344_v46  ;;  %4899 = vmatprep.subr.bf16.mxu1 %v5146_v0  ;;  %v5148_v46 = vld [vmem:[#allocation7 + $0x18] sm:$0xff]   ;;  %v5005_v40 = vunpack.i.l.bf16 %v5004_v48 }
 0xc98   : > { %v3162_v57 = vmul.f32 %v5439_v10, %v7346_v36  ;;  %v5149_v36 = vld [vmem:[#allocation7 + $0x10] sm:$0xff]   ;;  %v7446_v5 = vpop.permute.xlu0 %5028  ;;  %v3567_v50 = vsel %vm3566_vm1, %v3550_v25, %v5015_v24  ;;  %v3568_v58 = vsel %vm3566_vm1, %v3551_v43, %v5016_v62  ;;  %v5020_v43 = vunpack.i.l.bf16 %v7442_v6 }
 0xc99   : > { %4870 = vmatpush3.bf16.msra.mxu0 %v5146_v0  ;;  %4907 = vmatpush3.bf16.msra.mxu1 %v5146_v0  ;;  %v5024_v22 = vpop.permute.xlu1 %5023  ;;  %v7948_v62 = vld [vmem:[#allocation30_spill] sm:$0xff]  ;;  %v5010_v6 = vunpack.i.l.bf16 %v7440_v39 }
 0xc9a   : > { %4862 = vmatprep.mubr.f32.mxu0 %v3162_v57  ;;  %4871 = vmatprep.subr.bf16.mxu0 %v5147_v32  ;;  %v5026_v10 = vunpack.i.h.bf16 %v5024_v22 }
 0xc9b   : > { %4863 = vmatmul.mubr.f32.gmra.mxu0 %v3164_v42  ;;  %4900 = vmatprep.subr.bf16.mxu1 %v5147_v32  ;;  %v5025_v42 = vunpack.i.l.bf16 %v5024_v22  ;;  %v5000_v22 = vunpack.i.l.bf16 %v7438_v2 }
 0xc9c   : > { %v7448_v9 = vpop.permute.xlu0 %5038 }
 0xc9d   : > { %4872 = vmatpush3.bf16.msra.mxu0 %v5147_v32  ;;  %4908 = vmatpush3.bf16.msra.mxu1 %v5147_v32  ;;  %v5034_v3 = vpop.permute.xlu1 %5033 }
 0xc9e   : > { %4873 = vmatprep.subr.bf16.mxu0 %v5148_v46  ;;  %4901 = vmatprep.subr.bf16.mxu1 %v5148_v46  ;;  %v5036_v0 = vunpack.i.h.bf16 %v5034_v3  ;;  %v5035_v32 = vunpack.i.l.bf16 %v5034_v3 }
 0xca0   : > { %v7456_v63 = vpop.permute.xlu0 %5048 }
 0xca1   : > { %4874 = vmatpush3.bf16.msra.mxu0 %v5148_v46  ;;  %4909 = vmatpush3.bf16.msra.mxu1 %v5148_v46  ;;  %v7444_v17 = vpop.permute.xlu1 %5043 }
 0xca2   : > { %4875 = vmatprep.subr.bf16.mxu0 %v5149_v36  ;;  %4902 = vmatprep.subr.bf16.mxu1 %v5149_v36 }
 0xca5   : > { %4876 = vmatpush3.bf16.msra.mxu0 %v5149_v36  ;;  %4910 = vmatpush3.bf16.msra.mxu1 %v5149_v36  ;;  %v5054_v47 = vpop.permute.xlu1 %5053  ;;  %v7943_v36 = vld [vmem:[#allocation49_spill] sm:$0xff] }
 0xca6   : > { %4877 = vmatprep.subr.bf16.mxu0 %v5150_v21  ;;  %4903 = vmatprep.subr.bf16.mxu1 %v5150_v21 }
 0xca9   : > { %4878 = vmatpush3.bf16.msra.mxu0 %v5150_v21  ;;  %4911 = vmatpush3.bf16.msra.mxu1 %v5150_v21  ;;  %v7450_v35 = vpop.permute.xlu1 %5063  ;;  %v3553_v21 = vsel %vm917_vm0, %v7943_v36, %v5006_v49 }
 0xcaa   : > { %4879 = vmatprep.subr.bf16.mxu0 %v5151_v41  ;;  %4904 = vmatprep.subr.bf16.mxu1 %v5151_v41 }
 0xcad   : > { %4880 = vmatpush3.bf16.msra.mxu0 %v5151_v41  ;;  %4912 = vmatpush3.bf16.msra.mxu1 %v5151_v41  ;;  %v7944_v41 = vld [vmem:[#allocation51_spill] sm:$0xff] }
 0xd3e   : > { %v4843_v13 = vpop.f32.mrf.mxu0 }
 0xd40   : > { %v3279_v29 = vpop.f32.mrf.mxu0 }
 0xd41   : > { %v5072_v54 = vpack.i.bf16 %v4843_v13, %v3279_v29  ;;  %v3552_v13 = vsel %vm917_vm0, %v7944_v41, %v5005_v40  ;;  %v7950_v40 = vld [vmem:[#allocation40_spill] sm:$0xff]  ;;  %v5041_v41 = vunpack.i.h.bf16 %v7448_v9 }
 0xd43   : > { %v4846_v34 = vpop.f32.mrf.mxu0  ;;  %5073 = vrot.lane.b32.xlu1 %v5072_v54, %s5616_s18 }
 0xd45   : > { %v3289_v14 = vpop.f32.mrf.mxu0 }
 0xd46   : > { %v5077_v18 = vpack.i.bf16 %v4846_v34, %v3289_v14  ;;  %v3569_v34 = vsel %vm3566_vm1, %v3552_v13, %v5025_v42  ;;  %v3570_v14 = vsel %vm3566_vm1, %v3553_v21, %v5026_v10  ;;  %v5011_v42 = vunpack.i.h.bf16 %v7440_v39 }
 0xd47   : > { %v4849_v61 = vpop.f32.mrf.mxu0  ;;  %v5040_v13 = vunpack.i.l.bf16 %v7448_v9 }
 0xd48   : > { %5078 = vrot.lane.b32.xlu1 %v5077_v18, %s5616_s18  ;;  %v5056_v18 = vunpack.i.h.bf16 %v5054_v47 }
 0xd49   : > { %v3299_v55 = vpop.f32.mrf.mxu0 }
 0xd4a   : > { %v5082_v15 = vpack.i.bf16 %v4849_v61, %v3299_v55  ;;  %v5055_v61 = vunpack.i.l.bf16 %v5054_v47  ;;  %v7468_v55 = vpop.permute.xlu0 %5058 }
 0xd4b   : > { %v4852_v16 = vpop.f32.mrf.mxu0 }
 0xd4c   : > { %5083 = vrot.lane.b32.xlu1 %v5082_v15, %s5616_s18 }
 0xd4d   : > { %v3309_v51 = vpop.f32.mrf.mxu0 }
 0xd4e   : > { %v5102_v53 = vpack.i.bf16 %v4852_v16, %v3309_v51  ;;  %v7945_v51 = vld [vmem:[#allocation12_spill] sm:$0xff]  ;;  %v7486_v3 = vpop.permute.xlu0 %5068 }
 0xd4f   : > { %v4855_v7 = vpop.f32.mrf.mxu0 }
 0xd50   : > { %5103 = vrot.lane.b32.xlu1 %v5102_v53, %s5616_s18  ;;  %v3555_v53 = vsel %vm917_vm0, %v7945_v51, %v5036_v0  ;;  %v5061_v51 = vunpack.i.h.bf16 %v7468_v55 }
 0xd51   : > { %v3319_v45 = vpop.f32.mrf.mxu0 }
 0xd52   : > { %v5087_v4 = vpack.i.bf16 %v4855_v7, %v3319_v45  ;;  %v7946_v7 = vld [vmem:[#allocation16_spill] sm:$0xff] }
 0xd53   : > { %v4858_v38 = vpop.f32.mrf.mxu0  ;;  %v3554_v45 = vsel %vm917_vm0, %v7946_v7, %v5035_v32  ;;  %v5031_v32 = vunpack.i.h.bf16 %v7446_v5 }
 0xd54   : > { %5088 = vrot.lane.b32.xlu0 %v5087_v4, %s5616_s18 }
 0xd55   : > { %v3329_v30 = vpop.f32.mrf.mxu0 }
 0xd56   : > { %v5092_v12 = vpack.i.bf16 %v4858_v38, %v3329_v30  ;;  %v5046_v30 = vunpack.i.h.bf16 %v7444_v17 }
 0xd57   : > { %v4861_v27 = vpop.f32.mrf.mxu0 }
 0xd58   : > { %5093 = vrot.lane.b32.xlu0 %v5092_v12, %s5616_s18  ;;  %v5045_v12 = vunpack.i.l.bf16 %v7444_v17  ;;  %v3557_v1 = vsel %vm917_vm0, %v7947_v60, %v5046_v30  ;;  %v7955_v60 = vld [vmem:[#allocation54_spill] sm:$0xff] }
 0xd59   : > { %v3339_v33 = vpop.f32.mrf.mxu0 }
 0xd5a   : > { %v5097_v44 = vpack.i.bf16 %v4861_v27, %v3339_v33  ;;  %v3556_v24 = vsel %vm917_vm0, %v7948_v62, %v5045_v12 }
 0xd5b   : > { %v4864_v56 = vpop.f32.mrf.mxu0 }
 0xd5c   : > { %5098 = vrot.lane.b32.xlu0 %v5097_v44, %s5616_s18  ;;  %v3571_v44 = vsel %vm3566_vm1, %v3554_v45, %v5055_v61  ;;  %v7953_v45 = vld [vmem:[#allocation34_spill] sm:$0xff] }
 0xd5d   : > { %v3349_v31 = vpop.f32.mrf.mxu0 }
 0xd5e   : > { %v5107_v52 = vpack.i.bf16 %v4864_v56, %v3349_v31  ;;  %v3572_v56 = vsel %vm3566_vm1, %v3555_v53, %v5056_v18  ;;  %v5066_v31 = vunpack.i.h.bf16 %v7450_v35  ;;  %v5060_v53 = vunpack.i.l.bf16 %v7468_v55 }
 0xd60   : > { %5108 = vrot.lane.b32.xlu0 %v5107_v52, %s5616_s18  ;;  %v5065_v52 = vunpack.i.l.bf16 %v7450_v35  ;;  %v3574_v2 = vsel %vm3566_vm1, %v3557_v1, %v5066_v31  ;;  %v7956_v1 = vld [vmem:[#allocation55_spill] sm:$0xff]  ;;  %s5540_s18 = sshll.u32 %s5619_s17, 4  ;;  %s5541_s18 = int_to_ptr.vmem [resolvable:$false] %s5540_s18 }
 0xd61   : > { %s5542_s19 = scalar_lea.vmem %s5541_s18, 4096  ;;  %p5543_p6 = scmp.lt.s32.totalorder %s7603_s10, %s5541_s18 }
 0xd62   : > { %v3573_v19 = vsel %vm3566_vm1, %v3556_v24, %v5065_v52  ;;  %p5544_p12 = scmp.lt.s32.totalorder %s5542_s19, %s5536_s15 }
 0xd64   : > { %p5545_p3 = por %p5544_p12, %p5543_p6 }
 0xd66   : > { %p5546_p9 = pnand %p5545_p3, %p5539_p2 }
 0xdb5   : > { %v5074_v11 = vpop.permute.xlu1 %5073 }
 0xdb6   : > { %v5076_v28 = vunpack.i.h.bf16 %v5074_v11  ;;  %v5075_v26 = vunpack.i.l.bf16 %v5074_v11 }
 0xdb8   : > { %v3584_v57 = vsel %vm3583_vm2, %v3567_v50, %v5075_v26  ;;  %v3585_v37 = vsel %vm3583_vm2, %v3568_v58, %v5076_v28  ;;  %v7949_v26 = vld [vmem:[#allocation37_spill] sm:$0xff]  ;;  %v3558_v50 = vsel %vm917_vm0, %v7950_v40, %v5000_v22 }
 0xdb9   : > { %v3600_v59 = vpack.c.bf16 %v3585_v37, %v3584_v57  ;;  %v3559_v49 = vsel %vm917_vm0, %v7949_v26, %v5001_v23  ;;  %v3575_v0 = vsel %vm3566_vm1, %v3558_v50, %v5020_v43 }
 0xdba   : > { %v5079_v46 = vpop.permute.xlu1 %5078 }
 0xdbb   : > { %v5081_v29 = vunpack.i.h.bf16 %v5079_v46  ;;  %v5080_v54 = vunpack.i.l.bf16 %v5079_v46  ;;  %4881 = vmatprep.mubr.bf16.mxu0 %v3600_v59  ;;  %v3576_v59 = vsel %vm3566_vm1, %v3559_v49, %v5021_v20  ;;  %v5030_v46 = vunpack.i.l.bf16 %v7446_v5  ;;  %v5440_v49 = vld [vmem:[%s5790_s8 + $0x10] sm:$0xff] }
 0xdbd   : > { %v3587_v15 = vsel %vm3583_vm2, %v3570_v14, %v5081_v29  ;;  %v3586_v16 = vsel %vm3583_vm2, %v3569_v34, %v5080_v54  ;;  %v7951_v54 = vld [vmem:[#allocation43_spill] sm:$0xff]  ;;  %v7952_v14 = vld [vmem:[#allocation46_spill] sm:$0xff] }
 0xdbe   : > { %v3601_v4 = vpack.c.bf16 %v3587_v15, %v3586_v16  ;;  %v5084_v38 = vpop.permute.xlu1 %5083  ;;  %v3561_v34 = vsel %vm917_vm0, %v7951_v54, %v5011_v42  ;;  %v3560_v18 = vsel %vm917_vm0, %v7952_v14, %v5010_v6 }
 0xdbf   : > { %v5086_v27 = vunpack.i.h.bf16 %v5084_v38  ;;  %v5085_v33 = vunpack.i.l.bf16 %v5084_v38  ;;  %v3577_v5 = vsel %vm3566_vm1, %v3560_v18, %v5030_v46  ;;  %v3578_v16 = vsel %vm3566_vm1, %v3561_v34, %v5031_v32  ;;  %v7954_v38 = vld [vmem:[#allocation53_spill] sm:$0xff]  ;;  %v5445_v34 = vld [vmem:[%s5790_s8 + $0x20] sm:$0xff] }
 0xdc0   : > { %4882 = vmatmul.mubr.bf16.vlgmr.msra.gmra.mxu0 %v3601_v4  ;;  %v3563_v4 = vsel %vm917_vm0, %v7953_v45, %v5041_v41  ;;  %v3562_v30 = vsel %vm917_vm0, %v7954_v38, %v5040_v13  ;;  %v5443_v46 = vld [vmem:[%s5790_s8 + $0x8] sm:$0xff]  ;;  %v5444_v13 = vld [vmem:[%s5790_s8 + $0x30] sm:$0xff] }
 0xdc1   : > { %v3588_v48 = vsel %vm3583_vm2, %v3571_v44, %v5085_v33  ;;  %v3589_v8 = vsel %vm3583_vm2, %v3572_v56, %v5086_v27  ;;  %v5051_v33 = vunpack.i.h.bf16 %v7456_v63  ;;  %v5050_v44 = vunpack.i.l.bf16 %v7456_v63 }
 0xdc2   : > { %v5104_v17 = vpop.permute.xlu1 %5103  ;;  %v3602_v47 = vpack.c.bf16 %v3589_v8, %v3588_v48  ;;  %v3579_v55 = vsel %vm3566_vm1, %v3562_v30, %v5060_v53  ;;  %v3580_v52 = vsel %vm3566_vm1, %v3563_v4, %v5061_v51  ;;  %v5071_v48 = vunpack.i.h.bf16 %v7486_v3  ;;  %v5447_v53 = vld [vmem:[%s5790_s8 + $0x28] sm:$0xff]  ;;  %v5448_v4 = vld [vmem:[%s5790_s8 + $0x50] sm:$0xff] }
 0xdc3   : > { %v5106_v35 = vunpack.i.h.bf16 %v5104_v17  ;;  %v5105_v11 = vunpack.i.l.bf16 %v5104_v17  ;;  %v5070_v8 = vunpack.i.l.bf16 %v7486_v3  ;;  %v3565_v63 = vsel %vm917_vm0, %v7955_v60, %v5051_v33 }
 0xdc4   : > { %4885 = vmatprep.mubr.bf16.mxu0 %v3602_v47  ;;  %v3564_v62 = vsel %vm917_vm0, %v7956_v1, %v5050_v44  ;;  %v3582_v3 = vsel %vm3566_vm1, %v3565_v63, %v5071_v48 }
 0xdc5   : > { %v3590_v25 = vsel %vm3583_vm2, %v3573_v19, %v5105_v11  ;;  %v3591_v28 = vsel %vm3583_vm2, %v3574_v2, %v5106_v35  ;;  %v3581_v11 = vsel %vm3566_vm1, %v3564_v62, %v5070_v8  ;;  %v7545_v2 = vld [vmem:[%s7654_s5] ss:$0 sm:$0xff]  ;;  %v5451_v8 = vld [vmem:[%s5790_s8 + $0x48] sm:$0xff] }
 0xdc6   : > { %v5089_v58 = vpop.permute.xlu0 %5088  ;;  %v3603_v10 = vpack.c.bf16 %v3591_v28, %v3590_v25  ;;  %v5453_v62 = vld [vmem:[%s5790_s8 + $0x60] sm:$0xff] }
 0xdc7   : > { %v5091_v57 = vunpack.i.h.bf16 %v5089_v58  ;;  %v5090_v37 = vunpack.i.l.bf16 %v5089_v58 }
 0xdc8   : > { %4886 = vmatmul.mubr.bf16.gmra.mxu0 %v3603_v10  ;;  %v5441_v10 = vld [vmem:[%s5790_s8] sm:$0xff] }
 0xdc9   : > { %v3592_v36 = vsel %vm3583_vm2, %v3575_v0, %v5090_v37  ;;  %v3593_v21 = vsel %vm3583_vm2, %v3576_v59, %v5091_v57  ;;  %v5442_v37 = vld [vmem:[%s5790_s8 + $0x18] sm:$0xff] }
 0xdca   : > { %v5094_v39 = vpop.permute.xlu0 %5093  ;;  %v3604_v29 = vpack.c.bf16 %v3593_v21, %v3592_v36 }
 0xdcb   : > { %v5096_v61 = vunpack.i.h.bf16 %v5094_v39  ;;  %v5095_v15 = vunpack.i.l.bf16 %v5094_v39 }
 0xdcc   : > { %4889 = vmatprep.mubr.bf16.mxu1 %v3604_v29 }
 0xdcd   : > { %v3594_v9 = vsel %vm3583_vm2, %v3577_v5, %v5095_v15  ;;  %v3595_v7 = vsel %vm3583_vm2, %v3578_v16, %v5096_v61  ;;  %v5446_v15 = vld [vmem:[%s5790_s8 + $0x38] sm:$0xff] }
 0xdce   : > { %v3605_v12 = vpack.c.bf16 %v3595_v7, %v3594_v9  ;;  %v5099_v27 = vpop.permute.xlu0 %5098 }
 0xdcf   : > { %v5101_v56 = vunpack.i.h.bf16 %v5099_v27  ;;  %v5100_v31 = vunpack.i.l.bf16 %v5099_v27  ;;  %v5449_v27 = vld [vmem:[%s5790_s8 + $0x40] sm:$0xff] }
 0xdd0   : > { %4890 = vmatmul.mubr.bf16.vlgmr.msra.gmra.mxu1 %v3605_v12 }
 0xdd1   : > { %v3596_v23 = vsel %vm3583_vm2, %v3579_v55, %v5100_v31  ;;  %v3597_v22 = vsel %vm3583_vm2, %v3580_v52, %v5101_v56  ;;  %v5450_v31 = vld [vmem:[%s5790_s8 + $0x58] sm:$0xff] }
 0xdd2   : > { %v5109_v17 = vpop.permute.xlu0 %5108  ;;  %v3606_v47 = vpack.c.bf16 %v3597_v22, %v3596_v23 }
 0xdd3   : > { %v5111_v24 = vunpack.i.h.bf16 %v5109_v17  ;;  %v5110_v35 = vunpack.i.l.bf16 %v5109_v17 }
 0xdd4   : > { %4893 = vmatprep.mubr.bf16.mxu1 %v3606_v47  ;;  %v5452_v47 = vld [vmem:[%s5790_s8 + $0x70] sm:$0xff] }
 0xdd5   : > { %v3598_v20 = vsel %vm3583_vm2, %v3581_v11, %v5110_v35  ;;  %v3599_v43 = vsel %vm3583_vm2, %v3582_v3, %v5111_v24  ;;  %v5454_v3 = vld [vmem:[%s5790_s8 + $0x78] sm:$0xff] }
 0xdd6   : > { %v3607_v19 = vpack.c.bf16 %v3599_v43, %v3598_v20 }
 0xdd8   : > { %4894 = vmatmul.mubr.bf16.gmra.mxu1 %v3607_v19  ;;  %v5455_v19 = vld [vmem:[%s5790_s8 + $0x68] sm:$0xff] }
 0xe80   : > { %v4883_v25 = vpop.f32.mrf.mxu0 }
 0xe81   : > { %v3722_v28 = vadd.f32 %v4883_v25, %v7545_v2 }
 0xe82   : > { %v3713_v26 = vpop.f32.mrf.mxu0 }
 0xe83   : > { %v3778_v40 = vadd.f32 %v5440_v49, %v3722_v28  ;;  %v3714_v50 = vadd.f32 %v7545_v2, %v3713_v26 }
 0xe84   : > { %v4884_v58 = vpop.f32.mrf.mxu0 }
 0xe85   : > { %3794 = vst [vmem:[%s7552_s20 + $0x10] sm:$0xff] %v3778_v40  ;;  %v3776_v42 = vadd.f32 %v5441_v10, %v3714_v50  ;;  %v3725_v6 = vadd.f32 %v4884_v58, %v7545_v2 }
 0xe86   : > { %v3716_v57 = vpop.f32.mrf.mxu0 }
 0xe87   : > { %3792 = vst [vmem:[%s7552_s20] sm:$0xff] %v3776_v42  ;;  %v3779_v59 = vadd.f32 %v5442_v37, %v3725_v6  ;;  %v3717_v0 = vadd.f32 %v7545_v2, %v3716_v57 }
 0xe88   : > { %v4887_v32 = vpop.f32.mrf.mxu0 }
 0xe89   : > { %3795 = vst [vmem:[%s7552_s20 + $0x18] sm:$0xff] %v3779_v59  ;;  %v3777_v36 = vadd.f32 %v5443_v46, %v3717_v0  ;;  %v3738_v21 = vadd.f32 %v4887_v32, %v7545_v2 }
 0xe8a   : > { %v3729_v41 = vpop.f32.mrf.mxu0 }
 0xe8b   : > { %3793 = vst [vmem:[%s7552_s20 + $0x8] sm:$0xff] %v3777_v36  ;;  %v3782_v39 = vadd.f32 %v5444_v13, %v3738_v21  ;;  %v3730_v29 = vadd.f32 %v7545_v2, %v3729_v41 }
 0xe8c   : > { %v4888_v54 = vpop.f32.mrf.mxu0 }
 0xe8d   : > { %3798 = vst [vmem:[%s7552_s20 + $0x30] sm:$0xff] %v3782_v39  ;;  %v3780_v14 = vadd.f32 %v5445_v34, %v3730_v29  ;;  %v3741_v18 = vadd.f32 %v4888_v54, %v7545_v2 }
 0xe8e   : > { %v3732_v61 = vpop.f32.mrf.mxu0 }
 0xe8f   : > { %3796 = vst [vmem:[%s7552_s20 + $0x20] sm:$0xff] %v3780_v14  ;;  %v3783_v5 = vadd.f32 %v5446_v15, %v3741_v18  ;;  %v3733_v16 = vadd.f32 %v7545_v2, %v3732_v61 }
 0xe90   : > { %v4891_v51 = vpop.f32.mrf.mxu1 }
 0xe91   : > { %3799 = vst [vmem:[%s7552_s20 + $0x38] sm:$0xff] %v3783_v5  ;;  %v3781_v9 = vadd.f32 %v5447_v53, %v3733_v16  ;;  %v3754_v7 = vadd.f32 %v4891_v51, %v7545_v2 }
 0xe92   : > { %v3745_v45 = vpop.f32.mrf.mxu1 }
 0xe93   : > { %3797 = vst [vmem:[%s7552_s20 + $0x28] sm:$0xff] %v3781_v9  ;;  %v3786_v38 = vadd.f32 %v5448_v4, %v3754_v7  ;;  %v3746_v30 = vadd.f32 %v7545_v2, %v3745_v45 }
 0xe94   : > { %v4892_v12 = vpop.f32.mrf.mxu1 }
 0xe95   : > { %3802 = vst [vmem:[%s7552_s20 + $0x50] sm:$0xff] %v3786_v38  ;;  %v3784_v33 = vadd.f32 %v5449_v27, %v3746_v30  ;;  %v3757_v44 = vadd.f32 %v4892_v12, %v7545_v2 }
 0xe96   : > { %v3748_v56 = vpop.f32.mrf.mxu1 }
 0xe97   : > { %3800 = vst [vmem:[%s7552_s20 + $0x40] sm:$0xff] %v3784_v33  ;;  %v3787_v55 = vadd.f32 %v5450_v31, %v3757_v44  ;;  %v3749_v52 = vadd.f32 %v7545_v2, %v3748_v56 }
 0xe98   : > { %v4895_v48 = vpop.f32.mrf.mxu1 }
 0xe99   : > { %3803 = vst [vmem:[%s7552_s20 + $0x58] sm:$0xff] %v3787_v55  ;;  %v3785_v23 = vadd.f32 %v5451_v8, %v3749_v52  ;;  %v3770_v22 = vadd.f32 %v4895_v48, %v7545_v2 }
 0xe9a   : > { %v3761_v17 = vpop.f32.mrf.mxu1 }
 0xe9b   : > { %3801 = vst [vmem:[%s7552_s20 + $0x48] sm:$0xff] %v3785_v23  ;;  %v3790_v60 = vadd.f32 %v5452_v47, %v3770_v22  ;;  %v3762_v63 = vadd.f32 %v7545_v2, %v3761_v17 }
 0xe9c   : > { %v4896_v1 = vpop.f32.mrf.mxu1 }
 0xe9d   : > { %3806 = vst [vmem:[%s7552_s20 + $0x70] sm:$0xff] %v3790_v60  ;;  %v3788_v24 = vadd.f32 %v5453_v62, %v3762_v63  ;;  %v3773_v35 = vadd.f32 %v4896_v1, %v7545_v2 }
 0xe9e   : > { %v3764_v11 = vpop.f32.mrf.mxu1 }
 0xe9f   : > { %3804 = vst [vmem:[%s7552_s20 + $0x60] sm:$0xff] %v3788_v24  ;;  %v3791_v20 = vadd.f32 %v5454_v3, %v3773_v35  ;;  %v3765_v43 = vadd.f32 %v7545_v2, %v3764_v11 }
 0xea1   : > { %3807 = vst [vmem:[%s7552_s20 + $0x78] sm:$0xff] %v3791_v20  ;;  %v3789_v25 = vadd.f32 %v5455_v19, %v3765_v43 }
 0xea3   : > { %3805 = vst [vmem:[%s7552_s20 + $0x68] sm:$0xff] %v3789_v25 }
 0xea4   : > { %5549 = shalt.err (!%p5546_p9)
}
 0xea5   : > { %s5550_s8 = scalar_lea.hbm %s7601_s29, 2048  ;;  %s5554_s30 = scalar_lea.hbm %s7655_s6, 4096 }
 0xea6   : > { %p5551_p13 = scmp.ne.s32.totalorder %s7601_s29, %s5550_s8  ;;  %p5555_p4 = scmp.lt.s32.totalorder %s7601_s29, %s7655_s6 }
 0xea7   : > { %p5556_p8 = scmp.lt.s32.totalorder %s5554_s30, %s5550_s8 }
 0xea8   : > { %p5552_p5 = pnand %p5551_p13, %p7957_p10 }
 0xea9   : > { %p5557_p7 = por %p5556_p8, %p5555_p4 }
 0xeaa   : > { %p5553_p0 = pneg %p5552_p5 }
 0xeac   : > { %p5558_p11 = pnand %p5557_p7, %p5553_p0 }
 0xeae   : > { %5561 = shalt.err (!%p5558_p11)
}
 0xeaf   : > { %s5620_s13 = smov 128   ;;  %s5621_s27 = smov 8  }
 0xeb0   : > { %4923 = dma.vmem_to_hbm [thread:$0]  (%p7957_p10), %s7603_s10, 2048, %s7601_s29, %s3809_s25, %s5620_s13, %s5620_s13, %s5621_s27  }
 0xeb1 PF: > { %s3837_s15 = sand.u32 1, %s5592_s21   ;;  %p7958_p1 = scmp.ne.s32.totalorder %s7756_s28, 0 }
 0xeb2   : > { %p7959_p2 = scmp.ge.s32.totalorder %s5604_s24, 2  ;;  %s3838_s17 = scalar_lea.sflag [#allocation4], %s3837_s15 }
 0xeb4   : > { %p4937_p6 = pnand %p7959_p2, %p7958_p1 }
 0xeb6   : > { %p4938_p12 = pneg %p4937_p6 }
 0xeb8   : > { %5587 = dma.done.wait (%p4938_p12), %s3838_s17, 2048  }
 0xeb9   : > { %5589 = vsyncadd (%p4938_p12), %s3838_s17, 4294965248  ;;  %p20_p3 = scmp.ge.s32.totalorder %s5729_s26, 4   ;;  %s7960_s21 = smov %s5596_s22 }
 0xeba   : > { %s7961_s22 = smov %s5600_s23  ;;  %s7962_s23 = smov %s5738_s9 }
 0xebb   : > { %s7963_s24 = smov %s5729_s26  ;;  %22 = sbr.rel (!%p20_p3) target bundleno = 6 (0x6), region = 97 }
 0xec0   :  { %3843 = vsyncpa [#allocation3], 1 }
 0xec1   :  { %3845 = vsyncpa [#allocation3 + $0x1], 1 }
 0xec2   :  { %3846 = vsyncpa [#allocation6], 1 }
 0xec3   :  { %3847 = vsyncpa [#allocation4], 1 }
 0xec4   :  { %3849 = vsyncpa [#allocation4 + $0x1], 1 }

// kernel: tpu_custom_call.1
= control target key start
LH: loop header
LB: loop body
LE: loop exit
PB: predicated region body
PF: predicated region fallthrough
CT: control target
= control target key end

     0   :  { %11 = vsyncpa [#allocation3], 0  ;;  %s7649_s0 = inlined_call_operand.hbm [shape: f32[2,128,128], index: 0, kind: input, shape index: {}]   ;;  %s7650_s1 = inlined_call_operand.vmem [shape: f32[1,128], index: 1, kind: input, shape index: {}]   ;;  %s7651_s2 = inlined_call_operand.vmem [shape: f32[1,128], index: 2, kind: input, shape index: {}]   ;;  %s7652_s3 = inlined_call_operand.hbm [shape: bf16[128,384], index: 3, kind: input, shape index: {}]   ;;  %s7653_s4 = inlined_call_operand.hbm [shape: bf16[128,128], index: 4, kind: input, shape index: {}]   ;;  %s7654_s5 = inlined_call_operand.vmem [shape: f32[1,128], index: 5, kind: input, shape index: {}]   ;;  %s7655_s6 = inlined_call_operand.hbm [shape: f32[2,128,128], index: 6, kind: output, shape index: {}]  }
   0x1   :  { %13 = vsyncpa [#allocation3 + $0x1], 0 }
   0x2   :  { %14 = vsyncpa [#allocation6], 0 }
   0x3   :  { %15 = vsyncpa [#allocation4], 0 }
   0x4   :  { %17 = vsyncpa [#allocation4 + $0x1], 0  ;;  %s5657_s21 = smov 0   ;;  %s5659_s22 = smov 0  }
   0x5   :  { %s5661_s23 = smov 0   ;;  %s5663_s24 = smov 0  }
   0x6 LB: > { %s5678_s25 = sadd.s32 4294967295, %s5604_s24   ;;  %s3914_s26 = sadd.s32 4294967294, %s5604_s24   ;;  %s5604_s24 = sphi %s5663_s24, %s7963_s24   ;;  %s5600_s23 = sphi %s5661_s23, %s7962_s23   ;;  %s5596_s22 = sphi %s5659_s22, %s7961_s22   ;;  %s5592_s21 = sphi %s5657_s21, %s7960_s21  }
   0x7   : > { %p43_p0 = scmp.ne.s32.totalorder %s5596_s22, %s5592_s21  ;;  %p7656_p1 = scmp.eq.s32.totalorder %s5678_s25, 0 }
   0x8   : > { %p178_p3 = scmp.eq.s32.totalorder %s3914_s26, 1  ;;  %p3915_p5 = scmp.ge.s32.totalorder %s5604_s24, 1 }
   0x9   : > { %p5687_p4 = por %p7656_p1, %p43_p0  ;;  %p185_p7 = scmp.lt.s32.totalorder %s5604_s24, 3 }
   0xa   : > { %p5692_p6 = por %p178_p3, %p43_p0  ;;  %s5606_s30 = smov [#allocation5]  }
   0xb   : > { %s7755_s27 = scalar_select %p5687_p4, 1, 0 }
   0xc   : > { %s7756_s28 = scalar_select %p5692_p6, 1, 0 }
   0xd   : > { %p5697_p8 = pnand %p3915_p5, %p185_p7  ;;  %s203_s7 = sshll.u32 %s5606_s30, 4  ;;  %s204_s7 = int_to_ptr.vmem [resolvable:$true] %s203_s7 }
   0xe   : > { %s5607_s9 = smov [#allocation7]   ;;  %s5467_s11 = scalar_lea.vmem %s204_s7, 3072 }
   0xf   : > { %s7757_s29 = scalar_select %p5697_p8, 1, 0 }
  0x10   : > { %p4925_p9 = pneg %p5697_p8  ;;  %s216_s10 = sshll.u32 %s5607_s9, 4  ;;  %s217_s10 = int_to_ptr.vmem [resolvable:$true] %s216_s10 }
  0x11   : > { %p5468_p13 = scmp.ne.s32.totalorder %s204_s7, %s5467_s11  ;;  %p5475_p5 = scmp.lt.s32.totalorder %s204_s7, %s204_s7 }
  0x12   : > { %p5706_p11 = pnand %p4925_p9, %p7656_p1  ;;  %p5476_p7 = scmp.lt.s32.totalorder %s5467_s11, %s5467_s11 }
  0x14   : > { %p5458_p12 = pneg %p5706_p11  ;;  %p5477_p10 = por %p5476_p7, %p5475_p5 }
  0x16   : > { %p5470_p0 = pnand %p5468_p13, %p5458_p12 }
  0x18   : > { %p5471_p3 = pneg %p5470_p0 }
  0x1a   : > { %p5478_p9 = pnand %p5477_p10, %p5471_p3 }
  0x1c   : > { %5481 = shalt.err (!%p5478_p9)
}
  0x1d   : > { %s5608_s12 = smov 192   ;;  %s5609_s13 = smov 12  }
  0x1e   : > { %4928 = dma.hbm_to_vmem [thread:$0]  (!%p5706_p11), %s7652_s3, 3072, %s204_s7, [#allocation6], %s5608_s12, %s5608_s12, %s5609_s13  }
  0x1f   : > { %s5493_s16 = scalar_lea.vmem %s217_s10, 1024  ;;  %p5501_p2 = scmp.lt.s32.totalorder %s217_s10, %s217_s10 }
  0x20   : > { %p5494_p1 = scmp.ne.s32.totalorder %s217_s10, %s5493_s16  ;;  %p5502_p6 = scmp.lt.s32.totalorder %s5493_s16, %s5493_s16 }
  0x22   : > { %p5496_p13 = pnand %p5494_p1, %p5458_p12  ;;  %p5503_p5 = por %p5502_p6, %p5501_p2 }
  0x24   : > { %p5497_p0 = pneg %p5496_p13 }
  0x26   : > { %p5504_p10 = pnand %p5503_p5, %p5497_p0 }
  0x28   : > { %5507 = shalt.err (!%p5504_p10)
}
  0x29   : > { %s5610_s17 = smov 64   ;;  %s5611_s18 = smov 4  }
  0x2a   : > { %4931 = dma.hbm_to_vmem [thread:$0]  (!%p5706_p11), %s7653_s4, 1024, %s217_s10, [#allocation6], %s5610_s17, %s5610_s17, %s5611_s18  }
  0x2b   : > { %s5729_s26 = sadd.s32 1, %s5604_s24   ;;  %s30_s7 = sadd.s32 1, %s5600_s23 }
  0x2c   : > { %s27_s30 = ssub.s32 %s5604_s24, %s5729_s26  ;;  %p37_p2 = scmp.ne.s32.totalorder %s5600_s23, %s5596_s22 }
  0x2d   : > { %p28_p1 = scmp.eq.s32.totalorder %s27_s30, 0  ;;  %p38_p6 = scmp.eq.s32.totalorder %s5604_s24, 0 }
  0x2e   : > { %p7759_p3 = scmp.eq.s32.totalorder %s5678_s25, 1  ;;  %p4942_p9 = scmp.lt.s32.totalorder %s5604_s24, 2 }
  0x2f   : > { %s5738_s9 = scalar_select %p28_p1, %s5600_s23, %s30_s7  }
  0x30   : > { %p39_p12 = por %p38_p6, %p37_p2  ;;  %p5742_p7 = por %p7759_p3, %p37_p2 }
  0x31   : > { %s233_s8 = sand.u32 1, %s5600_s23   ;;  %s4095_s10 = sshll.u32 %s5604_s24, 11 }
  0x32   : > { %s7760_s11 = scalar_select %p5742_p7, 1, 0 }
  0x33   : > { %s3919_s12 = sshll.u32 %s233_s8, 7  ;;  %s5752_s15 = scalar_lea.hbm %s7649_s0, %s4095_s10 }
  0x34   : > { %s237_s16 = scalar_lea.vmem [#allocation2], %s3919_s12  ;;  %p5756_p11 = pnand %p4942_p9, %p39_p12 }
  0x35   : > { %s244_s17 = sshll.u32 %s237_s16, 4  ;;  %s5760_s19 = scalar_lea.sflag [#allocation3], %s233_s8  ;;  %s5754_s17 = int_to_ptr.vmem [resolvable:$true] %s244_s17 }
  0x36   : > { %s5508_s20 = scalar_lea.hbm %s5752_s15, 2048  ;;  %p5510_p0 = pneg %p5756_p11 }
  0x37   : > { %p5509_p13 = scmp.ne.s32.totalorder %s5752_s15, %s5508_s20  ;;  %s5513_s12 = scalar_lea.hbm %s7649_s0, 4096 }
  0x38   : > { %p5514_p1 = scmp.lt.s32.totalorder %s5752_s15, %s7649_s0  ;;  %p5515_p2 = scmp.lt.s32.totalorder %s5513_s12, %s5508_s20 }
  0x39   : > { %p5511_p5 = pnand %p5510_p0, %p5509_p13 }
  0x3a   : > { %p5516_p6 = por %p5515_p2, %p5514_p1 }
  0x3b   : > { %p5512_p10 = pneg %p5511_p5 }
  0x3d   : > { %p5517_p12 = pnand %p5516_p6, %p5512_p10 }
  0x3f   : > { %5520 = shalt.err (!%p5517_p12)
}
  0x40   : > { %s5521_s8 = scalar_lea.vmem %s5754_s17, 2048  ;;  %s5612_s14 = smov [#allocation2]  }
  0x41   : > { %p5522_p3 = scmp.ne.s32.totalorder %s5754_s17, %s5521_s8  ;;  %s5526_s16 = sshll.u32 %s5612_s14, 4  ;;  %s5527_s16 = int_to_ptr.vmem [resolvable:$false] %s5526_s16 }
  0x42   : > { %s5528_s30 = scalar_lea.vmem %s5527_s16, 4096  ;;  %p5529_p5 = scmp.lt.s32.totalorder %s5754_s17, %s5527_s16 }
  0x43   : > { %p5524_p9 = pnand %p5522_p3, %p5510_p0  ;;  %p5530_p7 = scmp.lt.s32.totalorder %s5528_s30, %s5521_s8 }
  0x45   : > { %p5525_p13 = pneg %p5524_p9  ;;  %p5531_p4 = por %p5530_p7, %p5529_p5 }
  0x47   : > { %p5532_p8 = pnand %p5531_p4, %p5525_p13 }
  0x49   : > { %5535 = shalt.err (!%p5532_p8)
}
  0x4a   : > { %s5613_s20 = smov 128   ;;  %s5614_s7 = smov 8  }
  0x4b   : > { %4935 = dma.hbm_to_vmem [thread:$0]  (!%p5756_p11), %s5752_s15, 2048, %s5754_s17, %s5760_s19, %s5613_s20, %s5613_s20, %s5614_s7  }
  0x4c   : > { %p7762_p0 = scmp.ne.s32.totalorder %s7757_s29, 0 }
  0x4e   : > { %256 = sbr.rel (%p7762_p0) target bundleno = 3761 (0xeb1), region = 44 }
  0x53   : > { %s5784_s12 = sand.u32 1, %s5596_s22   ;;  %p7763_p4 = scmp.ne.s32.totalorder %s7755_s27, 0 }
  0x54   : > { %s3923_s10 = sshll.u32 %s5784_s12, 7  ;;  %s259_s13 = scalar_lea.sflag [#allocation3], %s5784_s12 }
  0x55   : > { %s5790_s8 = scalar_lea.vmem [#allocation2], %s3923_s10 }
  0x56   : > { %5579 = dma.done.wait (%p7763_p4), %s259_s13, 2048  }
  0x57   : > { %5581 = vsyncadd (%p7763_p4), %s259_s13, 4294965248  ;;  %p7764_p8 = scmp.eq.s32.totalorder %s5678_s25, 0 }
  0x59   : > { %5583 = dma.done.wait (%p7764_p8), [#allocation6], 4096   ;;  %p7765_p7 = pmov %p7764_p8 }
  0x5a   : > { %v300_v0 = vld [vmem:[%s5790_s8] sm:$0xff]  ;;  %v302_v1 = vld [vmem:[%s5790_s8 + $0x10] sm:$0xff]  ;;  %v301_v2 = vld [vmem:[%s5790_s8 + $0x8] sm:$0xff]  ;;  %vm917_vm0 = vcmask 261120   ;;  %s5616_s18 = smov 96   ;;  %s5617_s19 = smov 64  }
  0x5b   : > { %5585 = vsyncadd (%p7765_p7), [#allocation6], 4294963200  ;;  %318 = vadd.xlane.f32.xlu0 %v300_v0  ;;  %322 = vadd.xlane.f32.xlu1 %v302_v1  ;;  %v303_v3 = vld [vmem:[%s5790_s8 + $0x18] sm:$0xff]  ;;  %v304_v4 = vld [vmem:[%s5790_s8 + $0x20] sm:$0xff]  ;;  %s5618_s14 = smov 32   ;;  %vm3566_vm1 = vcmask 523264  }
  0x5c   : > { %v305_v5 = vld [vmem:[%s5790_s8 + $0x28] sm:$0xff]  ;;  %v306_v6 = vld [vmem:[%s5790_s8 + $0x30] sm:$0xff]  ;;  %v307_v7 = vld [vmem:[%s5790_s8 + $0x38] sm:$0xff]  ;;  %vm3583_vm2 = vcmask 785408   ;;  %s7552_s20 = scalar_lea.vmem [#allocation8], %s3923_s10  ;;  %s4096_s7 = sshll.u32 %s5678_s25, 11 }
  0x5d   : > { %v5809_v8 = vld [vmem:[%s5790_s8 + $0x40] sm:$0xff]  ;;  %v5812_v9 = vld [vmem:[%s5790_s8 + $0x48] sm:$0xff]  ;;  %v5815_v10 = vld [vmem:[%s5790_s8 + $0x50] sm:$0xff]  ;;  %s3822_s10 = sshll.u32 %s7552_s20, 4  ;;  %s7601_s29 = scalar_lea.hbm %s7655_s6, %s4096_s7  ;;  %s7603_s10 = int_to_ptr.vmem [resolvable:$true] %s3822_s10 }
  0x5e   : > { %v5818_v11 = vld [vmem:[%s5790_s8 + $0x58] sm:$0xff]  ;;  %v5825_v12 = vld [vmem:[%s5790_s8 + $0x60] sm:$0xff]  ;;  %v5828_v13 = vld [vmem:[%s5790_s8 + $0x68] sm:$0xff]  ;;  %s3809_s25 = scalar_lea.sflag [#allocation4], %s5784_s12  ;;  %s5536_s15 = scalar_lea.vmem %s7603_s10, 2048 }
  0x5f   : > { %320 = vadd.xlane.f32.xlu0 %v301_v2  ;;  %324 = vadd.xlane.f32.xlu1 %v303_v3  ;;  %v5833_v14 = vld [vmem:[%s5790_s8 + $0x70] sm:$0xff]  ;;  %v5836_v15 = vld [vmem:[%s5790_s8 + $0x78] sm:$0xff]  ;;  %p5537_p11 = scmp.ne.s32.totalorder %s7603_s10, %s5536_s15  ;;  %p7957_p10 = scmp.ne.s32.totalorder %s7760_s11, 0 }
  0x60   : > { %v5112_v16 = vld [vmem:[#allocation5 + $0xac] ss:$12 sps:$4 sm:$0xff]   ;;  %v5114_v17 = vld [vmem:[#allocation5 + $0xa8] ss:$12 sps:$4 sm:$0xff]   ;;  %v5117_v54 = vld [vmem:[#allocation5 + $0xb0] ss:$12 sps:$4 sm:$0xff]  }
  0x61   : > { %707 = vmatprep.subr.bf16.mxu0 %v5112_v16  ;;  %v5115_v53 = vld [vmem:[#allocation5 + $0x94] ss:$12 sps:$4 sm:$0xff]   ;;  %v5118_v55 = vld [vmem:[#allocation5 + $0x90] ss:$12 sps:$4 sm:$0xff]   ;;  %4385 = vmatprep.subr.bf16.mxu1 %v5117_v54  ;;  %p5538_p1 = pnand %p5537_p11, %p7957_p10  ;;  %s5619_s17 = smov [#allocation8]  }
  0x62   : > { %708 = vmatpush1.bf16.msra.mxu0 %v5114_v17  ;;  %4386 = vmatpush3.bf16.msra.mxu1 %v5117_v54  ;;  %v5123_v17 = vld [vmem:[#allocation5 + $0x64] ss:$12 sps:$4 sm:$0xff]  }
  0x63   : > { %326 = vadd.xlane.f32.xlu0 %v304_v4  ;;  %328 = vadd.xlane.f32.xlu1 %v305_v5  ;;  %p5539_p2 = pneg %p5538_p1 }
  0x64   : > { %709 = vmatprep.subr.bf16.mxu0 %v5115_v53 }
  0x66   : > { %710 = vmatpush1.bf16.msra.mxu0 %v5118_v55 }
  0x67   : > { %330 = vadd.xlane.f32.xlu0 %v306_v6  ;;  %332 = vadd.xlane.f32.xlu1 %v307_v7 }
  0x6b   : > { %334 = vadd.xlane.f32.xlu0 %v5809_v8  ;;  %336 = vadd.xlane.f32.xlu1 %v5812_v9 }
  0x6f   : > { %338 = vadd.xlane.f32.xlu0 %v5815_v10  ;;  %340 = vadd.xlane.f32.xlu1 %v5818_v11 }
  0x73   : > { %342 = vadd.xlane.f32.xlu0 %v5825_v12  ;;  %344 = vadd.xlane.f32.xlu1 %v5828_v13 }
  0x77   : > { %346 = vadd.xlane.f32.xlu0 %v5833_v14  ;;  %348 = vadd.xlane.f32.xlu1 %v5836_v15 }
  0xe4   : > { %v319_v18 = vpop.xlane.xlu0 %318  ;;  %v323_v19 = vpop.xlane.xlu1 %322 }
  0xe5   : > { %v351_v20 = vmul.f32 0.0078125, %v319_v18  ;;  %v353_v21 = vmul.f32 0.0078125, %v323_v19  ;;  %v5125_v18 = vld [vmem:[#allocation5 + $0x80] ss:$12 sps:$4 sm:$0xff]  }
  0xe7   : > { %v5840_v22 = vsub.f32 %v300_v0, %v351_v20  ;;  %v5842_v23 = vsub.f32 %v302_v1, %v353_v21  ;;  %v5119_v0 = vld [vmem:[#allocation5 + $0x7c] ss:$12 sps:$4 sm:$0xff]   ;;  %v5121_v1 = vld [vmem:[#allocation5 + $0x98] ss:$12 sps:$4 sm:$0xff]   ;;  %v5126_v20 = vld [vmem:[#allocation5 + $0x60] ss:$12 sps:$4 sm:$0xff]  }
  0xe8   : > { %v321_v24 = vpop.xlane.xlu0 %320  ;;  %v325_v25 = vpop.xlane.xlu1 %324  ;;  %711 = vmatprep.subr.bf16.mxu0 %v5119_v0  ;;  %4387 = vmatprep.subr.bf16.mxu1 %v5121_v1 }
  0xe9   : > { %v352_v26 = vmul.f32 0.0078125, %v321_v24  ;;  %v383_v27 = vmul.f32 %v5840_v22, %v5840_v22  ;;  %v354_v28 = vmul.f32 0.0078125, %v325_v25  ;;  %v385_v29 = vmul.f32 %v5842_v23, %v5842_v23  ;;  %4388 = vmatpush3.bf16.msra.mxu1 %v5121_v1 }
  0xea   : > { %4389 = vmatprep.subr.bf16.mxu1 %v5125_v18 }
  0xeb   : > { %399 = vadd.xlane.f32.xlu0 %v383_v27  ;;  %v5848_v30 = vsub.f32 %v301_v2, %v352_v26  ;;  %v5850_v31 = vsub.f32 %v303_v3, %v354_v28  ;;  %v5127_v28 = vld [vmem:[#allocation5 + $0x4c] ss:$12 sps:$4 sm:$0xff]  }
  0xec   : > { %v327_v32 = vpop.xlane.xlu0 %326  ;;  %v329_v33 = vpop.xlane.xlu1 %328 }
  0xed   : > { %v355_v34 = vmul.f32 0.0078125, %v327_v32  ;;  %v384_v35 = vmul.f32 %v5848_v30, %v5848_v30  ;;  %v356_v36 = vmul.f32 0.0078125, %v329_v33  ;;  %v386_v37 = vmul.f32 %v5850_v31, %v5850_v31  ;;  %4390 = vmatpush3.bf16.msra.mxu1 %v5125_v18  ;;  %v5130_v33 = vld [vmem:[#allocation5 + $0x48] ss:$12 sps:$4 sm:$0xff]  }
  0xef   : > { %403 = vadd.xlane.f32.xlu0 %v385_v29  ;;  %401 = vadd.xlane.f32.xlu1 %v384_v35  ;;  %v5856_v38 = vsub.f32 %v304_v4, %v355_v34  ;;  %v5858_v39 = vsub.f32 %v305_v5, %v356_v36  ;;  %v5122_v5 = vld [vmem:[#allocation5 + $0x78] ss:$12 sps:$4 sm:$0xff]   ;;  %v5129_v29 = vld [vmem:[#allocation5 + $0x68] ss:$12 sps:$4 sm:$0xff]   ;;  %v5133_v36 = vld [vmem:[#allocation5 + $0x50] ss:$12 sps:$4 sm:$0xff]  }
  0xf0   : > { %v331_v40 = vpop.xlane.xlu0 %330  ;;  %v333_v41 = vpop.xlane.xlu1 %332  ;;  %712 = vmatpush1.bf16.msra.mxu0 %v5122_v5  ;;  %4391 = vmatprep.subr.bf16.mxu1 %v5129_v29  ;;  %v5131_v35 = vld [vmem:[#allocation5 + $0x34] ss:$12 sps:$4 sm:$0xff]  }
  0xf1   : > { %v357_v42 = vmul.f32 0.0078125, %v331_v40  ;;  %v387_v43 = vmul.f32 %v5856_v38, %v5856_v38  ;;  %v358_v44 = vmul.f32 0.0078125, %v333_v41  ;;  %v388_v45 = vmul.f32 %v5858_v39, %v5858_v39  ;;  %713 = vmatprep.subr.bf16.mxu0 %v5123_v17  ;;  %4392 = vmatpush3.bf16.msra.mxu1 %v5129_v29  ;;  %v5137_v40 = vld [vmem:[#allocation5 + $0x38] ss:$12 sps:$4 sm:$0xff]  }
  0xf2   : > { %4393 = vmatprep.subr.bf16.mxu1 %v5133_v36  ;;  %v5138_v41 = vld [vmem:[#allocation5 + $0x18] ss:$12 sps:$4 sm:$0xff]  }
  0xf3   : > { %405 = vadd.xlane.f32.xlu1 %v386_v37  ;;  %407 = vadd.xlane.f32.xlu0 %v387_v43  ;;  %v5864_v46 = vsub.f32 %v306_v6, %v357_v42  ;;  %v5866_v47 = vsub.f32 %v307_v7, %v358_v44  ;;  %v5139_v42 = vld [vmem:[#allocation5 + $0x4] ss:$12 sps:$4 sm:$0xff]   ;;  %v5141_v43 = vld [vmem:[#allocation5 + $0x20] ss:$12 sps:$4 sm:$0xff]  }
  0xf4   : > { %v335_v48 = vpop.xlane.xlu0 %334  ;;  %v337_v49 = vpop.xlane.xlu1 %336  ;;  %714 = vmatpush1.bf16.msra.mxu0 %v5126_v20  ;;  %v5142_v44 = vld [vmem:[#allocation5] ss:$12 sps:$4 sm:$0xff]  }
  0xf5   : > { %v359_v50 = vmul.f32 0.0078125, %v335_v48  ;;  %v389_v51 = vmul.f32 %v5864_v46, %v5864_v46  ;;  %v360_v52 = vmul.f32 0.0078125, %v337_v49  ;;  %v390_v56 = vmul.f32 %v5866_v47, %v5866_v47  ;;  %715 = vmatprep.subr.bf16.mxu0 %v5127_v28  ;;  %4394 = vmatpush3.bf16.msra.mxu1 %v5133_v36 }
  0xf6   : > { %4395 = vmatprep.subr.bf16.mxu1 %v5137_v40  ;;  %v5615_v48 = vmov 0  }
  0xf7   : > { %409 = vadd.xlane.f32.xlu1 %v388_v45  ;;  %411 = vadd.xlane.f32.xlu0 %v389_v51  ;;  %v5873_v57 = vsub.f32 %v5809_v8, %v359_v50  ;;  %v5876_v58 = vsub.f32 %v5812_v9, %v360_v52  ;;  %v5143_v45 = vld [vmem:[#allocation5 + $0x8] ss:$12 sps:$4 sm:$0xff]  }
  0xf8   : > { %v339_v59 = vpop.xlane.xlu0 %338  ;;  %v341_v60 = vpop.xlane.xlu1 %340  ;;  %716 = vmatpush1.bf16.msra.mxu0 %v5130_v33  ;;  %739 = vmatprep.mubr.bf16.mxu0 %v5615_v48 }
  0xf9   : > { %v361_v61 = vmul.f32 0.0078125, %v339_v59  ;;  %v391_v62 = vmul.f32 %v5873_v57, %v5873_v57  ;;  %v362_v63 = vmul.f32 0.0078125, %v341_v60  ;;  %v392_v2 = vmul.f32 %v5876_v58, %v5876_v58  ;;  %717 = vmatprep.subr.bf16.mxu0 %v5131_v35  ;;  %4396 = vmatpush3.bf16.msra.mxu1 %v5137_v40 }
  0xfa   : > { %4397 = vmatprep.subr.bf16.mxu1 %v5141_v43 }
  0xfb   : > { %413 = vadd.xlane.f32.xlu1 %v390_v56  ;;  %415 = vadd.xlane.f32.xlu0 %v391_v62  ;;  %v5883_v3 = vsub.f32 %v5815_v10, %v361_v61  ;;  %v5886_v4 = vsub.f32 %v5818_v11, %v362_v63 }
  0xfc   : > { %v343_v6 = vpop.xlane.xlu0 %342  ;;  %v345_v7 = vpop.xlane.xlu1 %344 }
  0xfd   : > { %v363_v8 = vmul.f32 0.0078125, %v343_v6  ;;  %v393_v9 = vmul.f32 %v5883_v3, %v5883_v3  ;;  %v364_v16 = vmul.f32 0.0078125, %v345_v7  ;;  %v394_v10 = vmul.f32 %v5886_v4, %v5886_v4  ;;  %4398 = vmatpush3.bf16.msra.mxu1 %v5141_v43 }
  0xfe   : > { %4399 = vmatprep.subr.bf16.mxu1 %v5143_v45 }
  0xff   : > { %417 = vadd.xlane.f32.xlu1 %v392_v2  ;;  %419 = vadd.xlane.f32.xlu0 %v393_v9  ;;  %v5893_v11 = vsub.f32 %v5825_v12, %v363_v8  ;;  %v5896_v19 = vsub.f32 %v5828_v13, %v364_v16 }
 0x100   : > { %v347_v21 = vpop.xlane.xlu0 %346  ;;  %v349_v24 = vpop.xlane.xlu1 %348 }
 0x101   : > { %v365_v25 = vmul.f32 0.0078125, %v347_v21  ;;  %v395_v26 = vmul.f32 %v5893_v11, %v5893_v11  ;;  %v366_v27 = vmul.f32 0.0078125, %v349_v24  ;;  %v396_v12 = vmul.f32 %v5896_v19, %v5896_v19  ;;  %4400 = vmatpush3.bf16.msra.mxu1 %v5143_v45 }
 0x103   : > { %421 = vadd.xlane.f32.xlu1 %v394_v10  ;;  %423 = vadd.xlane.f32.xlu0 %v395_v26  ;;  %v5903_v13 = vsub.f32 %v5833_v14, %v365_v25  ;;  %v5906_v32 = vsub.f32 %v5836_v15, %v366_v27  ;;  %v5134_v14 = vld [vmem:[#allocation5 + $0x30] ss:$12 sps:$4 sm:$0xff]   ;;  %v5916_v25 = vld [vmem:[%s7650_s1] ss:$0 sm:$0xff] }
 0x104   : > { %718 = vmatpush1.bf16.msra.mxu0 %v5134_v14  ;;  %v5135_v15 = vld [vmem:[#allocation5 + $0x1c] ss:$12 sps:$4 sm:$0xff]   ;;  %v5923_v14 = vld [vmem:[%s7651_s2] ss:$0 sm:$0xff] }
 0x105   : > { %v397_v34 = vmul.f32 %v5903_v13, %v5903_v13  ;;  %v398_v37 = vmul.f32 %v5906_v32, %v5906_v32  ;;  %719 = vmatprep.subr.bf16.mxu0 %v5135_v15 }
 0x107   : > { %425 = vadd.xlane.f32.xlu1 %v396_v12  ;;  %427 = vadd.xlane.f32.xlu0 %v397_v34 }
 0x108   : > { %720 = vmatpush1.bf16.msra.mxu0 %v5138_v41 }
 0x109   : > { %721 = vmatprep.subr.bf16.mxu0 %v5139_v42 }
 0x10b   : > { %429 = vadd.xlane.f32.xlu1 %v398_v37 }
 0x10c   : > { %722 = vmatpush1.bf16.msra.mxu0 %v5142_v44 }
 0x174   : > { %v400_v49 = vpop.xlane.xlu0 %399 }
 0x175   : > { %v431_v50 = vmul.f32 0.0078125, %v400_v49 }
 0x177   : > { %v447_v51 = vadd.f32 1e-05, %v431_v50 }
 0x178   : > { %v402_v52 = vpop.xlane.xlu1 %401  ;;  %v404_v53 = vpop.xlane.xlu0 %403 }
 0x179   : > { %5152 = vrsqrt.f32 %v447_v51  ;;  %v432_v54 = vmul.f32 0.0078125, %v402_v52  ;;  %v433_v55 = vmul.f32 0.0078125, %v404_v53 }
 0x17b   : > { %v448_v56 = vadd.f32 1e-05, %v432_v54  ;;  %v449_v59 = vadd.f32 1e-05, %v433_v55 }
 0x17c   : > { %v406_v60 = vpop.xlane.xlu1 %405  ;;  %v408_v61 = vpop.xlane.xlu0 %407 }
 0x17d   : > { %5154 = vrsqrt.f32 %v448_v56  ;;  %v434_v62 = vmul.f32 0.0078125, %v406_v60  ;;  %v435_v63 = vmul.f32 0.0078125, %v408_v61 }
 0x17e   : > { %5156 = vrsqrt.f32 %v449_v59 }
 0x17f   : > { %v450_v0 = vadd.f32 1e-05, %v434_v62  ;;  %v451_v1 = vadd.f32 1e-05, %v435_v63 }
 0x180   : > { %v410_v2 = vpop.xlane.xlu1 %409  ;;  %v412_v5 = vpop.xlane.xlu0 %411 }
 0x181   : > { %5158 = vrsqrt.f32 %v450_v0  ;;  %v436_v6 = vmul.f32 0.0078125, %v410_v2  ;;  %v437_v7 = vmul.f32 0.0078125, %v412_v5 }
 0x182   : > { %5160 = vrsqrt.f32 %v451_v1 }
 0x183   : > { %v452_v8 = vadd.f32 1e-05, %v436_v6  ;;  %v453_v9 = vadd.f32 1e-05, %v437_v7 }
 0x184   : > { %v414_v16 = vpop.xlane.xlu1 %413  ;;  %v416_v17 = vpop.xlane.xlu0 %415 }
 0x185   : > { %5162 = vrsqrt.f32 %v452_v8  ;;  %v438_v18 = vmul.f32 0.0078125, %v414_v16  ;;  %v439_v10 = vmul.f32 0.0078125, %v416_v17 }
 0x186   : > { %v5153_v20 = vpop.eup %5152  ;;  %5164 = vrsqrt.f32 %v453_v9 }
 0x187   : > { %v454_v21 = vadd.f32 1e-05, %v438_v18  ;;  %v455_v24 = vadd.f32 1e-05, %v439_v10  ;;  %v479_v26 = vmul.f32 %v5153_v20, %v5840_v22 }
 0x188   : > { %v418_v27 = vpop.xlane.xlu1 %417  ;;  %v420_v28 = vpop.xlane.xlu0 %419 }
 0x189   : > { %5166 = vrsqrt.f32 %v454_v21  ;;  %v440_v29 = vmul.f32 0.0078125, %v418_v27  ;;  %v441_v12 = vmul.f32 0.0078125, %v420_v28  ;;  %v501_v34 = vmul.f32 %v5916_v25, %v479_v26 }
 0x18a   : > { %v5155_v33 = vpop.eup %5154  ;;  %5168 = vrsqrt.f32 %v455_v24 }
 0x18b   : > { %v5157_v35 = vpop.eup %5156  ;;  %v456_v36 = vadd.f32 1e-05, %v440_v29  ;;  %v457_v37 = vadd.f32 1e-05, %v441_v12  ;;  %v480_v15 = vmul.f32 %v5155_v33, %v5848_v30  ;;  %v523_v49 = vadd.f32 %v5923_v14, %v501_v34 }
 0x18c   : > { %v422_v22 = vpop.xlane.xlu1 %421  ;;  %v424_v40 = vpop.xlane.xlu0 %423  ;;  %v481_v41 = vmul.f32 %v5157_v35, %v5842_v23 }
 0x18d   : > { %5170 = vrsqrt.f32 %v456_v36  ;;  %v442_v42 = vmul.f32 0.0078125, %v422_v22  ;;  %v443_v43 = vmul.f32 0.0078125, %v424_v40  ;;  %v502_v44 = vmul.f32 %v5916_v25, %v480_v15 }
 0x18e   : > { %v5159_v45 = vpop.eup %5158  ;;  %5172 = vrsqrt.f32 %v457_v37  ;;  %v503_v23 = vmul.f32 %v5916_v25, %v481_v41 }
 0x18f   : > { %v5161_v50 = vpop.eup %5160  ;;  %v458_v51 = vadd.f32 1e-05, %v442_v42  ;;  %v459_v52 = vadd.f32 1e-05, %v443_v43  ;;  %v524_v53 = vadd.f32 %v5923_v14, %v502_v44  ;;  %v482_v30 = vmul.f32 %v5159_v45, %v5850_v31 }
 0x190   : > { %v426_v54 = vpop.xlane.xlu1 %425  ;;  %v428_v55 = vpop.xlane.xlu0 %427  ;;  %v483_v56 = vmul.f32 %v5161_v50, %v5856_v38  ;;  %v525_v38 = vadd.f32 %v5923_v14, %v503_v23 }
 0x191   : > { %5174 = vrsqrt.f32 %v458_v51  ;;  %v444_v59 = vmul.f32 0.0078125, %v426_v54  ;;  %v445_v60 = vmul.f32 0.0078125, %v428_v55  ;;  %v539_v61 = vpack.c.bf16 %v524_v53, %v523_v49 }
 0x192   : > { %v5163_v62 = vpop.eup %5162  ;;  %5176 = vrsqrt.f32 %v459_v52  ;;  %v504_v63 = vmul.f32 %v5916_v25, %v482_v30  ;;  %v505_v5 = vmul.f32 %v5916_v25, %v483_v56 }
 0x193   : > { %v5165_v0 = vpop.eup %5164  ;;  %v460_v1 = vadd.f32 1e-05, %v444_v59  ;;  %v461_v2 = vadd.f32 1e-05, %v445_v60  ;;  %740 = vmatmul.mubr.bf16.vlgmr.msra.gmra.mxu0 %v539_v61  ;;  %4401 = vmatprep.mubr.bf16.mxu1 %v539_v61  ;;  %v484_v31 = vmul.f32 %v5163_v62, %v5858_v39 }
 0x194   : > { %v430_v6 = vpop.xlane.xlu1 %429  ;;  %v526_v7 = vadd.f32 %v5923_v14, %v504_v63  ;;  %749 = vmatprep.mubr.bf16.mxu0 %v5615_v48  ;;  %v485_v8 = vmul.f32 %v5165_v0, %v5864_v46  ;;  %v527_v21 = vadd.f32 %v5923_v14, %v505_v5 }
 0x195   : > { %5178 = vrsqrt.f32 %v460_v1  ;;  %v446_v9 = vmul.f32 0.0078125, %v430_v6  ;;  %v506_v16 = vmul.f32 %v5916_v25, %v484_v31 }
 0x196   : > { %v5167_v17 = vpop.eup %5166  ;;  %5180 = vrsqrt.f32 %v461_v2  ;;  %v540_v18 = vpack.c.bf16 %v526_v7, %v525_v38  ;;  %v507_v39 = vmul.f32 %v5916_v25, %v485_v8 }
 0x197   : > { %v5169_v10 = vpop.eup %5168  ;;  %v462_v20 = vadd.f32 1e-05, %v446_v9  ;;  %v528_v24 = vadd.f32 %v5923_v14, %v506_v16  ;;  %v486_v26 = vmul.f32 %v5167_v17, %v5866_v47 }
 0x198   : > { %4402 = vmatmul.mubr.bf16.vlgmr.msra.gmra.mxu1 %v540_v18  ;;  %v487_v46 = vmul.f32 %v5169_v10, %v5873_v57  ;;  %v529_v12 = vadd.f32 %v5923_v14, %v507_v39 }
 0x199   : > { %5182 = vrsqrt.f32 %v462_v20  ;;  %v541_v27 = vpack.c.bf16 %v528_v24, %v527_v21  ;;  %v508_v28 = vmul.f32 %v5916_v25, %v486_v26 }
 0x19a   : > { %v5171_v29 = vpop.eup %5170  ;;  %v509_v36 = vmul.f32 %v5916_v25, %v487_v46 }
 0x19b   : > { %v5173_v33 = vpop.eup %5172  ;;  %750 = vmatmul.mubr.bf16.gmra.mxu0 %v540_v18  ;;  %4405 = vmatprep.mubr.bf16.mxu1 %v541_v27  ;;  %v530_v34 = vadd.f32 %v5923_v14, %v508_v28  ;;  %v488_v35 = vmul.f32 %v5171_v29, %v5876_v58 }
 0x19c   : > { %759 = vmatprep.mubr.bf16.mxu0 %v5615_v48  ;;  %v489_v47 = vmul.f32 %v5173_v33, %v5883_v3  ;;  %v531_v41 = vadd.f32 %v5923_v14, %v509_v36 }
 0x19d   : > { %v542_v57 = vpack.c.bf16 %v530_v34, %v529_v12  ;;  %v510_v37 = vmul.f32 %v5916_v25, %v488_v35 }
 0x19e   : > { %v5175_v15 = vpop.eup %5174  ;;  %v511_v22 = vmul.f32 %v5916_v25, %v489_v47 }
 0x19f   : > { %v5177_v40 = vpop.eup %5176  ;;  %v532_v42 = vadd.f32 %v5923_v14, %v510_v37  ;;  %v490_v43 = vmul.f32 %v5175_v15, %v5886_v4 }
 0x1a0   : > { %4406 = vmatmul.mubr.bf16.gmra.mxu1 %v542_v57  ;;  %v491_v58 = vmul.f32 %v5177_v40, %v5893_v11  ;;  %v533_v49 = vadd.f32 %v5923_v14, %v511_v22 }
 0x1a1   : > { %v543_v44 = vpack.c.bf16 %v532_v42, %v531_v41  ;;  %v512_v45 = vmul.f32 %v5916_v25, %v490_v43 }
 0x1a2   : > { %v5179_v3 = vpop.eup %5178  ;;  %v513_v53 = vmul.f32 %v5916_v25, %v491_v58 }
 0x1a3   : > { %v5181_v50 = vpop.eup %5180  ;;  %760 = vmatmul.mubr.bf16.gmra.mxu0 %v541_v27  ;;  %4409 = vmatprep.mubr.bf16.mxu1 %v543_v44  ;;  %v534_v51 = vadd.f32 %v5923_v14, %v512_v45  ;;  %v492_v52 = vmul.f32 %v5179_v3, %v5896_v19 }
 0x1a4   : > { %769 = vmatprep.mubr.bf16.mxu0 %v5615_v48  ;;  %v493_v4 = vmul.f32 %v5181_v50, %v5903_v13  ;;  %v535_v55 = vadd.f32 %v5923_v14, %v513_v53 }
 0x1a5   : > { %v544_v11 = vpack.c.bf16 %v534_v51, %v533_v49  ;;  %v514_v30 = vmul.f32 %v5916_v25, %v492_v52 }
 0x1a6   : > { %v5183_v54 = vpop.eup %5182  ;;  %v515_v59 = vmul.f32 %v5916_v25, %v493_v4 }
 0x1a7   : > { %v536_v23 = vadd.f32 %v5923_v14, %v514_v30  ;;  %v494_v56 = vmul.f32 %v5183_v54, %v5906_v32 }
 0x1a8   : > { %4410 = vmatmul.mubr.bf16.gmra.mxu1 %v544_v11  ;;  %v537_v13 = vadd.f32 %v5923_v14, %v515_v59 }
 0x1a9   : > { %v545_v19 = vpack.c.bf16 %v536_v23, %v535_v55  ;;  %v516_v60 = vmul.f32 %v5916_v25, %v494_v56 }
 0x1ab   : > { %770 = vmatmul.mubr.bf16.gmra.mxu0 %v542_v57  ;;  %4413 = vmatprep.mubr.bf16.mxu1 %v545_v19  ;;  %v538_v61 = vadd.f32 %v5923_v14, %v516_v60 }
 0x1ac   : > { %779 = vmatprep.mubr.bf16.mxu0 %v5615_v48 }
 0x1ad   : > { %v546_v62 = vpack.c.bf16 %v538_v61, %v537_v13 }
 0x1b0   : > { %4414 = vmatmul.mubr.bf16.gmra.mxu1 %v546_v62 }
 0x1b3   : > { %780 = vmatmul.mubr.bf16.gmra.mxu0 %v543_v44 }
 0x1b4   : > { %789 = vmatprep.mubr.bf16.mxu0 %v5615_v48 }
 0x1bb   : > { %790 = vmatmul.mubr.bf16.gmra.mxu0 %v544_v11 }
 0x1bc   : > { %799 = vmatprep.mubr.bf16.mxu0 %v5615_v48 }
 0x1c3   : > { %800 = vmatmul.mubr.bf16.gmra.mxu0 %v545_v19 }
 0x1c4   : > { %809 = vmatprep.mubr.bf16.mxu0 %v5615_v48 }
 0x1cb   : > { %810 = vmatmul.mubr.bf16.gmra.mxu0 %v546_v62 }
 0x253   : > { %v5978_v32 = vpop.f32.mrf.mxu0 }
 0x254   : > { %4449 = vmatprep.mubr.msk.f32.mxu0 %vm917_vm0, %v5978_v32 }
 0x255   : > { %v5982_v25 = vpop.f32.mrf.mxu0 }
 0x257   : > { %v5984_v14 = vpop.f32.mrf.mxu0 }
 0x258   : > { %7766 = vst [vmem:[#allocation12_spill] sm:$0xff] %v5984_v14  ;;  %v5986_v63 = vpop.f32.mrf.mxu1 }
 0x259   : > { %7767 = vst [vmem:[#allocation13_spill] sm:$0xff] %v5986_v63  ;;  %v5988_v0 = vpop.f32.mrf.mxu0 }
 0x25a   : > { %7768 = vst [vmem:[#allocation14_spill] sm:$0xff] %v5988_v0  ;;  %v5990_v1 = vpop.f32.mrf.mxu1 }
 0x25b   : > { %7769 = vst [vmem:[#allocation15_spill] sm:$0xff] %v5990_v1  ;;  %v5992_v2 = vpop.f32.mrf.mxu0 }
 0x25c   : > { %7770 = vst [vmem:[#allocation16_spill] sm:$0xff] %v5992_v2  ;;  %v5994_v48 = vpop.f32.mrf.mxu1 }
 0x25d   : > { %7771 = vst [vmem:[#allocation17_spill] sm:$0xff] %v5994_v48  ;;  %v5996_v31 = vpop.f32.mrf.mxu0 }
 0x25e   : > { %7772 = vst [vmem:[#allocation18_spill] sm:$0xff] %v5996_v31  ;;  %v5998_v5 = vpop.f32.mrf.mxu1 }
 0x25f   : > { %7773 = vst [vmem:[#allocation19_spill] sm:$0xff] %v5998_v5  ;;  %v6000_v6 = vpop.f32.mrf.mxu0 }
 0x260   : > { %v6002_v38 = vpop.f32.mrf.mxu1 }
 0x261   : > { %7774 = vst [vmem:[#allocation20_spill] sm:$0xff] %v6002_v38  ;;  %v6004_v7 = vpop.f32.mrf.mxu0 }
 0x262   : > { %7775 = vst [vmem:[#allocation21_spill] sm:$0xff] %v6004_v7  ;;  %v6006_v8 = vpop.f32.mrf.mxu1 }
 0x263   : > { %7776 = vst [vmem:[#allocation22_spill] sm:$0xff] %v6006_v8  ;;  %v6008_v9 = vpop.f32.mrf.mxu0 }
 0x264   : > { %7777 = vst [vmem:[#allocation23_spill] sm:$0xff] %v6008_v9  ;;  %v6010_v16 = vpop.f32.mrf.mxu1 }
 0x265   : > { %7778 = vst [vmem:[#allocation24_spill] sm:$0xff] %v6010_v16  ;;  %v6012_v17 = vpop.f32.mrf.mxu0 }
 0x266   : > { %7779 = vst [vmem:[#allocation25_spill] sm:$0xff] %v6012_v17  ;;  %v6014_v18 = vpop.f32.mrf.mxu1 }
 0x267   : > { %7780 = vst [vmem:[#allocation26_spill] sm:$0xff] %v6014_v18  ;;  %v6016_v39 = vpop.f32.mrf.mxu0 }
 0x268   : > { %v6018_v10 = vpop.f32.mrf.mxu1 }
 0x269   : > { %7781 = vst [vmem:[#allocation27_spill] sm:$0xff] %v6018_v10  ;;  %v6020_v20 = vpop.f32.mrf.mxu0 }
 0x26a   : > { %7782 = vst [vmem:[#allocation28_spill] sm:$0xff] %v6020_v20  ;;  %v6022_v21 = vpop.f32.mrf.mxu1 }
 0x26b   : > { %7783 = vst [vmem:[#allocation29_spill] sm:$0xff] %v6022_v21  ;;  %v6024_v24 = vpop.f32.mrf.mxu0 }
 0x26c   : > { %7784 = vst [vmem:[#allocation30_spill] sm:$0xff] %v6024_v24  ;;  %v6026_v26 = vpop.f32.mrf.mxu1 }
 0x26d   : > { %7785 = vst [vmem:[#allocation31_spill] sm:$0xff] %v6026_v26  ;;  %v6028_v46 = vpop.f32.mrf.mxu0 }
 0x26e   : > { %7786 = vst [vmem:[#allocation32_spill] sm:$0xff] %v6028_v46  ;;  %v6030_v27 = vpop.f32.mrf.mxu1 }
 0x26f   : > { %7787 = vst [vmem:[#allocation33_spill] sm:$0xff] %v6030_v27  ;;  %v6032_v28 = vpop.f32.mrf.mxu0 }
 0x270   : > { %v6034_v29 = vpop.f32.mrf.mxu1 }
 0x271   : > { %7788 = vst [vmem:[#allocation34_spill] sm:$0xff] %v6034_v29  ;;  %v6036_v12 = vpop.f32.mrf.mxu0 }
 0x272   : > { %7789 = vst [vmem:[#allocation35_spill] sm:$0xff] %v6036_v12  ;;  %v6038_v33 = vpop.f32.mrf.mxu1 }
 0x273   : > { %7790 = vst [vmem:[#allocation36_spill] sm:$0xff] %v6038_v33  ;;  %v6040_v34 = vpop.f32.mrf.mxu0 }
 0x274   : > { %7791 = vst [vmem:[#allocation37_spill] sm:$0xff] %v6040_v34  ;;  %v6042_v35 = vpop.f32.mrf.mxu1 }
 0x275   : > { %4473 = vmatprep.subr.mxu1 %v6042_v35  ;;  %v6045_v36 = vpop.f32.mrf.mxu0 }
 0x276   : > { %7792 = vst [vmem:[#allocation38_spill] sm:$0xff] %v6045_v36  ;;  %4474 = vmatpush3.msra.mxu1 %v6042_v35  ;;  %v6051_v57 = vpop.f32.mrf.mxu1 }
 0x277   : > { %4475 = vmatprep.subr.mxu1 %v6034_v29  ;;  %v6049_v47 = vpop.f32.mrf.mxu0 }
 0x278   : > { %4476 = vmatpush3.msra.mxu1 %v6034_v29 }
 0x279   : > { %4477 = vmatprep.subr.mxu1 %v6051_v57  ;;  %v6055_v37 = vpop.f32.mrf.mxu0 }
 0x27a   : > { %7793 = vst [vmem:[#allocation39_spill] sm:$0xff] %v6055_v37  ;;  %4478 = vmatpush3.msra.mxu1 %v6051_v57 }
 0x27b   : > { %4479 = vmatprep.subr.mxu1 %v6038_v33  ;;  %v6059_v15 = vpop.f32.mrf.mxu0 }
 0x27c   : > { %7794 = vst [vmem:[#allocation40_spill] sm:$0xff] %v6059_v15  ;;  %4480 = vmatpush3.msra.mxu1 %v6038_v33 }
 0x27d   : > { %4481 = vmatprep.subr.mxu1 %v6026_v26  ;;  %v6063_v22 = vpop.f32.mrf.mxu0 }
 0x27e   : > { %7795 = vst [vmem:[#allocation41_spill] sm:$0xff] %v6063_v22  ;;  %4482 = vmatpush3.msra.mxu1 %v6026_v26  ;;  %1516 = vrot.lane.b32.xlu1 %v6063_v22, %s5616_s18 }
 0x27f   : > { %4483 = vmatprep.subr.mxu1 %v6018_v10  ;;  %v6069_v40 = vpop.f32.mrf.mxu0 }
 0x280   : > { %4484 = vmatpush3.msra.mxu1 %v6018_v10 }
 0x281   : > { %4485 = vmatprep.subr.mxu1 %v6030_v27  ;;  %v6073_v41 = vpop.f32.mrf.mxu0 }
 0x282   : > { %7796 = vst [vmem:[#allocation42_spill] sm:$0xff] %v6073_v41  ;;  %4486 = vmatpush3.msra.mxu1 %v6030_v27  ;;  %1518 = vrot.lane.b32.xlu0 %v6073_v41, %s5616_s18 }
 0x283   : > { %4487 = vmatprep.subr.mxu1 %v6022_v21  ;;  %v6079_v42 = vpop.f32.mrf.mxu0 }
 0x284   : > { %7797 = vst [vmem:[#allocation43_spill] sm:$0xff] %v6079_v42  ;;  %4488 = vmatpush3.msra.mxu1 %v6022_v21 }
 0x285   : > { %4489 = vmatprep.subr.mxu1 %v6010_v16  ;;  %v6083_v43 = vpop.f32.mrf.mxu0 }
 0x286   : > { %7798 = vst [vmem:[#allocation44_spill] sm:$0xff] %v6083_v43  ;;  %4490 = vmatpush3.msra.mxu1 %v6010_v16  ;;  %1520 = vrot.lane.b32.xlu1 %v6083_v43, %s5616_s18 }
 0x287   : > { %4491 = vmatprep.subr.mxu1 %v6002_v38  ;;  %v6089_v58 = vpop.f32.mrf.mxu0 }
 0x288   : > { %4492 = vmatpush3.msra.mxu1 %v6002_v38 }
 0x289   : > { %4493 = vmatprep.subr.mxu1 %v6014_v18  ;;  %v6093_v44 = vpop.f32.mrf.mxu0 }
 0x28a   : > { %7799 = vst [vmem:[#allocation45_spill] sm:$0xff] %v6093_v44  ;;  %4494 = vmatpush3.msra.mxu1 %v6014_v18  ;;  %1522 = vrot.lane.b32.xlu0 %v6093_v44, %s5616_s18 }
 0x28b   : > { %4495 = vmatprep.subr.mxu1 %v6006_v8  ;;  %v6099_v45 = vpop.f32.mrf.mxu0 }
 0x28c   : > { %7800 = vst [vmem:[#allocation46_spill] sm:$0xff] %v6099_v45  ;;  %4496 = vmatpush3.msra.mxu1 %v6006_v8 }
 0x28d   : > { %4497 = vmatprep.subr.mxu1 %v5994_v48  ;;  %v6103_v3 = vpop.f32.mrf.mxu0 }
 0x28e   : > { %7801 = vst [vmem:[#allocation47_spill] sm:$0xff] %v6103_v3  ;;  %4498 = vmatpush3.msra.mxu1 %v5994_v48  ;;  %1524 = vrot.lane.b32.xlu1 %v6103_v3, %s5616_s18 }
 0x28f   : > { %4499 = vmatprep.subr.mxu1 %v5986_v63  ;;  %v6109_v49 = vpop.f32.mrf.mxu0 }
 0x290   : > { %4500 = vmatpush3.msra.mxu1 %v5986_v63 }
 0x291   : > { %4501 = vmatprep.subr.mxu1 %v5998_v5  ;;  %v6113_v50 = vpop.f32.mrf.mxu0 }
 0x292   : > { %7802 = vst [vmem:[#allocation48_spill] sm:$0xff] %v6113_v50  ;;  %4502 = vmatpush3.msra.mxu1 %v5998_v5  ;;  %1526 = vrot.lane.b32.xlu0 %v6113_v50, %s5616_s18 }
 0x293   : > { %4503 = vmatprep.subr.mxu1 %v5990_v1  ;;  %4417 = vmatprep.subr.msk.mxu0 %vm917_vm0, %v6113_v50 }
 0x294   : > { %4418 = vmatpush3.xpose.msk.msra.mxu0 %vm917_vm0, %v6113_v50  ;;  %4504 = vmatpush3.msra.mxu1 %v5990_v1 }
 0x295   : > { %4419 = vmatprep.subr.msk.mxu0 %vm917_vm0, %v6103_v3 }
 0x298   : > { %4420 = vmatpush3.xpose.msk.msra.mxu0 %vm917_vm0, %v6103_v3 }
 0x299   : > { %4421 = vmatprep.subr.msk.mxu0 %vm917_vm0, %v6093_v44 }
 0x29c   : > { %4422 = vmatpush3.xpose.msk.msra.mxu0 %vm917_vm0, %v6093_v44 }
 0x29d   : > { %4423 = vmatprep.subr.msk.mxu0 %vm917_vm0, %v6083_v43 }
 0x2a0   : > { %4424 = vmatpush3.xpose.msk.msra.mxu0 %vm917_vm0, %v6083_v43 }
 0x2a1   : > { %4425 = vmatprep.subr.msk.mxu0 %vm917_vm0, %v6073_v41 }
 0x2a4   : > { %4426 = vmatpush3.xpose.msk.msra.mxu0 %vm917_vm0, %v6073_v41 }
 0x2a5   : > { %4427 = vmatprep.subr.msk.mxu0 %vm917_vm0, %v6063_v22 }
 0x2a8   : > { %4428 = vmatpush3.xpose.msk.msra.mxu0 %vm917_vm0, %v6063_v22 }
 0x2a9   : > { %4429 = vmatprep.subr.msk.mxu0 %vm917_vm0, %v6055_v37 }
 0x2ac   : > { %4430 = vmatpush3.xpose.msk.msra.mxu0 %vm917_vm0, %v6055_v37 }
 0x2ad   : > { %4431 = vmatprep.subr.msk.mxu0 %vm917_vm0, %v6045_v36 }
 0x2b0   : > { %4432 = vmatpush3.xpose.msk.msra.mxu0 %vm917_vm0, %v6045_v36 }
 0x2b1   : > { %4433 = vmatprep.subr.msk.mxu0 %vm917_vm0, %v6036_v12 }
 0x2b4   : > { %4434 = vmatpush3.xpose.msk.msra.mxu0 %vm917_vm0, %v6036_v12 }
 0x2b5   : > { %4435 = vmatprep.subr.msk.mxu0 %vm917_vm0, %v6028_v46 }
 0x2b8   : > { %4436 = vmatpush3.xpose.msk.msra.mxu0 %vm917_vm0, %v6028_v46 }
 0x2b9   : > { %4437 = vmatprep.subr.msk.mxu0 %vm917_vm0, %v6020_v20 }
 0x2bc   : > { %4438 = vmatpush3.xpose.msk.msra.mxu0 %vm917_vm0, %v6020_v20 }
 0x2bd   : > { %4439 = vmatprep.subr.msk.mxu0 %vm917_vm0, %v6012_v17 }
 0x2c0   : > { %4440 = vmatpush3.xpose.msk.msra.mxu0 %vm917_vm0, %v6012_v17 }
 0x2c1   : > { %4441 = vmatprep.subr.msk.mxu0 %vm917_vm0, %v6004_v7 }
 0x2c4   : > { %4442 = vmatpush3.xpose.msk.msra.mxu0 %vm917_vm0, %v6004_v7 }
 0x2c5   : > { %4443 = vmatprep.subr.msk.mxu0 %vm917_vm0, %v5996_v31 }
 0x2c8   : > { %4444 = vmatpush3.xpose.msk.msra.mxu0 %vm917_vm0, %v5996_v31 }
 0x2c9   : > { %4445 = vmatprep.subr.msk.mxu0 %vm917_vm0, %v5988_v0 }
 0x2cc   : > { %4446 = vmatpush3.xpose.msk.msra.mxu0 %vm917_vm0, %v5988_v0 }
 0x2cd   : > { %4447 = vmatprep.subr.msk.mxu0 %vm917_vm0, %v5982_v25 }
 0x2d0   : > { %4448 = vmatpush3.xpose.msk.msra.mxu0 %vm917_vm0, %v5982_v25 }
 0x2d3   : > { %4450 = vmatmul.mubr.msk.f32.vlgmr.msra.gmra.mxu0 %vm917_vm0, %v5984_v14 }
 0x2d4   : > { %4452 = vmatprep.mubr.msk.f32.mxu0 %vm917_vm0, %v5992_v2 }
 0x2d7   : > { %4453 = vmatmul.mubr.msk.f32.gmra.mxu0 %vm917_vm0, %v6000_v6 }
 0x2d8   : > { %4455 = vmatprep.mubr.msk.f32.mxu0 %vm917_vm0, %v6008_v9 }
 0x2db   : > { %4456 = vmatmul.mubr.msk.f32.gmra.mxu0 %vm917_vm0, %v6016_v39 }
 0x2dc   : > { %4458 = vmatprep.mubr.msk.f32.mxu0 %vm917_vm0, %v6024_v24 }
 0x2df   : > { %4459 = vmatmul.mubr.msk.f32.gmra.mxu0 %vm917_vm0, %v6032_v28 }
 0x2e0   : > { %4461 = vmatprep.mubr.msk.f32.mxu0 %vm917_vm0, %v6040_v34 }
 0x2e3   : > { %4462 = vmatmul.mubr.msk.f32.gmra.mxu0 %vm917_vm0, %v6049_v47 }
 0x2e4   : > { %4464 = vmatprep.mubr.msk.f32.mxu0 %vm917_vm0, %v6059_v15 }
 0x2e7   : > { %4465 = vmatmul.mubr.msk.f32.gmra.mxu0 %vm917_vm0, %v6069_v40 }
 0x2e8   : > { %4467 = vmatprep.mubr.msk.f32.mxu0 %vm917_vm0, %v6079_v42 }
 0x2eb   : > { %4468 = vmatmul.mubr.msk.f32.gmra.mxu0 %vm917_vm0, %v6089_v58 }
 0x2ec   : > { %4470 = vmatprep.mubr.msk.f32.mxu0 %vm917_vm0, %v6099_v45 }
 0x2ef   : > { %4471 = vmatmul.mubr.msk.f32.gmra.mxu0 %vm917_vm0, %v6109_v49 }
 0x2f4   : > { %v6214_v51 = vpop.permute.xlu0 %1518 }
 0x2f5   : > { %7803 = vst [vmem:[#allocation49_spill] sm:$0xff] %v6214_v51 }
 0x2fc   : > { %v6216_v52 = vpop.permute.xlu0 %1522 }
 0x2fd   : > { %7804 = vst [vmem:[#allocation50_spill] sm:$0xff] %v6216_v52 }
 0x304   : > { %v6218_v53 = vpop.permute.xlu0 %1526 }
 0x305   : > { %4529 = vmatprep.subr.msk.mxu1 %vm917_vm0, %v6218_v53 }
 0x393   : > { %v4451_v4 = vpop.f32.mrf.mxu0 }
 0x394   : > { %v1160_v11 = vmul.f32 0.17677669, %v4451_v4 }
 0x395   : > { %v1080_v30 = vpop.f32.mrf.mxu0 }
 0x396   : > { %v1159_v54 = vmul.f32 0.17677669, %v1080_v30  ;;  %1177 = vmax.xlane.f32.xlu1 %v1160_v11 }
 0x397   : > { %v4454_v55 = vpop.f32.mrf.mxu0 }
 0x398   : > { %v6222_v23 = vmul.f32 0.17677669, %v4454_v55  ;;  %1175 = vmax.xlane.f32.xlu0 %v1159_v54 }
 0x399   : > { %v1090_v56 = vpop.f32.mrf.mxu0 }
 0x39a   : > { %v6224_v59 = vmul.f32 0.17677669, %v1090_v56  ;;  %1181 = vmax.xlane.f32.xlu1 %v6222_v23 }
 0x39b   : > { %v4457_v19 = vpop.f32.mrf.mxu0 }
 0x39c   : > { %v6227_v60 = vmul.f32 0.17677669, %v4457_v19  ;;  %1179 = vmax.xlane.f32.xlu0 %v6224_v59 }
 0x39d   : > { %v1100_v13 = vpop.f32.mrf.mxu0 }
 0x39e   : > { %v6230_v61 = vmul.f32 0.17677669, %v1100_v13  ;;  %1185 = vmax.xlane.f32.xlu1 %v6227_v60 }
 0x39f   : > { %v4460_v62 = vpop.f32.mrf.mxu0 }
 0x3a0   : > { %v6233_v4 = vmul.f32 0.17677669, %v4460_v62  ;;  %1183 = vmax.xlane.f32.xlu0 %v6230_v61 }
 0x3a1   : > { %v1110_v30 = vpop.f32.mrf.mxu0 }
 0x3a2   : > { %v6236_v55 = vmul.f32 0.17677669, %v1110_v30  ;;  %1189 = vmax.xlane.f32.xlu1 %v6233_v4 }
 0x3a3   : > { %v4463_v56 = vpop.f32.mrf.mxu0 }
 0x3a4   : > { %v6239_v19 = vmul.f32 0.17677669, %v4463_v56  ;;  %1187 = vmax.xlane.f32.xlu0 %v6236_v55 }
 0x3a5   : > { %v1120_v22 = vpop.f32.mrf.mxu0 }
 0x3a6   : > { %v6242_v13 = vmul.f32 0.17677669, %v1120_v22  ;;  %1193 = vmax.xlane.f32.xlu1 %v6239_v19 }
 0x3a7   : > { %v4466_v43 = vpop.f32.mrf.mxu0 }
 0x3a8   : > { %v6245_v62 = vmul.f32 0.17677669, %v4466_v43  ;;  %1191 = vmax.xlane.f32.xlu0 %v6242_v13 }
 0x3a9   : > { %v1130_v50 = vpop.f32.mrf.mxu0 }
 0x3aa   : > { %v1169_v30 = vmul.f32 0.17677669, %v1130_v50  ;;  %1197 = vmax.xlane.f32.xlu1 %v6245_v62 }
 0x3ab   : > { %v4469_v5 = vpop.f32.mrf.mxu0 }
 0x3ac   : > { %v6249_v48 = vmul.f32 0.17677669, %v4469_v5  ;;  %1195 = vmax.xlane.f32.xlu0 %v1169_v30  ;;  %v6260_v5 = vpop.permute.xlu1 %1516 }
 0x3ad   : > { %v1140_v56 = vpop.f32.mrf.mxu0  ;;  %7805 = vst [vmem:[#allocation51_spill] sm:$0xff] %v6260_v5 }
 0x3ae   : > { %v6251_v18 = vmul.f32 0.17677669, %v1140_v56  ;;  %1201 = vmax.xlane.f32.xlu1 %v6249_v48 }
 0x3af   : > { %v4472_v22 = vpop.f32.mrf.mxu0 }
 0x3b0   : > { %v1174_v16 = vmul.f32 0.17677669, %v4472_v22  ;;  %1199 = vmax.xlane.f32.xlu0 %v6251_v18  ;;  %v6262_v50 = vpop.permute.xlu1 %1520 }
 0x3b1   : > { %v1150_v43 = vpop.f32.mrf.mxu0  ;;  %7806 = vst [vmem:[#allocation52_spill] sm:$0xff] %v6262_v50 }
 0x3b2   : > { %v6255_v27 = vmul.f32 0.17677669, %v1150_v43  ;;  %1205 = vmax.xlane.f32.xlu1 %v1174_v16 }
 0x3b4   : > { %1203 = vmax.xlane.f32.xlu0 %v6255_v27  ;;  %v6264_v56 = vpop.permute.xlu1 %1524 }
 0x3ca   : > { %1514 = vrot.lane.b32.xlu0 %v6055_v37, %s5616_s18 }
 0x41f   : > { %v1178_v10 = vpop.xlane.xlu1 %1177 }
 0x420   : > { %v1208_v33 = vsub.f32 %v1160_v11, %v1178_v10 }
 0x421   : > { %v1176_v22 = vpop.xlane.xlu0 %1175 }
 0x422   : > { %v1225_v29 = vmul.f32 1.442695, %v1208_v33  ;;  %v1207_v45 = vsub.f32 %v1159_v54, %v1176_v22 }
 0x423   : > { %v1182_v34 = vpop.xlane.xlu1 %1181 }
 0x424   : > { %5184 = vpow2.f32 %v1225_v29  ;;  %v1223_v43 = vmul.f32 1.442695, %v1207_v45  ;;  %v1210_v22 = vsub.f32 %v6222_v23, %v1182_v34 }
 0x425   : > { %v1180_v9 = vpop.xlane.xlu0 %1179 }
 0x426   : > { %5186 = vpow2.f32 %v1223_v43  ;;  %v1229_v2 = vmul.f32 1.442695, %v1210_v22 }
 0x427   : > { %v1186_v24 = vpop.xlane.xlu1 %1185 }
 0x428   : > { %5188 = vpow2.f32 %v1229_v2 }
 0x429   : > { %v1184_v33 = vpop.xlane.xlu0 %1183 }
 0x42a   : > { %v1211_v23 = vsub.f32 %v6230_v61, %v1184_v33 }
 0x42b   : > { %v1190_v10 = vpop.xlane.xlu1 %1189 }
 0x42c   : > { %v1214_v2 = vsub.f32 %v6233_v4, %v1190_v10 }
 0x42d   : > { %v1188_v45 = vpop.xlane.xlu0 %1187 }
 0x42e   : > { %v1213_v14 = vsub.f32 %v6236_v55, %v1188_v45 }
 0x42f   : > { %v1194_v29 = vpop.xlane.xlu1 %1193 }
 0x430   : > { %v1235_v5 = vmul.f32 1.442695, %v1213_v14  ;;  %v1231_v14 = vmul.f32 1.442695, %v1211_v23 }
 0x431   : > { %v6266_v42 = vpop.eup %5184  ;;  %v1192_v54 = vpop.xlane.xlu0 %1191 }
 0x432   : > { %1257 = vadd.xlane.f32.xlu1 %v6266_v42  ;;  %5190 = vpow2.f32 %v1235_v5 }
 0x433   : > { %v6269_v15 = vpop.eup %5186  ;;  %v1198_v11 = vpop.xlane.xlu1 %1197 }
 0x434   : > { %1255 = vadd.xlane.f32.xlu0 %v6269_v15 }
 0x435   : > { %v6287_v55 = vpop.eup %5188 }
 0x437   : > { %v1202_v43 = vpop.xlane.xlu1 %1201 }
 0x443   : > { %1510 = vrot.lane.b32.xlu1 %v6036_v12, %s5616_s18  ;;  %v1209_v12 = vsub.f32 %v6224_v59, %v1180_v9  ;;  %v6291_v9 = vpop.eup %5190 }
 0x445   : > { %v1227_v37 = vmul.f32 1.442695, %v1209_v12 }
 0x447   : > { %1508 = vrot.lane.b32.xlu1 %v6028_v46, %s5616_s18  ;;  %v1196_v46 = vpop.xlane.xlu0 %1195 }
 0x448   : > { %v1217_v51 = vsub.f32 %v1169_v30, %v1196_v46  ;;  %v1215_v46 = vsub.f32 %v6242_v13, %v1192_v54 }
 0x44a   : > { %1512 = vrot.lane.b32.xlu0 %v6045_v36, %s5616_s18  ;;  %v1206_v36 = vpop.xlane.xlu1 %1205 }
 0x44b   : > { %1506 = vrot.lane.b32.xlu1 %v6020_v20, %s5616_s18  ;;  %v1243_v20 = vmul.f32 1.442695, %v1217_v51  ;;  %v1222_v50 = vsub.f32 %v1174_v16, %v1206_v36  ;;  %v1237_v16 = vmul.f32 1.442695, %v1214_v2  ;;  %v1218_v51 = vsub.f32 %v6245_v62, %v1198_v11  ;;  %v1200_v4 = vpop.xlane.xlu0 %1199  ;;  %v7810_v2 = vld [vmem:[#allocation35_spill] sm:$0xff] }
 0x44c   : > { %v1219_v13 = vsub.f32 %v6251_v18, %v1200_v4 }
 0x44d   : > { %5192 = vpow2.f32 %v1243_v20  ;;  %v1253_v52 = vmul.f32 1.442695, %v1222_v50  ;;  %v1216_v20 = vsub.f32 %v6239_v19, %v1194_v29  ;;  %v1245_v59 = vmul.f32 1.442695, %v1218_v51 }
 0x44e   : > { %5194 = vpow2.f32 %v1227_v37  ;;  %v1239_v37 = vmul.f32 1.442695, %v1215_v46  ;;  %v1247_v30 = vmul.f32 1.442695, %v1219_v13  ;;  %v7817_v13 = vld [vmem:[#allocation37_spill] sm:$0xff] }
 0x44f   : > { %1504 = vrot.lane.b32.xlu1 %v6012_v17, %s5616_s18  ;;  %v1212_v17 = vsub.f32 %v6227_v60, %v1186_v24  ;;  %5196 = vpow2.f32 %v1253_v52  ;;  %v1241_v24 = vmul.f32 1.442695, %v1216_v20  ;;  %v1220_v60 = vsub.f32 %v6249_v48, %v1202_v43  ;;  %v1204_v33 = vpop.xlane.xlu0 %1203  ;;  %v7813_v20 = vld [vmem:[#allocation12_spill] sm:$0xff] }
 0x450   : > { %v1221_v54 = vsub.f32 %v6255_v27, %v1204_v33 }
 0x451   : > { %v1233_v34 = vmul.f32 1.442695, %v1212_v17  ;;  %v1249_v19 = vmul.f32 1.442695, %v1220_v60  ;;  %v7816_v60 = vld [vmem:[#allocation30_spill] sm:$0xff] }
 0x452   : > { %v1251_v22 = vmul.f32 1.442695, %v1221_v54  ;;  %v7819_v54 = vld [vmem:[#allocation43_spill] sm:$0xff] }
 0x453   : > { %5198 = vpow2.f32 %v1233_v34  ;;  %v1515_v29 = vpop.permute.xlu0 %1514 }
 0x454   : > { %5200 = vpow2.f32 %v1231_v14 }
 0x455   : > { %5202 = vpow2.f32 %v1237_v16  ;;  %v7812_v16 = vld [vmem:[#allocation51_spill] sm:$0xff] }
 0x456   : > { %5204 = vpow2.f32 %v1241_v24 }
 0x457   : > { %5206 = vpow2.f32 %v1239_v37  ;;  %v7814_v37 = vld [vmem:[#allocation16_spill] sm:$0xff] }
 0x458   : > { %5208 = vpow2.f32 %v1245_v59  ;;  %v7815_v59 = vld [vmem:[#allocation23_spill] sm:$0xff] }
 0x459   : > { %5210 = vpow2.f32 %v1249_v19 }
 0x45a   : > { %v6295_v17 = vpop.eup %5192  ;;  %5212 = vpow2.f32 %v1247_v30 }
 0x45b   : > { %v6299_v12 = vpop.eup %5194 }
 0x45c   : > { %v6302_v36 = vpop.eup %5196 }
 0x460   : > { %v6306_v52 = vpop.eup %5198 }
 0x461   : > { %v6310_v61 = vpop.eup %5200 }
 0x462   : > { %v6314_v62 = vpop.eup %5202 }
 0x463   : > { %v6317_v5 = vpop.eup %5204 }
 0x464   : > { %v6320_v48 = vpop.eup %5206 }
 0x465   : > { %v6323_v50 = vpop.eup %5208 }
 0x466   : > { %v6328_v18 = vpop.eup %5210 }
 0x467   : > { %v6333_v10 = vpop.eup %5212 }
 0x469   : > { %1261 = vadd.xlane.f32.xlu0 %v6287_v55 }
 0x46d   : > { %1267 = vadd.xlane.f32.xlu0 %v6291_v9 }
 0x471   : > { %1275 = vadd.xlane.f32.xlu0 %v6295_v17 }
 0x473   : > { %1259 = vadd.xlane.f32.xlu1 %v6299_v12 }
 0x475   : > { %1285 = vadd.xlane.f32.xlu0 %v6302_v36 }
 0x477   : > { %1265 = vadd.xlane.f32.xlu1 %v6306_v52 }
 0x47b   : > { %1263 = vadd.xlane.f32.xlu1 %v6310_v61 }
 0x47f   : > { %1269 = vadd.xlane.f32.xlu1 %v6314_v62 }
 0x483   : > { %1273 = vadd.xlane.f32.xlu1 %v6317_v5 }
 0x487   : > { %1271 = vadd.xlane.f32.xlu1 %v6320_v48 }
 0x48b   : > { %1277 = vadd.xlane.f32.xlu1 %v6323_v50  ;;  %1502 = vrot.lane.b32.xlu0 %v6004_v7, %s5616_s18 }
 0x48f   : > { %1281 = vadd.xlane.f32.xlu1 %v6328_v18  ;;  %1470 = vrot.lane.b32.xlu0 %v6000_v6, %s5616_s18 }
 0x493   : > { %1474 = vrot.lane.b32.xlu0 %v6016_v39, %s5616_s18  ;;  %1279 = vadd.xlane.f32.xlu1 %v6333_v10 }
 0x497   : > { %1478 = vrot.lane.b32.xlu0 %v6032_v28, %s5616_s18 }
 0x49b   : > { %1482 = vrot.lane.b32.xlu0 %v6049_v47, %s5616_s18 }
 0x49f   : > { %1486 = vrot.lane.b32.xlu0 %v6069_v40, %s5616_s18 }
 0x4a3   : > { %1490 = vrot.lane.b32.xlu0 %v6089_v58, %s5616_s18 }
 0x4a4   : > { %1500 = vrot.lane.b32.xlu1 %v5996_v31, %s5616_s18 }
 0x4a7   : > { %1494 = vrot.lane.b32.xlu0 %v6109_v49, %s5616_s18 }
 0x4a8   : > { %1498 = vrot.lane.b32.xlu1 %v5988_v0, %s5616_s18 }
 0x4ab   : > { %1943 = vrot.lane.b32.xlu0 %v6042_v35, %s5616_s18 }
 0x4ac   : > { %1496 = vrot.lane.b32.xlu1 %v5982_v25, %s5616_s18 }
 0x4af   : > { %1939 = vrot.lane.b32.xlu0 %v6051_v57, %s5616_s18 }
 0x4b0   : > { %1464 = vrot.lane.b32.xlu1 %v5978_v32, %s5616_s18 }
 0x4b3   : > { %1935 = vrot.lane.b32.xlu0 %v6026_v26, %s5616_s18 }
 0x4b7   : > { %1929 = vrot.lane.b32.xlu0 %v6022_v21, %s5616_s18 }
 0x4bb   : > { %v1258_v45 = vpop.xlane.xlu1 %1257  ;;  %1925 = vrot.lane.b32.xlu0 %v6002_v38, %s5616_s18 }
 0x4bc   : > { %5214 = vrcp.f32 %v1258_v45 }
 0x4bd   : > { %v1256_v11 = vpop.xlane.xlu0 %1255 }
 0x4be   : > { %5216 = vrcp.f32 %v1256_v11 }
 0x4bf   : > { %1921 = vrot.lane.b32.xlu0 %v6006_v8, %s5616_s18  ;;  %5218 = vpow2.f32 %v1251_v22  ;;  %v1511_v24 = vpop.permute.xlu1 %1510 }
 0x4c1   : > { %v1513_v46 = vpop.permute.xlu0 %1512 }
 0x4c3   : > { %1917 = vrot.lane.b32.xlu0 %v5986_v63, %s5616_s18  ;;  %v1509_v51 = vpop.permute.xlu1 %1508 }
 0x4c7   : > { %1913 = vrot.lane.b32.xlu0 %v5990_v1, %s5616_s18  ;;  %v1507_v4 = vpop.permute.xlu1 %1506 }
 0x4c9   : > { %v5215_v43 = vpop.eup %5214 }
 0x4ca   : > { %v1290_v23 = vmul.f32 %v5215_v43, %v6266_v42  ;;  %v7808_v42 = vld [vmem:[#allocation39_spill] sm:$0xff] }
 0x4cb   : > { %v5217_v34 = vpop.eup %5216  ;;  %2166 = vrot.lane.b32.xlu0 %v6103_v3, %s5617_s19  ;;  %v1505_v33 = vpop.permute.xlu1 %1504 }
 0x4cc   : > { %v1288_v27 = vmul.f32 %v5217_v34, %v6269_v15  ;;  %v6383_v14 = vpop.eup %5218  ;;  %v7807_v15 = vld [vmem:[#allocation50_spill] sm:$0xff] }
 0x4cd   : > { %v7820_v34 = vld [vmem:[#allocation46_spill] sm:$0xff] }
 0x4ce   : > { %4505 = vmatprep.mubr.f32.mxu1 %v1288_v27 }
 0x4cf   : > { %2164 = vrot.lane.b32.xlu0 %v6093_v44, %s5617_s19  ;;  %4506 = vmatmul.mubr.f32.vlgmr.msra.gmra.mxu1 %v1290_v23 }
 0x4d0   : > { %4530 = vmatpush3.xpose.msk.msra.mxu1 %vm917_vm0, %v6218_v53  ;;  %v7809_v53 = vld [vmem:[#allocation52_spill] sm:$0xff] }
 0x4d1   : > { %4531 = vmatprep.subr.msk.mxu1 %vm917_vm0, %v6264_v56 }
 0x4d3   : > { %2160 = vrot.lane.b32.xlu0 %v6073_v41, %s5617_s19 }
 0x4d4   : > { %4532 = vmatpush3.xpose.msk.msra.mxu1 %vm917_vm0, %v6264_v56  ;;  %1283 = vadd.xlane.f32.xlu1 %v6383_v14  ;;  %v7811_v56 = vld [vmem:[#allocation49_spill] sm:$0xff] }
 0x4d5   : > { %4533 = vmatprep.subr.msk.mxu1 %vm917_vm0, %v7807_v15 }
 0x4d7   : > { %2156 = vrot.lane.b32.xlu0 %v7808_v42, %s5617_s19 }
 0x4d8   : > { %4534 = vmatpush3.xpose.msk.msra.mxu1 %vm917_vm0, %v7807_v15  ;;  %v7821_v15 = vld [vmem:[#allocation34_spill] sm:$0xff] }
 0x4d9   : > { %4535 = vmatprep.subr.msk.mxu1 %vm917_vm0, %v7809_v53 }
 0x4db   : > { %2152 = vrot.lane.b32.xlu0 %v7810_v2, %s5617_s19 }
 0x4dc   : > { %4536 = vmatpush3.xpose.msk.msra.mxu1 %vm917_vm0, %v7809_v53 }
 0x4dd   : > { %4537 = vmatprep.subr.msk.mxu1 %vm917_vm0, %v7811_v56 }
 0x4e0   : > { %4538 = vmatpush3.xpose.msk.msra.mxu1 %vm917_vm0, %v7811_v56 }
 0x4e1   : > { %4539 = vmatprep.subr.msk.mxu1 %vm917_vm0, %v7812_v16 }
 0x4e4   : > { %4540 = vmatpush3.xpose.msk.msra.mxu1 %vm917_vm0, %v7812_v16 }
 0x4e5   : > { %4541 = vmatprep.subr.msk.mxu1 %vm917_vm0, %v1515_v29  ;;  %1466 = vrot.lane.b32.xlu1 %v7813_v20, %s5616_s18 }
 0x4e8   : > { %4542 = vmatpush3.xpose.msk.msra.mxu1 %vm917_vm0, %v1515_v29  ;;  %v7818_v29 = vld [vmem:[#allocation40_spill] sm:$0xff] }
 0x4e9   : > { %4543 = vmatprep.subr.msk.mxu1 %vm917_vm0, %v1513_v46  ;;  %1468 = vrot.lane.b32.xlu1 %v7814_v37, %s5616_s18 }
 0x4ec   : > { %4544 = vmatpush3.xpose.msk.msra.mxu1 %vm917_vm0, %v1513_v46 }
 0x4ed   : > { %4545 = vmatprep.subr.msk.mxu1 %vm917_vm0, %v1511_v24  ;;  %1472 = vrot.lane.b32.xlu1 %v7815_v59, %s5616_s18 }
 0x4f0   : > { %4546 = vmatpush3.xpose.msk.msra.mxu1 %vm917_vm0, %v1511_v24  ;;  %v7822_v24 = vld [vmem:[#allocation36_spill] sm:$0xff] }
 0x4f1   : > { %4547 = vmatprep.subr.msk.mxu1 %vm917_vm0, %v1509_v51  ;;  %1476 = vrot.lane.b32.xlu1 %v7816_v60, %s5616_s18 }
 0x4f2   : > { %v1262_v19 = vpop.xlane.xlu0 %1261 }
 0x4f3   : > { %5220 = vrcp.f32 %v1262_v19 }
 0x4f4   : > { %4548 = vmatpush3.xpose.msk.msra.mxu1 %vm917_vm0, %v1509_v51 }
 0x4f5   : > { %4549 = vmatprep.subr.msk.mxu1 %vm917_vm0, %v1507_v4  ;;  %1480 = vrot.lane.b32.xlu1 %v7817_v13, %s5616_s18 }
 0x4f6   : > { %v1268_v30 = vpop.xlane.xlu0 %1267 }
 0x4f8   : > { %4550 = vmatpush3.xpose.msk.msra.mxu1 %vm917_vm0, %v1507_v4 }
 0x4f9   : > { %4551 = vmatprep.subr.msk.mxu1 %vm917_vm0, %v1505_v33  ;;  %1484 = vrot.lane.b32.xlu1 %v7818_v29, %s5616_s18 }
 0x4fa   : > { %v1276_v45 = vpop.xlane.xlu0 %1275 }
 0x4fc   : > { %4552 = vmatpush3.xpose.msk.msra.mxu1 %vm917_vm0, %v1505_v33  ;;  %v1260_v11 = vpop.xlane.xlu1 %1259  ;;  %v7823_v33 = vld [vmem:[#allocation27_spill] sm:$0xff] }
 0x4fd   : > { %5222 = vrcp.f32 %v1260_v11  ;;  %1488 = vrot.lane.b32.xlu1 %v7819_v54, %s5616_s18 }
 0x4fe   : > { %v6436_v22 = vpop.xlane.xlu0 %1285  ;;  %5224 = vrcp.f32 %v1268_v30 }
 0x500   : > { %v1266_v43 = vpop.xlane.xlu1 %1265  ;;  %v5221_v16 = vpop.eup %5220 }
 0x501   : > { %1492 = vrot.lane.b32.xlu1 %v7820_v34, %s5616_s18  ;;  %5226 = vrcp.f32 %v1266_v43  ;;  %v1294_v30 = vmul.f32 %v5221_v16, %v6287_v55 }
 0x502   : > { %v1503_v27 = vpop.permute.xlu0 %1502 }
 0x503   : > { %4553 = vmatprep.subr.msk.mxu1 %vm917_vm0, %v1503_v27 }
 0x504   : > { %v1264_v23 = vpop.xlane.xlu1 %1263  ;;  %4554 = vmatpush3.xpose.msk.msra.mxu1 %vm917_vm0, %v1503_v27 }
 0x505   : > { %5228 = vrcp.f32 %v1264_v23  ;;  %1941 = vrot.lane.b32.xlu1 %v7821_v15, %s5616_s18 }
 0x506   : > { %v6444_v53 = vpop.permute.xlu0 %1470 }
 0x508   : > { %v1270_v56 = vpop.xlane.xlu1 %1269 }
 0x509   : > { %5230 = vrcp.f32 %v1270_v56  ;;  %1937 = vrot.lane.b32.xlu1 %v7822_v24, %s5616_s18  ;;  %v7824_v56 = vld [vmem:[#allocation33_spill] sm:$0xff] }
 0x50a   : > { %v5223_v46 = vpop.eup %5222  ;;  %v6448_v51 = vpop.permute.xlu0 %1474  ;;  %5232 = vrcp.f32 %v1276_v45 }
 0x50b   : > { %v1292_v4 = vmul.f32 %v5223_v46, %v6299_v12  ;;  %v5225_v43 = vpop.eup %5224 }
 0x50c   : > { %v1274_v19 = vpop.xlane.xlu1 %1273  ;;  %v1300_v45 = vmul.f32 %v5225_v43, %v6291_v9  ;;  %v7827_v9 = vld [vmem:[#allocation17_spill] sm:$0xff] }
 0x50d   : > { %1933 = vrot.lane.b32.xlu1 %v7823_v33, %s5616_s18  ;;  %4508 = vmatprep.mubr.f32.mxu1 %v1292_v4  ;;  %5234 = vrcp.f32 %v1274_v19 }
 0x50e   : > { %4509 = vmatmul.mubr.f32.gmra.mxu1 %v1294_v30  ;;  %v6454_v11 = vpop.permute.xlu0 %1478  ;;  %v5227_v23 = vpop.eup %5226  ;;  %v7825_v30 = vld [vmem:[#allocation24_spill] sm:$0xff] }
 0x50f   : > { %v1298_v4 = vmul.f32 %v5227_v23, %v6306_v52 }
 0x510   : > { %v1272_v27 = vpop.xlane.xlu1 %1271 }
 0x511   : > { %5236 = vrcp.f32 %v1272_v27  ;;  %1931 = vrot.lane.b32.xlu1 %v7824_v56, %s5616_s18 }
 0x512   : > { %v5229_v12 = vpop.eup %5228  ;;  %v6458_v46 = vpop.permute.xlu0 %1482 }
 0x513   : > { %v1296_v55 = vmul.f32 %v5229_v12, %v6310_v61  ;;  %v7826_v61 = vld [vmem:[#allocation26_spill] sm:$0xff] }
 0x514   : > { %v1278_v16 = vpop.xlane.xlu1 %1277 }
 0x515   : > { %5238 = vrcp.f32 %v1278_v16  ;;  %1927 = vrot.lane.b32.xlu1 %v7825_v30, %s5616_s18  ;;  %4511 = vmatprep.mubr.f32.mxu1 %v1296_v55 }
 0x516   : > { %v5231_v19 = vpop.eup %5230  ;;  %4512 = vmatmul.mubr.f32.gmra.mxu1 %v1298_v4  ;;  %v6465_v27 = vpop.permute.xlu0 %1486 }
 0x517   : > { %4514 = vmatprep.mubr.f32.mxu1 %v1300_v45  ;;  %v1302_v2 = vmul.f32 %v5231_v19, %v6314_v62  ;;  %v5233_v23 = vpop.eup %5232 }
 0x518   : > { %v1282_v42 = vpop.xlane.xlu1 %1281 }
 0x519   : > { %1923 = vrot.lane.b32.xlu1 %v7826_v61, %s5616_s18  ;;  %5240 = vrcp.f32 %v1282_v42  ;;  %v1308_v42 = vmul.f32 %v5233_v23, %v6295_v17 }
 0x51a   : > { %4515 = vmatmul.mubr.f32.gmra.mxu1 %v1302_v2  ;;  %v6470_v52 = vpop.permute.xlu0 %1490  ;;  %v5235_v55 = vpop.eup %5234  ;;  %v7828_v2 = vld [vmem:[#allocation19_spill] sm:$0xff] }
 0x51b   : > { %v1306_v45 = vmul.f32 %v5235_v55, %v6317_v5  ;;  %v7829_v5 = vld [vmem:[#allocation48_spill] sm:$0xff] }
 0x51c   : > { %v1280_v12 = vpop.xlane.xlu1 %1279  ;;  %v7830_v55 = vld [vmem:[#allocation44_spill] sm:$0xff] }
 0x51d   : > { %5242 = vrcp.f32 %v1280_v12  ;;  %1919 = vrot.lane.b32.xlu1 %v7827_v9, %s5616_s18 }
 0x51e   : > { %v5237_v43 = vpop.eup %5236  ;;  %v6474_v16 = vpop.permute.xlu0 %1494  ;;  %5244 = vrcp.f32 %v6436_v22 }
 0x51f   : > { %v1304_v62 = vmul.f32 %v5237_v43, %v6320_v48 }
 0x520   : > { %v1501_v4 = vpop.permute.xlu1 %1500 }
 0x521   : > { %1915 = vrot.lane.b32.xlu1 %v7828_v2, %s5616_s18  ;;  %4517 = vmatprep.mubr.f32.mxu1 %v1304_v62 }
 0x522   : > { %v5239_v19 = vpop.eup %5238  ;;  %4555 = vmatprep.subr.msk.mxu1 %vm917_vm0, %v1501_v4  ;;  %4518 = vmatmul.mubr.f32.gmra.mxu1 %v1306_v45  ;;  %v1944_v12 = vpop.permute.xlu0 %1943 }
 0x523   : > { %4556 = vmatpush3.xpose.msk.msra.mxu1 %vm917_vm0, %v1501_v4  ;;  %4520 = vmatprep.mubr.f32.mxu1 %v1308_v42  ;;  %v1310_v41 = vmul.f32 %v5239_v19, %v6323_v50  ;;  %v7831_v4 = vld [vmem:[#allocation41_spill] sm:$0xff] }
 0x524   : > { %4585 = vmatprep.subr.mxu0 %v1944_v12  ;;  %v1499_v48 = vpop.permute.xlu1 %1498 }
 0x525   : > { %4586 = vmatpush3.msra.mxu0 %v1944_v12  ;;  %2168 = vrot.lane.b32.xlu1 %v7829_v5, %s5617_s19 }
 0x526   : > { %4557 = vmatprep.subr.msk.mxu1 %vm917_vm0, %v1499_v48  ;;  %4521 = vmatmul.mubr.f32.gmra.mxu1 %v1310_v41  ;;  %v5241_v23 = vpop.eup %5240  ;;  %v7832_v41 = vld [vmem:[#allocation38_spill] sm:$0xff] }
 0x527   : > { %4558 = vmatpush3.xpose.msk.msra.mxu1 %vm917_vm0, %v1499_v48  ;;  %v1314_v62 = vmul.f32 %v5241_v23, %v6328_v18 }
 0x528   : > { %v1497_v17 = vpop.permute.xlu1 %1496 }
 0x529   : > { %2162 = vrot.lane.b32.xlu1 %v7830_v55, %s5617_s19  ;;  %4559 = vmatprep.subr.msk.mxu1 %vm917_vm0, %v1497_v17 }
 0x52a   : > { %v5243_v43 = vpop.eup %5242 }
 0x52b   : > { %4560 = vmatpush3.xpose.msk.msra.mxu1 %vm917_vm0, %v1497_v17  ;;  %v1312_v50 = vmul.f32 %v5243_v43, %v6333_v10  ;;  %v5245_v17 = vpop.eup %5244 }
 0x52c   : > { %v1465_v45 = vpop.permute.xlu1 %1464  ;;  %v1318_v43 = vmul.f32 %v5245_v17, %v6302_v36 }
 0x52d   : > { %2158 = vrot.lane.b32.xlu1 %v7831_v4, %s5617_s19  ;;  %4523 = vmatprep.mubr.f32.mxu1 %v1312_v50 }
 0x52e   : > { %4524 = vmatmul.mubr.f32.gmra.mxu1 %v1314_v62 }
 0x531   : > { %2154 = vrot.lane.b32.xlu1 %v7832_v41, %s5617_s19 }
 0x55d   : > { %v1284_v42 = vpop.xlane.xlu1 %1283 }
 0x55e   : > { %5246 = vrcp.f32 %v1284_v42 }
 0x561   : > { %v1467_v19 = vpop.permute.xlu1 %1466 }
 0x565   : > { %v1469_v12 = vpop.permute.xlu1 %1468 }
 0x569   : > { %v1473_v48 = vpop.permute.xlu1 %1472 }
 0x56b   : > { %v5247_v10 = vpop.eup %5246 }
 0x56c   : > { %v1316_v18 = vmul.f32 %v5247_v10, %v6383_v14  ;;  %v1940_v14 = vpop.permute.xlu0 %1939 }
 0x56d   : > { %v1477_v23 = vpop.permute.xlu1 %1476 }
 0x56e   : > { %4526 = vmatprep.mubr.f32.mxu1 %v1316_v18 }
 0x56f   : > { %4527 = vmatmul.mubr.f32.gmra.mxu1 %v1318_v43 }
 0x570   : > { %4561 = vmatprep.mubr.msk.f32.mxu1 %vm917_vm0, %v1465_v45  ;;  %v1936_v45 = vpop.permute.xlu0 %1935 }
 0x571   : > { %v1481_v50 = vpop.permute.xlu1 %1480 }
 0x573   : > { %4562 = vmatmul.mubr.msk.f32.vlgmr.msra.gmra.mxu1 %vm917_vm0, %v1467_v19 }
 0x574   : > { %4564 = vmatprep.mubr.msk.f32.mxu1 %vm917_vm0, %v1469_v12 }
 0x575   : > { %v1485_v22 = vpop.permute.xlu1 %1484 }
 0x577   : > { %4565 = vmatmul.mubr.msk.f32.gmra.mxu1 %vm917_vm0, %v6444_v53 }
 0x578   : > { %4567 = vmatprep.mubr.msk.f32.mxu1 %vm917_vm0, %v1473_v48 }
 0x579   : > { %v1489_v62 = vpop.permute.xlu1 %1488 }
 0x57b   : > { %4568 = vmatmul.mubr.msk.f32.gmra.mxu1 %vm917_vm0, %v6448_v51  ;;  %v1930_v51 = vpop.permute.xlu0 %1929 }
 0x57c   : > { %4570 = vmatprep.mubr.msk.f32.mxu1 %vm917_vm0, %v1477_v23 }
 0x57d   : > { %v1493_v36 = vpop.permute.xlu1 %1492 }
 0x57f   : > { %4571 = vmatmul.mubr.msk.f32.gmra.mxu1 %vm917_vm0, %v6454_v11 }
 0x580   : > { %4573 = vmatprep.mubr.msk.f32.mxu1 %vm917_vm0, %v1481_v50 }
 0x581   : > { %v1942_v42 = vpop.permute.xlu1 %1941 }
 0x582   : > { %4587 = vmatprep.subr.mxu0 %v1942_v42 }
 0x583   : > { %4574 = vmatmul.mubr.msk.f32.gmra.mxu1 %vm917_vm0, %v6458_v46  ;;  %4588 = vmatpush3.msra.mxu0 %v1942_v42  ;;  %v1926_v46 = vpop.permute.xlu0 %1925 }
 0x584   : > { %4576 = vmatprep.mubr.msk.f32.mxu1 %vm917_vm0, %v1485_v22  ;;  %4589 = vmatprep.subr.mxu0 %v1940_v14 }
 0x585   : > { %v1938_v53 = vpop.permute.xlu1 %1937  ;;  %4590 = vmatpush3.msra.mxu0 %v1940_v14 }
 0x586   : > { %4591 = vmatprep.subr.mxu0 %v1938_v53 }
 0x587   : > { %4577 = vmatmul.mubr.msk.f32.gmra.mxu1 %vm917_vm0, %v6465_v27  ;;  %4592 = vmatpush3.msra.mxu0 %v1938_v53  ;;  %v1922_v12 = vpop.permute.xlu0 %1921 }
 0x588   : > { %4579 = vmatprep.mubr.msk.f32.mxu1 %vm917_vm0, %v1489_v62  ;;  %4593 = vmatprep.subr.mxu0 %v1936_v45 }
 0x589   : > { %v1934_v11 = vpop.permute.xlu1 %1933  ;;  %4594 = vmatpush3.msra.mxu0 %v1936_v45 }
 0x58a   : > { %4595 = vmatprep.subr.mxu0 %v1934_v11 }
 0x58b   : > { %4580 = vmatmul.mubr.msk.f32.gmra.mxu1 %vm917_vm0, %v6470_v52  ;;  %4596 = vmatpush3.msra.mxu0 %v1934_v11  ;;  %v1918_v52 = vpop.permute.xlu0 %1917 }
 0x58c   : > { %4582 = vmatprep.mubr.msk.f32.mxu1 %vm917_vm0, %v1493_v36 }
 0x58d   : > { %v1932_v19 = vpop.permute.xlu1 %1931 }
 0x58e   : > { %4597 = vmatprep.subr.mxu0 %v1932_v19 }
 0x58f   : > { %4583 = vmatmul.mubr.msk.f32.gmra.mxu1 %vm917_vm0, %v6474_v16  ;;  %4598 = vmatpush3.msra.mxu0 %v1932_v19  ;;  %v1914_v10 = vpop.permute.xlu0 %1913  ;;  %v6528_v23 = vpop.f32.mrf.mxu1 }
 0x590   : > { %4599 = vmatprep.subr.mxu0 %v1930_v51  ;;  %7833 = vst [vmem:[#allocation50_spill] sm:$0xff] %v6528_v23 }
 0x591   : > { %v1928_v27 = vpop.permute.xlu1 %1927  ;;  %4600 = vmatpush3.msra.mxu0 %v1930_v51  ;;  %v6530_v43 = vpop.f32.mrf.mxu1 }
 0x592   : > { %4601 = vmatprep.subr.mxu0 %v1928_v27  ;;  %7834 = vst [vmem:[#allocation52_spill] sm:$0xff] %v6530_v43 }
 0x593   : > { %4602 = vmatpush3.msra.mxu0 %v1928_v27 }
 0x594   : > { %4603 = vmatprep.subr.mxu0 %v1926_v46 }
 0x595   : > { %v1924_v48 = vpop.permute.xlu1 %1923  ;;  %4604 = vmatpush3.msra.mxu0 %v1926_v46 }
 0x596   : > { %4605 = vmatprep.subr.mxu0 %v1924_v48 }
 0x597   : > { %4606 = vmatpush3.msra.mxu0 %v1924_v48 }
 0x598   : > { %4607 = vmatprep.subr.mxu0 %v1922_v12 }
 0x599   : > { %v1920_v17 = vpop.permute.xlu1 %1919  ;;  %4608 = vmatpush3.msra.mxu0 %v1922_v12 }
 0x59a   : > { %4609 = vmatprep.subr.mxu0 %v1920_v17 }
 0x59b   : > { %4610 = vmatpush3.msra.mxu0 %v1920_v17 }
 0x59c   : > { %4611 = vmatprep.subr.mxu0 %v1918_v52 }
 0x59d   : > { %v1916_v16 = vpop.permute.xlu1 %1915  ;;  %4612 = vmatpush3.msra.mxu0 %v1918_v52 }
 0x59e   : > { %4613 = vmatprep.subr.mxu0 %v1916_v16 }
 0x59f   : > { %4614 = vmatpush3.msra.mxu0 %v1916_v16 }
 0x5a0   : > { %4615 = vmatprep.subr.mxu0 %v1914_v10 }
 0x5a1   : > { %v6524_v18 = vpop.permute.xlu1 %2168  ;;  %4616 = vmatpush3.msra.mxu0 %v1914_v10  ;;  %v7849_v10 = vld [vmem:[#allocation32_spill] sm:$0xff] }
 0x5a2   : > { %4641 = vmatprep.subr.msk.mxu0 %vm917_vm0, %v6524_v18 }
 0x5a5   : > { %v6616_v41 = vpop.permute.xlu1 %2162 }
 0x5a9   : > { %v6620_v4 = vpop.permute.xlu1 %2158 }
 0x5ad   : > { %v6624_v55 = vpop.permute.xlu1 %2154 }
 0x5ce   : > { %v6532_v50 = vpop.f32.mrf.mxu1 }
 0x5cf   : > { %7835 = vst [vmem:[#allocation49_spill] sm:$0xff] %v6532_v50 }
 0x5d0   : > { %v6534_v22 = vpop.f32.mrf.mxu1 }
 0x5d1   : > { %7836 = vst [vmem:[#allocation51_spill] sm:$0xff] %v6534_v22 }
 0x5d6   : > { %v6536_v62 = vpop.f32.mrf.mxu1 }
 0x5d7   : > { %7837 = vst [vmem:[#allocation12_spill] sm:$0xff] %v6536_v62 }
 0x5d8   : > { %v6538_v14 = vpop.f32.mrf.mxu1 }
 0x5d9   : > { %7838 = vst [vmem:[#allocation16_spill] sm:$0xff] %v6538_v14 }
 0x5da   : > { %v6540_v36 = vpop.f32.mrf.mxu1 }
 0x5db   : > { %7839 = vst [vmem:[#allocation23_spill] sm:$0xff] %v6540_v36 }
 0x5dc   : > { %v6542_v45 = vpop.f32.mrf.mxu1 }
 0x5dd   : > { %7840 = vst [vmem:[#allocation30_spill] sm:$0xff] %v6542_v45 }
 0x5e2   : > { %v6544_v42 = vpop.f32.mrf.mxu1 }
 0x5e3   : > { %7841 = vst [vmem:[#allocation37_spill] sm:$0xff] %v6544_v42 }
 0x5e4   : > { %v6546_v53 = vpop.f32.mrf.mxu1 }
 0x5e5   : > { %7842 = vst [vmem:[#allocation40_spill] sm:$0xff] %v6546_v53 }
 0x5e6   : > { %v6548_v51 = vpop.f32.mrf.mxu1 }
 0x5e7   : > { %7843 = vst [vmem:[#allocation43_spill] sm:$0xff] %v6548_v51 }
 0x5e8   : > { %v6550_v11 = vpop.f32.mrf.mxu1 }
 0x5e9   : > { %7844 = vst [vmem:[#allocation46_spill] sm:$0xff] %v6550_v11  ;;  %v7850_v11 = vld [vmem:[#allocation28_spill] sm:$0xff] }
 0x5ee   : > { %v6552_v46 = vpop.f32.mrf.mxu1 }
 0x5ef   : > { %7845 = vst [vmem:[#allocation34_spill] sm:$0xff] %v6552_v46 }
 0x5f0   : > { %v6554_v19 = vpop.f32.mrf.mxu1 }
 0x5f1   : > { %7846 = vst [vmem:[#allocation53_spill] sm:$0xff] %v6554_v19  ;;  %v7851_v19 = vld [vmem:[#allocation25_spill] sm:$0xff] }
 0x62f   : > { %v6556_v27 = vpop.f32.mrf.mxu1 }
 0x630   : > { %7847 = vst [vmem:[#allocation54_spill] sm:$0xff] %v6556_v27 }
 0x631   : > { %v6558_v12 = vpop.f32.mrf.mxu1 }
 0x632   : > { %7848 = vst [vmem:[#allocation55_spill] sm:$0xff] %v6558_v12 }
 0x633   : > { %v4563_v48 = vpop.f32.mrf.mxu1 }
 0x634   : > { %v1738_v52 = vmul.f32 0.17677669, %v4563_v48 }
 0x635   : > { %v1658_v17 = vpop.f32.mrf.mxu1 }
 0x636   : > { %v6560_v16 = vmul.f32 0.17677669, %v1658_v17  ;;  %1755 = vmax.xlane.f32.xlu0 %v1738_v52 }
 0x637   : > { %v4566_v46 = vpop.f32.mrf.mxu1 }
 0x638   : > { %1753 = vmax.xlane.f32.xlu1 %v6560_v16  ;;  %v1740_v45 = vmul.f32 0.17677669, %v4566_v46 }
 0x639   : > { %v1668_v27 = vpop.f32.mrf.mxu1 }
 0x63a   : > { %v6569_v36 = vmul.f32 0.17677669, %v1668_v27 }
 0x63b   : > { %v4569_v12 = vpop.f32.mrf.mxu1 }
 0x63c   : > { %v6571_v62 = vmul.f32 0.17677669, %v4569_v12 }
 0x63d   : > { %v1678_v51 = vpop.f32.mrf.mxu1 }
 0x63e   : > { %v6574_v22 = vmul.f32 0.17677669, %v1678_v51 }
 0x63f   : > { %v4572_v48 = vpop.f32.mrf.mxu1 }
 0x640   : > { %v6577_v43 = vmul.f32 0.17677669, %v4572_v48 }
 0x641   : > { %v1688_v53 = vpop.f32.mrf.mxu1 }
 0x642   : > { %v6580_v23 = vmul.f32 0.17677669, %v1688_v53 }
 0x643   : > { %v4575_v17 = vpop.f32.mrf.mxu1 }
 0x644   : > { %v6583_v27 = vmul.f32 0.17677669, %v4575_v17 }
 0x645   : > { %v1698_v42 = vpop.f32.mrf.mxu1 }
 0x646   : > { %v6586_v12 = vmul.f32 0.17677669, %v1698_v42 }
 0x647   : > { %v4578_v14 = vpop.f32.mrf.mxu1 }
 0x649   : > { %2150 = vrot.lane.b32.xlu1 %v7849_v10, %s5617_s19  ;;  %v1708_v50 = vpop.f32.mrf.mxu1 }
 0x64a   : > { %v6592_v48 = vmul.f32 0.17677669, %v1708_v50  ;;  %v6610_v50 = vpop.permute.xlu0 %2166 }
 0x64b   : > { %v4581_v46 = vpop.f32.mrf.mxu1 }
 0x64c   : > { %2148 = vrot.lane.b32.xlu0 %v7850_v11, %s5617_s19  ;;  %v6595_v11 = vmul.f32 0.17677669, %v4581_v46 }
 0x64d   : > { %v1718_v51 = vpop.f32.mrf.mxu1 }
 0x64e   : > { %v6598_v17 = vmul.f32 0.17677669, %v1718_v51  ;;  %v6612_v46 = vpop.permute.xlu0 %2164 }
 0x64f   : > { %v4584_v53 = vpop.f32.mrf.mxu1 }
 0x650   : > { %2146 = vrot.lane.b32.xlu0 %v7851_v19, %s5617_s19  ;;  %v6589_v19 = vmul.f32 0.17677669, %v4578_v14  ;;  %v6601_v10 = vmul.f32 0.17677669, %v4584_v53 }
 0x651   : > { %v1728_v42 = vpop.f32.mrf.mxu1 }
 0x652   : > { %v6604_v14 = vmul.f32 0.17677669, %v1728_v42  ;;  %v6614_v51 = vpop.permute.xlu0 %2160 }
 0x656   : > { %v6618_v53 = vpop.permute.xlu0 %2156 }
 0x65a   : > { %v6622_v42 = vpop.permute.xlu0 %2152 }
 0x66d   : > { %1759 = vmax.xlane.f32.xlu1 %v1740_v45 }
 0x66f   : > { %1757 = vmax.xlane.f32.xlu0 %v6569_v36 }
 0x671   : > { %1763 = vmax.xlane.f32.xlu1 %v6571_v62 }
 0x673   : > { %1761 = vmax.xlane.f32.xlu0 %v6574_v22 }
 0x675   : > { %1767 = vmax.xlane.f32.xlu1 %v6577_v43 }
 0x677   : > { %1765 = vmax.xlane.f32.xlu0 %v6580_v23 }
 0x679   : > { %1771 = vmax.xlane.f32.xlu1 %v6583_v27 }
 0x67b   : > { %1769 = vmax.xlane.f32.xlu0 %v6586_v12 }
 0x67d   : > { %1775 = vmax.xlane.f32.xlu1 %v6589_v19 }
 0x67f   : > { %1773 = vmax.xlane.f32.xlu0 %v6592_v48 }
 0x681   : > { %1779 = vmax.xlane.f32.xlu1 %v6595_v11 }
 0x683   : > { %1777 = vmax.xlane.f32.xlu0 %v6598_v17 }
 0x685   : > { %1783 = vmax.xlane.f32.xlu1 %v6601_v10 }
 0x687   : > { %1781 = vmax.xlane.f32.xlu0 %v6604_v14 }
 0x69d   : > { %2144 = vrot.lane.b32.xlu0 %v6004_v7, %s5617_s19 }
 0x6bf   : > { %v1756_v44 = vpop.xlane.xlu0 %1755 }
 0x6c0   : > { %v1786_v5 = vsub.f32 %v1738_v52, %v1756_v44 }
 0x6c1   : > { %v1754_v3 = vpop.xlane.xlu1 %1753 }
 0x6c2   : > { %v1803_v7 = vmul.f32 1.442695, %v1786_v5  ;;  %v1785_v2 = vsub.f32 %v6560_v16, %v1754_v3 }
 0x6c3   : > { %v6633_v61 = vpop.permute.xlu0 %2148 }
 0x6c4   : > { %5248 = vpow2.f32 %v1803_v7  ;;  %v1801_v1 = vmul.f32 1.442695, %v1785_v2  ;;  %7852 = vst [vmem:[#allocation56_spill] sm:$0xff] %v6633_v61 }
 0x6c5   : > { %v6635_v8 = vpop.permute.xlu1 %2150 }
 0x6c6   : > { %5250 = vpow2.f32 %v1801_v1 }
 0x6c7   : > { %v6637_v44 = vpop.permute.xlu0 %2146 }
 0x6d1   : > { %v6627_v9 = vpop.eup %5248 }
 0x6d2   : > { %1835 = vadd.xlane.f32.xlu0 %v6627_v9 }
 0x6d3   : > { %v6630_v63 = vpop.eup %5250 }
 0x6d4   : > { %1833 = vadd.xlane.f32.xlu1 %v6630_v63 }
 0x6f6   : > { %v1760_v5 = vpop.xlane.xlu1 %1759 }
 0x6f7   : > { %v1788_v52 = vsub.f32 %v1740_v45, %v1760_v5 }
 0x6f8   : > { %v1758_v3 = vpop.xlane.xlu0 %1757 }
 0x6f9   : > { %v1807_v7 = vmul.f32 1.442695, %v1788_v52  ;;  %v1787_v1 = vsub.f32 %v6569_v36, %v1758_v3 }
 0x6fa   : > { %v1764_v2 = vpop.xlane.xlu1 %1763 }
 0x6fb   : > { %5252 = vpow2.f32 %v1807_v7  ;;  %v1805_v16 = vmul.f32 1.442695, %v1787_v1  ;;  %v1790_v30 = vsub.f32 %v6571_v62, %v1764_v2 }
 0x6fc   : > { %v1762_v38 = vpop.xlane.xlu0 %1761 }
 0x6fd   : > { %5254 = vpow2.f32 %v1805_v16  ;;  %v1811_v56 = vmul.f32 1.442695, %v1790_v30  ;;  %v1789_v21 = vsub.f32 %v6574_v22, %v1762_v38 }
 0x6fe   : > { %v1768_v33 = vpop.xlane.xlu1 %1767 }
 0x6ff   : > { %v1809_v61 = vmul.f32 1.442695, %v1789_v21  ;;  %5256 = vpow2.f32 %v1811_v56  ;;  %v1792_v45 = vsub.f32 %v6577_v43, %v1768_v33 }
 0x700   : > { %v1766_v26 = vpop.xlane.xlu0 %1765 }
 0x701   : > { %v1791_v5 = vsub.f32 %v6580_v23, %v1766_v26  ;;  %5258 = vpow2.f32 %v1809_v61  ;;  %v1815_v36 = vmul.f32 1.442695, %v1792_v45 }
 0x702   : > { %v1772_v56 = vpop.xlane.xlu1 %1771 }
 0x703   : > { %v1813_v52 = vmul.f32 1.442695, %v1791_v5  ;;  %v1794_v7 = vsub.f32 %v6583_v27, %v1772_v56 }
 0x704   : > { %v1770_v61 = vpop.xlane.xlu0 %1769 }
 0x705   : > { %5260 = vpow2.f32 %v1813_v52  ;;  %v1819_v45 = vmul.f32 1.442695, %v1794_v7  ;;  %v1793_v5 = vsub.f32 %v6586_v12, %v1770_v61 }
 0x706   : > { %5262 = vpow2.f32 %v1815_v36  ;;  %v1776_v23 = vpop.xlane.xlu1 %1775 }
 0x708   : > { %v6644_v3 = vpop.eup %5252  ;;  %v1774_v43 = vpop.xlane.xlu0 %1773 }
 0x709   : > { %1839 = vadd.xlane.f32.xlu0 %v6644_v3  ;;  %v1795_v62 = vsub.f32 %v6592_v48, %v1774_v43 }
 0x70a   : > { %v6647_v30 = vpop.eup %5254  ;;  %v1780_v22 = vpop.xlane.xlu1 %1779 }
 0x70b   : > { %1837 = vadd.xlane.f32.xlu1 %v6647_v30  ;;  %v1821_v1 = vmul.f32 1.442695, %v1795_v62  ;;  %v1798_v2 = vsub.f32 %v6595_v11, %v1780_v22 }
 0x70c   : > { %v6650_v38 = vpop.eup %5256 }
 0x70d   : > { %5264 = vpow2.f32 %v1821_v1  ;;  %v1827_v52 = vmul.f32 1.442695, %v1798_v2 }
 0x70e   : > { %v6653_v21 = vpop.eup %5258  ;;  %v1784_v16 = vpop.xlane.xlu1 %1783  ;;  %5266 = vpow2.f32 %v1819_v45 }
 0x70f   : > { %1843 = vadd.xlane.f32.xlu1 %v6650_v38  ;;  %v1800_v36 = vsub.f32 %v6601_v10, %v1784_v16  ;;  %5268 = vpow2.f32 %v1827_v52 }
 0x711   : > { %v1831_v48 = vmul.f32 1.442695, %v1800_v36 }
 0x712   : > { %v6655_v26 = vpop.eup %5260 }
 0x713   : > { %1841 = vadd.xlane.f32.xlu1 %v6653_v21  ;;  %1845 = vadd.xlane.f32.xlu0 %v6655_v26  ;;  %v6659_v33 = vpop.eup %5262 }
 0x714   : > { %7853 = vst [vmem:[#allocation57_spill] sm:$0xff] %v6659_v33 }
 0x717   : > { %1847 = vadd.xlane.f32.xlu1 %v6659_v33  ;;  %v1796_v33 = vsub.f32 %v6589_v19, %v1776_v23 }
 0x719   : > { %v1823_v27 = vmul.f32 1.442695, %v1796_v33 }
 0x71a   : > { %v6674_v61 = vpop.eup %5264 }
 0x71b   : > { %v6677_v10 = vpop.eup %5266 }
 0x71c   : > { %v6679_v23 = vpop.eup %5268 }
 0x728   : > { %2140 = vrot.lane.b32.xlu1 %v5988_v0, %s5617_s19  ;;  %v1778_v0 = vpop.xlane.xlu0 %1777 }
 0x729   : > { %2142 = vrot.lane.b32.xlu0 %v5996_v31, %s5617_s19  ;;  %v1817_v31 = vmul.f32 1.442695, %v1793_v5  ;;  %v1797_v56 = vsub.f32 %v6598_v17, %v1778_v0  ;;  %v7861_v5 = vld [vmem:[#allocation22_spill] sm:$0xff] }
 0x72b   : > { %5270 = vpow2.f32 %v1817_v31  ;;  %v1825_v43 = vmul.f32 1.442695, %v1797_v56  ;;  %v7863_v56 = vld [vmem:[#allocation13_spill] sm:$0xff] }
 0x72c   : > { %5272 = vpow2.f32 %v1831_v48  ;;  %v1782_v11 = vpop.xlane.xlu0 %1781 }
 0x72d   : > { %5274 = vpow2.f32 %v1823_v27  ;;  %v1799_v12 = vsub.f32 %v6604_v14, %v1782_v11 }
 0x72e   : > { %5276 = vpow2.f32 %v1825_v43 }
 0x72f   : > { %v1829_v19 = vmul.f32 1.442695, %v1799_v12  ;;  %v7864_v12 = vld [vmem:[#allocation17_spill] sm:$0xff] }
 0x730   : > { %v6694_v33 = vpop.permute.xlu0 %2144 }
 0x731   : > { %5278 = vpow2.f32 %v1829_v19 }
 0x738   : > { %v6683_v0 = vpop.eup %5270 }
 0x739   : > { %v6685_v31 = vpop.eup %5272 }
 0x73a   : > { %v6689_v17 = vpop.eup %5274 }
 0x73b   : > { %v6692_v14 = vpop.eup %5276 }
 0x73e   : > { %v6697_v22 = vpop.eup %5278 }
 0x748   : > { %1853 = vadd.xlane.f32.xlu0 %v6674_v61 }
 0x74c   : > { %1851 = vadd.xlane.f32.xlu1 %v6677_v10  ;;  %1859 = vadd.xlane.f32.xlu0 %v6679_v23 }
 0x750   : > { %1849 = vadd.xlane.f32.xlu1 %v6683_v0  ;;  %1863 = vadd.xlane.f32.xlu0 %v6685_v31 }
 0x754   : > { %1855 = vadd.xlane.f32.xlu1 %v6689_v17 }
 0x758   : > { %1857 = vadd.xlane.f32.xlu1 %v6692_v14 }
 0x75b   : > { %v1836_v62 = vpop.xlane.xlu0 %1835 }
 0x75c   : > { %1861 = vadd.xlane.f32.xlu1 %v6697_v22  ;;  %5280 = vrcp.f32 %v1836_v62 }
 0x75d   : > { %v1834_v7 = vpop.xlane.xlu1 %1833 }
 0x75e   : > { %5282 = vrcp.f32 %v1834_v7 }
 0x766   : > { %2138 = vrot.lane.b32.xlu0 %v5982_v25, %s5617_s19 }
 0x769   : > { %v5281_v1 = vpop.eup %5280 }
 0x76a   : > { %2108 = vrot.lane.b32.xlu0 %v7813_v20, %s5617_s19  ;;  %v1868_v45 = vmul.f32 %v5281_v1, %v6627_v9  ;;  %v7867_v1 = vld [vmem:[#allocation47_spill] sm:$0xff] }
 0x76b   : > { %v5283_v2 = vpop.eup %5282 }
 0x76c   : > { %v1866_v16 = vmul.f32 %v5283_v2, %v6630_v63  ;;  %v7854_v63 = vld [vmem:[#allocation31_spill] sm:$0xff] }
 0x76d   : > { %2106 = vrot.lane.b32.xlu1 %v5978_v32, %s5617_s19 }
 0x76e   : > { %4617 = vmatprep.mubr.f32.mxu0 %v1866_v16  ;;  %2112 = vrot.lane.b32.xlu0 %v6000_v6, %s5617_s19 }
 0x76f   : > { %4618 = vmatmul.mubr.f32.vlgmr.msra.gmra.mxu0 %v1868_v45  ;;  %v7868_v45 = vld [vmem:[#allocation48_spill] sm:$0xff] }
 0x770   : > { %4642 = vmatpush3.xpose.msk.msra.mxu0 %vm917_vm0, %v6524_v18  ;;  %v7857_v18 = vld [vmem:[#allocation29_spill] sm:$0xff] }
 0x771   : > { %4643 = vmatprep.subr.msk.mxu0 %vm917_vm0, %v6610_v50  ;;  %2110 = vrot.lane.b32.xlu1 %v7814_v37, %s5617_s19 }
 0x772   : > { %2116 = vrot.lane.b32.xlu0 %v6016_v39, %s5617_s19 }
 0x774   : > { %4644 = vmatpush3.xpose.msk.msra.mxu0 %vm917_vm0, %v6610_v50 }
 0x775   : > { %4645 = vmatprep.subr.msk.mxu0 %vm917_vm0, %v6612_v46  ;;  %2114 = vrot.lane.b32.xlu1 %v7815_v59, %s5617_s19 }
 0x776   : > { %2120 = vrot.lane.b32.xlu0 %v6032_v28, %s5617_s19 }
 0x778   : > { %4646 = vmatpush3.xpose.msk.msra.mxu0 %vm917_vm0, %v6612_v46  ;;  %v7859_v46 = vld [vmem:[#allocation20_spill] sm:$0xff] }
 0x779   : > { %4647 = vmatprep.subr.msk.mxu0 %vm917_vm0, %v6616_v41  ;;  %2118 = vrot.lane.b32.xlu1 %v7816_v60, %s5617_s19 }
 0x77a   : > { %2124 = vrot.lane.b32.xlu0 %v6049_v47, %s5617_s19 }
 0x77c   : > { %4648 = vmatpush3.xpose.msk.msra.mxu0 %vm917_vm0, %v6616_v41  ;;  %v7856_v41 = vld [vmem:[#allocation27_spill] sm:$0xff] }
 0x77d   : > { %4649 = vmatprep.subr.msk.mxu0 %vm917_vm0, %v6614_v51  ;;  %2122 = vrot.lane.b32.xlu1 %v7817_v13, %s5617_s19 }
 0x77e   : > { %2128 = vrot.lane.b32.xlu0 %v6069_v40, %s5617_s19 }
 0x780   : > { %4650 = vmatpush3.xpose.msk.msra.mxu0 %vm917_vm0, %v6614_v51 }
 0x781   : > { %4651 = vmatprep.subr.msk.mxu0 %vm917_vm0, %v6620_v4  ;;  %2126 = vrot.lane.b32.xlu1 %v7818_v29, %s5617_s19 }
 0x782   : > { %2132 = vrot.lane.b32.xlu0 %v6089_v58, %s5617_s19 }
 0x784   : > { %4652 = vmatpush3.xpose.msk.msra.mxu0 %vm917_vm0, %v6620_v4  ;;  %v7855_v4 = vld [vmem:[#allocation56_spill] sm:$0xff] }
 0x785   : > { %4653 = vmatprep.subr.msk.mxu0 %vm917_vm0, %v6618_v53  ;;  %2130 = vrot.lane.b32.xlu1 %v7819_v54, %s5617_s19 }
 0x786   : > { %2136 = vrot.lane.b32.xlu0 %v6109_v49, %s5617_s19 }
 0x788   : > { %4654 = vmatpush3.xpose.msk.msra.mxu0 %vm917_vm0, %v6618_v53 }
 0x789   : > { %4655 = vmatprep.subr.msk.mxu0 %vm917_vm0, %v6624_v55  ;;  %2134 = vrot.lane.b32.xlu1 %v7820_v34, %s5617_s19 }
 0x78a   : > { %2569 = vrot.lane.b32.xlu0 %v6042_v35, %s5617_s19 }
 0x78c   : > { %4656 = vmatpush3.xpose.msk.msra.mxu0 %vm917_vm0, %v6624_v55 }
 0x78d   : > { %4657 = vmatprep.subr.msk.mxu0 %vm917_vm0, %v6622_v42  ;;  %2567 = vrot.lane.b32.xlu1 %v7821_v15, %s5617_s19 }
 0x78e   : > { %2565 = vrot.lane.b32.xlu0 %v6051_v57, %s5617_s19 }
 0x790   : > { %4658 = vmatpush3.xpose.msk.msra.mxu0 %vm917_vm0, %v6622_v42  ;;  %v7860_v42 = vld [vmem:[#allocation24_spill] sm:$0xff] }
 0x791   : > { %4659 = vmatprep.subr.msk.mxu0 %vm917_vm0, %v6635_v8  ;;  %2563 = vrot.lane.b32.xlu1 %v7822_v24, %s5617_s19 }
 0x792   : > { %2561 = vrot.lane.b32.xlu0 %v7854_v63, %s5617_s19  ;;  %v1840_v9 = vpop.xlane.xlu0 %1839 }
 0x793   : > { %5284 = vrcp.f32 %v1840_v9 }
 0x794   : > { %4660 = vmatpush3.xpose.msk.msra.mxu0 %vm917_vm0, %v6635_v8  ;;  %v1838_v55 = vpop.xlane.xlu1 %1837  ;;  %v7858_v8 = vld [vmem:[#allocation33_spill] sm:$0xff] }
 0x795   : > { %5286 = vrcp.f32 %v1838_v55  ;;  %4661 = vmatprep.subr.msk.mxu0 %vm917_vm0, %v7855_v4  ;;  %2559 = vrot.lane.b32.xlu1 %v7856_v41, %s5617_s19 }
 0x796   : > { %2555 = vrot.lane.b32.xlu0 %v7857_v18, %s5617_s19 }
 0x798   : > { %4662 = vmatpush3.xpose.msk.msra.mxu0 %vm917_vm0, %v7855_v4  ;;  %v1844_v50 = vpop.xlane.xlu1 %1843  ;;  %v7869_v4 = vld [vmem:[#allocation45_spill] sm:$0xff] }
 0x799   : > { %4663 = vmatprep.subr.msk.mxu0 %vm917_vm0, %v6637_v44  ;;  %2557 = vrot.lane.b32.xlu1 %v7858_v8, %s5617_s19  ;;  %5288 = vrcp.f32 %v1844_v50  ;;  %v7870_v50 = vld [vmem:[#allocation57_spill] sm:$0xff] }
 0x79a   : > { %2551 = vrot.lane.b32.xlu0 %v7859_v46, %s5617_s19 }
 0x79c   : > { %4664 = vmatpush3.xpose.msk.msra.mxu0 %vm917_vm0, %v6637_v44  ;;  %v1842_v51 = vpop.xlane.xlu1 %1841  ;;  %v1846_v53 = vpop.xlane.xlu0 %1845  ;;  %v7862_v44 = vld [vmem:[#allocation26_spill] sm:$0xff] }
 0x79d   : > { %5290 = vrcp.f32 %v1842_v51  ;;  %4665 = vmatprep.subr.msk.mxu0 %vm917_vm0, %v6694_v33  ;;  %2553 = vrot.lane.b32.xlu1 %v7860_v42, %s5617_s19 }
 0x79e   : > { %5292 = vrcp.f32 %v1846_v53  ;;  %2547 = vrot.lane.b32.xlu0 %v7861_v5, %s5617_s19  ;;  %v7871_v53 = vld [vmem:[#allocation44_spill] sm:$0xff] }
 0x7a0   : > { %4666 = vmatpush3.xpose.msk.msra.mxu0 %vm917_vm0, %v6694_v33  ;;  %v1848_v52 = vpop.xlane.xlu1 %1847  ;;  %v2143_v36 = vpop.permute.xlu0 %2142  ;;  %v7865_v33 = vld [vmem:[#allocation15_spill] sm:$0xff] }
 0x7a1   : > { %v5285_v48 = vpop.eup %5284  ;;  %5294 = vrcp.f32 %v1848_v52  ;;  %2549 = vrot.lane.b32.xlu1 %v7862_v44, %s5617_s19  ;;  %4667 = vmatprep.subr.msk.mxu0 %vm917_vm0, %v2143_v36  ;;  %v7875_v52 = vld [vmem:[#allocation38_spill] sm:$0xff] }
 0x7a2   : > { %v5287_v27 = vpop.eup %5286  ;;  %2543 = vrot.lane.b32.xlu0 %v7863_v56, %s5617_s19  ;;  %v1872_v19 = vmul.f32 %v5285_v48, %v6644_v3  ;;  %v7877_v48 = vld [vmem:[#allocation32_spill] sm:$0xff] }
 0x7a3   : > { %v1870_v11 = vmul.f32 %v5287_v27, %v6647_v30  ;;  %v7866_v30 = vld [vmem:[#allocation19_spill] sm:$0xff]  ;;  %v7878_v27 = vld [vmem:[#allocation28_spill] sm:$0xff] }
 0x7a4   : > { %4668 = vmatpush3.xpose.msk.msra.mxu0 %vm917_vm0, %v2143_v36  ;;  %v2141_v43 = vpop.permute.xlu1 %2140  ;;  %v7876_v36 = vld [vmem:[#allocation35_spill] sm:$0xff] }
 0x7a5   : > { %2545 = vrot.lane.b32.xlu1 %v7864_v12, %s5617_s19  ;;  %4620 = vmatprep.mubr.f32.mxu0 %v1870_v11  ;;  %v7879_v11 = vld [vmem:[#allocation25_spill] sm:$0xff] }
 0x7a6   : > { %4669 = vmatprep.subr.msk.mxu0 %vm917_vm0, %v2141_v43  ;;  %2539 = vrot.lane.b32.xlu0 %v7865_v33, %s5617_s19  ;;  %v5289_v62 = vpop.eup %5288 }
 0x7a7   : > { %4621 = vmatmul.mubr.f32.gmra.mxu0 %v1872_v19  ;;  %v1876_v16 = vmul.f32 %v5289_v62, %v6650_v38  ;;  %v7873_v38 = vld [vmem:[#allocation41_spill] sm:$0xff] }
 0x7a8   : > { %4670 = vmatpush3.xpose.msk.msra.mxu0 %vm917_vm0, %v2141_v43 }
 0x7a9   : > { %2541 = vrot.lane.b32.xlu1 %v7866_v30, %s5617_s19 }
 0x7aa   : > { %v5291_v7 = vpop.eup %5290  ;;  %2792 = vrot.lane.b32.xlu0 %v7867_v1, %s5618_s14 }
 0x7ab   : > { %v5293_v2 = vpop.eup %5292  ;;  %v1874_v3 = vmul.f32 %v5291_v7, %v6653_v21  ;;  %v7872_v21 = vld [vmem:[#allocation42_spill] sm:$0xff] }
 0x7ac   : > { %v1878_v9 = vmul.f32 %v5293_v2, %v6655_v26  ;;  %v7874_v26 = vld [vmem:[#allocation39_spill] sm:$0xff] }
 0x7ad   : > { %2794 = vrot.lane.b32.xlu1 %v7868_v45, %s5618_s14  ;;  %4623 = vmatprep.mubr.f32.mxu0 %v1874_v3 }
 0x7ae   : > { %v5295_v55 = vpop.eup %5294  ;;  %2790 = vrot.lane.b32.xlu0 %v7869_v4, %s5618_s14  ;;  %4624 = vmatmul.mubr.f32.gmra.mxu0 %v1876_v16 }
 0x7af   : > { %4626 = vmatprep.mubr.f32.mxu0 %v1878_v9  ;;  %v1880_v51 = vmul.f32 %v5295_v55, %v7870_v50 }
 0x7b1   : > { %2788 = vrot.lane.b32.xlu1 %v7871_v53, %s5618_s14 }
 0x7b2   : > { %2786 = vrot.lane.b32.xlu0 %v7872_v21, %s5618_s14  ;;  %4627 = vmatmul.mubr.f32.gmra.mxu0 %v1880_v51 }
 0x7b5   : > { %2784 = vrot.lane.b32.xlu1 %v7873_v38, %s5618_s14 }
 0x7b6   : > { %2782 = vrot.lane.b32.xlu0 %v7874_v26, %s5618_s14 }
 0x7b9   : > { %2780 = vrot.lane.b32.xlu1 %v7875_v52, %s5618_s14 }
 0x7ba   : > { %2778 = vrot.lane.b32.xlu0 %v7876_v36, %s5618_s14 }
 0x7bd   : > { %2776 = vrot.lane.b32.xlu1 %v7877_v48, %s5618_s14 }
 0x7be   : > { %2774 = vrot.lane.b32.xlu0 %v7878_v27, %s5618_s14 }
 0x7c2   : > { %2772 = vrot.lane.b32.xlu0 %v7879_v11, %s5618_s14 }
 0x7d1   : > { %v1854_v43 = vpop.xlane.xlu0 %1853 }
 0x7d2   : > { %5296 = vrcp.f32 %v1854_v43 }
 0x7d5   : > { %v1852_v19 = vpop.xlane.xlu1 %1851  ;;  %v1860_v62 = vpop.xlane.xlu0 %1859 }
 0x7d6   : > { %5298 = vrcp.f32 %v1852_v19 }
 0x7d9   : > { %v1850_v7 = vpop.xlane.xlu1 %1849  ;;  %v1864_v1 = vpop.xlane.xlu0 %1863 }
 0x7da   : > { %5300 = vrcp.f32 %v1850_v7 }
 0x7dd   : > { %v1856_v2 = vpop.xlane.xlu1 %1855  ;;  %v2139_v3 = vpop.permute.xlu0 %2138 }
 0x7de   : > { %5302 = vrcp.f32 %v1856_v2  ;;  %4671 = vmatprep.subr.msk.mxu0 %vm917_vm0, %v2139_v3 }
 0x7df   : > { %4672 = vmatpush3.xpose.msk.msra.mxu0 %vm917_vm0, %v2139_v3  ;;  %5304 = vrcp.f32 %v1860_v62  ;;  %v5297_v9 = vpop.eup %5296 }
 0x7e0   : > { %v1886_v52 = vmul.f32 %v5297_v9, %v6674_v61 }
 0x7e1   : > { %v1858_v16 = vpop.xlane.xlu1 %1857  ;;  %v2109_v45 = vpop.permute.xlu0 %2108 }
 0x7e2   : > { %5306 = vrcp.f32 %v1858_v16 }
 0x7e3   : > { %5308 = vrcp.f32 %v1864_v1  ;;  %v5299_v50 = vpop.eup %5298 }
 0x7e4   : > { %v1884_v26 = vmul.f32 %v5299_v50, %v6677_v10 }
 0x7e5   : > { %v1862_v55 = vpop.xlane.xlu1 %1861  ;;  %v2113_v4 = vpop.permute.xlu0 %2112 }
 0x7e6   : > { %5310 = vrcp.f32 %v1862_v55 }
 0x7e7   : > { %v5301_v51 = vpop.eup %5300 }
 0x7e8   : > { %v1882_v53 = vmul.f32 %v5301_v51, %v6683_v0 }
 0x7e9   : > { %v2107_v21 = vpop.permute.xlu1 %2106  ;;  %v2117_v38 = vpop.permute.xlu0 %2116 }
 0x7ea   : > { %4629 = vmatprep.mubr.f32.mxu0 %v1882_v53 }
 0x7eb   : > { %v5303_v36 = vpop.eup %5302  ;;  %4630 = vmatmul.mubr.f32.gmra.mxu0 %v1884_v26 }
 0x7ec   : > { %4632 = vmatprep.mubr.f32.mxu0 %v1886_v52  ;;  %v1888_v48 = vmul.f32 %v5303_v36, %v6689_v17  ;;  %v5305_v43 = vpop.eup %5304 }
 0x7ed   : > { %v2111_v27 = vpop.permute.xlu1 %2110  ;;  %v2121_v11 = vpop.permute.xlu0 %2120  ;;  %v1892_v1 = vmul.f32 %v5305_v43, %v6679_v23 }
 0x7ef   : > { %v5307_v19 = vpop.eup %5306  ;;  %4633 = vmatmul.mubr.f32.gmra.mxu0 %v1888_v48 }
 0x7f0   : > { %v1890_v62 = vmul.f32 %v5307_v19, %v6692_v14  ;;  %v5309_v10 = vpop.eup %5308 }
 0x7f1   : > { %v2115_v0 = vpop.permute.xlu1 %2114  ;;  %v2125_v7 = vpop.permute.xlu0 %2124  ;;  %v1896_v17 = vmul.f32 %v5309_v10, %v6685_v31 }
 0x7f2   : > { %4635 = vmatprep.mubr.f32.mxu0 %v1890_v62 }
 0x7f3   : > { %v5311_v2 = vpop.eup %5310  ;;  %4636 = vmatmul.mubr.f32.gmra.mxu0 %v1892_v1 }
 0x7f4   : > { %v1894_v61 = vmul.f32 %v5311_v2, %v6697_v22 }
 0x7f5   : > { %v2119_v3 = vpop.permute.xlu1 %2118  ;;  %v2129_v16 = vpop.permute.xlu0 %2128 }
 0x7f6   : > { %4638 = vmatprep.mubr.f32.mxu0 %v1894_v61 }
 0x7f7   : > { %4639 = vmatmul.mubr.f32.gmra.mxu0 %v1896_v17 }
 0x7f8   : > { %4673 = vmatprep.mubr.msk.f32.mxu0 %vm917_vm0, %v2107_v21 }
 0x7f9   : > { %v2123_v9 = vpop.permute.xlu1 %2122  ;;  %v2133_v14 = vpop.permute.xlu0 %2132 }
 0x7fb   : > { %4674 = vmatmul.mubr.msk.f32.vlgmr.msra.gmra.mxu0 %vm917_vm0, %v2109_v45 }
 0x7fc   : > { %4676 = vmatprep.mubr.msk.f32.mxu0 %vm917_vm0, %v2111_v27 }
 0x7fd   : > { %v2127_v23 = vpop.permute.xlu1 %2126  ;;  %v2137_v55 = vpop.permute.xlu0 %2136 }
 0x7ff   : > { %4677 = vmatmul.mubr.msk.f32.gmra.mxu0 %vm917_vm0, %v2113_v4 }
 0x800   : > { %4679 = vmatprep.mubr.msk.f32.mxu0 %vm917_vm0, %v2115_v0 }
 0x801   : > { %v2131_v22 = vpop.permute.xlu1 %2130  ;;  %v2570_v50 = vpop.permute.xlu0 %2569 }
 0x802   : > { %4697 = vmatprep.subr.mxu1 %v2570_v50 }
 0x803   : > { %4680 = vmatmul.mubr.msk.f32.gmra.mxu0 %vm917_vm0, %v2117_v38  ;;  %4698 = vmatpush3.msra.mxu1 %v2570_v50 }
 0x804   : > { %4682 = vmatprep.mubr.msk.f32.mxu0 %vm917_vm0, %v2119_v3 }
 0x805   : > { %v2135_v31 = vpop.permute.xlu1 %2134  ;;  %v2566_v51 = vpop.permute.xlu0 %2565 }
 0x807   : > { %4683 = vmatmul.mubr.msk.f32.gmra.mxu0 %vm917_vm0, %v2121_v11 }
 0x808   : > { %4685 = vmatprep.mubr.msk.f32.mxu0 %vm917_vm0, %v2123_v9 }
 0x809   : > { %v2568_v45 = vpop.permute.xlu1 %2567  ;;  %v2562_v53 = vpop.permute.xlu0 %2561 }
 0x80a   : > { %4699 = vmatprep.subr.mxu1 %v2568_v45 }
 0x80b   : > { %4686 = vmatmul.mubr.msk.f32.gmra.mxu0 %vm917_vm0, %v2125_v7  ;;  %4700 = vmatpush3.msra.mxu1 %v2568_v45 }
 0x80c   : > { %4688 = vmatprep.mubr.msk.f32.mxu0 %vm917_vm0, %v2127_v23  ;;  %4701 = vmatprep.subr.mxu1 %v2566_v51 }
 0x80d   : > { %v2564_v4 = vpop.permute.xlu1 %2563  ;;  %4702 = vmatpush3.msra.mxu1 %v2566_v51  ;;  %v2556_v21 = vpop.permute.xlu0 %2555 }
 0x80e   : > { %4703 = vmatprep.subr.mxu1 %v2564_v4 }
 0x80f   : > { %4689 = vmatmul.mubr.msk.f32.gmra.mxu0 %vm917_vm0, %v2129_v16  ;;  %4704 = vmatpush3.msra.mxu1 %v2564_v4 }
 0x810   : > { %4691 = vmatprep.mubr.msk.f32.mxu0 %vm917_vm0, %v2131_v22  ;;  %4705 = vmatprep.subr.mxu1 %v2562_v53 }
 0x811   : > { %v2560_v38 = vpop.permute.xlu1 %2559  ;;  %4706 = vmatpush3.msra.mxu1 %v2562_v53  ;;  %v2552_v26 = vpop.permute.xlu0 %2551 }
 0x812   : > { %4707 = vmatprep.subr.mxu1 %v2560_v38 }
 0x813   : > { %4692 = vmatmul.mubr.msk.f32.gmra.mxu0 %vm917_vm0, %v2133_v14  ;;  %4708 = vmatpush3.msra.mxu1 %v2560_v38 }
 0x814   : > { %4694 = vmatprep.mubr.msk.f32.mxu0 %vm917_vm0, %v2135_v31 }
 0x815   : > { %v2558_v52 = vpop.permute.xlu1 %2557  ;;  %v2548_v48 = vpop.permute.xlu0 %2547 }
 0x816   : > { %4709 = vmatprep.subr.mxu1 %v2558_v52 }
 0x817   : > { %4695 = vmatmul.mubr.msk.f32.gmra.mxu0 %vm917_vm0, %v2137_v55  ;;  %4710 = vmatpush3.msra.mxu1 %v2558_v52 }
 0x818   : > { %4711 = vmatprep.subr.mxu1 %v2556_v21 }
 0x819   : > { %v2554_v36 = vpop.permute.xlu1 %2553  ;;  %4712 = vmatpush3.msra.mxu1 %v2556_v21  ;;  %v2544_v11 = vpop.permute.xlu0 %2543 }
 0x81a   : > { %4713 = vmatprep.subr.mxu1 %v2554_v36 }
 0x81b   : > { %4714 = vmatpush3.msra.mxu1 %v2554_v36 }
 0x81c   : > { %4715 = vmatprep.subr.mxu1 %v2552_v26 }
 0x81d   : > { %v2550_v27 = vpop.permute.xlu1 %2549  ;;  %4716 = vmatpush3.msra.mxu1 %v2552_v26  ;;  %v2540_v62 = vpop.permute.xlu0 %2539 }
 0x81e   : > { %4717 = vmatprep.subr.mxu1 %v2550_v27 }
 0x81f   : > { %4718 = vmatpush3.msra.mxu1 %v2550_v27 }
 0x820   : > { %4719 = vmatprep.subr.mxu1 %v2548_v48 }
 0x821   : > { %v2546_v43 = vpop.permute.xlu1 %2545  ;;  %4720 = vmatpush3.msra.mxu1 %v2548_v48 }
 0x822   : > { %4721 = vmatprep.subr.mxu1 %v2546_v43 }
 0x823   : > { %4722 = vmatpush3.msra.mxu1 %v2546_v43 }
 0x824   : > { %4723 = vmatprep.subr.mxu1 %v2544_v11 }
 0x825   : > { %v2542_v19 = vpop.permute.xlu1 %2541  ;;  %4724 = vmatpush3.msra.mxu1 %v2544_v11 }
 0x826   : > { %4725 = vmatprep.subr.mxu1 %v2542_v19 }
 0x827   : > { %4726 = vmatpush3.msra.mxu1 %v2542_v19 }
 0x828   : > { %4727 = vmatprep.subr.mxu1 %v2540_v62 }
 0x829   : > { %v6878_v0 = vpop.permute.xlu1 %2794  ;;  %4728 = vmatpush3.msra.mxu1 %v2540_v62 }
 0x82a   : > { %4753 = vmatprep.subr.msk.mxu1 %vm917_vm0, %v6878_v0 }
 0x82f   : > { %v6882_v7 = vpop.f32.mrf.mxu0 }
 0x830   : > { %7880 = vst [vmem:[#allocation31_spill] sm:$0xff] %v6882_v7 }
 0x831   : > { %v6884_v1 = vpop.f32.mrf.mxu0 }
 0x832   : > { %7881 = vst [vmem:[#allocation56_spill] sm:$0xff] %v6884_v1 }
 0x867   : > { %v6888_v2 = vpop.f32.mrf.mxu0 }
 0x868   : > { %7882 = vst [vmem:[#allocation33_spill] sm:$0xff] %v6888_v2 }
 0x869   : > { %v6890_v61 = vpop.f32.mrf.mxu0 }
 0x86a   : > { %7883 = vst [vmem:[#allocation24_spill] sm:$0xff] %v6890_v61 }
 0x86e   : > { %v6894_v16 = vpop.f32.mrf.mxu0 }
 0x86f   : > { %7884 = vst [vmem:[#allocation47_spill] sm:$0xff] %v6894_v16 }
 0x870   : > { %v6896_v17 = vpop.f32.mrf.mxu0 }
 0x871   : > { %7885 = vst [vmem:[#allocation48_spill] sm:$0xff] %v6896_v17  ;;  %v7896_v17 = vld [vmem:[#allocation21_spill] sm:$0xff] }
 0x872   : > { %v6900_v14 = vpop.f32.mrf.mxu0 }
 0x873   : > { %7886 = vst [vmem:[#allocation45_spill] sm:$0xff] %v6900_v14 }
 0x874   : > { %v6902_v23 = vpop.f32.mrf.mxu0 }
 0x875   : > { %7887 = vst [vmem:[#allocation57_spill] sm:$0xff] %v6902_v23 }
 0x8ab   : > { %v6906_v22 = vpop.f32.mrf.mxu0 }
 0x8ac   : > { %7888 = vst [vmem:[#allocation44_spill] sm:$0xff] %v6906_v22 }
 0x8ad   : > { %v6908_v50 = vpop.f32.mrf.mxu0 }
 0x8ae   : > { %7889 = vst [vmem:[#allocation42_spill] sm:$0xff] %v6908_v50 }
 0x8af   : > { %v6912_v51 = vpop.f32.mrf.mxu0 }
 0x8b0   : > { %7890 = vst [vmem:[#allocation41_spill] sm:$0xff] %v6912_v51  ;;  %v6985_v51 = vpop.permute.xlu1 %2788 }
 0x8b1   : > { %v6914_v45 = vpop.f32.mrf.mxu0 }
 0x8b2   : > { %7891 = vst [vmem:[#allocation39_spill] sm:$0xff] %v6914_v45 }
 0x8b3   : > { %v6918_v4 = vpop.f32.mrf.mxu0 }
 0x8b4   : > { %7892 = vst [vmem:[#allocation38_spill] sm:$0xff] %v6918_v4 }
 0x8b5   : > { %v6920_v21 = vpop.f32.mrf.mxu0 }
 0x8b6   : > { %7893 = vst [vmem:[#allocation35_spill] sm:$0xff] %v6920_v21 }
 0x8b7   : > { %v6924_v26 = vpop.f32.mrf.mxu0 }
 0x8b8   : > { %7894 = vst [vmem:[#allocation32_spill] sm:$0xff] %v6924_v26 }
 0x8b9   : > { %v6926_v52 = vpop.f32.mrf.mxu0 }
 0x8ba   : > { %7895 = vst [vmem:[#allocation28_spill] sm:$0xff] %v6926_v52 }
 0x8bb   : > { %v4675_v48 = vpop.f32.mrf.mxu0 }
 0x8bc   : > { %v2380_v27 = vmul.f32 0.17677669, %v4675_v48 }
 0x8bd   : > { %v2300_v11 = vpop.f32.mrf.mxu0 }
 0x8be   : > { %v6930_v43 = vmul.f32 0.17677669, %v2300_v11  ;;  %2397 = vmax.xlane.f32.xlu0 %v2380_v27 }
 0x8bf   : > { %v4678_v19 = vpop.f32.mrf.mxu0 }
 0x8c0   : > { %2395 = vmax.xlane.f32.xlu1 %v6930_v43  ;;  %v6933_v55 = vmul.f32 0.17677669, %v4678_v19 }
 0x8c1   : > { %v2310_v62 = vpop.f32.mrf.mxu0 }
 0x8c2   : > { %v6935_v38 = vmul.f32 0.17677669, %v2310_v62 }
 0x8c3   : > { %v4681_v9 = vpop.f32.mrf.mxu0 }
 0x8c4   : > { %2401 = vmax.xlane.f32.xlu1 %v6933_v55  ;;  %2399 = vmax.xlane.f32.xlu0 %v6935_v38  ;;  %v6939_v53 = vmul.f32 0.17677669, %v4681_v9 }
 0x8c5   : > { %v2320_v36 = vpop.f32.mrf.mxu0 }
 0x8c6   : > { %v6941_v48 = vmul.f32 0.17677669, %v2320_v36 }
 0x8c7   : > { %v4684_v11 = vpop.f32.mrf.mxu0 }
 0x8c8   : > { %2405 = vmax.xlane.f32.xlu1 %v6939_v53  ;;  %2403 = vmax.xlane.f32.xlu0 %v6941_v48  ;;  %v6945_v19 = vmul.f32 0.17677669, %v4684_v11 }
 0x8c9   : > { %v2330_v10 = vpop.f32.mrf.mxu0 }
 0x8ca   : > { %v6947_v62 = vmul.f32 0.17677669, %v2330_v10 }
 0x8cb   : > { %v4687_v3 = vpop.f32.mrf.mxu0 }
 0x8cc   : > { %2409 = vmax.xlane.f32.xlu1 %v6945_v19  ;;  %2407 = vmax.xlane.f32.xlu0 %v6947_v62  ;;  %v6951_v9 = vmul.f32 0.17677669, %v4687_v3 }
 0x8cd   : > { %v2340_v31 = vpop.f32.mrf.mxu0 }
 0x8ce   : > { %v6953_v36 = vmul.f32 0.17677669, %v2340_v31 }
 0x8cf   : > { %v4690_v52 = vpop.f32.mrf.mxu0 }
 0x8d0   : > { %2413 = vmax.xlane.f32.xlu1 %v6951_v9  ;;  %2411 = vmax.xlane.f32.xlu0 %v6953_v36  ;;  %v6957_v11 = vmul.f32 0.17677669, %v4690_v52 }
 0x8d1   : > { %v2350_v26 = vpop.f32.mrf.mxu0 }
 0x8d2   : > { %v6959_v10 = vmul.f32 0.17677669, %v2350_v26 }
 0x8d3   : > { %v4693_v21 = vpop.f32.mrf.mxu0 }
 0x8d4   : > { %2417 = vmax.xlane.f32.xlu1 %v6957_v11  ;;  %2415 = vmax.xlane.f32.xlu0 %v6959_v10  ;;  %v6963_v3 = vmul.f32 0.17677669, %v4693_v21  ;;  %v6977_v21 = vpop.permute.xlu0 %2792 }
 0x8d5   : > { %v2360_v4 = vpop.f32.mrf.mxu0 }
 0x8d6   : > { %v6965_v31 = vmul.f32 0.17677669, %v2360_v4 }
 0x8d7   : > { %v4696_v23 = vpop.f32.mrf.mxu0 }
 0x8d8   : > { %2421 = vmax.xlane.f32.xlu1 %v6963_v3  ;;  %2419 = vmax.xlane.f32.xlu0 %v6965_v31  ;;  %v6969_v52 = vmul.f32 0.17677669, %v4696_v23  ;;  %v6979_v4 = vpop.permute.xlu0 %2790 }
 0x8d9   : > { %v2370_v14 = vpop.f32.mrf.mxu0 }
 0x8da   : > { %v6971_v26 = vmul.f32 0.17677669, %v2370_v14  ;;  %v6989_v14 = vpop.permute.xlu1 %2784 }
 0x8dc   : > { %2425 = vmax.xlane.f32.xlu1 %v6969_v52  ;;  %2423 = vmax.xlane.f32.xlu0 %v6971_v26  ;;  %v6981_v16 = vpop.permute.xlu0 %2786 }
 0x8de   : > { %v6993_v7 = vpop.permute.xlu1 %2780 }
 0x8e0   : > { %v6983_v45 = vpop.permute.xlu0 %2782 }
 0x8e4   : > { %v6987_v23 = vpop.permute.xlu0 %2778 }
 0x8e5   : > { %7897 = vst [vmem:[#allocation25_spill] sm:$0xff] %v6987_v23 }
 0x8e8   : > { %v6991_v1 = vpop.permute.xlu0 %2774 }
 0x8e9   : > { %7898 = vst [vmem:[#allocation21_spill] sm:$0xff] %v6991_v1 }
 0x8ec   : > { %v6995_v61 = vpop.permute.xlu0 %2772 }
 0x8ed   : > { %7899 = vst [vmem:[#allocation58_spill] sm:$0xff] %v6995_v61 }
 0x8f2   : > { %2770 = vrot.lane.b32.xlu0 %v7896_v17, %s5618_s14  ;;  %v6997_v17 = vpop.permute.xlu1 %2776 }
 0x8f3   : > { %7900 = vst [vmem:[#allocation59_spill] sm:$0xff] %v6997_v17 }
 0x947   : > { %v2398_v2 = vpop.xlane.xlu0 %2397 }
 0x948   : > { %v2428_v50 = vsub.f32 %v2380_v27, %v2398_v2 }
 0x949   : > { %v2396_v22 = vpop.xlane.xlu1 %2395 }
 0x94a   : > { %v2445_v30 = vmul.f32 1.442695, %v2428_v50  ;;  %v2427_v12 = vsub.f32 %v6930_v43, %v2396_v22 }
 0x94c   : > { %5312 = vpow2.f32 %v2445_v30  ;;  %v2443_v33 = vmul.f32 1.442695, %v2427_v12 }
 0x94d   : > { %v2402_v44 = vpop.xlane.xlu1 %2401  ;;  %v2400_v56 = vpop.xlane.xlu0 %2399 }
 0x94e   : > { %5314 = vpow2.f32 %v2443_v33  ;;  %v2430_v5 = vsub.f32 %v6933_v55, %v2402_v44  ;;  %v2429_v46 = vsub.f32 %v6935_v38, %v2400_v56 }
 0x950   : > { %v2449_v1 = vmul.f32 1.442695, %v2430_v5  ;;  %v2447_v18 = vmul.f32 1.442695, %v2429_v46 }
 0x951   : > { %v2406_v61 = vpop.xlane.xlu1 %2405  ;;  %v2404_v41 = vpop.xlane.xlu0 %2403 }
 0x952   : > { %5316 = vpow2.f32 %v2449_v1  ;;  %v2432_v2 = vsub.f32 %v6939_v53, %v2406_v61  ;;  %v2431_v50 = vsub.f32 %v6941_v48, %v2404_v41  ;;  %v7901_v48 = vld [vmem:[#allocation14_spill] sm:$0xff] }
 0x953   : > { %5318 = vpow2.f32 %v2447_v18 }
 0x954   : > { %v2453_v22 = vmul.f32 1.442695, %v2432_v2  ;;  %v2451_v27 = vmul.f32 1.442695, %v2431_v50 }
 0x955   : > { %v2410_v30 = vpop.xlane.xlu1 %2409  ;;  %v2408_v12 = vpop.xlane.xlu0 %2407 }
 0x956   : > { %5320 = vpow2.f32 %v2453_v22  ;;  %v2433_v33 = vsub.f32 %v6947_v62, %v2408_v12  ;;  %v2434_v44 = vsub.f32 %v6945_v19, %v2410_v30  ;;  %v7902_v62 = vld [vmem:[#allocation18_spill] sm:$0xff] }
 0x957   : > { %5322 = vpow2.f32 %v2451_v27 }
 0x958   : > { %v2455_v56 = vmul.f32 1.442695, %v2433_v33  ;;  %v2457_v1 = vmul.f32 1.442695, %v2434_v44 }
 0x959   : > { %v7006_v5 = vpop.eup %5312  ;;  %v2414_v43 = vpop.xlane.xlu1 %2413 }
 0x95a   : > { %2477 = vadd.xlane.f32.xlu0 %v7006_v5  ;;  %5324 = vpow2.f32 %v2455_v56  ;;  %v2412_v19 = vpop.xlane.xlu0 %2411  ;;  %v2436_v12 = vsub.f32 %v6951_v9, %v2414_v43 }
 0x95b   : > { %v7009_v46 = vpop.eup %5314  ;;  %5326 = vpow2.f32 %v2457_v1  ;;  %v2435_v1 = vsub.f32 %v6953_v36, %v2412_v19 }
 0x95c   : > { %2475 = vadd.xlane.f32.xlu1 %v7009_v46  ;;  %v2461_v56 = vmul.f32 1.442695, %v2436_v12 }
 0x95d   : > { %v2418_v2 = vpop.xlane.xlu1 %2417 }
 0x95e   : > { %v2416_v50 = vpop.xlane.xlu0 %2415  ;;  %v2438_v23 = vsub.f32 %v6957_v11, %v2418_v2 }
 0x95f   : > { %v7012_v41 = vpop.eup %5316  ;;  %v2437_v30 = vsub.f32 %v6959_v10, %v2416_v50 }
 0x960   : > { %v7014_v18 = vpop.eup %5318  ;;  %2481 = vadd.xlane.f32.xlu0 %v7012_v41  ;;  %v2465_v9 = vmul.f32 1.442695, %v2438_v23 }
 0x961   : > { %2479 = vadd.xlane.f32.xlu1 %v7014_v18  ;;  %v2422_v22 = vpop.xlane.xlu1 %2421  ;;  %v2463_v27 = vmul.f32 1.442695, %v2437_v30 }
 0x962   : > { %v2440_v33 = vsub.f32 %v6963_v3, %v2422_v22  ;;  %v2420_v10 = vpop.xlane.xlu0 %2419 }
 0x963   : > { %v7018_v61 = vpop.eup %5320  ;;  %5328 = vpow2.f32 %v2463_v27  ;;  %v2439_v43 = vsub.f32 %v6965_v31, %v2420_v10 }
 0x964   : > { %v7021_v55 = vpop.eup %5322  ;;  %5330 = vpow2.f32 %v2461_v56 }
 0x965   : > { %2485 = vadd.xlane.f32.xlu1 %v7018_v61  ;;  %v2426_v44 = vpop.xlane.xlu1 %2425  ;;  %v2467_v3 = vmul.f32 1.442695, %v2439_v43 }
 0x966   : > { %v2442_v17 = vsub.f32 %v6969_v52, %v2426_v44 }
 0x967   : > { %v7023_v53 = vpop.eup %5324 }
 0x968   : > { %2487 = vadd.xlane.f32.xlu0 %v7023_v53  ;;  %v7027_v38 = vpop.eup %5326  ;;  %v2473_v24 = vmul.f32 1.442695, %v2442_v17  ;;  %v2424_v17 = vpop.xlane.xlu0 %2423 }
 0x969   : > { %2483 = vadd.xlane.f32.xlu1 %v7021_v55  ;;  %v2441_v19 = vsub.f32 %v6971_v26, %v2424_v17 }
 0x96d   : > { %2489 = vadd.xlane.f32.xlu1 %v7027_v38 }
 0x970   : > { %v7041_v50 = vpop.eup %5328 }
 0x971   : > { %v7044_v36 = vpop.eup %5330 }
 0x97e   : > { %2766 = vrot.lane.b32.xlu1 %v7901_v48, %s5618_s14  ;;  %2768 = vrot.lane.b32.xlu0 %v7902_v62, %s5618_s14  ;;  %v2469_v48 = vmul.f32 1.442695, %v2440_v33  ;;  %v2459_v62 = vmul.f32 1.442695, %v2435_v1 }
 0x980   : > { %5332 = vpow2.f32 %v2469_v48 }
 0x981   : > { %5334 = vpow2.f32 %v2459_v62 }
 0x982   : > { %5336 = vpow2.f32 %v2473_v24 }
 0x983   : > { %5338 = vpow2.f32 %v2465_v9 }
 0x984   : > { %5340 = vpow2.f32 %v2467_v3 }
 0x98d   : > { %v7046_v52 = vpop.eup %5332 }
 0x98e   : > { %v7050_v11 = vpop.eup %5334 }
 0x98f   : > { %v7052_v23 = vpop.eup %5336 }
 0x990   : > { %v7056_v24 = vpop.eup %5338 }
 0x991   : > { %v7059_v31 = vpop.eup %5340 }
 0x99d   : > { %2495 = vadd.xlane.f32.xlu0 %v7041_v50 }
 0x9a1   : > { %2501 = vadd.xlane.f32.xlu0 %v7046_v52 }
 0x9a2   : > { %2493 = vadd.xlane.f32.xlu1 %v7044_v36 }
 0x9a5   : > { %2505 = vadd.xlane.f32.xlu0 %v7052_v23 }
 0x9a6   : > { %2491 = vadd.xlane.f32.xlu1 %v7050_v11 }
 0x9aa   : > { %2497 = vadd.xlane.f32.xlu1 %v7056_v24 }
 0x9ae   : > { %2499 = vadd.xlane.f32.xlu1 %v7059_v31 }
 0x9bb   : > { %2764 = vrot.lane.b32.xlu0 %v5982_v25, %s5618_s14  ;;  %v2471_v25 = vmul.f32 1.442695, %v2441_v19 }
 0x9bd   : > { %5342 = vpow2.f32 %v2471_v25 }
 0x9bf   : > { %2732 = vrot.lane.b32.xlu1 %v5978_v32, %s5618_s14  ;;  %2734 = vrot.lane.b32.xlu0 %v7813_v20, %s5618_s14  ;;  %v7083_v32 = vpop.permute.xlu0 %2770 }
 0x9c3   : > { %2738 = vrot.lane.b32.xlu0 %v6000_v6, %s5618_s14 }
 0x9c7   : > { %2742 = vrot.lane.b32.xlu0 %v6016_v39, %s5618_s14 }
 0x9ca   : > { %v7087_v6 = vpop.eup %5342 }
 0x9cb   : > { %2746 = vrot.lane.b32.xlu0 %v6032_v28, %s5618_s14 }
 0x9cf   : > { %2750 = vrot.lane.b32.xlu0 %v6049_v47, %s5618_s14 }
 0x9d3   : > { %2754 = vrot.lane.b32.xlu0 %v6069_v40, %s5618_s14 }
 0x9d7   : > { %2758 = vrot.lane.b32.xlu0 %v6089_v58, %s5618_s14 }
 0x9db   : > { %2762 = vrot.lane.b32.xlu0 %v6109_v49, %s5618_s14 }
 0x9df   : > { %3195 = vrot.lane.b32.xlu0 %v6042_v35, %s5618_s14 }
 0x9e3   : > { %2503 = vadd.xlane.f32.xlu1 %v7087_v6  ;;  %v2478_v39 = vpop.xlane.xlu0 %2477  ;;  %3191 = vrot.lane.b32.xlu0 %v6051_v57, %s5618_s14 }
 0x9e4   : > { %5344 = vrcp.f32 %v2478_v39 }
 0x9e5   : > { %v2476_v28 = vpop.xlane.xlu1 %2475 }
 0x9e6   : > { %5346 = vrcp.f32 %v2476_v28 }
 0x9e7   : > { %3187 = vrot.lane.b32.xlu0 %v7854_v63, %s5618_s14 }
 0x9e9   : > { %v2482_v47 = vpop.xlane.xlu0 %2481 }
 0x9ea   : > { %v2480_v40 = vpop.xlane.xlu1 %2479  ;;  %5348 = vrcp.f32 %v2482_v47 }
 0x9eb   : > { %5350 = vrcp.f32 %v2480_v40  ;;  %3183 = vrot.lane.b32.xlu0 %v7858_v8, %s5618_s14 }
 0x9ee   : > { %v2486_v35 = vpop.xlane.xlu1 %2485 }
 0x9ef   : > { %3179 = vrot.lane.b32.xlu0 %v7860_v42, %s5618_s14  ;;  %5352 = vrcp.f32 %v2486_v35 }
 0x9f1   : > { %v5345_v58 = vpop.eup %5344  ;;  %v2488_v49 = vpop.xlane.xlu0 %2487 }
 0x9f2   : > { %v2484_v57 = vpop.xlane.xlu1 %2483  ;;  %v2510_v26 = vmul.f32 %v5345_v58, %v7006_v5 }
 0x9f3   : > { %v5347_v20 = vpop.eup %5346  ;;  %5354 = vrcp.f32 %v2484_v57 }
 0x9f4   : > { %5356 = vrcp.f32 %v2488_v49  ;;  %2736 = vrot.lane.b32.xlu1 %v7814_v37, %s5618_s14  ;;  %v2508_v63 = vmul.f32 %v5347_v20, %v7009_v46 }
 0x9f6   : > { %v2490_v2 = vpop.xlane.xlu1 %2489  ;;  %4729 = vmatprep.mubr.f32.mxu1 %v2508_v63 }
 0x9f7   : > { %v5349_v8 = vpop.eup %5348  ;;  %5358 = vrcp.f32 %v2490_v2  ;;  %4730 = vmatmul.mubr.f32.vlgmr.msra.gmra.mxu1 %v2510_v26 }
 0x9f8   : > { %v5351_v42 = vpop.eup %5350  ;;  %2740 = vrot.lane.b32.xlu1 %v7815_v59, %s5618_s14  ;;  %4754 = vmatpush3.xpose.msk.msra.mxu1 %vm917_vm0, %v6878_v0  ;;  %v2514_v22 = vmul.f32 %v5349_v8, %v7012_v41 }
 0x9f9   : > { %4755 = vmatprep.subr.msk.mxu1 %vm917_vm0, %v6977_v21  ;;  %v2512_v37 = vmul.f32 %v5351_v42, %v7014_v18 }
 0x9fb   : > { %4732 = vmatprep.mubr.f32.mxu1 %v2512_v37 }
 0x9fc   : > { %2744 = vrot.lane.b32.xlu1 %v7816_v60, %s5618_s14  ;;  %4733 = vmatmul.mubr.f32.gmra.mxu1 %v2514_v22  ;;  %v5353_v59 = vpop.eup %5352 }
 0x9fd   : > { %4756 = vmatpush3.xpose.msk.msra.mxu1 %vm917_vm0, %v6977_v21  ;;  %v2518_v60 = vmul.f32 %v5353_v59, %v7018_v61 }
 0x9fe   : > { %4757 = vmatprep.subr.msk.mxu1 %vm917_vm0, %v6979_v4 }
 0xa00   : > { %v5355_v0 = vpop.eup %5354  ;;  %2748 = vrot.lane.b32.xlu1 %v7817_v13, %s5618_s14 }
 0xa01   : > { %v5357_v5 = vpop.eup %5356  ;;  %4758 = vmatpush3.xpose.msk.msra.mxu1 %vm917_vm0, %v6979_v4  ;;  %v2516_v46 = vmul.f32 %v5355_v0, %v7021_v55  ;;  %v2769_v4 = vpop.permute.xlu0 %2768 }
 0xa02   : > { %4759 = vmatprep.subr.msk.mxu1 %vm917_vm0, %v6985_v51  ;;  %v2520_v21 = vmul.f32 %v5357_v5, %v7023_v53 }
 0xa03   : > { %4735 = vmatprep.mubr.f32.mxu1 %v2516_v46 }
 0xa04   : > { %v5359_v41 = vpop.eup %5358  ;;  %2752 = vrot.lane.b32.xlu1 %v7818_v29, %s5618_s14  ;;  %4736 = vmatmul.mubr.f32.gmra.mxu1 %v2518_v60  ;;  %v7903_v29 = vld [vmem:[#allocation36_spill] sm:$0xff] }
 0xa05   : > { %4760 = vmatpush3.xpose.msk.msra.mxu1 %vm917_vm0, %v6985_v51  ;;  %4738 = vmatprep.mubr.f32.mxu1 %v2520_v21  ;;  %v2522_v13 = vmul.f32 %v5359_v41, %v7027_v38  ;;  %v7908_v51 = vld [vmem:[#allocation21_spill] sm:$0xff] }
 0xa06   : > { %4761 = vmatprep.subr.msk.mxu1 %vm917_vm0, %v6981_v16 }
 0xa08   : > { %2756 = vrot.lane.b32.xlu1 %v7819_v54, %s5618_s14  ;;  %4739 = vmatmul.mubr.f32.gmra.mxu1 %v2522_v13  ;;  %v7904_v54 = vld [vmem:[#allocation25_spill] sm:$0xff] }
 0xa09   : > { %4762 = vmatpush3.xpose.msk.msra.mxu1 %vm917_vm0, %v6981_v16  ;;  %v7907_v16 = vld [vmem:[#allocation29_spill] sm:$0xff] }
 0xa0a   : > { %4763 = vmatprep.subr.msk.mxu1 %vm917_vm0, %v6989_v14 }
 0xa0c   : > { %2760 = vrot.lane.b32.xlu1 %v7820_v34, %s5618_s14  ;;  %v7905_v34 = vld [vmem:[#allocation27_spill] sm:$0xff] }
 0xa0d   : > { %4764 = vmatpush3.xpose.msk.msra.mxu1 %vm917_vm0, %v6989_v14  ;;  %v2767_v14 = vpop.permute.xlu1 %2766 }
 0xa0e   : > { %4765 = vmatprep.subr.msk.mxu1 %vm917_vm0, %v6983_v45 }
 0xa10   : > { %3193 = vrot.lane.b32.xlu1 %v7821_v15, %s5618_s14  ;;  %v7906_v15 = vld [vmem:[#allocation59_spill] sm:$0xff] }
 0xa11   : > { %4766 = vmatpush3.xpose.msk.msra.mxu1 %vm917_vm0, %v6983_v45  ;;  %v7910_v45 = vld [vmem:[#allocation58_spill] sm:$0xff] }
 0xa12   : > { %4767 = vmatprep.subr.msk.mxu1 %vm917_vm0, %v6993_v7 }
 0xa14   : > { %3189 = vrot.lane.b32.xlu1 %v7903_v29, %s5618_s14 }
 0xa15   : > { %4768 = vmatpush3.xpose.msk.msra.mxu1 %vm917_vm0, %v6993_v7  ;;  %v7909_v7 = vld [vmem:[#allocation20_spill] sm:$0xff] }
 0xa16   : > { %4769 = vmatprep.subr.msk.mxu1 %vm917_vm0, %v7904_v54 }
 0xa18   : > { %3185 = vrot.lane.b32.xlu1 %v7905_v34, %s5618_s14 }
 0xa19   : > { %4770 = vmatpush3.xpose.msk.msra.mxu1 %vm917_vm0, %v7904_v54 }
 0xa1a   : > { %4771 = vmatprep.subr.msk.mxu1 %vm917_vm0, %v7906_v15 }
 0xa1c   : > { %3181 = vrot.lane.b32.xlu1 %v7907_v16, %s5618_s14 }
 0xa1d   : > { %4772 = vmatpush3.xpose.msk.msra.mxu1 %vm917_vm0, %v7906_v15 }
 0xa1e   : > { %4773 = vmatprep.subr.msk.mxu1 %vm917_vm0, %v7908_v51 }
 0xa20   : > { %3177 = vrot.lane.b32.xlu1 %v7909_v7, %s5618_s14 }
 0xa21   : > { %4774 = vmatpush3.xpose.msk.msra.mxu1 %vm917_vm0, %v7908_v51 }
 0xa22   : > { %4775 = vmatprep.subr.msk.mxu1 %vm917_vm0, %v7910_v45 }
 0xa25   : > { %4776 = vmatpush3.xpose.msk.msra.mxu1 %vm917_vm0, %v7910_v45 }
 0xa26   : > { %4777 = vmatprep.subr.msk.mxu1 %vm917_vm0, %v7083_v32  ;;  %v2496_v18 = vpop.xlane.xlu0 %2495 }
 0xa27   : > { %5360 = vrcp.f32 %v2496_v18 }
 0xa29   : > { %4778 = vmatpush3.xpose.msk.msra.mxu1 %vm917_vm0, %v7083_v32 }
 0xa2a   : > { %4779 = vmatprep.subr.msk.mxu1 %vm917_vm0, %v2769_v4  ;;  %v2502_v55 = vpop.xlane.xlu0 %2501 }
 0xa2b   : > { %v2494_v61 = vpop.xlane.xlu1 %2493 }
 0xa2c   : > { %5362 = vrcp.f32 %v2494_v61 }
 0xa2d   : > { %4780 = vmatpush3.xpose.msk.msra.mxu1 %vm917_vm0, %v2769_v4 }
 0xa2e   : > { %4781 = vmatprep.subr.msk.mxu1 %vm917_vm0, %v2767_v14  ;;  %v2506_v38 = vpop.xlane.xlu0 %2505 }
 0xa2f   : > { %v2492_v53 = vpop.xlane.xlu1 %2491 }
 0xa30   : > { %5364 = vrcp.f32 %v2492_v53 }
 0xa31   : > { %4782 = vmatpush3.xpose.msk.msra.mxu1 %vm917_vm0, %v2767_v14 }
 0xa32   : > { %v2765_v12 = vpop.permute.xlu0 %2764 }
 0xa33   : > { %v2498_v30 = vpop.xlane.xlu1 %2497  ;;  %4783 = vmatprep.subr.msk.mxu1 %vm917_vm0, %v2765_v12 }
 0xa34   : > { %5366 = vrcp.f32 %v2498_v30  ;;  %v5361_v44 = vpop.eup %5360 }
 0xa35   : > { %4784 = vmatpush3.xpose.msk.msra.mxu1 %vm917_vm0, %v2765_v12  ;;  %5368 = vrcp.f32 %v2502_v55  ;;  %v2528_v43 = vmul.f32 %v5361_v44, %v7041_v50 }
 0xa36   : > { %v2735_v33 = vpop.permute.xlu0 %2734 }
 0xa37   : > { %v2500_v27 = vpop.xlane.xlu1 %2499 }
 0xa38   : > { %5370 = vrcp.f32 %v2500_v27 }
 0xa39   : > { %v5363_v1 = vpop.eup %5362  ;;  %5372 = vrcp.f32 %v2506_v38 }
 0xa3a   : > { %v2739_v56 = vpop.permute.xlu0 %2738  ;;  %v2526_v9 = vmul.f32 %v5363_v1, %v7044_v36 }
 0xa3b   : > { %v2733_v35 = vpop.permute.xlu1 %2732 }
 0xa3d   : > { %v5365_v48 = vpop.eup %5364 }
 0xa3e   : > { %v2524_v62 = vmul.f32 %v5365_v48, %v7050_v11  ;;  %v2743_v10 = vpop.permute.xlu0 %2742 }
 0xa40   : > { %4741 = vmatprep.mubr.f32.mxu1 %v2524_v62 }
 0xa41   : > { %v5367_v3 = vpop.eup %5366  ;;  %4742 = vmatmul.mubr.f32.gmra.mxu1 %v2526_v9 }
 0xa42   : > { %4744 = vmatprep.mubr.f32.mxu1 %v2528_v43  ;;  %v2530_v17 = vmul.f32 %v5367_v3, %v7056_v24  ;;  %v2747_v19 = vpop.permute.xlu0 %2746  ;;  %v5369_v25 = vpop.eup %5368 }
 0xa43   : > { %v2534_v11 = vmul.f32 %v5369_v25, %v7046_v52 }
 0xa45   : > { %v5371_v32 = vpop.eup %5370  ;;  %4745 = vmatmul.mubr.f32.gmra.mxu1 %v2530_v17 }
 0xa46   : > { %v2532_v39 = vmul.f32 %v5371_v32, %v7059_v31  ;;  %v2751_v28 = vpop.permute.xlu0 %2750  ;;  %v5373_v20 = vpop.eup %5372 }
 0xa47   : > { %v2538_v26 = vmul.f32 %v5373_v20, %v7052_v23 }
 0xa48   : > { %4747 = vmatprep.mubr.f32.mxu1 %v2532_v39 }
 0xa49   : > { %4748 = vmatmul.mubr.f32.gmra.mxu1 %v2534_v11 }
 0xa4a   : > { %v2755_v36 = vpop.permute.xlu0 %2754 }
 0xa4e   : > { %v2759_v47 = vpop.permute.xlu0 %2758 }
 0xa52   : > { %v2763_v40 = vpop.permute.xlu0 %2762 }
 0xa56   : > { %v3196_v50 = vpop.permute.xlu0 %3195 }
 0xa57   : > { %4809 = vmatprep.subr.mxu0 %v3196_v50 }
 0xa58   : > { %4810 = vmatpush3.msra.mxu0 %v3196_v50 }
 0xa5a   : > { %v3192_v42 = vpop.permute.xlu0 %3191 }
 0xa6c   : > { %v2504_v24 = vpop.xlane.xlu1 %2503 }
 0xa6d   : > { %5374 = vrcp.f32 %v2504_v24 }
 0xa70   : > { %v2737_v58 = vpop.permute.xlu1 %2736 }
 0xa74   : > { %v2741_v57 = vpop.permute.xlu1 %2740 }
 0xa78   : > { %v2745_v49 = vpop.permute.xlu1 %2744 }
 0xa7a   : > { %v5375_v31 = vpop.eup %5374 }
 0xa7b   : > { %v2536_v63 = vmul.f32 %v5375_v31, %v7087_v6  ;;  %v3188_v6 = vpop.permute.xlu0 %3187 }
 0xa7c   : > { %v2749_v52 = vpop.permute.xlu1 %2748 }
 0xa7d   : > { %4750 = vmatprep.mubr.f32.mxu1 %v2536_v63 }
 0xa7e   : > { %4751 = vmatmul.mubr.f32.gmra.mxu1 %v2538_v26 }
 0xa7f   : > { %4785 = vmatprep.mubr.msk.f32.mxu1 %vm917_vm0, %v2733_v35  ;;  %v3184_v59 = vpop.permute.xlu0 %3183 }
 0xa80   : > { %v2753_v2 = vpop.permute.xlu1 %2752 }
 0xa82   : > { %4786 = vmatmul.mubr.msk.f32.vlgmr.msra.gmra.mxu1 %vm917_vm0, %v2735_v33 }
 0xa83   : > { %4788 = vmatprep.mubr.msk.f32.mxu1 %vm917_vm0, %v2737_v58  ;;  %v3180_v46 = vpop.permute.xlu0 %3179 }
 0xa84   : > { %v2757_v8 = vpop.permute.xlu1 %2756 }
 0xa86   : > { %4789 = vmatmul.mubr.msk.f32.gmra.mxu1 %vm917_vm0, %v2739_v56 }
 0xa87   : > { %4791 = vmatprep.mubr.msk.f32.mxu1 %vm917_vm0, %v2741_v57 }
 0xa88   : > { %v2761_v22 = vpop.permute.xlu1 %2760 }
 0xa8a   : > { %4792 = vmatmul.mubr.msk.f32.gmra.mxu1 %vm917_vm0, %v2743_v10 }
 0xa8b   : > { %4794 = vmatprep.mubr.msk.f32.mxu1 %vm917_vm0, %v2745_v49 }
 0xa8c   : > { %v3194_v23 = vpop.permute.xlu1 %3193 }
 0xa8d   : > { %4811 = vmatprep.subr.mxu0 %v3194_v23 }
 0xa8e   : > { %4795 = vmatmul.mubr.msk.f32.gmra.mxu1 %vm917_vm0, %v2747_v19  ;;  %4812 = vmatpush3.msra.mxu0 %v3194_v23  ;;  %v7911_v23 = vld [vmem:[#allocation22_spill] sm:$0xff] }
 0xa8f   : > { %4797 = vmatprep.mubr.msk.f32.mxu1 %vm917_vm0, %v2749_v52  ;;  %4813 = vmatprep.subr.mxu0 %v3192_v42 }
 0xa90   : > { %v3190_v37 = vpop.permute.xlu1 %3189  ;;  %4814 = vmatpush3.msra.mxu0 %v3192_v42 }
 0xa91   : > { %4815 = vmatprep.subr.mxu0 %v3190_v37 }
 0xa92   : > { %4798 = vmatmul.mubr.msk.f32.gmra.mxu1 %vm917_vm0, %v2751_v28  ;;  %4816 = vmatpush3.msra.mxu0 %v3190_v37  ;;  %v7913_v37 = vld [vmem:[#allocation26_spill] sm:$0xff] }
 0xa93   : > { %4800 = vmatprep.mubr.msk.f32.mxu1 %vm917_vm0, %v2753_v2  ;;  %4817 = vmatprep.subr.mxu0 %v3188_v6 }
 0xa94   : > { %v3186_v0 = vpop.permute.xlu1 %3185  ;;  %4818 = vmatpush3.msra.mxu0 %v3188_v6  ;;  %v7912_v6 = vld [vmem:[#allocation13_spill] sm:$0xff] }
 0xa95   : > { %4819 = vmatprep.subr.mxu0 %v3186_v0 }
 0xa96   : > { %4801 = vmatmul.mubr.msk.f32.gmra.mxu1 %vm917_vm0, %v2755_v36  ;;  %4820 = vmatpush3.msra.mxu0 %v3186_v0  ;;  %v7915_v0 = vld [vmem:[#allocation17_spill] sm:$0xff] }
 0xa97   : > { %4803 = vmatprep.mubr.msk.f32.mxu1 %vm917_vm0, %v2757_v8  ;;  %4821 = vmatprep.subr.mxu0 %v3184_v59 }
 0xa98   : > { %v3182_v5 = vpop.permute.xlu1 %3181  ;;  %4822 = vmatpush3.msra.mxu0 %v3184_v59  ;;  %v7914_v59 = vld [vmem:[#allocation15_spill] sm:$0xff] }
 0xa99   : > { %4823 = vmatprep.subr.mxu0 %v3182_v5 }
 0xa9a   : > { %4804 = vmatmul.mubr.msk.f32.gmra.mxu1 %vm917_vm0, %v2759_v47  ;;  %4824 = vmatpush3.msra.mxu0 %v3182_v5  ;;  %v7916_v5 = vld [vmem:[#allocation19_spill] sm:$0xff] }
 0xa9b   : > { %4806 = vmatprep.mubr.msk.f32.mxu1 %vm917_vm0, %v2761_v22  ;;  %4825 = vmatprep.subr.mxu0 %v3180_v46 }
 0xa9c   : > { %v3178_v60 = vpop.permute.xlu1 %3177  ;;  %4826 = vmatpush3.msra.mxu0 %v3180_v46 }
 0xa9d   : > { %4827 = vmatprep.subr.mxu0 %v3178_v60 }
 0xa9e   : > { %4807 = vmatmul.mubr.msk.f32.gmra.mxu1 %vm917_vm0, %v2763_v40  ;;  %4828 = vmatpush3.msra.mxu0 %v3178_v60 }
 0xab7   : > { %v7210_v21 = vpop.f32.mrf.mxu1 }
 0xab9   : > { %v7212_v41 = vpop.f32.mrf.mxu1 }
 0xaba   : > { %v5012_v13 = vpack.i.bf16 %v7210_v21, %v7212_v41  ;;  %v7932_v41 = vld [vmem:[#allocation45_spill] sm:$0xff] }
 0xabc   : > { %v7216_v29 = vpop.f32.mrf.mxu1 }
 0xabe   : > { %v7218_v54 = vpop.f32.mrf.mxu1 }
 0xabf   : > { %v5022_v34 = vpack.i.bf16 %v7216_v29, %v7218_v54  ;;  %v7935_v54 = vld [vmem:[#allocation38_spill] sm:$0xff] }
 0xac4   : > { %v7222_v15 = vpop.f32.mrf.mxu1 }
 0xac6   : > { %v7224_v16 = vpop.f32.mrf.mxu1 }
 0xac7   : > { %v5052_v51 = vpack.i.bf16 %v7222_v15, %v7224_v16 }
 0xac8   : > { %v7228_v7 = vpop.f32.mrf.mxu1 }
 0xaca   : > { %v7230_v45 = vpop.f32.mrf.mxu1 }
 0xacb   : > { %v5062_v4 = vpack.i.bf16 %v7228_v7, %v7230_v45 }
 0xb01   : > { %v7234_v14 = vpop.f32.mrf.mxu1 }
 0xb03   : > { %v7236_v18 = vpop.f32.mrf.mxu1 }
 0xb04   : > { %v5017_v61 = vpack.i.bf16 %v7234_v14, %v7236_v18  ;;  %v7938_v18 = vld [vmem:[#allocation32_spill] sm:$0xff] }
 0xb05   : > { %v7240_v55 = vpop.f32.mrf.mxu1 }
 0xb07   : > { %v7242_v53 = vpop.f32.mrf.mxu1 }
 0xb08   : > { %v5027_v38 = vpack.i.bf16 %v7240_v55, %v7242_v53 }
 0xb09   : > { %v7246_v30 = vpop.f32.mrf.mxu1 }
 0xb0b   : > { %v7248_v12 = vpop.f32.mrf.mxu1 }
 0xb0c   : > { %v5057_v27 = vpack.i.bf16 %v7246_v30, %v7248_v12 }
 0xb3e   : > { %v7252_v33 = vpop.f32.mrf.mxu1 }
 0xb40   : > { %v7254_v44 = vpop.f32.mrf.mxu1 }
 0xb41   : > { %v5067_v56 = vpack.i.bf16 %v7252_v33, %v7254_v44 }
 0xb42   : > { %v4787_v1 = vpop.f32.mrf.mxu1 }
 0xb43   : > { %v3006_v48 = vmul.f32 0.17677669, %v4787_v1 }
 0xb44   : > { %v2926_v62 = vpop.f32.mrf.mxu1 }
 0xb45   : > { %v3005_v10 = vmul.f32 0.17677669, %v2926_v62  ;;  %3023 = vmax.xlane.f32.xlu0 %v3006_v48 }
 0xb46   : > { %v4790_v9 = vpop.f32.mrf.mxu1 }
 0xb47   : > { %3021 = vmax.xlane.f32.xlu1 %v3005_v10  ;;  %v3008_v3 = vmul.f32 0.17677669, %v4790_v9 }
 0xb48   : > { %v2936_v43 = vpop.f32.mrf.mxu1 }
 0xb49   : > { %v3007_v17 = vmul.f32 0.17677669, %v2936_v43 }
 0xb4a   : > { %v4793_v19 = vpop.f32.mrf.mxu1 }
 0xb4b   : > { %3027 = vmax.xlane.f32.xlu1 %v3008_v3  ;;  %3025 = vmax.xlane.f32.xlu0 %v3007_v17  ;;  %v3010_v32 = vmul.f32 0.17677669, %v4793_v19 }
 0xb4c   : > { %v2946_v25 = vpop.f32.mrf.mxu1 }
 0xb4d   : > { %v3009_v39 = vmul.f32 0.17677669, %v2946_v25 }
 0xb4e   : > { %v4796_v28 = vpop.f32.mrf.mxu1 }
 0xb4f   : > { %3031 = vmax.xlane.f32.xlu1 %v3010_v32  ;;  %3029 = vmax.xlane.f32.xlu0 %v3009_v39  ;;  %v3012_v36 = vmul.f32 0.17677669, %v4796_v28 }
 0xb50   : > { %v2956_v11 = vpop.f32.mrf.mxu1 }
 0xb51   : > { %v3011_v47 = vmul.f32 0.17677669, %v2956_v11 }
 0xb52   : > { %v4799_v40 = vpop.f32.mrf.mxu1 }
 0xb53   : > { %3035 = vmax.xlane.f32.xlu1 %v3012_v36  ;;  %3033 = vmax.xlane.f32.xlu0 %v3011_v47  ;;  %v7258_v35 = vmul.f32 0.17677669, %v4799_v40 }
 0xb54   : > { %v2966_v50 = vpop.f32.mrf.mxu1 }
 0xb55   : > { %v7260_v24 = vmul.f32 0.17677669, %v2966_v50 }
 0xb56   : > { %v4802_v58 = vpop.f32.mrf.mxu1 }
 0xb57   : > { %3039 = vmax.xlane.f32.xlu1 %v7258_v35  ;;  %3037 = vmax.xlane.f32.xlu0 %v7260_v24  ;;  %v7264_v49 = vmul.f32 0.17677669, %v4802_v58 }
 0xb58   : > { %v2976_v57 = vpop.f32.mrf.mxu1 }
 0xb59   : > { %v7266_v20 = vmul.f32 0.17677669, %v2976_v57 }
 0xb5a   : > { %v4805_v31 = vpop.f32.mrf.mxu1 }
 0xb5b   : > { %3043 = vmax.xlane.f32.xlu1 %v7264_v49  ;;  %3041 = vmax.xlane.f32.xlu0 %v7266_v20  ;;  %v7270_v52 = vmul.f32 0.17677669, %v4805_v31 }
 0xb5c   : > { %v2986_v63 = vpop.f32.mrf.mxu1 }
 0xb5d   : > { %v7272_v26 = vmul.f32 0.17677669, %v2986_v63 }
 0xb5e   : > { %v4808_v2 = vpop.f32.mrf.mxu1 }
 0xb5f   : > { %3047 = vmax.xlane.f32.xlu1 %v7270_v52  ;;  %3045 = vmax.xlane.f32.xlu0 %v7272_v26  ;;  %v7276_v42 = vmul.f32 0.17677669, %v4808_v2 }
 0xb60   : > { %v2996_v8 = vpop.f32.mrf.mxu1 }
 0xb61   : > { %v7278_v22 = vmul.f32 0.17677669, %v2996_v8 }
 0xb63   : > { %3051 = vmax.xlane.f32.xlu1 %v7276_v42  ;;  %3049 = vmax.xlane.f32.xlu0 %v7278_v22 }
 0xb74   : > { %3173 = vrot.lane.b32.xlu1 %v7911_v23, %s5618_s14 }
 0xb78   : > { %3169 = vrot.lane.b32.xlu1 %v7912_v6, %s5618_s14 }
 0xb79   : > { %3175 = vrot.lane.b32.xlu0 %v7913_v37, %s5618_s14 }
 0xb7c   : > { %3165 = vrot.lane.b32.xlu1 %v7914_v59, %s5618_s14 }
 0xb7d   : > { %3171 = vrot.lane.b32.xlu0 %v7915_v0, %s5618_s14 }
 0xb81   : > { %3167 = vrot.lane.b32.xlu0 %v7916_v5, %s5618_s14 }
 0xbce   : > { %v3024_v46 = vpop.xlane.xlu0 %3023 }
 0xbcf   : > { %v3054_v60 = vsub.f32 %v3006_v48, %v3024_v46 }
 0xbd0   : > { %v3022_v1 = vpop.xlane.xlu1 %3021 }
 0xbd1   : > { %v3071_v62 = vmul.f32 1.442695, %v3054_v60  ;;  %v3053_v9 = vsub.f32 %v3005_v10, %v3022_v1 }
 0xbd3   : > { %5376 = vpow2.f32 %v3071_v62  ;;  %v3069_v43 = vmul.f32 1.442695, %v3053_v9 }
 0xbd4   : > { %v3028_v19 = vpop.xlane.xlu1 %3027  ;;  %v3026_v25 = vpop.xlane.xlu0 %3025 }
 0xbd5   : > { %5378 = vpow2.f32 %v3069_v43  ;;  %v3056_v28 = vsub.f32 %v3008_v3, %v3028_v19  ;;  %v3055_v11 = vsub.f32 %v3007_v17, %v3026_v25 }
 0xbd7   : > { %v3075_v40 = vmul.f32 1.442695, %v3056_v28  ;;  %v3073_v50 = vmul.f32 1.442695, %v3055_v11 }
 0xbd8   : > { %v3032_v58 = vpop.xlane.xlu1 %3031  ;;  %v3030_v57 = vpop.xlane.xlu0 %3029 }
 0xbd9   : > { %5380 = vpow2.f32 %v3075_v40  ;;  %v3058_v31 = vsub.f32 %v3010_v32, %v3032_v58  ;;  %v3057_v63 = vsub.f32 %v3009_v39, %v3030_v57 }
 0xbda   : > { %5382 = vpow2.f32 %v3073_v50 }
 0xbdb   : > { %v3079_v2 = vmul.f32 1.442695, %v3058_v31  ;;  %v3077_v48 = vmul.f32 1.442695, %v3057_v63 }
 0xbdc   : > { %v3036_v8 = vpop.xlane.xlu1 %3035  ;;  %v3034_v23 = vpop.xlane.xlu0 %3033 }
 0xbdd   : > { %5384 = vpow2.f32 %v3079_v2  ;;  %v3060_v10 = vsub.f32 %v3012_v36, %v3036_v8  ;;  %v3059_v6 = vsub.f32 %v3011_v47, %v3034_v23 }
 0xbde   : > { %5386 = vpow2.f32 %v3077_v48 }
 0xbdf   : > { %v3083_v37 = vmul.f32 1.442695, %v3060_v10  ;;  %v3081_v59 = vmul.f32 1.442695, %v3059_v6 }
 0xbe0   : > { %v7294_v3 = vpop.eup %5376  ;;  %v3040_v17 = vpop.xlane.xlu1 %3039 }
 0xbe1   : > { %v3038_v0 = vpop.xlane.xlu0 %3037  ;;  %5388 = vpow2.f32 %v3083_v37  ;;  %v3062_v5 = vsub.f32 %v7258_v35, %v3040_v17  ;;  %3103 = vadd.xlane.f32.xlu0 %v7294_v3 }
 0xbe2   : > { %v3061_v32 = vsub.f32 %v7260_v24, %v3038_v0  ;;  %v7299_v39 = vpop.eup %5378  ;;  %5390 = vpow2.f32 %v3081_v59 }
 0xbe3   : > { %v3087_v46 = vmul.f32 1.442695, %v3062_v5  ;;  %3101 = vadd.xlane.f32.xlu1 %v7299_v39 }
 0xbe4   : > { %v3085_v36 = vmul.f32 1.442695, %v3061_v32  ;;  %v3044_v47 = vpop.xlane.xlu1 %3043 }
 0xbe5   : > { %v3042_v60 = vpop.xlane.xlu0 %3041  ;;  %5392 = vpow2.f32 %v3087_v46  ;;  %v3064_v1 = vsub.f32 %v7264_v49, %v3044_v47  ;;  %v7917_v47 = vld [vmem:[#allocation44_spill] sm:$0xff] }
 0xbe6   : > { %v3063_v62 = vsub.f32 %v7266_v20, %v3042_v60  ;;  %v7304_v9 = vpop.eup %5380  ;;  %5394 = vpow2.f32 %v3085_v36  ;;  %v7918_v60 = vld [vmem:[#allocation42_spill] sm:$0xff] }
 0xbe7   : > { %v7306_v35 = vpop.eup %5382  ;;  %v3091_v24 = vmul.f32 1.442695, %v3064_v1  ;;  %3107 = vadd.xlane.f32.xlu0 %v7304_v9  ;;  %v7919_v1 = vpack.i.bf16 %v7917_v47, %v7918_v60 }
 0xbe8   : > { %v3089_v43 = vmul.f32 1.442695, %v3063_v62  ;;  %3105 = vadd.xlane.f32.xlu1 %v7306_v35  ;;  %v3048_v19 = vpop.xlane.xlu1 %3047  ;;  %v7920_v62 = vld [vmem:[#allocation33_spill] sm:$0xff] }
 0xbe9   : > { %v3046_v25 = vpop.xlane.xlu0 %3045  ;;  %5396 = vpow2.f32 %v3091_v24  ;;  %v3066_v28 = vsub.f32 %v7270_v52, %v3048_v19  ;;  %v7921_v24 = vld [vmem:[#allocation24_spill] sm:$0xff]  ;;  %v7923_v19 = vld [vmem:[#allocation31_spill] sm:$0xff] }
 0xbea   : > { %v3065_v49 = vsub.f32 %v7272_v26, %v3046_v25  ;;  %v7312_v11 = vpop.eup %5384  ;;  %5398 = vpow2.f32 %v3089_v43  ;;  %v7922_v43 = vpack.i.bf16 %v7920_v62, %v7921_v24  ;;  %v7924_v25 = vld [vmem:[#allocation56_spill] sm:$0xff] }
 0xbeb   : > { %v7314_v20 = vpop.eup %5386  ;;  %v3095_v40 = vmul.f32 1.442695, %v3066_v28  ;;  %3111 = vadd.xlane.f32.xlu0 %v7312_v11  ;;  %v7925_v28 = vpack.i.bf16 %v7923_v19, %v7924_v25 }
 0xbec   : > { %v3093_v50 = vmul.f32 1.442695, %v3065_v49  ;;  %3109 = vadd.xlane.f32.xlu1 %v7314_v20  ;;  %v3052_v58 = vpop.xlane.xlu1 %3051  ;;  %v7926_v49 = vld [vmem:[#allocation41_spill] sm:$0xff] }
 0xbed   : > { %v3050_v57 = vpop.xlane.xlu0 %3049  ;;  %5400 = vpow2.f32 %v3095_v40  ;;  %v3068_v31 = vsub.f32 %v7276_v42, %v3052_v58  ;;  %v7927_v40 = vld [vmem:[#allocation39_spill] sm:$0xff] }
 0xbee   : > { %v3067_v52 = vsub.f32 %v7278_v22, %v3050_v57  ;;  %v7320_v63 = vpop.eup %5388  ;;  %5402 = vpow2.f32 %v3093_v50  ;;  %v7928_v50 = vpack.i.bf16 %v7926_v49, %v7927_v40  ;;  %v7929_v58 = vld [vmem:[#allocation47_spill] sm:$0xff]  ;;  %v7930_v57 = vld [vmem:[#allocation48_spill] sm:$0xff] }
 0xbef   : > { %v7322_v26 = vpop.eup %5390  ;;  %v3099_v2 = vmul.f32 1.442695, %v3068_v31  ;;  %3115 = vadd.xlane.f32.xlu0 %v7320_v63  ;;  %v7931_v21 = vpack.i.bf16 %v7929_v58, %v7930_v57 }
 0xbf0   : > { %v3097_v48 = vmul.f32 1.442695, %v3067_v52  ;;  %3113 = vadd.xlane.f32.xlu1 %v7322_v26  ;;  %v3174_v8 = vpop.permute.xlu1 %3173 }
 0xbf1   : > { %v3176_v23 = vpop.permute.xlu0 %3175  ;;  %5404 = vpow2.f32 %v3099_v2 }
 0xbf2   : > { %4829 = vmatprep.subr.mxu0 %v3176_v23  ;;  %v7326_v10 = vpop.eup %5392  ;;  %5406 = vpow2.f32 %v3097_v48 }
 0xbf3   : > { %4830 = vmatpush3.msra.mxu0 %v3176_v23  ;;  %v7328_v42 = vpop.eup %5394  ;;  %3119 = vadd.xlane.f32.xlu0 %v7326_v10 }
 0xbf4   : > { %4831 = vmatprep.subr.mxu0 %v3174_v8  ;;  %3117 = vadd.xlane.f32.xlu1 %v7328_v42  ;;  %v3170_v22 = vpop.permute.xlu1 %3169 }
 0xbf5   : > { %4832 = vmatpush3.msra.mxu0 %v3174_v8  ;;  %v3172_v6 = vpop.permute.xlu0 %3171 }
 0xbf6   : > { %4833 = vmatprep.subr.mxu0 %v3172_v6  ;;  %v7332_v37 = vpop.eup %5396 }
 0xbf7   : > { %4834 = vmatpush3.msra.mxu0 %v3172_v6  ;;  %v7334_v59 = vpop.eup %5398  ;;  %3123 = vadd.xlane.f32.xlu0 %v7332_v37 }
 0xbf8   : > { %4835 = vmatprep.subr.mxu0 %v3170_v22  ;;  %3121 = vadd.xlane.f32.xlu1 %v7334_v59  ;;  %v3166_v5 = vpop.permute.xlu1 %3165 }
 0xbf9   : > { %4836 = vmatpush3.msra.mxu0 %v3170_v22  ;;  %v3168_v17 = vpop.permute.xlu0 %3167 }
 0xbfa   : > { %4837 = vmatprep.subr.mxu0 %v3168_v17  ;;  %v7338_v0 = vpop.eup %5400 }
 0xbfb   : > { %4838 = vmatpush3.msra.mxu0 %v3168_v17  ;;  %v7340_v32 = vpop.eup %5402  ;;  %3127 = vadd.xlane.f32.xlu0 %v7338_v0 }
 0xbfc   : > { %4839 = vmatprep.subr.mxu0 %v3166_v5  ;;  %3125 = vadd.xlane.f32.xlu1 %v7340_v32 }
 0xbfd   : > { %4840 = vmatpush3.msra.mxu0 %v3166_v5 }
 0xbfe   : > { %v7344_v46 = vpop.eup %5404 }
 0xbff   : > { %v7346_v36 = vpop.eup %5406  ;;  %3131 = vadd.xlane.f32.xlu0 %v7344_v46 }
 0xc00   : > { %3129 = vadd.xlane.f32.xlu1 %v7346_v36 }
 0xc11   : > { %4998 = vrot.lane.b32.xlu1 %v7919_v1, %s5618_s14 }
 0xc15   : > { %5003 = vrot.lane.b32.xlu1 %v7922_v43, %s5618_s14  ;;  %4993 = vrot.lane.b32.xlu0 %v7925_v28, %s5618_s14 }
 0xc19   : > { %5013 = vrot.lane.b32.xlu1 %v5012_v13, %s5617_s19  ;;  %5008 = vrot.lane.b32.xlu0 %v7928_v50, %s5618_s14  ;;  %v7933_v13 = vld [vmem:[#allocation57_spill] sm:$0xff] }
 0xc1a   : > { %v7934_v29 = vpack.i.bf16 %v7932_v41, %v7933_v13  ;;  %v5151_v41 = vld [vmem:[#allocation7] sm:$0xff]  }
 0xc1d   : > { %5023 = vrot.lane.b32.xlu1 %v5022_v34, %s5617_s19  ;;  %5018 = vrot.lane.b32.xlu0 %v5017_v61, %s5617_s19  ;;  %v7936_v34 = vld [vmem:[#allocation35_spill] sm:$0xff]  ;;  %v7939_v61 = vld [vmem:[#allocation28_spill] sm:$0xff] }
 0xc1e   : > { %v7937_v14 = vpack.i.bf16 %v7935_v54, %v7936_v34  ;;  %v7940_v55 = vpack.i.bf16 %v7938_v18, %v7939_v61 }
 0xc21   : > { %5033 = vrot.lane.b32.xlu1 %v7931_v21, %s5618_s14  ;;  %5028 = vrot.lane.b32.xlu0 %v5027_v38, %s5617_s19  ;;  %v5150_v21 = vld [vmem:[#allocation7 + $0x8] sm:$0xff]  }
 0xc25   : > { %5043 = vrot.lane.b32.xlu1 %v7934_v29, %s5618_s14  ;;  %5038 = vrot.lane.b32.xlu0 %v7937_v14, %s5618_s14 }
 0xc29   : > { %5053 = vrot.lane.b32.xlu1 %v5052_v51, %s5617_s19  ;;  %5048 = vrot.lane.b32.xlu0 %v7940_v55, %s5618_s14 }
 0xc2d   : > { %5063 = vrot.lane.b32.xlu1 %v5062_v4, %s5617_s19  ;;  %5058 = vrot.lane.b32.xlu0 %v5057_v27, %s5617_s19 }
 0xc31   : > { %5068 = vrot.lane.b32.xlu0 %v5067_v56, %s5617_s19 }
 0xc6a   : > { %v3104_v15 = vpop.xlane.xlu0 %3103 }
 0xc6b   : > { %5408 = vrcp.f32 %v3104_v15 }
 0xc6c   : > { %v3102_v16 = vpop.xlane.xlu1 %3101 }
 0xc6d   : > { %5410 = vrcp.f32 %v3102_v16 }
 0xc70   : > { %v3108_v51 = vpop.xlane.xlu0 %3107 }
 0xc71   : > { %v3106_v53 = vpop.xlane.xlu1 %3105  ;;  %5412 = vrcp.f32 %v3108_v51 }
 0xc72   : > { %5414 = vrcp.f32 %v3106_v53 }
 0xc74   : > { %v3112_v7 = vpop.xlane.xlu0 %3111 }
 0xc75   : > { %v3110_v45 = vpop.xlane.xlu1 %3109  ;;  %5416 = vrcp.f32 %v3112_v7 }
 0xc76   : > { %5418 = vrcp.f32 %v3110_v45 }
 0xc78   : > { %v3116_v4 = vpop.xlane.xlu0 %3115  ;;  %v5409_v38 = vpop.eup %5408 }
 0xc79   : > { %v3114_v30 = vpop.xlane.xlu1 %3113  ;;  %5420 = vrcp.f32 %v3116_v4  ;;  %v3136_v44 = vmul.f32 %v5409_v38, %v7294_v3 }
 0xc7a   : > { %v5411_v12 = vpop.eup %5410  ;;  %5422 = vrcp.f32 %v3114_v30 }
 0xc7b   : > { %v3134_v27 = vmul.f32 %v5411_v12, %v7299_v39 }
 0xc7c   : > { %v3120_v33 = vpop.xlane.xlu0 %3119 }
 0xc7d   : > { %v3118_v56 = vpop.xlane.xlu1 %3117  ;;  %5424 = vrcp.f32 %v3120_v33  ;;  %4841 = vmatprep.mubr.f32.mxu0 %v3134_v27 }
 0xc7e   : > { %v5413_v31 = vpop.eup %5412  ;;  %5426 = vrcp.f32 %v3118_v56  ;;  %4842 = vmatmul.mubr.f32.vlgmr.msra.gmra.mxu0 %v3136_v44 }
 0xc7f   : > { %v5415_v52 = vpop.eup %5414  ;;  %v3140_v2 = vmul.f32 %v5413_v31, %v7304_v9 }
 0xc80   : > { %v3124_v48 = vpop.xlane.xlu0 %3123  ;;  %v3138_v8 = vmul.f32 %v5415_v52, %v7306_v35 }
 0xc81   : > { %v3122_v23 = vpop.xlane.xlu1 %3121  ;;  %5428 = vrcp.f32 %v3124_v48 }
 0xc82   : > { %v5417_v22 = vpop.eup %5416  ;;  %5430 = vrcp.f32 %v3122_v23  ;;  %4844 = vmatprep.mubr.f32.mxu0 %v3138_v8 }
 0xc83   : > { %v5419_v39 = vpop.eup %5418  ;;  %4845 = vmatmul.mubr.f32.gmra.mxu0 %v3140_v2  ;;  %v3144_v3 = vmul.f32 %v5417_v22, %v7312_v11 }
 0xc84   : > { %v3128_v6 = vpop.xlane.xlu0 %3127  ;;  %v3142_v17 = vmul.f32 %v5419_v39, %v7314_v20 }
 0xc85   : > { %v3126_v5 = vpop.xlane.xlu1 %3125  ;;  %5432 = vrcp.f32 %v3128_v6 }
 0xc86   : > { %v5421_v47 = vpop.eup %5420  ;;  %5434 = vrcp.f32 %v3126_v5  ;;  %4847 = vmatprep.mubr.f32.mxu0 %v3142_v17 }
 0xc87   : > { %v5423_v9 = vpop.eup %5422  ;;  %4848 = vmatmul.mubr.f32.gmra.mxu0 %v3144_v3  ;;  %v3148_v35 = vmul.f32 %v5421_v47, %v7320_v63 }
 0xc88   : > { %v3132_v60 = vpop.xlane.xlu0 %3131  ;;  %v3146_v1 = vmul.f32 %v5423_v9, %v7322_v26 }
 0xc89   : > { %v3130_v62 = vpop.xlane.xlu1 %3129  ;;  %5436 = vrcp.f32 %v3132_v60 }
 0xc8a   : > { %v5425_v24 = vpop.eup %5424  ;;  %5438 = vrcp.f32 %v3130_v62  ;;  %4850 = vmatprep.mubr.f32.mxu0 %v3146_v1 }
 0xc8b   : > { %v5427_v11 = vpop.eup %5426  ;;  %4851 = vmatmul.mubr.f32.gmra.mxu0 %v3148_v35  ;;  %v3152_v20 = vmul.f32 %v5425_v24, %v7326_v10 }
 0xc8c   : > { %v3150_v43 = vmul.f32 %v5427_v11, %v7328_v42  ;;  %v4994_v23 = vpop.permute.xlu0 %4993 }
 0xc8d   : > { %v7438_v2 = vpop.permute.xlu1 %4998  ;;  %v4996_v60 = vunpack.i.h.bf16 %v4994_v23  ;;  %v4995_v1 = vunpack.i.l.bf16 %v4994_v23 }
 0xc8e   : > { %v5429_v19 = vpop.eup %5428  ;;  %4853 = vmatprep.mubr.f32.mxu0 %v3150_v43  ;;  %v5001_v23 = vunpack.i.h.bf16 %v7438_v2 }
 0xc8f   : > { %v5431_v25 = vpop.eup %5430  ;;  %4854 = vmatmul.mubr.f32.gmra.mxu0 %v3152_v20  ;;  %v3156_v63 = vmul.f32 %v5429_v19, %v7332_v37  ;;  %v5144_v37 = vld [vmem:[#allocation7 + $0x38] sm:$0xff]   ;;  %v7941_v20 = vld [vmem:[#allocation50_spill] sm:$0xff]  ;;  %v7942_v19 = vld [vmem:[#allocation52_spill] sm:$0xff] }
 0xc90   : > { %v3154_v28 = vmul.f32 %v5431_v25, %v7334_v59  ;;  %v5145_v59 = vld [vmem:[#allocation7 + $0x30] sm:$0xff]   ;;  %4865 = vmatprep.subr.bf16.mxu0 %v5144_v37  ;;  %4897 = vmatprep.subr.bf16.mxu1 %v5144_v37  ;;  %v7440_v39 = vpop.permute.xlu0 %5008  ;;  %v3551_v43 = vsel %vm917_vm0, %v7941_v20, %v4996_v60  ;;  %v3550_v25 = vsel %vm917_vm0, %v7942_v19, %v4995_v1  ;;  %v7947_v60 = vld [vmem:[#allocation23_spill] sm:$0xff] }
 0xc91   : > { %4866 = vmatpush3.bf16.msra.mxu0 %v5144_v37  ;;  %4905 = vmatpush3.bf16.msra.mxu1 %v5144_v37  ;;  %v5004_v48 = vpop.permute.xlu1 %5003 }
 0xc92   : > { %v5433_v26 = vpop.eup %5432  ;;  %4856 = vmatprep.mubr.f32.mxu0 %v3154_v28  ;;  %4867 = vmatprep.subr.bf16.mxu0 %v5145_v59 }
 0xc93   : > { %v5435_v49 = vpop.eup %5434  ;;  %4857 = vmatmul.mubr.f32.gmra.mxu0 %v3156_v63  ;;  %v3160_v40 = vmul.f32 %v5433_v26, %v7338_v0  ;;  %v5146_v0 = vld [vmem:[#allocation7 + $0x28] sm:$0xff]   ;;  %4898 = vmatprep.subr.bf16.mxu1 %v5145_v59 }
 0xc94   : > { %v3158_v50 = vmul.f32 %v5435_v49, %v7340_v32  ;;  %v5147_v32 = vld [vmem:[#allocation7 + $0x20] sm:$0xff]   ;;  %v7442_v6 = vpop.permute.xlu0 %5018  ;;  %v5006_v49 = vunpack.i.h.bf16 %v5004_v48 }
 0xc95   : > { %4868 = vmatpush3.bf16.msra.mxu0 %v5145_v59  ;;  %4906 = vmatpush3.bf16.msra.mxu1 %v5145_v59  ;;  %v5014_v8 = vpop.permute.xlu1 %5013  ;;  %v5021_v20 = vunpack.i.h.bf16 %v7442_v6 }
 0xc96   : > { %v5437_v58 = vpop.eup %5436  ;;  %4859 = vmatprep.mubr.f32.mxu0 %v3158_v50  ;;  %4869 = vmatprep.subr.bf16.mxu0 %v5146_v0  ;;  %v5016_v62 = vunpack.i.h.bf16 %v5014_v8  ;;  %v5015_v24 = vunpack.i.l.bf16 %v5014_v8 }
 0xc97   : > { %v5439_v10 = vpop.eup %5438  ;;  %4860 = vmatmul.mubr.f32.gmra.mxu0 %v3160_v40  ;;  %v3164_v42 = vmul.f32 %v5437_v58, %v7344_v46  ;;  %4899 = vmatprep.subr.bf16.mxu1 %v5146_v0  ;;  %v5148_v46 = vld [vmem:[#allocation7 + $0x18] sm:$0xff]   ;;  %v5005_v40 = vunpack.i.l.bf16 %v5004_v48 }
 0xc98   : > { %v3162_v57 = vmul.f32 %v5439_v10, %v7346_v36  ;;  %v5149_v36 = vld [vmem:[#allocation7 + $0x10] sm:$0xff]   ;;  %v7446_v5 = vpop.permute.xlu0 %5028  ;;  %v3567_v50 = vsel %vm3566_vm1, %v3550_v25, %v5015_v24  ;;  %v3568_v58 = vsel %vm3566_vm1, %v3551_v43, %v5016_v62  ;;  %v5020_v43 = vunpack.i.l.bf16 %v7442_v6 }
 0xc99   : > { %4870 = vmatpush3.bf16.msra.mxu0 %v5146_v0  ;;  %4907 = vmatpush3.bf16.msra.mxu1 %v5146_v0  ;;  %v5024_v22 = vpop.permute.xlu1 %5023  ;;  %v7948_v62 = vld [vmem:[#allocation30_spill] sm:$0xff]  ;;  %v5010_v6 = vunpack.i.l.bf16 %v7440_v39 }
 0xc9a   : > { %4862 = vmatprep.mubr.f32.mxu0 %v3162_v57  ;;  %4871 = vmatprep.subr.bf16.mxu0 %v5147_v32  ;;  %v5026_v10 = vunpack.i.h.bf16 %v5024_v22 }
 0xc9b   : > { %4863 = vmatmul.mubr.f32.gmra.mxu0 %v3164_v42  ;;  %4900 = vmatprep.subr.bf16.mxu1 %v5147_v32  ;;  %v5025_v42 = vunpack.i.l.bf16 %v5024_v22  ;;  %v5000_v22 = vunpack.i.l.bf16 %v7438_v2 }
 0xc9c   : > { %v7448_v9 = vpop.permute.xlu0 %5038 }
 0xc9d   : > { %4872 = vmatpush3.bf16.msra.mxu0 %v5147_v32  ;;  %4908 = vmatpush3.bf16.msra.mxu1 %v5147_v32  ;;  %v5034_v3 = vpop.permute.xlu1 %5033 }
 0xc9e   : > { %4873 = vmatprep.subr.bf16.mxu0 %v5148_v46  ;;  %4901 = vmatprep.subr.bf16.mxu1 %v5148_v46  ;;  %v5036_v0 = vunpack.i.h.bf16 %v5034_v3  ;;  %v5035_v32 = vunpack.i.l.bf16 %v5034_v3 }
 0xca0   : > { %v7456_v63 = vpop.permute.xlu0 %5048 }
 0xca1   : > { %4874 = vmatpush3.bf16.msra.mxu0 %v5148_v46  ;;  %4909 = vmatpush3.bf16.msra.mxu1 %v5148_v46  ;;  %v7444_v17 = vpop.permute.xlu1 %5043 }
 0xca2   : > { %4875 = vmatprep.subr.bf16.mxu0 %v5149_v36  ;;  %4902 = vmatprep.subr.bf16.mxu1 %v5149_v36 }
 0xca5   : > { %4876 = vmatpush3.bf16.msra.mxu0 %v5149_v36  ;;  %4910 = vmatpush3.bf16.msra.mxu1 %v5149_v36  ;;  %v5054_v47 = vpop.permute.xlu1 %5053  ;;  %v7943_v36 = vld [vmem:[#allocation49_spill] sm:$0xff] }
 0xca6   : > { %4877 = vmatprep.subr.bf16.mxu0 %v5150_v21  ;;  %4903 = vmatprep.subr.bf16.mxu1 %v5150_v21 }
 0xca9   : > { %4878 = vmatpush3.bf16.msra.mxu0 %v5150_v21  ;;  %4911 = vmatpush3.bf16.msra.mxu1 %v5150_v21  ;;  %v7450_v35 = vpop.permute.xlu1 %5063  ;;  %v3553_v21 = vsel %vm917_vm0, %v7943_v36, %v5006_v49 }
 0xcaa   : > { %4879 = vmatprep.subr.bf16.mxu0 %v5151_v41  ;;  %4904 = vmatprep.subr.bf16.mxu1 %v5151_v41 }
 0xcad   : > { %4880 = vmatpush3.bf16.msra.mxu0 %v5151_v41  ;;  %4912 = vmatpush3.bf16.msra.mxu1 %v5151_v41  ;;  %v7944_v41 = vld [vmem:[#allocation51_spill] sm:$0xff] }
 0xd3e   : > { %v4843_v13 = vpop.f32.mrf.mxu0 }
 0xd40   : > { %v3279_v29 = vpop.f32.mrf.mxu0 }
 0xd41   : > { %v5072_v54 = vpack.i.bf16 %v4843_v13, %v3279_v29  ;;  %v3552_v13 = vsel %vm917_vm0, %v7944_v41, %v5005_v40  ;;  %v7950_v40 = vld [vmem:[#allocation40_spill] sm:$0xff]  ;;  %v5041_v41 = vunpack.i.h.bf16 %v7448_v9 }
 0xd43   : > { %v4846_v34 = vpop.f32.mrf.mxu0  ;;  %5073 = vrot.lane.b32.xlu1 %v5072_v54, %s5616_s18 }
 0xd45   : > { %v3289_v14 = vpop.f32.mrf.mxu0 }
 0xd46   : > { %v5077_v18 = vpack.i.bf16 %v4846_v34, %v3289_v14  ;;  %v3569_v34 = vsel %vm3566_vm1, %v3552_v13, %v5025_v42  ;;  %v3570_v14 = vsel %vm3566_vm1, %v3553_v21, %v5026_v10  ;;  %v5011_v42 = vunpack.i.h.bf16 %v7440_v39 }
 0xd47   : > { %v4849_v61 = vpop.f32.mrf.mxu0  ;;  %v5040_v13 = vunpack.i.l.bf16 %v7448_v9 }
 0xd48   : > { %5078 = vrot.lane.b32.xlu1 %v5077_v18, %s5616_s18  ;;  %v5056_v18 = vunpack.i.h.bf16 %v5054_v47 }
 0xd49   : > { %v3299_v55 = vpop.f32.mrf.mxu0 }
 0xd4a   : > { %v5082_v15 = vpack.i.bf16 %v4849_v61, %v3299_v55  ;;  %v5055_v61 = vunpack.i.l.bf16 %v5054_v47  ;;  %v7468_v55 = vpop.permute.xlu0 %5058 }
 0xd4b   : > { %v4852_v16 = vpop.f32.mrf.mxu0 }
 0xd4c   : > { %5083 = vrot.lane.b32.xlu1 %v5082_v15, %s5616_s18 }
 0xd4d   : > { %v3309_v51 = vpop.f32.mrf.mxu0 }
 0xd4e   : > { %v5102_v53 = vpack.i.bf16 %v4852_v16, %v3309_v51  ;;  %v7945_v51 = vld [vmem:[#allocation12_spill] sm:$0xff]  ;;  %v7486_v3 = vpop.permute.xlu0 %5068 }
 0xd4f   : > { %v4855_v7 = vpop.f32.mrf.mxu0 }
 0xd50   : > { %5103 = vrot.lane.b32.xlu1 %v5102_v53, %s5616_s18  ;;  %v3555_v53 = vsel %vm917_vm0, %v7945_v51, %v5036_v0  ;;  %v5061_v51 = vunpack.i.h.bf16 %v7468_v55 }
 0xd51   : > { %v3319_v45 = vpop.f32.mrf.mxu0 }
 0xd52   : > { %v5087_v4 = vpack.i.bf16 %v4855_v7, %v3319_v45  ;;  %v7946_v7 = vld [vmem:[#allocation16_spill] sm:$0xff] }
 0xd53   : > { %v4858_v38 = vpop.f32.mrf.mxu0  ;;  %v3554_v45 = vsel %vm917_vm0, %v7946_v7, %v5035_v32  ;;  %v5031_v32 = vunpack.i.h.bf16 %v7446_v5 }
 0xd54   : > { %5088 = vrot.lane.b32.xlu0 %v5087_v4, %s5616_s18 }
 0xd55   : > { %v3329_v30 = vpop.f32.mrf.mxu0 }
 0xd56   : > { %v5092_v12 = vpack.i.bf16 %v4858_v38, %v3329_v30  ;;  %v5046_v30 = vunpack.i.h.bf16 %v7444_v17 }
 0xd57   : > { %v4861_v27 = vpop.f32.mrf.mxu0 }
 0xd58   : > { %5093 = vrot.lane.b32.xlu0 %v5092_v12, %s5616_s18  ;;  %v5045_v12 = vunpack.i.l.bf16 %v7444_v17  ;;  %v3557_v1 = vsel %vm917_vm0, %v7947_v60, %v5046_v30  ;;  %v7955_v60 = vld [vmem:[#allocation54_spill] sm:$0xff] }
 0xd59   : > { %v3339_v33 = vpop.f32.mrf.mxu0 }
 0xd5a   : > { %v5097_v44 = vpack.i.bf16 %v4861_v27, %v3339_v33  ;;  %v3556_v24 = vsel %vm917_vm0, %v7948_v62, %v5045_v12 }
 0xd5b   : > { %v4864_v56 = vpop.f32.mrf.mxu0 }
 0xd5c   : > { %5098 = vrot.lane.b32.xlu0 %v5097_v44, %s5616_s18  ;;  %v3571_v44 = vsel %vm3566_vm1, %v3554_v45, %v5055_v61  ;;  %v7953_v45 = vld [vmem:[#allocation34_spill] sm:$0xff] }
 0xd5d   : > { %v3349_v31 = vpop.f32.mrf.mxu0 }
 0xd5e   : > { %v5107_v52 = vpack.i.bf16 %v4864_v56, %v3349_v31  ;;  %v3572_v56 = vsel %vm3566_vm1, %v3555_v53, %v5056_v18  ;;  %v5066_v31 = vunpack.i.h.bf16 %v7450_v35  ;;  %v5060_v53 = vunpack.i.l.bf16 %v7468_v55 }
 0xd60   : > { %5108 = vrot.lane.b32.xlu0 %v5107_v52, %s5616_s18  ;;  %v5065_v52 = vunpack.i.l.bf16 %v7450_v35  ;;  %v3574_v2 = vsel %vm3566_vm1, %v3557_v1, %v5066_v31  ;;  %v7956_v1 = vld [vmem:[#allocation55_spill] sm:$0xff]  ;;  %s5540_s18 = sshll.u32 %s5619_s17, 4  ;;  %s5541_s18 = int_to_ptr.vmem [resolvable:$false] %s5540_s18 }
 0xd61   : > { %s5542_s19 = scalar_lea.vmem %s5541_s18, 4096  ;;  %p5543_p6 = scmp.lt.s32.totalorder %s7603_s10, %s5541_s18 }
 0xd62   : > { %v3573_v19 = vsel %vm3566_vm1, %v3556_v24, %v5065_v52  ;;  %p5544_p12 = scmp.lt.s32.totalorder %s5542_s19, %s5536_s15 }
 0xd64   : > { %p5545_p3 = por %p5544_p12, %p5543_p6 }
 0xd66   : > { %p5546_p9 = pnand %p5545_p3, %p5539_p2 }
 0xdb5   : > { %v5074_v11 = vpop.permute.xlu1 %5073 }
 0xdb6   : > { %v5076_v28 = vunpack.i.h.bf16 %v5074_v11  ;;  %v5075_v26 = vunpack.i.l.bf16 %v5074_v11 }
 0xdb8   : > { %v3584_v57 = vsel %vm3583_vm2, %v3567_v50, %v5075_v26  ;;  %v3585_v37 = vsel %vm3583_vm2, %v3568_v58, %v5076_v28  ;;  %v7949_v26 = vld [vmem:[#allocation37_spill] sm:$0xff]  ;;  %v3558_v50 = vsel %vm917_vm0, %v7950_v40, %v5000_v22 }
 0xdb9   : > { %v3600_v59 = vpack.c.bf16 %v3585_v37, %v3584_v57  ;;  %v3559_v49 = vsel %vm917_vm0, %v7949_v26, %v5001_v23  ;;  %v3575_v0 = vsel %vm3566_vm1, %v3558_v50, %v5020_v43 }
 0xdba   : > { %v5079_v46 = vpop.permute.xlu1 %5078 }
 0xdbb   : > { %v5081_v29 = vunpack.i.h.bf16 %v5079_v46  ;;  %v5080_v54 = vunpack.i.l.bf16 %v5079_v46  ;;  %4881 = vmatprep.mubr.bf16.mxu0 %v3600_v59  ;;  %v3576_v59 = vsel %vm3566_vm1, %v3559_v49, %v5021_v20  ;;  %v5030_v46 = vunpack.i.l.bf16 %v7446_v5  ;;  %v5440_v49 = vld [vmem:[%s5790_s8 + $0x10] sm:$0xff] }
 0xdbd   : > { %v3587_v15 = vsel %vm3583_vm2, %v3570_v14, %v5081_v29  ;;  %v3586_v16 = vsel %vm3583_vm2, %v3569_v34, %v5080_v54  ;;  %v7951_v54 = vld [vmem:[#allocation43_spill] sm:$0xff]  ;;  %v7952_v14 = vld [vmem:[#allocation46_spill] sm:$0xff] }
 0xdbe   : > { %v3601_v4 = vpack.c.bf16 %v3587_v15, %v3586_v16  ;;  %v5084_v38 = vpop.permute.xlu1 %5083  ;;  %v3561_v34 = vsel %vm917_vm0, %v7951_v54, %v5011_v42  ;;  %v3560_v18 = vsel %vm917_vm0, %v7952_v14, %v5010_v6 }
 0xdbf   : > { %v5086_v27 = vunpack.i.h.bf16 %v5084_v38  ;;  %v5085_v33 = vunpack.i.l.bf16 %v5084_v38  ;;  %v3577_v5 = vsel %vm3566_vm1, %v3560_v18, %v5030_v46  ;;  %v3578_v16 = vsel %vm3566_vm1, %v3561_v34, %v5031_v32  ;;  %v7954_v38 = vld [vmem:[#allocation53_spill] sm:$0xff]  ;;  %v5445_v34 = vld [vmem:[%s5790_s8 + $0x20] sm:$0xff] }
 0xdc0   : > { %4882 = vmatmul.mubr.bf16.vlgmr.msra.gmra.mxu0 %v3601_v4  ;;  %v3563_v4 = vsel %vm917_vm0, %v7953_v45, %v5041_v41  ;;  %v3562_v30 = vsel %vm917_vm0, %v7954_v38, %v5040_v13  ;;  %v5443_v46 = vld [vmem:[%s5790_s8 + $0x8] sm:$0xff]  ;;  %v5444_v13 = vld [vmem:[%s5790_s8 + $0x30] sm:$0xff] }
 0xdc1   : > { %v3588_v48 = vsel %vm3583_vm2, %v3571_v44, %v5085_v33  ;;  %v3589_v8 = vsel %vm3583_vm2, %v3572_v56, %v5086_v27  ;;  %v5051_v33 = vunpack.i.h.bf16 %v7456_v63  ;;  %v5050_v44 = vunpack.i.l.bf16 %v7456_v63 }
 0xdc2   : > { %v5104_v17 = vpop.permute.xlu1 %5103  ;;  %v3602_v47 = vpack.c.bf16 %v3589_v8, %v3588_v48  ;;  %v3579_v55 = vsel %vm3566_vm1, %v3562_v30, %v5060_v53  ;;  %v3580_v52 = vsel %vm3566_vm1, %v3563_v4, %v5061_v51  ;;  %v5071_v48 = vunpack.i.h.bf16 %v7486_v3  ;;  %v5447_v53 = vld [vmem:[%s5790_s8 + $0x28] sm:$0xff]  ;;  %v5448_v4 = vld [vmem:[%s5790_s8 + $0x50] sm:$0xff] }
 0xdc3   : > { %v5106_v35 = vunpack.i.h.bf16 %v5104_v17  ;;  %v5105_v11 = vunpack.i.l.bf16 %v5104_v17  ;;  %v5070_v8 = vunpack.i.l.bf16 %v7486_v3  ;;  %v3565_v63 = vsel %vm917_vm0, %v7955_v60, %v5051_v33 }
 0xdc4   : > { %4885 = vmatprep.mubr.bf16.mxu0 %v3602_v47  ;;  %v3564_v62 = vsel %vm917_vm0, %v7956_v1, %v5050_v44  ;;  %v3582_v3 = vsel %vm3566_vm1, %v3565_v63, %v5071_v48 }
 0xdc5   : > { %v3590_v25 = vsel %vm3583_vm2, %v3573_v19, %v5105_v11  ;;  %v3591_v28 = vsel %vm3583_vm2, %v3574_v2, %v5106_v35  ;;  %v3581_v11 = vsel %vm3566_vm1, %v3564_v62, %v5070_v8  ;;  %v7545_v2 = vld [vmem:[%s7654_s5] ss:$0 sm:$0xff]  ;;  %v5451_v8 = vld [vmem:[%s5790_s8 + $0x48] sm:$0xff] }
 0xdc6   : > { %v5089_v58 = vpop.permute.xlu0 %5088  ;;  %v3603_v10 = vpack.c.bf16 %v3591_v28, %v3590_v25  ;;  %v5453_v62 = vld [vmem:[%s5790_s8 + $0x60] sm:$0xff] }
 0xdc7   : > { %v5091_v57 = vunpack.i.h.bf16 %v5089_v58  ;;  %v5090_v37 = vunpack.i.l.bf16 %v5089_v58 }
 0xdc8   : > { %4886 = vmatmul.mubr.bf16.gmra.mxu0 %v3603_v10  ;;  %v5441_v10 = vld [vmem:[%s5790_s8] sm:$0xff] }
 0xdc9   : > { %v3592_v36 = vsel %vm3583_vm2, %v3575_v0, %v5090_v37  ;;  %v3593_v21 = vsel %vm3583_vm2, %v3576_v59, %v5091_v57  ;;  %v5442_v37 = vld [vmem:[%s5790_s8 + $0x18] sm:$0xff] }
 0xdca   : > { %v5094_v39 = vpop.permute.xlu0 %5093  ;;  %v3604_v29 = vpack.c.bf16 %v3593_v21, %v3592_v36 }
 0xdcb   : > { %v5096_v61 = vunpack.i.h.bf16 %v5094_v39  ;;  %v5095_v15 = vunpack.i.l.bf16 %v5094_v39 }
 0xdcc   : > { %4889 = vmatprep.mubr.bf16.mxu1 %v3604_v29 }
 0xdcd   : > { %v3594_v9 = vsel %vm3583_vm2, %v3577_v5, %v5095_v15  ;;  %v3595_v7 = vsel %vm3583_vm2, %v3578_v16, %v5096_v61  ;;  %v5446_v15 = vld [vmem:[%s5790_s8 + $0x38] sm:$0xff] }
 0xdce   : > { %v3605_v12 = vpack.c.bf16 %v3595_v7, %v3594_v9  ;;  %v5099_v27 = vpop.permute.xlu0 %5098 }
 0xdcf   : > { %v5101_v56 = vunpack.i.h.bf16 %v5099_v27  ;;  %v5100_v31 = vunpack.i.l.bf16 %v5099_v27  ;;  %v5449_v27 = vld [vmem:[%s5790_s8 + $0x40] sm:$0xff] }
 0xdd0   : > { %4890 = vmatmul.mubr.bf16.vlgmr.msra.gmra.mxu1 %v3605_v12 }
 0xdd1   : > { %v3596_v23 = vsel %vm3583_vm2, %v3579_v55, %v5100_v31  ;;  %v3597_v22 = vsel %vm3583_vm2, %v3580_v52, %v5101_v56  ;;  %v5450_v31 = vld [vmem:[%s5790_s8 + $0x58] sm:$0xff] }
 0xdd2   : > { %v5109_v17 = vpop.permute.xlu0 %5108  ;;  %v3606_v47 = vpack.c.bf16 %v3597_v22, %v3596_v23 }
 0xdd3   : > { %v5111_v24 = vunpack.i.h.bf16 %v5109_v17  ;;  %v5110_v35 = vunpack.i.l.bf16 %v5109_v17 }
 0xdd4   : > { %4893 = vmatprep.mubr.bf16.mxu1 %v3606_v47  ;;  %v5452_v47 = vld [vmem:[%s5790_s8 + $0x70] sm:$0xff] }
 0xdd5   : > { %v3598_v20 = vsel %vm3583_vm2, %v3581_v11, %v5110_v35  ;;  %v3599_v43 = vsel %vm3583_vm2, %v3582_v3, %v5111_v24  ;;  %v5454_v3 = vld [vmem:[%s5790_s8 + $0x78] sm:$0xff] }
 0xdd6   : > { %v3607_v19 = vpack.c.bf16 %v3599_v43, %v3598_v20 }
 0xdd8   : > { %4894 = vmatmul.mubr.bf16.gmra.mxu1 %v3607_v19  ;;  %v5455_v19 = vld [vmem:[%s5790_s8 + $0x68] sm:$0xff] }
 0xe80   : > { %v4883_v25 = vpop.f32.mrf.mxu0 }
 0xe81   : > { %v3722_v28 = vadd.f32 %v4883_v25, %v7545_v2 }
 0xe82   : > { %v3713_v26 = vpop.f32.mrf.mxu0 }
 0xe83   : > { %v3778_v40 = vadd.f32 %v5440_v49, %v3722_v28  ;;  %v3714_v50 = vadd.f32 %v7545_v2, %v3713_v26 }
 0xe84   : > { %v4884_v58 = vpop.f32.mrf.mxu0 }
 0xe85   : > { %3794 = vst [vmem:[%s7552_s20 + $0x10] sm:$0xff] %v3778_v40  ;;  %v3776_v42 = vadd.f32 %v5441_v10, %v3714_v50  ;;  %v3725_v6 = vadd.f32 %v4884_v58, %v7545_v2 }
 0xe86   : > { %v3716_v57 = vpop.f32.mrf.mxu0 }
 0xe87   : > { %3792 = vst [vmem:[%s7552_s20] sm:$0xff] %v3776_v42  ;;  %v3779_v59 = vadd.f32 %v5442_v37, %v3725_v6  ;;  %v3717_v0 = vadd.f32 %v7545_v2, %v3716_v57 }
 0xe88   : > { %v4887_v32 = vpop.f32.mrf.mxu0 }
 0xe89   : > { %3795 = vst [vmem:[%s7552_s20 + $0x18] sm:$0xff] %v3779_v59  ;;  %v3777_v36 = vadd.f32 %v5443_v46, %v3717_v0  ;;  %v3738_v21 = vadd.f32 %v4887_v32, %v7545_v2 }
 0xe8a   : > { %v3729_v41 = vpop.f32.mrf.mxu0 }
 0xe8b   : > { %3793 = vst [vmem:[%s7552_s20 + $0x8] sm:$0xff] %v3777_v36  ;;  %v3782_v39 = vadd.f32 %v5444_v13, %v3738_v21  ;;  %v3730_v29 = vadd.f32 %v7545_v2, %v3729_v41 }
 0xe8c   : > { %v4888_v54 = vpop.f32.mrf.mxu0 }
 0xe8d   : > { %3798 = vst [vmem:[%s7552_s20 + $0x30] sm:$0xff] %v3782_v39  ;;  %v3780_v14 = vadd.f32 %v5445_v34, %v3730_v29  ;;  %v3741_v18 = vadd.f32 %v4888_v54, %v7545_v2 }
 0xe8e   : > { %v3732_v61 = vpop.f32.mrf.mxu0 }
 0xe8f   : > { %3796 = vst [vmem:[%s7552_s20 + $0x20] sm:$0xff] %v3780_v14  ;;  %v3783_v5 = vadd.f32 %v5446_v15, %v3741_v18  ;;  %v3733_v16 = vadd.f32 %v7545_v2, %v3732_v61 }
 0xe90   : > { %v4891_v51 = vpop.f32.mrf.mxu1 }
 0xe91   : > { %3799 = vst [vmem:[%s7552_s20 + $0x38] sm:$0xff] %v3783_v5  ;;  %v3781_v9 = vadd.f32 %v5447_v53, %v3733_v16  ;;  %v3754_v7 = vadd.f32 %v4891_v51, %v7545_v2 }
 0xe92   : > { %v3745_v45 = vpop.f32.mrf.mxu1 }
 0xe93   : > { %3797 = vst [vmem:[%s7552_s20 + $0x28] sm:$0xff] %v3781_v9  ;;  %v3786_v38 = vadd.f32 %v5448_v4, %v3754_v7  ;;  %v3746_v30 = vadd.f32 %v7545_v2, %v3745_v45 }
 0xe94   : > { %v4892_v12 = vpop.f32.mrf.mxu1 }
 0xe95   : > { %3802 = vst [vmem:[%s7552_s20 + $0x50] sm:$0xff] %v3786_v38  ;;  %v3784_v33 = vadd.f32 %v5449_v27, %v3746_v30  ;;  %v3757_v44 = vadd.f32 %v4892_v12, %v7545_v2 }
 0xe96   : > { %v3748_v56 = vpop.f32.mrf.mxu1 }
 0xe97   : > { %3800 = vst [vmem:[%s7552_s20 + $0x40] sm:$0xff] %v3784_v33  ;;  %v3787_v55 = vadd.f32 %v5450_v31, %v3757_v44  ;;  %v3749_v52 = vadd.f32 %v7545_v2, %v3748_v56 }
 0xe98   : > { %v4895_v48 = vpop.f32.mrf.mxu1 }
 0xe99   : > { %3803 = vst [vmem:[%s7552_s20 + $0x58] sm:$0xff] %v3787_v55  ;;  %v3785_v23 = vadd.f32 %v5451_v8, %v3749_v52  ;;  %v3770_v22 = vadd.f32 %v4895_v48, %v7545_v2 }
 0xe9a   : > { %v3761_v17 = vpop.f32.mrf.mxu1 }
 0xe9b   : > { %3801 = vst [vmem:[%s7552_s20 + $0x48] sm:$0xff] %v3785_v23  ;;  %v3790_v60 = vadd.f32 %v5452_v47, %v3770_v22  ;;  %v3762_v63 = vadd.f32 %v7545_v2, %v3761_v17 }
 0xe9c   : > { %v4896_v1 = vpop.f32.mrf.mxu1 }
 0xe9d   : > { %3806 = vst [vmem:[%s7552_s20 + $0x70] sm:$0xff] %v3790_v60  ;;  %v3788_v24 = vadd.f32 %v5453_v62, %v3762_v63  ;;  %v3773_v35 = vadd.f32 %v4896_v1, %v7545_v2 }
 0xe9e   : > { %v3764_v11 = vpop.f32.mrf.mxu1 }
 0xe9f   : > { %3804 = vst [vmem:[%s7552_s20 + $0x60] sm:$0xff] %v3788_v24  ;;  %v3791_v20 = vadd.f32 %v5454_v3, %v3773_v35  ;;  %v3765_v43 = vadd.f32 %v7545_v2, %v3764_v11 }
 0xea1   : > { %3807 = vst [vmem:[%s7552_s20 + $0x78] sm:$0xff] %v3791_v20  ;;  %v3789_v25 = vadd.f32 %v5455_v19, %v3765_v43 }
 0xea3   : > { %3805 = vst [vmem:[%s7552_s20 + $0x68] sm:$0xff] %v3789_v25 }
 0xea4   : > { %5549 = shalt.err (!%p5546_p9)
}
 0xea5   : > { %s5550_s8 = scalar_lea.hbm %s7601_s29, 2048  ;;  %s5554_s30 = scalar_lea.hbm %s7655_s6, 4096 }
 0xea6   : > { %p5551_p13 = scmp.ne.s32.totalorder %s7601_s29, %s5550_s8  ;;  %p5555_p4 = scmp.lt.s32.totalorder %s7601_s29, %s7655_s6 }
 0xea7   : > { %p5556_p8 = scmp.lt.s32.totalorder %s5554_s30, %s5550_s8 }
 0xea8   : > { %p5552_p5 = pnand %p5551_p13, %p7957_p10 }
 0xea9   : > { %p5557_p7 = por %p5556_p8, %p5555_p4 }
 0xeaa   : > { %p5553_p0 = pneg %p5552_p5 }
 0xeac   : > { %p5558_p11 = pnand %p5557_p7, %p5553_p0 }
 0xeae   : > { %5561 = shalt.err (!%p5558_p11)
}
 0xeaf   : > { %s5620_s13 = smov 128   ;;  %s5621_s27 = smov 8  }
 0xeb0   : > { %4923 = dma.vmem_to_hbm [thread:$0]  (%p7957_p10), %s7603_s10, 2048, %s7601_s29, %s3809_s25, %s5620_s13, %s5620_s13, %s5621_s27  }
 0xeb1 PF: > { %s3837_s15 = sand.u32 1, %s5592_s21   ;;  %p7958_p1 = scmp.ne.s32.totalorder %s7756_s28, 0 }
 0xeb2   : > { %p7959_p2 = scmp.ge.s32.totalorder %s5604_s24, 2  ;;  %s3838_s17 = scalar_lea.sflag [#allocation4], %s3837_s15 }
 0xeb4   : > { %p4937_p6 = pnand %p7959_p2, %p7958_p1 }
 0xeb6   : > { %p4938_p12 = pneg %p4937_p6 }
 0xeb8   : > { %5587 = dma.done.wait (%p4938_p12), %s3838_s17, 2048  }
 0xeb9   : > { %5589 = vsyncadd (%p4938_p12), %s3838_s17, 4294965248  ;;  %p20_p3 = scmp.ge.s32.totalorder %s5729_s26, 4   ;;  %s7960_s21 = smov %s5596_s22 }
 0xeba   : > { %s7961_s22 = smov %s5600_s23  ;;  %s7962_s23 = smov %s5738_s9 }
 0xebb   : > { %s7963_s24 = smov %s5729_s26  ;;  %22 = sbr.rel (!%p20_p3) target bundleno = 6 (0x6), region = 97 }
 0xec0   :  { %3843 = vsyncpa [#allocation3], 1 }
 0xec1   :  { %3845 = vsyncpa [#allocation3 + $0x1], 1 }
 0xec2   :  { %3846 = vsyncpa [#allocation6], 1 }
 0xec3   :  { %3847 = vsyncpa [#allocation4], 1 }
 0xec4   :  { %3849 = vsyncpa [#allocation4 + $0x1], 1 }

</bundles_post_ra>
